<compile_context>
chip_gen: v7x
topology: tpu7x:2x2x1
jax: 0.10.0
libtpu: 0.0.40
codegen_flags: <defaults>
</compile_context>

<pallas_src>
import functools
import numpy as np
import jax
import jax.numpy as jnp
from jax.experimental import pallas as pl
from jax.experimental.pallas import tpu as pltpu

EPS = 1e-6
APPROX_RECIP = True      # exact-parity flag: set False for tighter numerics

# ----------------------------------------------------------------------------
# Model config (downscaled MSM3D: 2 encoder stages / 2 decoder stages)
# ----------------------------------------------------------------------------
IN_CH, OUT_CH = 6, 8
CHANNELS = (16, 32)
NUM_HEADS = (2, 4)
WINDOW = 32
DEC_CHANNELS = (32, 16)
DEC_NUM_HEADS = (4, 2)
MLP_SCALE = 4

_VMEM_LIMIT = 32 << 20   # <= 48 MiB budget recommended for v7x (64 MiB VMEM)


# ----------------------------------------------------------------------------
# In-kernel helpers
# ----------------------------------------------------------------------------
def _rms(x, g):
    return x * jax.lax.rsqrt(jnp.mean(x * x, axis=-1, keepdims=True) + EPS) * g


def _bf(x):
    return x.astype(jnp.bfloat16)


def _recip(x):
    if APPROX_RECIP:
        return pl.reciprocal(x, approx=True)
    return 1.0 / x


def _resformer(x, mask, rp_refs, heads):
    """transformer++ block on one window: x + MHA(RMS(x)); h + SwiGLU(RMS(h))."""
    g1, wq, wk, wv, wo, g2, wg, wu, wd = (r[...] for r in rp_refs)
    W, C = x.shape
    dh = C // heads

    xn = _bf(_rms(x, g1))
    q = _bf(jnp.dot(xn, wq, preferred_element_type=jnp.float32))  # wq pre-scaled 1/sqrt(dh)
    k = _bf(jnp.dot(xn, wk, preferred_element_type=jnp.float32))
    v = _bf(jnp.dot(xn, wv, preferred_element_type=jnp.float32))

    mask_full = jnp.broadcast_to(mask, (W, W))   # hoisted: one broadcast total
    head_outs = []
    for hh in range(heads):                      # static unroll (2 or 4 heads)
        sl = slice(hh * dh, (hh + 1) * dh)
        s = jax.lax.dot_general(q[:, sl], k[:, sl], (((1,), (1,)), ((), ())),
                                preferred_element_type=jnp.float32)   # [W, W]
        s = s + mask_full
        s = s - jnp.max(s, axis=-1, keepdims=True)
        p = jnp.exp(s)
        p = p * _recip(jnp.sum(p, axis=-1, keepdims=True))
        head_outs.append(jnp.dot(_bf(p), v[:, sl],
                                 preferred_element_type=jnp.float32))
    o = jnp.concatenate(head_outs, axis=-1)                          # [W, C]
    attn = jnp.dot(_bf(o), wo, preferred_element_type=jnp.float32)   # ONE K=C matmul

    hid = x + attn
    hn = _bf(_rms(hid, g2))
    gate = jnp.dot(hn, wg, preferred_element_type=jnp.float32)
    up = jnp.dot(hn, wu, preferred_element_type=jnp.float32)
    mlp = jnp.dot(_bf(jax.nn.silu(gate) * up), wd,
                  preferred_element_type=jnp.float32)
    return hid + mlp


# ----------------------------------------------------------------------------
# Fused stage kernels (one pallas_call each, grid=(B,) over windows)
# ----------------------------------------------------------------------------
def enc_stage0_kernel(x_ref, mask_ref, wi_ref, bi_ref, gi_ref, *rest, heads):
    # init Linear + RMSNorm + encoder-stage-0 ResFormer, fused.
    rp, o_ref = rest[:9], rest[9]
    x = jnp.dot(_bf(x_ref[0]), wi_ref[...],
                preferred_element_type=jnp.float32) + bi_ref[...]
    x = _rms(x, gi_ref[...])
    # TODO(synk): resnet_enc[0] (submanifold sparse-conv ResNet) -> identity
    o_ref[0] = _resformer(x, mask_ref[0], rp, heads)


def down_dec0_kernel(x_ref, ohe_ref, pool_ref, mask_ref,
                     rep_ref, wd_ref, bd_ref, gd_ref, *rest,
                     heads_enc, heads_dec):
    # stride-2 sparse conv (octant matmul + pooling matmul) + bias + RMSNorm
    # + encoder-stage-1 ResFormer + decoder_init_norm + decoder-stage-0
    # ResFormer, all fused (activations never leave VMEM).
    enc_rp = rest[0:9]
    gdec_ref = rest[9]
    dec_rp = rest[10:19]
    o_ref = rest[19]
    mask = mask_ref[0]

    x_rep = jnp.dot(_bf(x_ref[0]), rep_ref[...],
                    preferred_element_type=jnp.float32)      # [W, 8*C0] replicate
    x_oct = x_rep * ohe_ref[0]                               # single lane-dense mul
    proj = jnp.dot(_bf(x_oct), wd_ref[...],
                   preferred_element_type=jnp.float32)       # [W, C1]
    pooled = jnp.dot(pool_ref[0], _bf(proj),
                     preferred_element_type=jnp.float32)     # parent <- child sum
    x = _rms(pooled + bd_ref[...], gd_ref[...])
    # TODO(synk): resnet_enc[1] -> identity
    x = _resformer(x, mask, enc_rp, heads_enc)               # encoder stage 1
    x = _rms(x, gdec_ref[...])                               # decoder_init_norm
    # TODO(synk): resnet_dec[0] -> identity
    o_ref[0] = _resformer(x, mask, dec_rp, heads_dec)        # decoder stage 0


def up_dec1_kernel(x_ref, unpool_ref, ohe_ref, skip_ref, mask_ref,
                   rep_ref, gu_ref, wup_ref, bu_ref,
                   gs_ref, ws_ref, bs_ref, gamma_ref, *rest, heads):
    # up: RMSNorm -> inverse conv (transposed pool matmul gather + octant
    # matmul) + bias; skip: RMSNorm -> Linear + bias, gamma residual; then
    # decoder-stage-1 ResFormer and the final_stem Linear, all fused.
    rp = rest[0:9]
    wf_ref, bfin_ref = rest[9], rest[10]
    oatt_ref, ofin_ref = rest[11], rest[12]

    xn = _rms(x_ref[0], gu_ref[...])
    parent = jnp.dot(unpool_ref[0], _bf(xn),
                     preferred_element_type=jnp.float32)     # child <- its parent
    p_rep = jnp.dot(_bf(parent), rep_ref[...],
                    preferred_element_type=jnp.float32)      # [W, 8*C1]
    x_oct = p_rep * ohe_ref[0]
    y = jnp.dot(_bf(x_oct), wup_ref[...],
                preferred_element_type=jnp.float32) + bu_ref[...]

    sn = _rms(skip_ref[0], gs_ref[...])
    s = jnp.dot(_bf(sn), ws_ref[...],
                preferred_element_type=jnp.float32) + bs_ref[...]
    x = y + gamma_ref[...] * s
    # TODO(synk): resnet_dec[1] -> identity
    x = _resformer(x, mask_ref[0], rp, heads)
    oatt_ref[0] = x
    ofin_ref[0] = jnp.dot(_bf(x), wf_ref[...],
                          preferred_element_type=jnp.float32) + bfin_ref[...]


# ----------------------------------------------------------------------------
# pallas_call wrapper: batch-blocked args + whole-array shared (weight) args
# ----------------------------------------------------------------------------
def _batch_block(shape):
    zeros = (0,) * (len(shape) - 1)
    return pl.BlockSpec((1,) + tuple(shape[1:]), lambda b, z=zeros: (b,) + z)


def _shared_block(shape):
    zeros = (0,) * len(shape)
    return pl.BlockSpec(tuple(shape), lambda b, z=zeros: z)


def _stage_call(kernel, batch_args, shared_args, out_shapes):
    B = batch_args[0].shape[0]
    in_specs = ([_batch_block(a.shape) for a in batch_args]
                + [_shared_block(a.shape) for a in shared_args])
    out_specs = tuple(_batch_block(s) for s in out_shapes)
    out_shape = tuple(jax.ShapeDtypeStruct(s, jnp.float32) for s in out_shapes)
    if len(out_shapes) == 1:
        out_specs, out_shape = out_specs[0], out_shape[0]
    return pl.pallas_call(
        kernel,
        grid=(B,),
        in_specs=in_specs,
        out_specs=out_specs,
        out_shape=out_shape,
        compiler_params=pltpu.CompilerParams(
            dimension_semantics=("parallel",),
            vmem_limit_bytes=_VMEM_LIMIT),
    )(*batch_args, *shared_args)


# ----------------------------------------------------------------------------
# Host precompute (once): z-order window packing, pooling matrices, octant
# one-hots — everything downstream is pure device ops under one jit.
# ----------------------------------------------------------------------------
def offset2batch(offset):
    offset = np.asarray(offset)
    counts = np.diff(np.concatenate([[0], offset]))
    return np.repeat(np.arange(len(offset)), counts).astype(np.int32)


def zorder_key(coords):
    c = np.asarray(coords).astype(np.uint64)
    key = np.zeros(c.shape[0], dtype=np.uint64)
    for bit in range(10):
        for axis in range(3):
            key |= ((c[:, axis] >> np.uint64(bit)) & np.uint64(1)) << np.uint64(3 * bit + axis)
    return key


def build_window_packing(coords, batch_ids, num_batches, W):
    coords = np.asarray(coords)
    batch_ids = np.asarray(batch_ids)
    N = coords.shape[0]
    key = zorder_key(coords)
    gather_idx = np.zeros((num_batches, W), dtype=np.int32)   # pad -> row 0 (masked)
    valid = np.zeros((num_batches, W), dtype=np.float32)
    inv_idx = np.zeros((N,), dtype=np.int32)
    for b in range(num_batches):
        ids = np.where(batch_ids == b)[0]
        ids = ids[np.argsort(key[ids], kind='stable')]
        assert len(ids) <= W, "one window per batch assumed at this problem size"
        gather_idx[b, :len(ids)] = ids
        valid[b, :len(ids)] = 1.0
        inv_idx[ids] = b * W + np.arange(len(ids))
    mask = np.where(valid[:, None, :] > 0, 0.0, -1e9).astype(np.float32)
    return dict(B=num_batches, W=W,
                gather=jnp.asarray(gather_idx.reshape(-1)),
                valid=jnp.asarray(valid[..., None]),   # [B, W, 1]
                mask=jnp.asarray(mask),                # [B, 1, W]
                inv=jnp.asarray(inv_idx),              # [N]
                inv_np=inv_idx)


def build_precompute(coords, offset):
    coords = np.asarray(coords)
    batch_ids = offset2batch(offset)
    B = int(batch_ids[-1]) + 1
    W = WINDOW
    C0, C1 = CHANNELS

    pack0 = build_window_packing(coords, batch_ids, B, W)

    parent = coords // 2
    octant = (coords % 2) @ np.array([4, 2, 1])
    key = ((batch_ids.astype(np.int64) << 48)
           | (parent[:, 0].astype(np.int64) << 32)
           | (parent[:, 1].astype(np.int64) << 16)
           | parent[:, 2].astype(np.int64))
    _, first_idx, child2parent = np.unique(key, return_index=True, return_inverse=True)
    child2parent = np.asarray(child2parent).reshape(-1)
    parent_coords = parent[first_idx].astype(np.int32)
    parent_batch = batch_ids[first_idx].astype(np.int32)
    pack1 = build_window_packing(parent_coords, parent_batch, B, W)

    # pooling matrix + lane-expanded octant one-hots in WINDOW coordinates
    pool_mat = np.zeros((B, W, W), np.float32)     # [parent_slot, child_slot]
    oh_exp0 = np.zeros((B, W, 8 * C0), np.float32)
    oh_exp1 = np.zeros((B, W, 8 * C1), np.float32)
    inv0, inv1 = pack0['inv_np'], pack1['inv_np']
    for i in range(coords.shape[0]):
        b, cslot = divmod(int(inv0[i]), W)
        pb, pslot = divmod(int(inv1[child2parent[i]]), W)
        assert pb == b
        pool_mat[b, pslot, cslot] = 1.0
        o = int(octant[i])
        oh_exp0[b, cslot, o * C0:(o + 1) * C0] = 1.0
        oh_exp1[b, cslot, o * C1:(o + 1) * C1] = 1.0

    # constant lane-replication matrices for the octant expansion (MXU matmul)
    rep0 = np.tile(np.eye(C0, dtype=np.float32), (1, 8))   # [C0, 8*C0]
    rep1 = np.tile(np.eye(C1, dtype=np.float32), (1, 8))   # [C1, 8*C1]

    return dict(pack0=pack0, pack1=pack1,
                pool_mat=jnp.asarray(pool_mat, jnp.bfloat16),
                unpool_mat=jnp.asarray(pool_mat.transpose(0, 2, 1), jnp.bfloat16),
                oh_exp0=jnp.asarray(oh_exp0),
                oh_exp1=jnp.asarray(oh_exp1),
                rep0=jnp.asarray(rep0, jnp.bfloat16),
                rep1=jnp.asarray(rep1, jnp.bfloat16),
                num_parents=int(first_idx.shape[0]))


# ----------------------------------------------------------------------------
# Parameters (deterministic synthetic). Matmul weights stored in bf16;
# wq pre-scaled by 1/sqrt(dh); octant conv weights pre-flattened (8*Cin, Cout).
# ----------------------------------------------------------------------------
def _init_params():
    kit = iter(jax.random.split(jax.random.PRNGKey(42), 64))

    def dense(shape, scale=0.05):
        return (scale * jax.random.normal(next(kit), shape)).astype(jnp.float32)

    def w16(x):
        return x.astype(jnp.bfloat16)

    def resformer(C, heads):
        H = MLP_SCALE * C
        qscale = 1.0 / float(np.sqrt(C // heads))
        return dict(g1=jnp.ones((1, C), jnp.float32),
                    wq=w16(dense((C, C)) * qscale),
                    wk=w16(dense((C, C))), wv=w16(dense((C, C))), wo=w16(dense((C, C))),
                    g2=jnp.ones((1, C), jnp.float32),
                    wg=w16(dense((C, H))), wu=w16(dense((C, H))), wd=w16(dense((H, C))),
                    heads=heads)

    p = {}
    p['init'] = dict(w=w16(dense((IN_CH, CHANNELS[0]))), b=dense((1, CHANNELS[0])),
                     g=jnp.ones((1, CHANNELS[0]), jnp.float32))
    p['enc_att'] = [resformer(CHANNELS[0], NUM_HEADS[0]),
                    resformer(CHANNELS[1], NUM_HEADS[1])]
    p['down'] = [dict(
        w=w16(dense((8, CHANNELS[0], CHANNELS[1])).reshape(8 * CHANNELS[0], CHANNELS[1])),
        b=dense((1, CHANNELS[1])),
        g=jnp.ones((1, CHANNELS[1]), jnp.float32))]
    p['dec_init_norm'] = jnp.ones((1, DEC_CHANNELS[0]), jnp.float32)
    p['dec_att'] = [resformer(DEC_CHANNELS[0], DEC_NUM_HEADS[0]),
                    resformer(DEC_CHANNELS[1], DEC_NUM_HEADS[1])]
    p['up'] = [dict(
        g=jnp.ones((1, DEC_CHANNELS[0]), jnp.float32),
        w=w16(dense((8, DEC_CHANNELS[0], DEC_CHANNELS[1])).reshape(
            8 * DEC_CHANNELS[0], DEC_CHANNELS[1])),
        b=dense((1, DEC_CHANNELS[1])))]
    p['skip_lin'] = [dict(g=jnp.ones((1, CHANNELS[0]), jnp.float32),
                          w=w16(dense((CHANNELS[0], DEC_CHANNELS[1]))),
                          b=dense((1, DEC_CHANNELS[1])))]
    p['skip_gamma'] = [jnp.ones((1, DEC_CHANNELS[1]), jnp.float32)]
    p['final'] = dict(w=w16(dense((DEC_CHANNELS[1], OUT_CH))), b=dense((1, OUT_CH)))
    return p


def _rp(p):
    return [p['g1'], p['wq'], p['wk'], p['wv'], p['wo'],
            p['g2'], p['wg'], p['wu'], p['wd']]


# ----------------------------------------------------------------------------
# Device-side forward (jitted as a whole: 3 pallas_calls + boundary gathers)
# ----------------------------------------------------------------------------
def msm3d_forward_device(feat, params, pre):
    pk0, pk1 = pre['pack0'], pre['pack1']
    B, W = pk0['B'], pk0['W']

    # single entry gather: per-point features -> windowed [B, W, C] layout
    xw = jnp.take(feat, pk0['gather'], axis=0).reshape(B, W, IN_CH) * pk0['valid']

    pi, e0 = params['init'], params['enc_att'][0]
    x0 = _stage_call(
        functools.partial(enc_stage0_kernel, heads=e0['heads']),
        [xw, pk0['mask']],
        [pi['w'], pi['b'], pi['g']] + _rp(e0),
        [(B, W, CHANNELS[0])])                    # == encoder stage-0 output (skip)

    pd, e1, d0 = params['down'][0], params['enc_att'][1], params['dec_att'][0]
    dec0 = _stage_call(
        functools.partial(down_dec0_kernel,
                          heads_enc=e1['heads'], heads_dec=d0['heads']),
        [x0, pre['oh_exp0'], pre['pool_mat'], pk1['mask']],
        [pre['rep0'], pd['w'], pd['b'], pd['g']] + _rp(e1)
        + [params['dec_init_norm']] + _rp(d0),
        [(B, W, CHANNELS[1])])                    # decoder stage-0 output (coarse)

    pu, ps = params['up'][0], params['skip_lin'][0]
    d1, pf = params['dec_att'][1], params['final']
    x_att, x_final = _stage_call(
        functools.partial(up_dec1_kernel, heads=d1['heads']),
        [dec0, pre['unpool_mat'], pre['oh_exp1'], x0, pk0['mask']],
        [pre['rep1'], pu['g'], pu['w'], pu['b'],
         ps['g'], ps['w'], ps['b'], params['skip_gamma'][0]]
        + _rp(d1) + [pf['w'], pf['b']],
        [(B, W, DEC_CHANNELS[1]), (B, W, OUT_CH)])

    # single exit unpack back to per-point ordering
    x_final_pts = jnp.take(x_final.reshape(B * W, OUT_CH), pk0['inv'], axis=0)
    x_att_pts = jnp.take(x_att.reshape(B * W, DEC_CHANNELS[1]), pk0['inv'], axis=0)
    dec0_pts = jnp.take(dec0.reshape(B * W, CHANNELS[1]), pk1['inv'], axis=0)
    out_feats = [x_final_pts, x_att_pts, dec0_pts]   # [final, fine, coarse]
    return x_final_pts, out_feats


# ----------------------------------------------------------------------------
if __name__ == "__main__":
    key = jax.random.PRNGKey(0)
    B, pts_per_batch, grid = 2, 24, 16

    coords_list = []
    for b in range(B):
        kb = jax.random.fold_in(key, b)
        ids = np.asarray(jax.random.choice(kb, grid ** 3, shape=(pts_per_batch,),
                                           replace=False))
        xyz = np.stack([ids // (grid * grid), (ids // grid) % grid, ids % grid], axis=1)
        coords_list.append(xyz)
    grid_coord = np.concatenate(coords_list).astype(np.int32)
    offset = np.arange(1, B + 1) * pts_per_batch
    feat = jax.random.normal(jax.random.fold_in(key, 100),
                             (B * pts_per_batch, IN_CH), jnp.float32)

    params = _init_params()
    pre = build_precompute(grid_coord, offset)      # host, once

    fwd = jax.jit(lambda f: msm3d_forward_device(f, params, pre))
    x_out, out_feats = fwd(feat)
    jax.block_until_ready(x_out)
    for f_ in out_feats:
        jax.block_until_ready(f_)

    assert x_out.shape == (B * pts_per_batch, OUT_CH)
    assert not bool(jnp.any(jnp.isnan(x_out)))
    print("KERNEL_OK")
</pallas_src>

<mosaic_0001>
module attributes {stable_mosaic.version = 11 : i64} {
  func.func @enc_stage0_kernel(%arg0: i32, %arg1: memref<1x32x6xf32, #tpu.memory_space<vmem>>, %arg2: memref<1x1x32xf32, #tpu.memory_space<vmem>>, %arg3: memref<6x16xbf16, #tpu.memory_space<vmem>>, %arg4: memref<1x16xf32, #tpu.memory_space<vmem>>, %arg5: memref<1x16xf32, #tpu.memory_space<vmem>>, %arg6: memref<1x16xf32, #tpu.memory_space<vmem>>, %arg7: memref<16x16xbf16, #tpu.memory_space<vmem>>, %arg8: memref<16x16xbf16, #tpu.memory_space<vmem>>, %arg9: memref<16x16xbf16, #tpu.memory_space<vmem>>, %arg10: memref<16x16xbf16, #tpu.memory_space<vmem>>, %arg11: memref<1x16xf32, #tpu.memory_space<vmem>>, %arg12: memref<16x64xbf16, #tpu.memory_space<vmem>>, %arg13: memref<16x64xbf16, #tpu.memory_space<vmem>>, %arg14: memref<64x16xbf16, #tpu.memory_space<vmem>>, %arg15: memref<1x32x16xf32, #tpu.memory_space<vmem>>) attributes {dimension_semantics = [#tpu.dimension_semantics<parallel>], iteration_bounds = array<i64: 2>, scalar_prefetch = 0 : i64, scratch_operands = 0 : i64, tpu.core_type = #tpu.core_type<tc>, window_params = [{transform_indices = @transform_0, window_bounds = array<i64: 1, 32, 6>}, {transform_indices = @transform_1, window_bounds = array<i64: 1, 1, 32>}, {pipeline_mode = #tpu.pipeline_mode<synchronous>, transform_indices = @transform_2, window_bounds = array<i64: 6, 16>}, {pipeline_mode = #tpu.pipeline_mode<synchronous>, transform_indices = @transform_3, window_bounds = array<i64: 1, 16>}, {pipeline_mode = #tpu.pipeline_mode<synchronous>, transform_indices = @transform_4, window_bounds = array<i64: 1, 16>}, {pipeline_mode = #tpu.pipeline_mode<synchronous>, transform_indices = @transform_5, window_bounds = array<i64: 1, 16>}, {pipeline_mode = #tpu.pipeline_mode<synchronous>, transform_indices = @transform_6, window_bounds = array<i64: 16, 16>}, {pipeline_mode = #tpu.pipeline_mode<synchronous>, transform_indices = @transform_7, window_bounds = array<i64: 16, 16>}, {pipeline_mode = #tpu.pipeline_mode<synchronous>, transform_indices = @transform_8, window_bounds = array<i64: 16, 16>}, {pipeline_mode = #tpu.pipeline_mode<synchronous>, transform_indices = @transform_9, window_bounds = array<i64: 16, 16>}, {pipeline_mode = #tpu.pipeline_mode<synchronous>, transform_indices = @transform_10, window_bounds = array<i64: 1, 16>}, {pipeline_mode = #tpu.pipeline_mode<synchronous>, transform_indices = @transform_11, window_bounds = array<i64: 16, 64>}, {pipeline_mode = #tpu.pipeline_mode<synchronous>, transform_indices = @transform_12, window_bounds = array<i64: 16, 64>}, {pipeline_mode = #tpu.pipeline_mode<synchronous>, transform_indices = @transform_13, window_bounds = array<i64: 64, 16>}, {transform_indices = @transform_14, window_bounds = array<i64: 1, 32, 16>}]} {
    %c0 = arith.constant 0 : index
    %c0_0 = arith.constant 0 : index
    %c0_1 = arith.constant 0 : index
    %0 = vector.load %arg1[%c0, %c0_0, %c0_1] : memref<1x32x6xf32, #tpu.memory_space<vmem>>, vector<1x32x6xf32>
    %1 = vector.shape_cast %0 : vector<1x32x6xf32> to vector<32x6xf32>
    %2 = arith.truncf %1 : vector<32x6xf32> to vector<32x6xbf16>
    %c0_2 = arith.constant 0 : index
    %c0_3 = arith.constant 0 : index
    %3 = vector.load %arg3[%c0_2, %c0_3] : memref<6x16xbf16, #tpu.memory_space<vmem>>, vector<6x16xbf16>
    %cst = arith.constant dense<0.000000e+00> : vector<32x16xf32>
    %4 = tpu.matmul %2, %3, %cst {dimension_numbers = #tpu.dot_dimension_numbers<[1], [0], [0], [1], [0, 0, 1, 1], [], []>} : vector<32x6xbf16>, vector<6x16xbf16>, vector<32x16xf32> -> vector<32x16xf32>
    %c0_4 = arith.constant 0 : index
    %c0_5 = arith.constant 0 : index
    %5 = vector.load %arg4[%c0_4, %c0_5] : memref<1x16xf32, #tpu.memory_space<vmem>>, vector<1x16xf32>
    %6 = vector.broadcast %5 : vector<1x16xf32> to vector<32x16xf32>
    %7 = arith.addf %4, %6 : vector<32x16xf32>
    %c0_6 = arith.constant 0 : index
    %c0_7 = arith.constant 0 : index
    %8 = vector.load %arg5[%c0_6, %c0_7] : memref<1x16xf32, #tpu.memory_space<vmem>>, vector<1x16xf32>
    %9 = arith.mulf %7, %7 : vector<32x16xf32>
    %cst_8 = arith.constant dense<0.000000e+00> : vector<32xf32>
    %10 = vector.multi_reduction <add>, %9, %cst_8 [1] : vector<32x16xf32> to vector<32xf32>
    %11 = vector.shape_cast %10 : vector<32xf32> to vector<32x1xf32>
    %cst_9 = arith.constant 1.600000e+01 : f32
    %12 = vector.broadcast %cst_9 : f32 to vector<32x1xf32>
    %13 = arith.divf %11, %12 : vector<32x1xf32>
    %cst_10 = arith.constant 9.99999997E-7 : f32
    %14 = vector.broadcast %cst_10 : f32 to vector<32x1xf32>
    %15 = arith.addf %13, %14 : vector<32x1xf32>
    %16 = math.rsqrt %15 : vector<32x1xf32>
    %17 = vector.broadcast %16 : vector<32x1xf32> to vector<32x16xf32>
    %18 = arith.mulf %7, %17 : vector<32x16xf32>
    %19 = vector.broadcast %8 : vector<1x16xf32> to vector<32x16xf32>
    %20 = arith.mulf %18, %19 : vector<32x16xf32>
    %c0_11 = arith.constant 0 : index
    %c0_12 = arith.constant 0 : index
    %c0_13 = arith.constant 0 : index
    %21 = vector.load %arg2[%c0_11, %c0_12, %c0_13] : memref<1x1x32xf32, #tpu.memory_space<vmem>>, vector<1x1x32xf32>
    %22 = vector.shape_cast %21 : vector<1x1x32xf32> to vector<1x32xf32>
    %c0_14 = arith.constant 0 : index
    %c0_15 = arith.constant 0 : index
    %23 = vector.load %arg6[%c0_14, %c0_15] : memref<1x16xf32, #tpu.memory_space<vmem>>, vector<1x16xf32>
    %c0_16 = arith.constant 0 : index
    %c0_17 = arith.constant 0 : index
    %24 = vector.load %arg7[%c0_16, %c0_17] : memref<16x16xbf16, #tpu.memory_space<vmem>>, vector<16x16xbf16>
    %c0_18 = arith.constant 0 : index
    %c0_19 = arith.constant 0 : index
    %25 = vector.load %arg8[%c0_18, %c0_19] : memref<16x16xbf16, #tpu.memory_space<vmem>>, vector<16x16xbf16>
    %c0_20 = arith.constant 0 : index
    %c0_21 = arith.constant 0 : index
    %26 = vector.load %arg9[%c0_20, %c0_21] : memref<16x16xbf16, #tpu.memory_space<vmem>>, vector<16x16xbf16>
    %c0_22 = arith.constant 0 : index
    %c0_23 = arith.constant 0 : index
    %27 = vector.load %arg10[%c0_22, %c0_23] : memref<16x16xbf16, #tpu.memory_space<vmem>>, vector<16x16xbf16>
    %c0_24 = arith.constant 0 : index
    %c0_25 = arith.constant 0 : index
    %28 = vector.load %arg11[%c0_24, %c0_25] : memref<1x16xf32, #tpu.memory_space<vmem>>, vector<1x16xf32>
    %c0_26 = arith.constant 0 : index
    %c0_27 = arith.constant 0 : index
    %29 = vector.load %arg12[%c0_26, %c0_27] : memref<16x64xbf16, #tpu.memory_space<vmem>>, vector<16x64xbf16>
    %c0_28 = arith.constant 0 : index
    %c0_29 = arith.constant 0 : index
    %30 = vector.load %arg13[%c0_28, %c0_29] : memref<16x64xbf16, #tpu.memory_space<vmem>>, vector<16x64xbf16>
    %c0_30 = arith.constant 0 : index
    %c0_31 = arith.constant 0 : index
    %31 = vector.load %arg14[%c0_30, %c0_31] : memref<64x16xbf16, #tpu.memory_space<vmem>>, vector<64x16xbf16>
    %32 = arith.mulf %20, %20 : vector<32x16xf32>
    %cst_32 = arith.constant dense<0.000000e+00> : vector<32xf32>
    %33 = vector.multi_reduction <add>, %32, %cst_32 [1] : vector<32x16xf32> to vector<32xf32>
    %34 = vector.shape_cast %33 : vector<32xf32> to vector<32x1xf32>
    %cst_33 = arith.constant 1.600000e+01 : f32
    %35 = vector.broadcast %cst_33 : f32 to vector<32x1xf32>
    %36 = arith.divf %34, %35 : vector<32x1xf32>
    %cst_34 = arith.constant 9.99999997E-7 : f32
    %37 = vector.broadcast %cst_34 : f32 to vector<32x1xf32>
    %38 = arith.addf %36, %37 : vector<32x1xf32>
    %39 = math.rsqrt %38 : vector<32x1xf32>
    %40 = vector.broadcast %39 : vector<32x1xf32> to vector<32x16xf32>
    %41 = arith.mulf %20, %40 : vector<32x16xf32>
    %42 = vector.broadcast %23 : vector<1x16xf32> to vector<32x16xf32>
    %43 = arith.mulf %41, %42 : vector<32x16xf32>
    %44 = arith.truncf %43 : vector<32x16xf32> to vector<32x16xbf16>
    %cst_35 = arith.constant dense<0.000000e+00> : vector<32x16xf32>
    %45 = tpu.matmul %44, %24, %cst_35 {dimension_numbers = #tpu.dot_dimension_numbers<[1], [0], [0], [1], [0, 0, 1, 1], [], []>} : vector<32x16xbf16>, vector<16x16xbf16>, vector<32x16xf32> -> vector<32x16xf32>
    %46 = arith.truncf %45 : vector<32x16xf32> to vector<32x16xbf16>
    %cst_36 = arith.constant dense<0.000000e+00> : vector<32x16xf32>
    %47 = tpu.matmul %44, %25, %cst_36 {dimension_numbers = #tpu.dot_dimension_numbers<[1], [0], [0], [1], [0, 0, 1, 1], [], []>} : vector<32x16xbf16>, vector<16x16xbf16>, vector<32x16xf32> -> vector<32x16xf32>
    %48 = arith.truncf %47 : vector<32x16xf32> to vector<32x16xbf16>
    %cst_37 = arith.constant dense<0.000000e+00> : vector<32x16xf32>
    %49 = tpu.matmul %44, %26, %cst_37 {dimension_numbers = #tpu.dot_dimension_numbers<[1], [0], [0], [1], [0, 0, 1, 1], [], []>} : vector<32x16xbf16>, vector<16x16xbf16>, vector<32x16xf32> -> vector<32x16xf32>
    %50 = arith.truncf %49 : vector<32x16xf32> to vector<32x16xbf16>
    %51 = vector.shape_cast %22 : vector<1x32xf32> to vector<1x32xf32>
    %52 = vector.broadcast %51 : vector<1x32xf32> to vector<32x32xf32>
    %53 = vector.extract_strided_slice %46 {offsets = [0, 0], sizes = [32, 8], strides = [1, 1]} : vector<32x16xbf16> to vector<32x8xbf16>
    %54 = vector.extract_strided_slice %48 {offsets = [0, 0], sizes = [32, 8], strides = [1, 1]} : vector<32x16xbf16> to vector<32x8xbf16>
    %cst_38 = arith.constant dense<0.000000e+00> : vector<32x32xf32>
    %55 = tpu.matmul %53, %54, %cst_38 {dimension_numbers = #tpu.dot_dimension_numbers<[1], [1], [0], [0], [0, 0, 1, 0], [], []>} : vector<32x8xbf16>, vector<32x8xbf16>, vector<32x32xf32> -> vector<32x32xf32>
    %56 = arith.addf %55, %52 : vector<32x32xf32>
    %cst_39 = arith.constant dense<0xFF800000> : vector<32xf32>
    %57 = vector.multi_reduction <maximumf>, %56, %cst_39 [1] : vector<32x32xf32> to vector<32xf32>
    %58 = vector.shape_cast %57 : vector<32xf32> to vector<32x1xf32>
    %59 = vector.broadcast %58 : vector<32x1xf32> to vector<32x32xf32>
    %60 = arith.subf %56, %59 : vector<32x32xf32>
    %61 = math.exp %60 : vector<32x32xf32>
    %cst_40 = arith.constant dense<0.000000e+00> : vector<32xf32>
    %62 = vector.multi_reduction <add>, %61, %cst_40 [1] : vector<32x32xf32> to vector<32xf32>
    %63 = vector.shape_cast %62 : vector<32xf32> to vector<32x1xf32>
    %64 = tpu.reciprocal %63 {approx = true} : vector<32x1xf32> -> vector<32x1xf32>
    %65 = vector.broadcast %64 : vector<32x1xf32> to vector<32x32xf32>
    %66 = arith.mulf %61, %65 : vector<32x32xf32>
    %67 = arith.truncf %66 : vector<32x32xf32> to vector<32x32xbf16>
    %68 = vector.extract_strided_slice %50 {offsets = [0, 0], sizes = [32, 8], strides = [1, 1]} : vector<32x16xbf16> to vector<32x8xbf16>
    %cst_41 = arith.constant dense<0.000000e+00> : vector<32x8xf32>
    %69 = tpu.matmul %67, %68, %cst_41 {dimension_numbers = #tpu.dot_dimension_numbers<[1], [0], [0], [1], [0, 0, 1, 1], [], []>} : vector<32x32xbf16>, vector<32x8xbf16>, vector<32x8xf32> -> vector<32x8xf32>
    %70 = vector.extract_strided_slice %46 {offsets = [0, 8], sizes = [32, 8], strides = [1, 1]} : vector<32x16xbf16> to vector<32x8xbf16>
    %71 = vector.extract_strided_slice %48 {offsets = [0, 8], sizes = [32, 8], strides = [1, 1]} : vector<32x16xbf16> to vector<32x8xbf16>
    %cst_42 = arith.constant dense<0.000000e+00> : vector<32x32xf32>
    %72 = tpu.matmul %70, %71, %cst_42 {dimension_numbers = #tpu.dot_dimension_numbers<[1], [1], [0], [0], [0, 0, 1, 0], [], []>} : vector<32x8xbf16>, vector<32x8xbf16>, vector<32x32xf32> -> vector<32x32xf32>
    %73 = arith.addf %72, %52 : vector<32x32xf32>
    %cst_43 = arith.constant dense<0xFF800000> : vector<32xf32>
    %74 = vector.multi_reduction <maximumf>, %73, %cst_43 [1] : vector<32x32xf32> to vector<32xf32>
    %75 = vector.shape_cast %74 : vector<32xf32> to vector<32x1xf32>
    %76 = vector.broadcast %75 : vector<32x1xf32> to vector<32x32xf32>
    %77 = arith.subf %73, %76 : vector<32x32xf32>
    %78 = math.exp %77 : vector<32x32xf32>
    %cst_44 = arith.constant dense<0.000000e+00> : vector<32xf32>
    %79 = vector.multi_reduction <add>, %78, %cst_44 [1] : vector<32x32xf32> to vector<32xf32>
    %80 = vector.shape_cast %79 : vector<32xf32> to vector<32x1xf32>
    %81 = tpu.reciprocal %80 {approx = true} : vector<32x1xf32> -> vector<32x1xf32>
    %82 = vector.broadcast %81 : vector<32x1xf32> to vector<32x32xf32>
    %83 = arith.mulf %78, %82 : vector<32x32xf32>
    %84 = arith.truncf %83 : vector<32x32xf32> to vector<32x32xbf16>
    %85 = vector.extract_strided_slice %50 {offsets = [0, 8], sizes = [32, 8], strides = [1, 1]} : vector<32x16xbf16> to vector<32x8xbf16>
    %cst_45 = arith.constant dense<0.000000e+00> : vector<32x8xf32>
    %86 = tpu.matmul %84, %85, %cst_45 {dimension_numbers = #tpu.dot_dimension_numbers<[1], [0], [0], [1], [0, 0, 1, 1], [], []>} : vector<32x32xbf16>, vector<32x8xbf16>, vector<32x8xf32> -> vector<32x8xf32>
    %87 = tpu.concatenate %69, %86 in 1 : vector<32x8xf32>, vector<32x8xf32> -> vector<32x16xf32>
    %88 = arith.truncf %87 : vector<32x16xf32> to vector<32x16xbf16>
    %cst_46 = arith.constant dense<0.000000e+00> : vector<32x16xf32>
    %89 = tpu.matmul %88, %27, %cst_46 {dimension_numbers = #tpu.dot_dimension_numbers<[1], [0], [0], [1], [0, 0, 1, 1], [], []>} : vector<32x16xbf16>, vector<16x16xbf16>, vector<32x16xf32> -> vector<32x16xf32>
    %90 = arith.addf %20, %89 : vector<32x16xf32>
    %91 = arith.mulf %90, %90 : vector<32x16xf32>
    %cst_47 = arith.constant dense<0.000000e+00> : vector<32xf32>
    %92 = vector.multi_reduction <add>, %91, %cst_47 [1] : vector<32x16xf32> to vector<32xf32>
    %93 = vector.shape_cast %92 : vector<32xf32> to vector<32x1xf32>
    %cst_48 = arith.constant 1.600000e+01 : f32
    %94 = vector.broadcast %cst_48 : f32 to vector<32x1xf32>
    %95 = arith.divf %93, %94 : vector<32x1xf32>
    %cst_49 = arith.constant 9.99999997E-7 : f32
    %96 = vector.broadcast %cst_49 : f32 to vector<32x1xf32>
    %97 = arith.addf %95, %96 : vector<32x1xf32>
    %98 = math.rsqrt %97 : vector<32x1xf32>
    %99 = vector.broadcast %98 : vector<32x1xf32> to vector<32x16xf32>
    %100 = arith.mulf %90, %99 : vector<32x16xf32>
    %101 = vector.broadcast %28 : vector<1x16xf32> to vector<32x16xf32>
    %102 = arith.mulf %100, %101 : vector<32x16xf32>
    %103 = arith.truncf %102 : vector<32x16xf32> to vector<32x16xbf16>
    %cst_50 = arith.constant dense<0.000000e+00> : vector<32x64xf32>
    %104 = tpu.matmul %103, %29, %cst_50 {dimension_numbers = #tpu.dot_dimension_numbers<[1], [0], [0], [1], [0, 0, 1, 1], [], []>} : vector<32x16xbf16>, vector<16x64xbf16>, vector<32x64xf32> -> vector<32x64xf32>
    %cst_51 = arith.constant dense<0.000000e+00> : vector<32x64xf32>
    %105 = tpu.matmul %103, %30, %cst_51 {dimension_numbers = #tpu.dot_dimension_numbers<[1], [0], [0], [1], [0, 0, 1, 1], [], []>} : vector<32x16xbf16>, vector<16x64xbf16>, vector<32x64xf32> -> vector<32x64xf32>
    %106 = arith.negf %104 : vector<32x64xf32>
    %107 = math.exp %106 : vector<32x64xf32>
    %cst_52 = arith.constant 1.000000e+00 : f32
    %108 = vector.broadcast %cst_52 : f32 to vector<32x64xf32>
    %109 = arith.addf %108, %107 : vector<32x64xf32>
    %110 = arith.divf %108, %109 : vector<32x64xf32>
    %111 = arith.mulf %104, %110 : vector<32x64xf32>
    %112 = arith.mulf %111, %105 : vector<32x64xf32>
    %113 = arith.truncf %112 : vector<32x64xf32> to vector<32x64xbf16>
    %cst_53 = arith.constant dense<0.000000e+00> : vector<32x16xf32>
    %114 = tpu.matmul %113, %31, %cst_53 {dimension_numbers = #tpu.dot_dimension_numbers<[1], [0], [0], [1], [0, 0, 1, 1], [], []>} : vector<32x64xbf16>, vector<64x16xbf16>, vector<32x16xf32> -> vector<32x16xf32>
    %115 = arith.addf %90, %114 : vector<32x16xf32>
    %c0_54 = arith.constant 0 : index
    %c0_55 = arith.constant 0 : index
    %c0_56 = arith.constant 0 : index
    %116 = vector.load %arg15[%c0_54, %c0_55, %c0_56] : memref<1x32x16xf32, #tpu.memory_space<vmem>>, vector<1x32x16xf32>
    %117 = vector.shape_cast %116 : vector<1x32x16xf32> to vector<32x16xf32>
    %118 = vector.shape_cast %115 : vector<32x16xf32> to vector<1x32x16xf32>
    tpu.vector_store %arg15[%c0_54, %c0_55, %c0_56], %118 {strides = array<i32>} : memref<1x32x16xf32, #tpu.memory_space<vmem>>, vector<1x32x16xf32>,
    return
  }
  func.func @transform_0(%arg0: i32) -> (i32, i32, i32) {
    %c0_i32 = arith.constant 0 : i32
    %c0_i32_0 = arith.constant 0 : i32
    %c0_i32_1 = arith.constant 0 : i32
    return %arg0, %c0_i32, %c0_i32_0 : i32, i32, i32
  }
  func.func @transform_1(%arg0: i32) -> (i32, i32, i32) {
    %c0_i32 = arith.constant 0 : i32
    %c0_i32_0 = arith.constant 0 : i32
    %c0_i32_1 = arith.constant 0 : i32
    return %arg0, %c0_i32, %c0_i32_0 : i32, i32, i32
  }
  func.func @transform_2(%arg0: i32) -> (i32, i32) {
    %c0_i32 = arith.constant 0 : i32
    %c0_i32_0 = arith.constant 0 : i32
    %c0_i32_1 = arith.constant 0 : i32
    return %c0_i32, %c0_i32_0 : i32, i32
  }
  func.func @transform_3(%arg0: i32) -> (i32, i32) {
    %c0_i32 = arith.constant 0 : i32
    %c0_i32_0 = arith.constant 0 : i32
    %c0_i32_1 = arith.constant 0 : i32
    return %c0_i32, %c0_i32_0 : i32, i32
  }
  func.func @transform_4(%arg0: i32) -> (i32, i32) {
    %c0_i32 = arith.constant 0 : i32
    %c0_i32_0 = arith.constant 0 : i32
    %c0_i32_1 = arith.constant 0 : i32
    return %c0_i32, %c0_i32_0 : i32, i32
  }
  func.func @transform_5(%arg0: i32) -> (i32, i32) {
    %c0_i32 = arith.constant 0 : i32
    %c0_i32_0 = arith.constant 0 : i32
    %c0_i32_1 = arith.constant 0 : i32
    return %c0_i32, %c0_i32_0 : i32, i32
  }
  func.func @transform_6(%arg0: i32) -> (i32, i32) {
    %c0_i32 = arith.constant 0 : i32
    %c0_i32_0 = arith.constant 0 : i32
    %c0_i32_1 = arith.constant 0 : i32
    return %c0_i32, %c0_i32_0 : i32, i32
  }
  func.func @transform_7(%arg0: i32) -> (i32, i32) {
    %c0_i32 = arith.constant 0 : i32
    %c0_i32_0 = arith.constant 0 : i32
    %c0_i32_1 = arith.constant 0 : i32
    return %c0_i32, %c0_i32_0 : i32, i32
  }
  func.func @transform_8(%arg0: i32) -> (i32, i32) {
    %c0_i32 = arith.constant 0 : i32
    %c0_i32_0 = arith.constant 0 : i32
    %c0_i32_1 = arith.constant 0 : i32
    return %c0_i32, %c0_i32_0 : i32, i32
  }
  func.func @transform_9(%arg0: i32) -> (i32, i32) {
    %c0_i32 = arith.constant 0 : i32
    %c0_i32_0 = arith.constant 0 : i32
    %c0_i32_1 = arith.constant 0 : i32
    return %c0_i32, %c0_i32_0 : i32, i32
  }
  func.func @transform_10(%arg0: i32) -> (i32, i32) {
    %c0_i32 = arith.constant 0 : i32
    %c0_i32_0 = arith.constant 0 : i32
    %c0_i32_1 = arith.constant 0 : i32
    return %c0_i32, %c0_i32_0 : i32, i32
  }
  func.func @transform_11(%arg0: i32) -> (i32, i32) {
    %c0_i32 = arith.constant 0 : i32
    %c0_i32_0 = arith.constant 0 : i32
    %c0_i32_1 = arith.constant 0 : i32
    return %c0_i32, %c0_i32_0 : i32, i32
  }
  func.func @transform_12(%arg0: i32) -> (i32, i32) {
    %c0_i32 = arith.constant 0 : i32
    %c0_i32_0 = arith.constant 0 : i32
    %c0_i32_1 = arith.constant 0 : i32
    return %c0_i32, %c0_i32_0 : i32, i32
  }
  func.func @transform_13(%arg0: i32) -> (i32, i32) {
    %c0_i32 = arith.constant 0 : i32
    %c0_i32_0 = arith.constant 0 : i32
    %c0_i32_1 = arith.constant 0 : i32
    return %c0_i32, %c0_i32_0 : i32, i32
  }
  func.func @transform_14(%arg0: i32) -> (i32, i32, i32) {
    %c0_i32 = arith.constant 0 : i32
    %c0_i32_0 = arith.constant 0 : i32
    %c0_i32_1 = arith.constant 0 : i32
    return %arg0, %c0_i32, %c0_i32_0 : i32, i32, i32
  }
}

module attributes {stable_mosaic.version = 11 : i64} {
  func.func @up_dec1_kernel(%arg0: i32, %arg1: memref<1x32x32xf32, #tpu.memory_space<vmem>>, %arg2: memref<1x32x32xbf16, #tpu.memory_space<vmem>>, %arg3: memref<1x32x256xf32, #tpu.memory_space<vmem>>, %arg4: memref<1x32x16xf32, #tpu.memory_space<vmem>>, %arg5: memref<1x1x32xf32, #tpu.memory_space<vmem>>, %arg6: memref<32x256xbf16, #tpu.memory_space<vmem>>, %arg7: memref<1x32xf32, #tpu.memory_space<vmem>>, %arg8: memref<256x16xbf16, #tpu.memory_space<vmem>>, %arg9: memref<1x16xf32, #tpu.memory_space<vmem>>, %arg10: memref<1x16xf32, #tpu.memory_space<vmem>>, %arg11: memref<16x16xbf16, #tpu.memory_space<vmem>>, %arg12: memref<1x16xf32, #tpu.memory_space<vmem>>, %arg13: memref<1x16xf32, #tpu.memory_space<vmem>>, %arg14: memref<1x16xf32, #tpu.memory_space<vmem>>, %arg15: memref<16x16xbf16, #tpu.memory_space<vmem>>, %arg16: memref<16x16xbf16, #tpu.memory_space<vmem>>, %arg17: memref<16x16xbf16, #tpu.memory_space<vmem>>, %arg18: memref<16x16xbf16, #tpu.memory_space<vmem>>, %arg19: memref<1x16xf32, #tpu.memory_space<vmem>>, %arg20: memref<16x64xbf16, #tpu.memory_space<vmem>>, %arg21: memref<16x64xbf16, #tpu.memory_space<vmem>>, %arg22: memref<64x16xbf16, #tpu.memory_space<vmem>>, %arg23: memref<16x8xbf16, #tpu.memory_space<vmem>>, %arg24: memref<1x8xf32, #tpu.memory_space<vmem>>, %arg25: memref<1x32x16xf32, #tpu.memory_space<vmem>>, %arg26: memref<1x32x8xf32, #tpu.memory_space<vmem>>) attributes {dimension_semantics = [#tpu.dimension_semantics<parallel>], iteration_bounds = array<i64: 2>, scalar_prefetch = 0 : i64, scratch_operands = 0 : i64, tpu.core_type = #tpu.core_type<tc>, window_params = [{transform_indices = @transform_0, window_bounds = array<i64: 1, 32, 32>}, {transform_indices = @transform_1, window_bounds = array<i64: 1, 32, 32>}, {transform_indices = @transform_2, window_bounds = array<i64: 1, 32, 256>}, {transform_indices = @transform_3, window_bounds = array<i64: 1, 32, 16>}, {transform_indices = @transform_4, window_bounds = array<i64: 1, 1, 32>}, {pipeline_mode = #tpu.pipeline_mode<synchronous>, transform_indices = @transform_5, window_bounds = array<i64: 32, 256>}, {pipeline_mode = #tpu.pipeline_mode<synchronous>, transform_indices = @transform_6, window_bounds = array<i64: 1, 32>}, {pipeline_mode = #tpu.pipeline_mode<synchronous>, transform_indices = @transform_7, window_bounds = array<i64: 256, 16>}, {pipeline_mode = #tpu.pipeline_mode<synchronous>, transform_indices = @transform_8, window_bounds = array<i64: 1, 16>}, {pipeline_mode = #tpu.pipeline_mode<synchronous>, transform_indices = @transform_9, window_bounds = array<i64: 1, 16>}, {pipeline_mode = #tpu.pipeline_mode<synchronous>, transform_indices = @transform_10, window_bounds = array<i64: 16, 16>}, {pipeline_mode = #tpu.pipeline_mode<synchronous>, transform_indices = @transform_11, window_bounds = array<i64: 1, 16>}, {pipeline_mode = #tpu.pipeline_mode<synchronous>, transform_indices = @transform_12, window_bounds = array<i64: 1, 16>}, {pipeline_mode = #tpu.pipeline_mode<synchronous>, transform_indices = @transform_13, window_bounds = array<i64: 1, 16>}, {pipeline_mode = #tpu.pipeline_mode<synchronous>, transform_indices = @transform_14, window_bounds = array<i64: 16, 16>}, {pipeline_mode = #tpu.pipeline_mode<synchronous>, transform_indices = @transform_15, window_bounds = array<i64: 16, 16>}, {pipeline_mode = #tpu.pipeline_mode<synchronous>, transform_indices = @transform_16, window_bounds = array<i64: 16, 16>}, {pipeline_mode = #tpu.pipeline_mode<synchronous>, transform_indices = @transform_17, window_bounds = array<i64: 16, 16>}, {pipeline_mode = #tpu.pipeline_mode<synchronous>, transform_indices = @transform_18, window_bounds = array<i64: 1, 16>}, {pipeline_mode = #tpu.pipeline_mode<synchronous>, transform_indices = @transform_19, window_bounds = array<i64: 16, 64>}, {pipeline_mode = #tpu.pipeline_mode<synchronous>, transform_indices = @transform_20, window_bounds = array<i64: 16, 64>}, {pipeline_mode = #tpu.pipeline_mode<synchronous>, transform_indices = @transform_21, window_bounds = array<i64: 64, 16>}, {pipeline_mode = #tpu.pipeline_mode<synchronous>, transform_indices = @transform_22, window_bounds = array<i64: 16, 8>}, {pipeline_mode = #tpu.pipeline_mode<synchronous>, transform_indices = @transform_23, window_bounds = array<i64: 1, 8>}, {transform_indices = @transform_24, window_bounds = array<i64: 1, 32, 16>}, {transform_indices = @transform_25, window_bounds = array<i64: 1, 32, 8>}]} {
    %c0 = arith.constant 0 : index
    %c0_0 = arith.constant 0 : index
    %c0_1 = arith.constant 0 : index
    %0 = vector.load %arg1[%c0, %c0_0, %c0_1] : memref<1x32x32xf32, #tpu.memory_space<vmem>>, vector<1x32x32xf32>
    %1 = vector.shape_cast %0 : vector<1x32x32xf32> to vector<32x32xf32>
    %c0_2 = arith.constant 0 : index
    %c0_3 = arith.constant 0 : index
    %2 = vector.load %arg7[%c0_2, %c0_3] : memref<1x32xf32, #tpu.memory_space<vmem>>, vector<1x32xf32>
    %3 = arith.mulf %1, %1 : vector<32x32xf32>
    %cst = arith.constant dense<0.000000e+00> : vector<32xf32>
    %4 = vector.multi_reduction <add>, %3, %cst [1] : vector<32x32xf32> to vector<32xf32>
    %5 = vector.shape_cast %4 : vector<32xf32> to vector<32x1xf32>
    %cst_4 = arith.constant 3.200000e+01 : f32
    %6 = vector.broadcast %cst_4 : f32 to vector<32x1xf32>
    %7 = arith.divf %5, %6 : vector<32x1xf32>
    %cst_5 = arith.constant 9.99999997E-7 : f32
    %8 = vector.broadcast %cst_5 : f32 to vector<32x1xf32>
    %9 = arith.addf %7, %8 : vector<32x1xf32>
    %10 = math.rsqrt %9 : vector<32x1xf32>
    %11 = vector.broadcast %10 : vector<32x1xf32> to vector<32x32xf32>
    %12 = arith.mulf %1, %11 : vector<32x32xf32>
    %13 = vector.broadcast %2 : vector<1x32xf32> to vector<32x32xf32>
    %14 = arith.mulf %12, %13 : vector<32x32xf32>
    %c0_6 = arith.constant 0 : index
    %c0_7 = arith.constant 0 : index
    %c0_8 = arith.constant 0 : index
    %15 = vector.load %arg2[%c0_6, %c0_7, %c0_8] : memref<1x32x32xbf16, #tpu.memory_space<vmem>>, vector<1x32x32xbf16>
    %16 = vector.shape_cast %15 : vector<1x32x32xbf16> to vector<32x32xbf16>
    %17 = arith.truncf %14 : vector<32x32xf32> to vector<32x32xbf16>
    %cst_9 = arith.constant dense<0.000000e+00> : vector<32x32xf32>
    %18 = tpu.matmul %16, %17, %cst_9 {dimension_numbers = #tpu.dot_dimension_numbers<[1], [0], [0], [1], [0, 0, 1, 1], [], []>} : vector<32x32xbf16>, vector<32x32xbf16>, vector<32x32xf32> -> vector<32x32xf32>
    %19 = arith.truncf %18 : vector<32x32xf32> to vector<32x32xbf16>
    %c0_10 = arith.constant 0 : index
    %c0_11 = arith.constant 0 : index
    %20 = vector.load %arg6[%c0_10, %c0_11] : memref<32x256xbf16, #tpu.memory_space<vmem>>, vector<32x256xbf16>
    %cst_12 = arith.constant dense<0.000000e+00> : vector<32x256xf32>
    %21 = tpu.matmul %19, %20, %cst_12 {dimension_numbers = #tpu.dot_dimension_numbers<[1], [0], [0], [1], [0, 0, 1, 1], [], []>} : vector<32x32xbf16>, vector<32x256xbf16>, vector<32x256xf32> -> vector<32x256xf32>
    %c0_13 = arith.constant 0 : index
    %c0_14 = arith.constant 0 : index
    %c0_15 = arith.constant 0 : index
    %22 = vector.load %arg3[%c0_13, %c0_14, %c0_15] : memref<1x32x256xf32, #tpu.memory_space<vmem>>, vector<1x32x256xf32>
    %23 = vector.shape_cast %22 : vector<1x32x256xf32> to vector<32x256xf32>
    %24 = arith.mulf %21, %23 : vector<32x256xf32>
    %25 = arith.truncf %24 : vector<32x256xf32> to vector<32x256xbf16>
    %c0_16 = arith.constant 0 : index
    %c0_17 = arith.constant 0 : index
    %26 = vector.load %arg8[%c0_16, %c0_17] : memref<256x16xbf16, #tpu.memory_space<vmem>>, vector<256x16xbf16>
    %cst_18 = arith.constant dense<0.000000e+00> : vector<32x16xf32>
    %27 = tpu.matmul %25, %26, %cst_18 {dimension_numbers = #tpu.dot_dimension_numbers<[1], [0], [0], [1], [0, 0, 1, 1], [], []>} : vector<32x256xbf16>, vector<256x16xbf16>, vector<32x16xf32> -> vector<32x16xf32>
    %c0_19 = arith.constant 0 : index
    %c0_20 = arith.constant 0 : index
    %28 = vector.load %arg9[%c0_19, %c0_20] : memref<1x16xf32, #tpu.memory_space<vmem>>, vector<1x16xf32>
    %29 = vector.broadcast %28 : vector<1x16xf32> to vector<32x16xf32>
    %30 = arith.addf %27, %29 : vector<32x16xf32>
    %c0_21 = arith.constant 0 : index
    %c0_22 = arith.constant 0 : index
    %c0_23 = arith.constant 0 : index
    %31 = vector.load %arg4[%c0_21, %c0_22, %c0_23] : memref<1x32x16xf32, #tpu.memory_space<vmem>>, vector<1x32x16xf32>
    %32 = vector.shape_cast %31 : vector<1x32x16xf32> to vector<32x16xf32>
    %c0_24 = arith.constant 0 : index
    %c0_25 = arith.constant 0 : index
    %33 = vector.load %arg10[%c0_24, %c0_25] : memref<1x16xf32, #tpu.memory_space<vmem>>, vector<1x16xf32>
    %34 = arith.mulf %32, %32 : vector<32x16xf32>
    %cst_26 = arith.constant dense<0.000000e+00> : vector<32xf32>
    %35 = vector.multi_reduction <add>, %34, %cst_26 [1] : vector<32x16xf32> to vector<32xf32>
    %36 = vector.shape_cast %35 : vector<32xf32> to vector<32x1xf32>
    %cst_27 = arith.constant 1.600000e+01 : f32
    %37 = vector.broadcast %cst_27 : f32 to vector<32x1xf32>
    %38 = arith.divf %36, %37 : vector<32x1xf32>
    %cst_28 = arith.constant 9.99999997E-7 : f32
    %39 = vector.broadcast %cst_28 : f32 to vector<32x1xf32>
    %40 = arith.addf %38, %39 : vector<32x1xf32>
    %41 = math.rsqrt %40 : vector<32x1xf32>
    %42 = vector.broadcast %41 : vector<32x1xf32> to vector<32x16xf32>
    %43 = arith.mulf %32, %42 : vector<32x16xf32>
    %44 = vector.broadcast %33 : vector<1x16xf32> to vector<32x16xf32>
    %45 = arith.mulf %43, %44 : vector<32x16xf32>
    %46 = arith.truncf %45 : vector<32x16xf32> to vector<32x16xbf16>
    %c0_29 = arith.constant 0 : index
    %c0_30 = arith.constant 0 : index
    %47 = vector.load %arg11[%c0_29, %c0_30] : memref<16x16xbf16, #tpu.memory_space<vmem>>, vector<16x16xbf16>
    %cst_31 = arith.constant dense<0.000000e+00> : vector<32x16xf32>
    %48 = tpu.matmul %46, %47, %cst_31 {dimension_numbers = #tpu.dot_dimension_numbers<[1], [0], [0], [1], [0, 0, 1, 1], [], []>} : vector<32x16xbf16>, vector<16x16xbf16>, vector<32x16xf32> -> vector<32x16xf32>
    %c0_32 = arith.constant 0 : index
    %c0_33 = arith.constant 0 : index
    %49 = vector.load %arg12[%c0_32, %c0_33] : memref<1x16xf32, #tpu.memory_space<vmem>>, vector<1x16xf32>
    %50 = vector.broadcast %49 : vector<1x16xf32> to vector<32x16xf32>
    %51 = arith.addf %48, %50 : vector<32x16xf32>
    %c0_34 = arith.constant 0 : index
    %c0_35 = arith.constant 0 : index
    %52 = vector.load %arg13[%c0_34, %c0_35] : memref<1x16xf32, #tpu.memory_space<vmem>>, vector<1x16xf32>
    %53 = vector.broadcast %52 : vector<1x16xf32> to vector<32x16xf32>
    %54 = arith.mulf %53, %51 : vector<32x16xf32>
    %55 = arith.addf %30, %54 : vector<32x16xf32>
    %c0_36 = arith.constant 0 : index
    %c0_37 = arith.constant 0 : index
    %c0_38 = arith.constant 0 : index
    %56 = vector.load %arg5[%c0_36, %c0_37, %c0_38] : memref<1x1x32xf32, #tpu.memory_space<vmem>>, vector<1x1x32xf32>
    %57 = vector.shape_cast %56 : vector<1x1x32xf32> to vector<1x32xf32>
    %c0_39 = arith.constant 0 : index
    %c0_40 = arith.constant 0 : index
    %58 = vector.load %arg14[%c0_39, %c0_40] : memref<1x16xf32, #tpu.memory_space<vmem>>, vector<1x16xf32>
    %c0_41 = arith.constant 0 : index
    %c0_42 = arith.constant 0 : index
    %59 = vector.load %arg15[%c0_41, %c0_42] : memref<16x16xbf16, #tpu.memory_space<vmem>>, vector<16x16xbf16>
    %c0_43 = arith.constant 0 : index
    %c0_44 = arith.constant 0 : index
    %60 = vector.load %arg16[%c0_43, %c0_44] : memref<16x16xbf16, #tpu.memory_space<vmem>>, vector<16x16xbf16>
    %c0_45 = arith.constant 0 : index
    %c0_46 = arith.constant 0 : index
    %61 = vector.load %arg17[%c0_45, %c0_46] : memref<16x16xbf16, #tpu.memory_space<vmem>>, vector<16x16xbf16>
    %c0_47 = arith.constant 0 : index
    %c0_48 = arith.constant 0 : index
    %62 = vector.load %arg18[%c0_47, %c0_48] : memref<16x16xbf16, #tpu.memory_space<vmem>>, vector<16x16xbf16>
    %c0_49 = arith.constant 0 : index
    %c0_50 = arith.constant 0 : index
    %63 = vector.load %arg19[%c0_49, %c0_50] : memref<1x16xf32, #tpu.memory_space<vmem>>, vector<1x16xf32>
    %c0_51 = arith.constant 0 : index
    %c0_52 = arith.constant 0 : index
    %64 = vector.load %arg20[%c0_51, %c0_52] : memref<16x64xbf16, #tpu.memory_space<vmem>>, vector<16x64xbf16>
    %c0_53 = arith.constant 0 : index
    %c0_54 = arith.constant 0 : index
    %65 = vector.load %arg21[%c0_53, %c0_54] : memref<16x64xbf16, #tpu.memory_space<vmem>>, vector<16x64xbf16>
    %c0_55 = arith.constant 0 : index
    %c0_56 = arith.constant 0 : index
    %66 = vector.load %arg22[%c0_55, %c0_56] : memref<64x16xbf16, #tpu.memory_space<vmem>>, vector<64x16xbf16>
    %67 = arith.mulf %55, %55 : vector<32x16xf32>
    %cst_57 = arith.constant dense<0.000000e+00> : vector<32xf32>
    %68 = vector.multi_reduction <add>, %67, %cst_57 [1] : vector<32x16xf32> to vector<32xf32>
    %69 = vector.shape_cast %68 : vector<32xf32> to vector<32x1xf32>
    %cst_58 = arith.constant 1.600000e+01 : f32
    %70 = vector.broadcast %cst_58 : f32 to vector<32x1xf32>
    %71 = arith.divf %69, %70 : vector<32x1xf32>
    %cst_59 = arith.constant 9.99999997E-7 : f32
    %72 = vector.broadcast %cst_59 : f32 to vector<32x1xf32>
    %73 = arith.addf %71, %72 : vector<32x1xf32>
    %74 = math.rsqrt %73 : vector<32x1xf32>
    %75 = vector.broadcast %74 : vector<32x1xf32> to vector<32x16xf32>
    %76 = arith.mulf %55, %75 : vector<32x16xf32>
    %77 = vector.broadcast %58 : vector<1x16xf32> to vector<32x16xf32>
    %78 = arith.mulf %76, %77 : vector<32x16xf32>
    %79 = arith.truncf %78 : vector<32x16xf32> to vector<32x16xbf16>
    %cst_60 = arith.constant dense<0.000000e+00> : vector<32x16xf32>
    %80 = tpu.matmul %79, %59, %cst_60 {dimension_numbers = #tpu.dot_dimension_numbers<[1], [0], [0], [1], [0, 0, 1, 1], [], []>} : vector<32x16xbf16>, vector<16x16xbf16>, vector<32x16xf32> -> vector<32x16xf32>
    %81 = arith.truncf %80 : vector<32x16xf32> to vector<32x16xbf16>
    %cst_61 = arith.constant dense<0.000000e+00> : vector<32x16xf32>
    %82 = tpu.matmul %79, %60, %cst_61 {dimension_numbers = #tpu.dot_dimension_numbers<[1], [0], [0], [1], [0, 0, 1, 1], [], []>} : vector<32x16xbf16>, vector<16x16xbf16>, vector<32x16xf32> -> vector<32x16xf32>
    %83 = arith.truncf %82 : vector<32x16xf32> to vector<32x16xbf16>
    %cst_62 = arith.constant dense<0.000000e+00> : vector<32x16xf32>
    %84 = tpu.matmul %79, %61, %cst_62 {dimension_numbers = #tpu.dot_dimension_numbers<[1], [0], [0], [1], [0, 0, 1, 1], [], []>} : vector<32x16xbf16>, vector<16x16xbf16>, vector<32x16xf32> -> vector<32x16xf32>
    %85 = arith.truncf %84 : vector<32x16xf32> to vector<32x16xbf16>
    %86 = vector.shape_cast %57 : vector<1x32xf32> to vector<1x32xf32>
    %87 = vector.broadcast %86 : vector<1x32xf32> to vector<32x32xf32>
    %88 = vector.extract_strided_slice %81 {offsets = [0, 0], sizes = [32, 8], strides = [1, 1]} : vector<32x16xbf16> to vector<32x8xbf16>
    %89 = vector.extract_strided_slice %83 {offsets = [0, 0], sizes = [32, 8], strides = [1, 1]} : vector<32x16xbf16> to vector<32x8xbf16>
    %cst_63 = arith.constant dense<0.000000e+00> : vector<32x32xf32>
    %90 = tpu.matmul %88, %89, %cst_63 {dimension_numbers = #tpu.dot_dimension_numbers<[1], [1], [0], [0], [0, 0, 1, 0], [], []>} : vector<32x8xbf16>, vector<32x8xbf16>, vector<32x32xf32> -> vector<32x32xf32>
    %91 = arith.addf %90, %87 : vector<32x32xf32>
    %cst_64 = arith.constant dense<0xFF800000> : vector<32xf32>
    %92 = vector.multi_reduction <maximumf>, %91, %cst_64 [1] : vector<32x32xf32> to vector<32xf32>
    %93 = vector.shape_cast %92 : vector<32xf32> to vector<32x1xf32>
    %94 = vector.broadcast %93 : vector<32x1xf32> to vector<32x32xf32>
    %95 = arith.subf %91, %94 : vector<32x32xf32>
    %96 = math.exp %95 : vector<32x32xf32>
    %cst_65 = arith.constant dense<0.000000e+00> : vector<32xf32>
    %97 = vector.multi_reduction <add>, %96, %cst_65 [1] : vector<32x32xf32> to vector<32xf32>
    %98 = vector.shape_cast %97 : vector<32xf32> to vector<32x1xf32>
    %99 = tpu.reciprocal %98 {approx = true} : vector<32x1xf32> -> vector<32x1xf32>
    %100 = vector.broadcast %99 : vector<32x1xf32> to vector<32x32xf32>
    %101 = arith.mulf %96, %100 : vector<32x32xf32>
    %102 = arith.truncf %101 : vector<32x32xf32> to vector<32x32xbf16>
    %103 = vector.extract_strided_slice %85 {offsets = [0, 0], sizes = [32, 8], strides = [1, 1]} : vector<32x16xbf16> to vector<32x8xbf16>
    %cst_66 = arith.constant dense<0.000000e+00> : vector<32x8xf32>
    %104 = tpu.matmul %102, %103, %cst_66 {dimension_numbers = #tpu.dot_dimension_numbers<[1], [0], [0], [1], [0, 0, 1, 1], [], []>} : vector<32x32xbf16>, vector<32x8xbf16>, vector<32x8xf32> -> vector<32x8xf32>
    %105 = vector.extract_strided_slice %81 {offsets = [0, 8], sizes = [32, 8], strides = [1, 1]} : vector<32x16xbf16> to vector<32x8xbf16>
    %106 = vector.extract_strided_slice %83 {offsets = [0, 8], sizes = [32, 8], strides = [1, 1]} : vector<32x16xbf16> to vector<32x8xbf16>
    %cst_67 = arith.constant dense<0.000000e+00> : vector<32x32xf32>
    %107 = tpu.matmul %105, %106, %cst_67 {dimension_numbers = #tpu.dot_dimension_numbers<[1], [1], [0], [0], [0, 0, 1, 0], [], []>} : vector<32x8xbf16>, vector<32x8xbf16>, vector<32x32xf32> -> vector<32x32xf32>
    %108 = arith.addf %107, %87 : vector<32x32xf32>
    %cst_68 = arith.constant dense<0xFF800000> : vector<32xf32>
    %109 = vector.multi_reduction <maximumf>, %108, %cst_68 [1] : vector<32x32xf32> to vector<32xf32>
    %110 = vector.shape_cast %109 : vector<32xf32> to vector<32x1xf32>
    %111 = vector.broadcast %110 : vector<32x1xf32> to vector<32x32xf32>
    %112 = arith.subf %108, %111 : vector<32x32xf32>
    %113 = math.exp %112 : vector<32x32xf32>
    %cst_69 = arith.constant dense<0.000000e+00> : vector<32xf32>
    %114 = vector.multi_reduction <add>, %113, %cst_69 [1] : vector<32x32xf32> to vector<32xf32>
    %115 = vector.shape_cast %114 : vector<32xf32> to vector<32x1xf32>
    %116 = tpu.reciprocal %115 {approx = true} : vector<32x1xf32> -> vector<32x1xf32>
    %117 = vector.broadcast %116 : vector<32x1xf32> to vector<32x32xf32>
    %118 = arith.mulf %113, %117 : vector<32x32xf32>
    %119 = arith.truncf %118 : vector<32x32xf32> to vector<32x32xbf16>
    %120 = vector.extract_strided_slice %85 {offsets = [0, 8], sizes = [32, 8], strides = [1, 1]} : vector<32x16xbf16> to vector<32x8xbf16>
    %cst_70 = arith.constant dense<0.000000e+00> : vector<32x8xf32>
    %121 = tpu.matmul %119, %120, %cst_70 {dimension_numbers = #tpu.dot_dimension_numbers<[1], [0], [0], [1], [0, 0, 1, 1], [], []>} : vector<32x32xbf16>, vector<32x8xbf16>, vector<32x8xf32> -> vector<32x8xf32>
    %122 = tpu.concatenate %104, %121 in 1 : vector<32x8xf32>, vector<32x8xf32> -> vector<32x16xf32>
    %123 = arith.truncf %122 : vector<32x16xf32> to vector<32x16xbf16>
    %cst_71 = arith.constant dense<0.000000e+00> : vector<32x16xf32>
    %124 = tpu.matmul %123, %62, %cst_71 {dimension_numbers = #tpu.dot_dimension_numbers<[1], [0], [0], [1], [0, 0, 1, 1], [], []>} : vector<32x16xbf16>, vector<16x16xbf16>, vector<32x16xf32> -> vector<32x16xf32>
    %125 = arith.addf %55, %124 : vector<32x16xf32>
    %126 = arith.mulf %125, %125 : vector<32x16xf32>
    %cst_72 = arith.constant dense<0.000000e+00> : vector<32xf32>
    %127 = vector.multi_reduction <add>, %126, %cst_72 [1] : vector<32x16xf32> to vector<32xf32>
    %128 = vector.shape_cast %127 : vector<32xf32> to vector<32x1xf32>
    %cst_73 = arith.constant 1.600000e+01 : f32
    %129 = vector.broadcast %cst_73 : f32 to vector<32x1xf32>
    %130 = arith.divf %128, %129 : vector<32x1xf32>
    %cst_74 = arith.constant 9.99999997E-7 : f32
    %131 = vector.broadcast %cst_74 : f32 to vector<32x1xf32>
    %132 = arith.addf %130, %131 : vector<32x1xf32>
    %133 = math.rsqrt %132 : vector<32x1xf32>
    %134 = vector.broadcast %133 : vector<32x1xf32> to vector<32x16xf32>
    %135 = arith.mulf %125, %134 : vector<32x16xf32>
    %136 = vector.broadcast %63 : vector<1x16xf32> to vector<32x16xf32>
    %137 = arith.mulf %135, %136 : vector<32x16xf32>
    %138 = arith.truncf %137 : vector<32x16xf32> to vector<32x16xbf16>
    %cst_75 = arith.constant dense<0.000000e+00> : vector<32x64xf32>
    %139 = tpu.matmul %138, %64, %cst_75 {dimension_numbers = #tpu.dot_dimension_numbers<[1], [0], [0], [1], [0, 0, 1, 1], [], []>} : vector<32x16xbf16>, vector<16x64xbf16>, vector<32x64xf32> -> vector<32x64xf32>
    %cst_76 = arith.constant dense<0.000000e+00> : vector<32x64xf32>
    %140 = tpu.matmul %138, %65, %cst_76 {dimension_numbers = #tpu.dot_dimension_numbers<[1], [0], [0], [1], [0, 0, 1, 1], [], []>} : vector<32x16xbf16>, vector<16x64xbf16>, vector<32x64xf32> -> vector<32x64xf32>
    %141 = arith.negf %139 : vector<32x64xf32>
    %142 = math.exp %141 : vector<32x64xf32>
    %cst_77 = arith.constant 1.000000e+00 : f32
    %143 = vector.broadcast %cst_77 : f32 to vector<32x64xf32>
    %144 = arith.addf %143, %142 : vector<32x64xf32>
    %145 = arith.divf %143, %144 : vector<32x64xf32>
    %146 = arith.mulf %139, %145 : vector<32x64xf32>
    %147 = arith.mulf %146, %140 : vector<32x64xf32>
    %148 = arith.truncf %147 : vector<32x64xf32> to vector<32x64xbf16>
    %cst_78 = arith.constant dense<0.000000e+00> : vector<32x16xf32>
    %149 = tpu.matmul %148, %66, %cst_78 {dimension_numbers = #tpu.dot_dimension_numbers<[1], [0], [0], [1], [0, 0, 1, 1], [], []>} : vector<32x64xbf16>, vector<64x16xbf16>, vector<32x16xf32> -> vector<32x16xf32>
    %150 = arith.addf %125, %149 : vector<32x16xf32>
    %c0_79 = arith.constant 0 : index
    %c0_80 = arith.constant 0 : index
    %c0_81 = arith.constant 0 : index
    %151 = vector.load %arg25[%c0_79, %c0_80, %c0_81] : memref<1x32x16xf32, #tpu.memory_space<vmem>>, vector<1x32x16xf32>
    %152 = vector.shape_cast %151 : vector<1x32x16xf32> to vector<32x16xf32>
    %153 = vector.shape_cast %150 : vector<32x16xf32> to vector<1x32x16xf32>
    tpu.vector_store %arg25[%c0_79, %c0_80, %c0_81], %153 {strides = array<i32>} : memref<1x32x16xf32, #tpu.memory_space<vmem>>, vector<1x32x16xf32>,
    %154 = arith.truncf %150 : vector<32x16xf32> to vector<32x16xbf16>
    %c0_82 = arith.constant 0 : index
    %c0_83 = arith.constant 0 : index
    %155 = vector.load %arg23[%c0_82, %c0_83] : memref<16x8xbf16, #tpu.memory_space<vmem>>, vector<16x8xbf16>
    %cst_84 = arith.constant dense<0.000000e+00> : vector<32x8xf32>
    %156 = tpu.matmul %154, %155, %cst_84 {dimension_numbers = #tpu.dot_dimension_numbers<[1], [0], [0], [1], [0, 0, 1, 1], [], []>} : vector<32x16xbf16>, vector<16x8xbf16>, vector<32x8xf32> -> vector<32x8xf32>
    %c0_85 = arith.constant 0 : index
    %c0_86 = arith.constant 0 : index
    %157 = vector.load %arg24[%c0_85, %c0_86] : memref<1x8xf32, #tpu.memory_space<vmem>>, vector<1x8xf32>
    %158 = vector.broadcast %157 : vector<1x8xf32> to vector<32x8xf32>
    %159 = arith.addf %156, %158 : vector<32x8xf32>
    %c0_87 = arith.constant 0 : index
    %c0_88 = arith.constant 0 : index
    %c0_89 = arith.constant 0 : index
    %160 = vector.load %arg26[%c0_87, %c0_88, %c0_89] : memref<1x32x8xf32, #tpu.memory_space<vmem>>, vector<1x32x8xf32>
    %161 = vector.shape_cast %160 : vector<1x32x8xf32> to vector<32x8xf32>
    %162 = vector.shape_cast %159 : vector<32x8xf32> to vector<1x32x8xf32>
    tpu.vector_store %arg26[%c0_87, %c0_88, %c0_89], %162 {strides = array<i32>} : memref<1x32x8xf32, #tpu.memory_space<vmem>>, vector<1x32x8xf32>,
    return
  }
  func.func @transform_0(%arg0: i32) -> (i32, i32, i32) {
    %c0_i32 = arith.constant 0 : i32
    %c0_i32_0 = arith.constant 0 : i32
    %c0_i32_1 = arith.constant 0 : i32
    return %arg0, %c0_i32, %c0_i32_0 : i32, i32, i32
  }
  func.func @transform_1(%arg0: i32) -> (i32, i32, i32) {
    %c0_i32 = arith.constant 0 : i32
    %c0_i32_0 = arith.constant 0 : i32
    %c0_i32_1 = arith.constant 0 : i32
    return %arg0, %c0_i32, %c0_i32_0 : i32, i32, i32
  }
  func.func @transform_2(%arg0: i32) -> (i32, i32, i32) {
    %c0_i32 = arith.constant 0 : i32
    %c0_i32_0 = arith.constant 0 : i32
    %c0_i32_1 = arith.constant 0 : i32
    return %arg0, %c0_i32, %c0_i32_0 : i32, i32, i32
  }
  func.func @transform_3(%arg0: i32) -> (i32, i32, i32) {
    %c0_i32 = arith.constant 0 : i32
    %c0_i32_0 = arith.constant 0 : i32
    %c0_i32_1 = arith.constant 0 : i32
    return %arg0, %c0_i32, %c0_i32_0 : i32, i32, i32
  }
  func.func @transform_4(%arg0: i32) -> (i32, i32, i32) {
    %c0_i32 = arith.constant 0 : i32
    %c0_i32_0 = arith.constant 0 : i32
    %c0_i32_1 = arith.constant 0 : i32
    return %arg0, %c0_i32, %c0_i32_0 : i32, i32, i32
  }
  func.func @transform_5(%arg0: i32) -> (i32, i32) {
    %c0_i32 = arith.constant 0 : i32
    %c0_i32_0 = arith.constant 0 : i32
    %c0_i32_1 = arith.constant 0 : i32
    return %c0_i32, %c0_i32_0 : i32, i32
  }
  func.func @transform_6(%arg0: i32) -> (i32, i32) {
    %c0_i32 = arith.constant 0 : i32
    %c0_i32_0 = arith.constant 0 : i32
    %c0_i32_1 = arith.constant 0 : i32
    return %c0_i32, %c0_i32_0 : i32, i32
  }
  func.func @transform_7(%arg0: i32) -> (i32, i32) {
    %c0_i32 = arith.constant 0 : i32
    %c0_i32_0 = arith.constant 0 : i32
    %c0_i32_1 = arith.constant 0 : i32
    return %c0_i32, %c0_i32_0 : i32, i32
  }
  func.func @transform_8(%arg0: i32) -> (i32, i32) {
    %c0_i32 = arith.constant 0 : i32
    %c0_i32_0 = arith.constant 0 : i32
    %c0_i32_1 = arith.constant 0 : i32
    return %c0_i32, %c0_i32_0 : i32, i32
  }
  func.func @transform_9(%arg0: i32) -> (i32, i32) {
    %c0_i32 = arith.constant 0 : i32
    %c0_i32_0 = arith.constant 0 : i32
    %c0_i32_1 = arith.constant 0 : i32
    return %c0_i32, %c0_i32_0 : i32, i32
  }
  func.func @transform_10(%arg0: i32) -> (i32, i32) {
    %c0_i32 = arith.constant 0 : i32
    %c0_i32_0 = arith.constant 0 : i32
    %c0_i32_1 = arith.constant 0 : i32
    return %c0_i32, %c0_i32_0 : i32, i32
  }
  func.func @transform_11(%arg0: i32) -> (i32, i32) {
    %c0_i32 = arith.constant 0 : i32
    %c0_i32_0 = arith.constant 0 : i32
    %c0_i32_1 = arith.constant 0 : i32
    return %c0_i32, %c0_i32_0 : i32, i32
  }
  func.func @transform_12(%arg0: i32) -> (i32, i32) {
    %c0_i32 = arith.constant 0 : i32
    %c0_i32_0 = arith.constant 0 : i32
    %c0_i32_1 = arith.constant 0 : i32
    return %c0_i32, %c0_i32_0 : i32, i32
  }
  func.func @transform_13(%arg0: i32) -> (i32, i32) {
    %c0_i32 = arith.constant 0 : i32
    %c0_i32_0 = arith.constant 0 : i32
    %c0_i32_1 = arith.constant 0 : i32
    return %c0_i32, %c0_i32_0 : i32, i32
  }
  func.func @transform_14(%arg0: i32) -> (i32, i32) {
    %c0_i32 = arith.constant 0 : i32
    %c0_i32_0 = arith.constant 0 : i32
    %c0_i32_1 = arith.constant 0 : i32
    return %c0_i32, %c0_i32_0 : i32, i32
  }
  func.func @transform_15(%arg0: i32) -> (i32, i32) {
    %c0_i32 = arith.constant 0 : i32
    %c0_i32_0 = arith.constant 0 : i32
    %c0_i32_1 = arith.constant 0 : i32
    return %c0_i32, %c0_i32_0 : i32, i32
  }
  func.func @transform_16(%arg0: i32) -> (i32, i32) {
    %c0_i32 = arith.constant 0 : i32
    %c0_i32_0 = arith.constant 0 : i32
    %c0_i32_1 = arith.constant 0 : i32
    return %c0_i32, %c0_i32_0 : i32, i32
  }
  func.func @transform_17(%arg0: i32) -> (i32, i32) {
    %c0_i32 = arith.constant 0 : i32
    %c0_i32_0 = arith.constant 0 : i32
    %c0_i32_1 = arith.constant 0 : i32
    return %c0_i32, %c0_i32_0 : i32, i32
  }
  func.func @transform_18(%arg0: i32) -> (i32, i32) {
    %c0_i32 = arith.constant 0 : i32
    %c0_i32_0 = arith.constant 0 : i32
    %c0_i32_1 = arith.constant 0 : i32
    return %c0_i32, %c0_i32_0 : i32, i32
  }
  func.func @transform_19(%arg0: i32) -> (i32, i32) {
    %c0_i32 = arith.constant 0 : i32
    %c0_i32_0 = arith.constant 0 : i32
    %c0_i32_1 = arith.constant 0 : i32
    return %c0_i32, %c0_i32_0 : i32, i32
  }
  func.func @transform_20(%arg0: i32) -> (i32, i32) {
    %c0_i32 = arith.constant 0 : i32
    %c0_i32_0 = arith.constant 0 : i32
    %c0_i32_1 = arith.constant 0 : i32
    return %c0_i32, %c0_i32_0 : i32, i32
  }
  func.func @transform_21(%arg0: i32) -> (i32, i32) {
    %c0_i32 = arith.constant 0 : i32
    %c0_i32_0 = arith.constant 0 : i32
    %c0_i32_1 = arith.constant 0 : i32
    return %c0_i32, %c0_i32_0 : i32, i32
  }
  func.func @transform_22(%arg0: i32) -> (i32, i32) {
    %c0_i32 = arith.constant 0 : i32
    %c0_i32_0 = arith.constant 0 : i32
    %c0_i32_1 = arith.constant 0 : i32
    return %c0_i32, %c0_i32_0 : i32, i32
  }
  func.func @transform_23(%arg0: i32) -> (i32, i32) {
    %c0_i32 = arith.constant 0 : i32
    %c0_i32_0 = arith.constant 0 : i32
    %c0_i32_1 = arith.constant 0 : i32
    return %c0_i32, %c0_i32_0 : i32, i32
  }
  func.func @transform_24(%arg0: i32) -> (i32, i32, i32) {
    %c0_i32 = arith.constant 0 : i32
    %c0_i32_0 = arith.constant 0 : i32
    %c0_i32_1 = arith.constant 0 : i32
    return %arg0, %c0_i32, %c0_i32_0 : i32, i32, i32
  }
  func.func @transform_25(%arg0: i32) -> (i32, i32, i32) {
    %c0_i32 = arith.constant 0 : i32
    %c0_i32_0 = arith.constant 0 : i32
    %c0_i32_1 = arith.constant 0 : i32
    return %arg0, %c0_i32, %c0_i32_0 : i32, i32, i32
  }
}

module attributes {stable_mosaic.version = 11 : i64} {
  func.func @down_dec0_kernel(%arg0: i32, %arg1: memref<1x32x16xf32, #tpu.memory_space<vmem>>, %arg2: memref<1x32x128xf32, #tpu.memory_space<vmem>>, %arg3: memref<1x32x32xbf16, #tpu.memory_space<vmem>>, %arg4: memref<1x1x32xf32, #tpu.memory_space<vmem>>, %arg5: memref<16x128xbf16, #tpu.memory_space<vmem>>, %arg6: memref<128x32xbf16, #tpu.memory_space<vmem>>, %arg7: memref<1x32xf32, #tpu.memory_space<vmem>>, %arg8: memref<1x32xf32, #tpu.memory_space<vmem>>, %arg9: memref<1x32xf32, #tpu.memory_space<vmem>>, %arg10: memref<32x32xbf16, #tpu.memory_space<vmem>>, %arg11: memref<32x32xbf16, #tpu.memory_space<vmem>>, %arg12: memref<32x32xbf16, #tpu.memory_space<vmem>>, %arg13: memref<32x32xbf16, #tpu.memory_space<vmem>>, %arg14: memref<1x32xf32, #tpu.memory_space<vmem>>, %arg15: memref<32x128xbf16, #tpu.memory_space<vmem>>, %arg16: memref<32x128xbf16, #tpu.memory_space<vmem>>, %arg17: memref<128x32xbf16, #tpu.memory_space<vmem>>, %arg18: memref<1x32xf32, #tpu.memory_space<vmem>>, %arg19: memref<1x32xf32, #tpu.memory_space<vmem>>, %arg20: memref<32x32xbf16, #tpu.memory_space<vmem>>, %arg21: memref<32x32xbf16, #tpu.memory_space<vmem>>, %arg22: memref<32x32xbf16, #tpu.memory_space<vmem>>, %arg23: memref<32x32xbf16, #tpu.memory_space<vmem>>, %arg24: memref<1x32xf32, #tpu.memory_space<vmem>>, %arg25: memref<32x128xbf16, #tpu.memory_space<vmem>>, %arg26: memref<32x128xbf16, #tpu.memory_space<vmem>>, %arg27: memref<128x32xbf16, #tpu.memory_space<vmem>>, %arg28: memref<1x32x32xf32, #tpu.memory_space<vmem>>) attributes {dimension_semantics = [#tpu.dimension_semantics<parallel>], iteration_bounds = array<i64: 2>, scalar_prefetch = 0 : i64, scratch_operands = 0 : i64, tpu.core_type = #tpu.core_type<tc>, window_params = [{transform_indices = @transform_0, window_bounds = array<i64: 1, 32, 16>}, {transform_indices = @transform_1, window_bounds = array<i64: 1, 32, 128>}, {transform_indices = @transform_2, window_bounds = array<i64: 1, 32, 32>}, {transform_indices = @transform_3, window_bounds = array<i64: 1, 1, 32>}, {pipeline_mode = #tpu.pipeline_mode<synchronous>, transform_indices = @transform_4, window_bounds = array<i64: 16, 128>}, {pipeline_mode = #tpu.pipeline_mode<synchronous>, transform_indices = @transform_5, window_bounds = array<i64: 128, 32>}, {pipeline_mode = #tpu.pipeline_mode<synchronous>, transform_indices = @transform_6, window_bounds = array<i64: 1, 32>}, {pipeline_mode = #tpu.pipeline_mode<synchronous>, transform_indices = @transform_7, window_bounds = array<i64: 1, 32>}, {pipeline_mode = #tpu.pipeline_mode<synchronous>, transform_indices = @transform_8, window_bounds = array<i64: 1, 32>}, {pipeline_mode = #tpu.pipeline_mode<synchronous>, transform_indices = @transform_9, window_bounds = array<i64: 32, 32>}, {pipeline_mode = #tpu.pipeline_mode<synchronous>, transform_indices = @transform_10, window_bounds = array<i64: 32, 32>}, {pipeline_mode = #tpu.pipeline_mode<synchronous>, transform_indices = @transform_11, window_bounds = array<i64: 32, 32>}, {pipeline_mode = #tpu.pipeline_mode<synchronous>, transform_indices = @transform_12, window_bounds = array<i64: 32, 32>}, {pipeline_mode = #tpu.pipeline_mode<synchronous>, transform_indices = @transform_13, window_bounds = array<i64: 1, 32>}, {pipeline_mode = #tpu.pipeline_mode<synchronous>, transform_indices = @transform_14, window_bounds = array<i64: 32, 128>}, {pipeline_mode = #tpu.pipeline_mode<synchronous>, transform_indices = @transform_15, window_bounds = array<i64: 32, 128>}, {pipeline_mode = #tpu.pipeline_mode<synchronous>, transform_indices = @transform_16, window_bounds = array<i64: 128, 32>}, {pipeline_mode = #tpu.pipeline_mode<synchronous>, transform_indices = @transform_17, window_bounds = array<i64: 1, 32>}, {pipeline_mode = #tpu.pipeline_mode<synchronous>, transform_indices = @transform_18, window_bounds = array<i64: 1, 32>}, {pipeline_mode = #tpu.pipeline_mode<synchronous>, transform_indices = @transform_19, window_bounds = array<i64: 32, 32>}, {pipeline_mode = #tpu.pipeline_mode<synchronous>, transform_indices = @transform_20, window_bounds = array<i64: 32, 32>}, {pipeline_mode = #tpu.pipeline_mode<synchronous>, transform_indices = @transform_21, window_bounds = array<i64: 32, 32>}, {pipeline_mode = #tpu.pipeline_mode<synchronous>, transform_indices = @transform_22, window_bounds = array<i64: 32, 32>}, {pipeline_mode = #tpu.pipeline_mode<synchronous>, transform_indices = @transform_23, window_bounds = array<i64: 1, 32>}, {pipeline_mode = #tpu.pipeline_mode<synchronous>, transform_indices = @transform_24, window_bounds = array<i64: 32, 128>}, {pipeline_mode = #tpu.pipeline_mode<synchronous>, transform_indices = @transform_25, window_bounds = array<i64: 32, 128>}, {pipeline_mode = #tpu.pipeline_mode<synchronous>, transform_indices = @transform_26, window_bounds = array<i64: 128, 32>}, {transform_indices = @transform_27, window_bounds = array<i64: 1, 32, 32>}]} {
    %c0 = arith.constant 0 : index
    %c0_0 = arith.constant 0 : index
    %c0_1 = arith.constant 0 : index
    %0 = vector.load %arg4[%c0, %c0_0, %c0_1] : memref<1x1x32xf32, #tpu.memory_space<vmem>>, vector<1x1x32xf32>
    %1 = vector.shape_cast %0 : vector<1x1x32xf32> to vector<1x32xf32>
    %c0_2 = arith.constant 0 : index
    %c0_3 = arith.constant 0 : index
    %c0_4 = arith.constant 0 : index
    %2 = vector.load %arg1[%c0_2, %c0_3, %c0_4] : memref<1x32x16xf32, #tpu.memory_space<vmem>>, vector<1x32x16xf32>
    %3 = vector.shape_cast %2 : vector<1x32x16xf32> to vector<32x16xf32>
    %4 = arith.truncf %3 : vector<32x16xf32> to vector<32x16xbf16>
    %c0_5 = arith.constant 0 : index
    %c0_6 = arith.constant 0 : index
    %5 = vector.load %arg5[%c0_5, %c0_6] : memref<16x128xbf16, #tpu.memory_space<vmem>>, vector<16x128xbf16>
    %cst = arith.constant dense<0.000000e+00> : vector<32x128xf32>
    %6 = tpu.matmul %4, %5, %cst {dimension_numbers = #tpu.dot_dimension_numbers<[1], [0], [0], [1], [0, 0, 1, 1], [], []>} : vector<32x16xbf16>, vector<16x128xbf16>, vector<32x128xf32> -> vector<32x128xf32>
    %c0_7 = arith.constant 0 : index
    %c0_8 = arith.constant 0 : index
    %c0_9 = arith.constant 0 : index
    %7 = vector.load %arg2[%c0_7, %c0_8, %c0_9] : memref<1x32x128xf32, #tpu.memory_space<vmem>>, vector<1x32x128xf32>
    %8 = vector.shape_cast %7 : vector<1x32x128xf32> to vector<32x128xf32>
    %9 = arith.mulf %6, %8 : vector<32x128xf32>
    %10 = arith.truncf %9 : vector<32x128xf32> to vector<32x128xbf16>
    %c0_10 = arith.constant 0 : index
    %c0_11 = arith.constant 0 : index
    %11 = vector.load %arg6[%c0_10, %c0_11] : memref<128x32xbf16, #tpu.memory_space<vmem>>, vector<128x32xbf16>
    %cst_12 = arith.constant dense<0.000000e+00> : vector<32x32xf32>
    %12 = tpu.matmul %10, %11, %cst_12 {dimension_numbers = #tpu.dot_dimension_numbers<[1], [0], [0], [1], [0, 0, 1, 1], [], []>} : vector<32x128xbf16>, vector<128x32xbf16>, vector<32x32xf32> -> vector<32x32xf32>
    %c0_13 = arith.constant 0 : index
    %c0_14 = arith.constant 0 : index
    %c0_15 = arith.constant 0 : index
    %13 = vector.load %arg3[%c0_13, %c0_14, %c0_15] : memref<1x32x32xbf16, #tpu.memory_space<vmem>>, vector<1x32x32xbf16>
    %14 = vector.shape_cast %13 : vector<1x32x32xbf16> to vector<32x32xbf16>
    %15 = arith.truncf %12 : vector<32x32xf32> to vector<32x32xbf16>
    %cst_16 = arith.constant dense<0.000000e+00> : vector<32x32xf32>
    %16 = tpu.matmul %14, %15, %cst_16 {dimension_numbers = #tpu.dot_dimension_numbers<[1], [0], [0], [1], [0, 0, 1, 1], [], []>} : vector<32x32xbf16>, vector<32x32xbf16>, vector<32x32xf32> -> vector<32x32xf32>
    %c0_17 = arith.constant 0 : index
    %c0_18 = arith.constant 0 : index
    %17 = vector.load %arg7[%c0_17, %c0_18] : memref<1x32xf32, #tpu.memory_space<vmem>>, vector<1x32xf32>
    %18 = vector.broadcast %17 : vector<1x32xf32> to vector<32x32xf32>
    %19 = arith.addf %16, %18 : vector<32x32xf32>
    %c0_19 = arith.constant 0 : index
    %c0_20 = arith.constant 0 : index
    %20 = vector.load %arg8[%c0_19, %c0_20] : memref<1x32xf32, #tpu.memory_space<vmem>>, vector<1x32xf32>
    %21 = arith.mulf %19, %19 : vector<32x32xf32>
    %cst_21 = arith.constant dense<0.000000e+00> : vector<32xf32>
    %22 = vector.multi_reduction <add>, %21, %cst_21 [1] : vector<32x32xf32> to vector<32xf32>
    %23 = vector.shape_cast %22 : vector<32xf32> to vector<32x1xf32>
    %cst_22 = arith.constant 3.200000e+01 : f32
    %24 = vector.broadcast %cst_22 : f32 to vector<32x1xf32>
    %25 = arith.divf %23, %24 : vector<32x1xf32>
    %cst_23 = arith.constant 9.99999997E-7 : f32
    %26 = vector.broadcast %cst_23 : f32 to vector<32x1xf32>
    %27 = arith.addf %25, %26 : vector<32x1xf32>
    %28 = math.rsqrt %27 : vector<32x1xf32>
    %29 = vector.broadcast %28 : vector<32x1xf32> to vector<32x32xf32>
    %30 = arith.mulf %19, %29 : vector<32x32xf32>
    %31 = vector.broadcast %20 : vector<1x32xf32> to vector<32x32xf32>
    %32 = arith.mulf %30, %31 : vector<32x32xf32>
    %c0_24 = arith.constant 0 : index
    %c0_25 = arith.constant 0 : index
    %33 = vector.load %arg9[%c0_24, %c0_25] : memref<1x32xf32, #tpu.memory_space<vmem>>, vector<1x32xf32>
    %c0_26 = arith.constant 0 : index
    %c0_27 = arith.constant 0 : index
    %34 = vector.load %arg10[%c0_26, %c0_27] : memref<32x32xbf16, #tpu.memory_space<vmem>>, vector<32x32xbf16>
    %c0_28 = arith.constant 0 : index
    %c0_29 = arith.constant 0 : index
    %35 = vector.load %arg11[%c0_28, %c0_29] : memref<32x32xbf16, #tpu.memory_space<vmem>>, vector<32x32xbf16>
    %c0_30 = arith.constant 0 : index
    %c0_31 = arith.constant 0 : index
    %36 = vector.load %arg12[%c0_30, %c0_31] : memref<32x32xbf16, #tpu.memory_space<vmem>>, vector<32x32xbf16>
    %c0_32 = arith.constant 0 : index
    %c0_33 = arith.constant 0 : index
    %37 = vector.load %arg13[%c0_32, %c0_33] : memref<32x32xbf16, #tpu.memory_space<vmem>>, vector<32x32xbf16>
    %c0_34 = arith.constant 0 : index
    %c0_35 = arith.constant 0 : index
    %38 = vector.load %arg14[%c0_34, %c0_35] : memref<1x32xf32, #tpu.memory_space<vmem>>, vector<1x32xf32>
    %c0_36 = arith.constant 0 : index
    %c0_37 = arith.constant 0 : index
    %39 = vector.load %arg15[%c0_36, %c0_37] : memref<32x128xbf16, #tpu.memory_space<vmem>>, vector<32x128xbf16>
    %c0_38 = arith.constant 0 : index
    %c0_39 = arith.constant 0 : index
    %40 = vector.load %arg16[%c0_38, %c0_39] : memref<32x128xbf16, #tpu.memory_space<vmem>>, vector<32x128xbf16>
    %c0_40 = arith.constant 0 : index
    %c0_41 = arith.constant 0 : index
    %41 = vector.load %arg17[%c0_40, %c0_41] : memref<128x32xbf16, #tpu.memory_space<vmem>>, vector<128x32xbf16>
    %42 = arith.mulf %32, %32 : vector<32x32xf32>
    %cst_42 = arith.constant dense<0.000000e+00> : vector<32xf32>
    %43 = vector.multi_reduction <add>, %42, %cst_42 [1] : vector<32x32xf32> to vector<32xf32>
    %44 = vector.shape_cast %43 : vector<32xf32> to vector<32x1xf32>
    %cst_43 = arith.constant 3.200000e+01 : f32
    %45 = vector.broadcast %cst_43 : f32 to vector<32x1xf32>
    %46 = arith.divf %44, %45 : vector<32x1xf32>
    %cst_44 = arith.constant 9.99999997E-7 : f32
    %47 = vector.broadcast %cst_44 : f32 to vector<32x1xf32>
    %48 = arith.addf %46, %47 : vector<32x1xf32>
    %49 = math.rsqrt %48 : vector<32x1xf32>
    %50 = vector.broadcast %49 : vector<32x1xf32> to vector<32x32xf32>
    %51 = arith.mulf %32, %50 : vector<32x32xf32>
    %52 = vector.broadcast %33 : vector<1x32xf32> to vector<32x32xf32>
    %53 = arith.mulf %51, %52 : vector<32x32xf32>
    %54 = arith.truncf %53 : vector<32x32xf32> to vector<32x32xbf16>
    %cst_45 = arith.constant dense<0.000000e+00> : vector<32x32xf32>
    %55 = tpu.matmul %54, %34, %cst_45 {dimension_numbers = #tpu.dot_dimension_numbers<[1], [0], [0], [1], [0, 0, 1, 1], [], []>} : vector<32x32xbf16>, vector<32x32xbf16>, vector<32x32xf32> -> vector<32x32xf32>
    %56 = arith.truncf %55 : vector<32x32xf32> to vector<32x32xbf16>
    %cst_46 = arith.constant dense<0.000000e+00> : vector<32x32xf32>
    %57 = tpu.matmul %54, %35, %cst_46 {dimension_numbers = #tpu.dot_dimension_numbers<[1], [0], [0], [1], [0, 0, 1, 1], [], []>} : vector<32x32xbf16>, vector<32x32xbf16>, vector<32x32xf32> -> vector<32x32xf32>
    %58 = arith.truncf %57 : vector<32x32xf32> to vector<32x32xbf16>
    %cst_47 = arith.constant dense<0.000000e+00> : vector<32x32xf32>
    %59 = tpu.matmul %54, %36, %cst_47 {dimension_numbers = #tpu.dot_dimension_numbers<[1], [0], [0], [1], [0, 0, 1, 1], [], []>} : vector<32x32xbf16>, vector<32x32xbf16>, vector<32x32xf32> -> vector<32x32xf32>
    %60 = arith.truncf %59 : vector<32x32xf32> to vector<32x32xbf16>
    %61 = vector.shape_cast %1 : vector<1x32xf32> to vector<1x32xf32>
    %62 = vector.broadcast %61 : vector<1x32xf32> to vector<32x32xf32>
    %63 = vector.extract_strided_slice %56 {offsets = [0, 0], sizes = [32, 8], strides = [1, 1]} : vector<32x32xbf16> to vector<32x8xbf16>
    %64 = vector.extract_strided_slice %58 {offsets = [0, 0], sizes = [32, 8], strides = [1, 1]} : vector<32x32xbf16> to vector<32x8xbf16>
    %cst_48 = arith.constant dense<0.000000e+00> : vector<32x32xf32>
    %65 = tpu.matmul %63, %64, %cst_48 {dimension_numbers = #tpu.dot_dimension_numbers<[1], [1], [0], [0], [0, 0, 1, 0], [], []>} : vector<32x8xbf16>, vector<32x8xbf16>, vector<32x32xf32> -> vector<32x32xf32>
    %66 = arith.addf %65, %62 : vector<32x32xf32>
    %cst_49 = arith.constant dense<0xFF800000> : vector<32xf32>
    %67 = vector.multi_reduction <maximumf>, %66, %cst_49 [1] : vector<32x32xf32> to vector<32xf32>
    %68 = vector.shape_cast %67 : vector<32xf32> to vector<32x1xf32>
    %69 = vector.broadcast %68 : vector<32x1xf32> to vector<32x32xf32>
    %70 = arith.subf %66, %69 : vector<32x32xf32>
    %71 = math.exp %70 : vector<32x32xf32>
    %cst_50 = arith.constant dense<0.000000e+00> : vector<32xf32>
    %72 = vector.multi_reduction <add>, %71, %cst_50 [1] : vector<32x32xf32> to vector<32xf32>
    %73 = vector.shape_cast %72 : vector<32xf32> to vector<32x1xf32>
    %74 = tpu.reciprocal %73 {approx = true} : vector<32x1xf32> -> vector<32x1xf32>
    %75 = vector.broadcast %74 : vector<32x1xf32> to vector<32x32xf32>
    %76 = arith.mulf %71, %75 : vector<32x32xf32>
    %77 = arith.truncf %76 : vector<32x32xf32> to vector<32x32xbf16>
    %78 = vector.extract_strided_slice %60 {offsets = [0, 0], sizes = [32, 8], strides = [1, 1]} : vector<32x32xbf16> to vector<32x8xbf16>
    %cst_51 = arith.constant dense<0.000000e+00> : vector<32x8xf32>
    %79 = tpu.matmul %77, %78, %cst_51 {dimension_numbers = #tpu.dot_dimension_numbers<[1], [0], [0], [1], [0, 0, 1, 1], [], []>} : vector<32x32xbf16>, vector<32x8xbf16>, vector<32x8xf32> -> vector<32x8xf32>
    %80 = vector.extract_strided_slice %56 {offsets = [0, 8], sizes = [32, 8], strides = [1, 1]} : vector<32x32xbf16> to vector<32x8xbf16>
    %81 = vector.extract_strided_slice %58 {offsets = [0, 8], sizes = [32, 8], strides = [1, 1]} : vector<32x32xbf16> to vector<32x8xbf16>
    %cst_52 = arith.constant dense<0.000000e+00> : vector<32x32xf32>
    %82 = tpu.matmul %80, %81, %cst_52 {dimension_numbers = #tpu.dot_dimension_numbers<[1], [1], [0], [0], [0, 0, 1, 0], [], []>} : vector<32x8xbf16>, vector<32x8xbf16>, vector<32x32xf32> -> vector<32x32xf32>
    %83 = arith.addf %82, %62 : vector<32x32xf32>
    %cst_53 = arith.constant dense<0xFF800000> : vector<32xf32>
    %84 = vector.multi_reduction <maximumf>, %83, %cst_53 [1] : vector<32x32xf32> to vector<32xf32>
    %85 = vector.shape_cast %84 : vector<32xf32> to vector<32x1xf32>
    %86 = vector.broadcast %85 : vector<32x1xf32> to vector<32x32xf32>
    %87 = arith.subf %83, %86 : vector<32x32xf32>
    %88 = math.exp %87 : vector<32x32xf32>
    %cst_54 = arith.constant dense<0.000000e+00> : vector<32xf32>
    %89 = vector.multi_reduction <add>, %88, %cst_54 [1] : vector<32x32xf32> to vector<32xf32>
    %90 = vector.shape_cast %89 : vector<32xf32> to vector<32x1xf32>
    %91 = tpu.reciprocal %90 {approx = true} : vector<32x1xf32> -> vector<32x1xf32>
    %92 = vector.broadcast %91 : vector<32x1xf32> to vector<32x32xf32>
    %93 = arith.mulf %88, %92 : vector<32x32xf32>
    %94 = arith.truncf %93 : vector<32x32xf32> to vector<32x32xbf16>
    %95 = vector.extract_strided_slice %60 {offsets = [0, 8], sizes = [32, 8], strides = [1, 1]} : vector<32x32xbf16> to vector<32x8xbf16>
    %cst_55 = arith.constant dense<0.000000e+00> : vector<32x8xf32>
    %96 = tpu.matmul %94, %95, %cst_55 {dimension_numbers = #tpu.dot_dimension_numbers<[1], [0], [0], [1], [0, 0, 1, 1], [], []>} : vector<32x32xbf16>, vector<32x8xbf16>, vector<32x8xf32> -> vector<32x8xf32>
    %97 = vector.extract_strided_slice %56 {offsets = [0, 16], sizes = [32, 8], strides = [1, 1]} : vector<32x32xbf16> to vector<32x8xbf16>
    %98 = vector.extract_strided_slice %58 {offsets = [0, 16], sizes = [32, 8], strides = [1, 1]} : vector<32x32xbf16> to vector<32x8xbf16>
    %cst_56 = arith.constant dense<0.000000e+00> : vector<32x32xf32>
    %99 = tpu.matmul %97, %98, %cst_56 {dimension_numbers = #tpu.dot_dimension_numbers<[1], [1], [0], [0], [0, 0, 1, 0], [], []>} : vector<32x8xbf16>, vector<32x8xbf16>, vector<32x32xf32> -> vector<32x32xf32>
    %100 = arith.addf %99, %62 : vector<32x32xf32>
    %cst_57 = arith.constant dense<0xFF800000> : vector<32xf32>
    %101 = vector.multi_reduction <maximumf>, %100, %cst_57 [1] : vector<32x32xf32> to vector<32xf32>
    %102 = vector.shape_cast %101 : vector<32xf32> to vector<32x1xf32>
    %103 = vector.broadcast %102 : vector<32x1xf32> to vector<32x32xf32>
    %104 = arith.subf %100, %103 : vector<32x32xf32>
    %105 = math.exp %104 : vector<32x32xf32>
    %cst_58 = arith.constant dense<0.000000e+00> : vector<32xf32>
    %106 = vector.multi_reduction <add>, %105, %cst_58 [1] : vector<32x32xf32> to vector<32xf32>
    %107 = vector.shape_cast %106 : vector<32xf32> to vector<32x1xf32>
    %108 = tpu.reciprocal %107 {approx = true} : vector<32x1xf32> -> vector<32x1xf32>
    %109 = vector.broadcast %108 : vector<32x1xf32> to vector<32x32xf32>
    %110 = arith.mulf %105, %109 : vector<32x32xf32>
    %111 = arith.truncf %110 : vector<32x32xf32> to vector<32x32xbf16>
    %112 = vector.extract_strided_slice %60 {offsets = [0, 16], sizes = [32, 8], strides = [1, 1]} : vector<32x32xbf16> to vector<32x8xbf16>
    %cst_59 = arith.constant dense<0.000000e+00> : vector<32x8xf32>
    %113 = tpu.matmul %111, %112, %cst_59 {dimension_numbers = #tpu.dot_dimension_numbers<[1], [0], [0], [1], [0, 0, 1, 1], [], []>} : vector<32x32xbf16>, vector<32x8xbf16>, vector<32x8xf32> -> vector<32x8xf32>
    %114 = vector.extract_strided_slice %56 {offsets = [0, 24], sizes = [32, 8], strides = [1, 1]} : vector<32x32xbf16> to vector<32x8xbf16>
    %115 = vector.extract_strided_slice %58 {offsets = [0, 24], sizes = [32, 8], strides = [1, 1]} : vector<32x32xbf16> to vector<32x8xbf16>
    %cst_60 = arith.constant dense<0.000000e+00> : vector<32x32xf32>
    %116 = tpu.matmul %114, %115, %cst_60 {dimension_numbers = #tpu.dot_dimension_numbers<[1], [1], [0], [0], [0, 0, 1, 0], [], []>} : vector<32x8xbf16>, vector<32x8xbf16>, vector<32x32xf32> -> vector<32x32xf32>
    %117 = arith.addf %116, %62 : vector<32x32xf32>
    %cst_61 = arith.constant dense<0xFF800000> : vector<32xf32>
    %118 = vector.multi_reduction <maximumf>, %117, %cst_61 [1] : vector<32x32xf32> to vector<32xf32>
    %119 = vector.shape_cast %118 : vector<32xf32> to vector<32x1xf32>
    %120 = vector.broadcast %119 : vector<32x1xf32> to vector<32x32xf32>
    %121 = arith.subf %117, %120 : vector<32x32xf32>
    %122 = math.exp %121 : vector<32x32xf32>
    %cst_62 = arith.constant dense<0.000000e+00> : vector<32xf32>
    %123 = vector.multi_reduction <add>, %122, %cst_62 [1] : vector<32x32xf32> to vector<32xf32>
    %124 = vector.shape_cast %123 : vector<32xf32> to vector<32x1xf32>
    %125 = tpu.reciprocal %124 {approx = true} : vector<32x1xf32> -> vector<32x1xf32>
    %126 = vector.broadcast %125 : vector<32x1xf32> to vector<32x32xf32>
    %127 = arith.mulf %122, %126 : vector<32x32xf32>
    %128 = arith.truncf %127 : vector<32x32xf32> to vector<32x32xbf16>
    %129 = vector.extract_strided_slice %60 {offsets = [0, 24], sizes = [32, 8], strides = [1, 1]} : vector<32x32xbf16> to vector<32x8xbf16>
    %cst_63 = arith.constant dense<0.000000e+00> : vector<32x8xf32>
    %130 = tpu.matmul %128, %129, %cst_63 {dimension_numbers = #tpu.dot_dimension_numbers<[1], [0], [0], [1], [0, 0, 1, 1], [], []>} : vector<32x32xbf16>, vector<32x8xbf16>, vector<32x8xf32> -> vector<32x8xf32>
    %131 = tpu.concatenate %79, %96, %113, %130 in 1 : vector<32x8xf32>, vector<32x8xf32>, vector<32x8xf32>, vector<32x8xf32> -> vector<32x32xf32>
    %132 = arith.truncf %131 : vector<32x32xf32> to vector<32x32xbf16>
    %cst_64 = arith.constant dense<0.000000e+00> : vector<32x32xf32>
    %133 = tpu.matmul %132, %37, %cst_64 {dimension_numbers = #tpu.dot_dimension_numbers<[1], [0], [0], [1], [0, 0, 1, 1], [], []>} : vector<32x32xbf16>, vector<32x32xbf16>, vector<32x32xf32> -> vector<32x32xf32>
    %134 = arith.addf %32, %133 : vector<32x32xf32>
    %135 = arith.mulf %134, %134 : vector<32x32xf32>
    %cst_65 = arith.constant dense<0.000000e+00> : vector<32xf32>
    %136 = vector.multi_reduction <add>, %135, %cst_65 [1] : vector<32x32xf32> to vector<32xf32>
    %137 = vector.shape_cast %136 : vector<32xf32> to vector<32x1xf32>
    %cst_66 = arith.constant 3.200000e+01 : f32
    %138 = vector.broadcast %cst_66 : f32 to vector<32x1xf32>
    %139 = arith.divf %137, %138 : vector<32x1xf32>
    %cst_67 = arith.constant 9.99999997E-7 : f32
    %140 = vector.broadcast %cst_67 : f32 to vector<32x1xf32>
    %141 = arith.addf %139, %140 : vector<32x1xf32>
    %142 = math.rsqrt %141 : vector<32x1xf32>
    %143 = vector.broadcast %142 : vector<32x1xf32> to vector<32x32xf32>
    %144 = arith.mulf %134, %143 : vector<32x32xf32>
    %145 = vector.broadcast %38 : vector<1x32xf32> to vector<32x32xf32>
    %146 = arith.mulf %144, %145 : vector<32x32xf32>
    %147 = arith.truncf %146 : vector<32x32xf32> to vector<32x32xbf16>
    %cst_68 = arith.constant dense<0.000000e+00> : vector<32x128xf32>
    %148 = tpu.matmul %147, %39, %cst_68 {dimension_numbers = #tpu.dot_dimension_numbers<[1], [0], [0], [1], [0, 0, 1, 1], [], []>} : vector<32x32xbf16>, vector<32x128xbf16>, vector<32x128xf32> -> vector<32x128xf32>
    %cst_69 = arith.constant dense<0.000000e+00> : vector<32x128xf32>
    %149 = tpu.matmul %147, %40, %cst_69 {dimension_numbers = #tpu.dot_dimension_numbers<[1], [0], [0], [1], [0, 0, 1, 1], [], []>} : vector<32x32xbf16>, vector<32x128xbf16>, vector<32x128xf32> -> vector<32x128xf32>
    %150 = arith.negf %148 : vector<32x128xf32>
    %151 = math.exp %150 : vector<32x128xf32>
    %cst_70 = arith.constant 1.000000e+00 : f32
    %152 = vector.broadcast %cst_70 : f32 to vector<32x128xf32>
    %153 = arith.addf %152, %151 : vector<32x128xf32>
    %154 = arith.divf %152, %153 : vector<32x128xf32>
    %155 = arith.mulf %148, %154 : vector<32x128xf32>
    %156 = arith.mulf %155, %149 : vector<32x128xf32>
    %157 = arith.truncf %156 : vector<32x128xf32> to vector<32x128xbf16>
    %cst_71 = arith.constant dense<0.000000e+00> : vector<32x32xf32>
    %158 = tpu.matmul %157, %41, %cst_71 {dimension_numbers = #tpu.dot_dimension_numbers<[1], [0], [0], [1], [0, 0, 1, 1], [], []>} : vector<32x128xbf16>, vector<128x32xbf16>, vector<32x32xf32> -> vector<32x32xf32>
    %159 = arith.addf %134, %158 : vector<32x32xf32>
    %c0_72 = arith.constant 0 : index
    %c0_73 = arith.constant 0 : index
    %160 = vector.load %arg18[%c0_72, %c0_73] : memref<1x32xf32, #tpu.memory_space<vmem>>, vector<1x32xf32>
    %161 = arith.mulf %159, %159 : vector<32x32xf32>
    %cst_74 = arith.constant dense<0.000000e+00> : vector<32xf32>
    %162 = vector.multi_reduction <add>, %161, %cst_74 [1] : vector<32x32xf32> to vector<32xf32>
    %163 = vector.shape_cast %162 : vector<32xf32> to vector<32x1xf32>
    %cst_75 = arith.constant 3.200000e+01 : f32
    %164 = vector.broadcast %cst_75 : f32 to vector<32x1xf32>
    %165 = arith.divf %163, %164 : vector<32x1xf32>
    %cst_76 = arith.constant 9.99999997E-7 : f32
    %166 = vector.broadcast %cst_76 : f32 to vector<32x1xf32>
    %167 = arith.addf %165, %166 : vector<32x1xf32>
    %168 = math.rsqrt %167 : vector<32x1xf32>
    %169 = vector.broadcast %168 : vector<32x1xf32> to vector<32x32xf32>
    %170 = arith.mulf %159, %169 : vector<32x32xf32>
    %171 = vector.broadcast %160 : vector<1x32xf32> to vector<32x32xf32>
    %172 = arith.mulf %170, %171 : vector<32x32xf32>
    %c0_77 = arith.constant 0 : index
    %c0_78 = arith.constant 0 : index
    %173 = vector.load %arg19[%c0_77, %c0_78] : memref<1x32xf32, #tpu.memory_space<vmem>>, vector<1x32xf32>
    %c0_79 = arith.constant 0 : index
    %c0_80 = arith.constant 0 : index
    %174 = vector.load %arg20[%c0_79, %c0_80] : memref<32x32xbf16, #tpu.memory_space<vmem>>, vector<32x32xbf16>
    %c0_81 = arith.constant 0 : index
    %c0_82 = arith.constant 0 : index
    %175 = vector.load %arg21[%c0_81, %c0_82] : memref<32x32xbf16, #tpu.memory_space<vmem>>, vector<32x32xbf16>
    %c0_83 = arith.constant 0 : index
    %c0_84 = arith.constant 0 : index
    %176 = vector.load %arg22[%c0_83, %c0_84] : memref<32x32xbf16, #tpu.memory_space<vmem>>, vector<32x32xbf16>
    %c0_85 = arith.constant 0 : index
    %c0_86 = arith.constant 0 : index
    %177 = vector.load %arg23[%c0_85, %c0_86] : memref<32x32xbf16, #tpu.memory_space<vmem>>, vector<32x32xbf16>
    %c0_87 = arith.constant 0 : index
    %c0_88 = arith.constant 0 : index
    %178 = vector.load %arg24[%c0_87, %c0_88] : memref<1x32xf32, #tpu.memory_space<vmem>>, vector<1x32xf32>
    %c0_89 = arith.constant 0 : index
    %c0_90 = arith.constant 0 : index
    %179 = vector.load %arg25[%c0_89, %c0_90] : memref<32x128xbf16, #tpu.memory_space<vmem>>, vector<32x128xbf16>
    %c0_91 = arith.constant 0 : index
    %c0_92 = arith.constant 0 : index
    %180 = vector.load %arg26[%c0_91, %c0_92] : memref<32x128xbf16, #tpu.memory_space<vmem>>, vector<32x128xbf16>
    %c0_93 = arith.constant 0 : index
    %c0_94 = arith.constant 0 : index
    %181 = vector.load %arg27[%c0_93, %c0_94] : memref<128x32xbf16, #tpu.memory_space<vmem>>, vector<128x32xbf16>
    %182 = arith.mulf %172, %172 : vector<32x32xf32>
    %cst_95 = arith.constant dense<0.000000e+00> : vector<32xf32>
    %183 = vector.multi_reduction <add>, %182, %cst_95 [1] : vector<32x32xf32> to vector<32xf32>
    %184 = vector.shape_cast %183 : vector<32xf32> to vector<32x1xf32>
    %cst_96 = arith.constant 3.200000e+01 : f32
    %185 = vector.broadcast %cst_96 : f32 to vector<32x1xf32>
    %186 = arith.divf %184, %185 : vector<32x1xf32>
    %cst_97 = arith.constant 9.99999997E-7 : f32
    %187 = vector.broadcast %cst_97 : f32 to vector<32x1xf32>
    %188 = arith.addf %186, %187 : vector<32x1xf32>
    %189 = math.rsqrt %188 : vector<32x1xf32>
    %190 = vector.broadcast %189 : vector<32x1xf32> to vector<32x32xf32>
    %191 = arith.mulf %172, %190 : vector<32x32xf32>
    %192 = vector.broadcast %173 : vector<1x32xf32> to vector<32x32xf32>
    %193 = arith.mulf %191, %192 : vector<32x32xf32>
    %194 = arith.truncf %193 : vector<32x32xf32> to vector<32x32xbf16>
    %cst_98 = arith.constant dense<0.000000e+00> : vector<32x32xf32>
    %195 = tpu.matmul %194, %174, %cst_98 {dimension_numbers = #tpu.dot_dimension_numbers<[1], [0], [0], [1], [0, 0, 1, 1], [], []>} : vector<32x32xbf16>, vector<32x32xbf16>, vector<32x32xf32> -> vector<32x32xf32>
    %196 = arith.truncf %195 : vector<32x32xf32> to vector<32x32xbf16>
    %cst_99 = arith.constant dense<0.000000e+00> : vector<32x32xf32>
    %197 = tpu.matmul %194, %175, %cst_99 {dimension_numbers = #tpu.dot_dimension_numbers<[1], [0], [0], [1], [0, 0, 1, 1], [], []>} : vector<32x32xbf16>, vector<32x32xbf16>, vector<32x32xf32> -> vector<32x32xf32>
    %198 = arith.truncf %197 : vector<32x32xf32> to vector<32x32xbf16>
    %cst_100 = arith.constant dense<0.000000e+00> : vector<32x32xf32>
    %199 = tpu.matmul %194, %176, %cst_100 {dimension_numbers = #tpu.dot_dimension_numbers<[1], [0], [0], [1], [0, 0, 1, 1], [], []>} : vector<32x32xbf16>, vector<32x32xbf16>, vector<32x32xf32> -> vector<32x32xf32>
    %200 = arith.truncf %199 : vector<32x32xf32> to vector<32x32xbf16>
    %201 = vector.shape_cast %1 : vector<1x32xf32> to vector<1x32xf32>
    %202 = vector.broadcast %201 : vector<1x32xf32> to vector<32x32xf32>
    %203 = vector.extract_strided_slice %196 {offsets = [0, 0], sizes = [32, 8], strides = [1, 1]} : vector<32x32xbf16> to vector<32x8xbf16>
    %204 = vector.extract_strided_slice %198 {offsets = [0, 0], sizes = [32, 8], strides = [1, 1]} : vector<32x32xbf16> to vector<32x8xbf16>
    %cst_101 = arith.constant dense<0.000000e+00> : vector<32x32xf32>
    %205 = tpu.matmul %203, %204, %cst_101 {dimension_numbers = #tpu.dot_dimension_numbers<[1], [1], [0], [0], [0, 0, 1, 0], [], []>} : vector<32x8xbf16>, vector<32x8xbf16>, vector<32x32xf32> -> vector<32x32xf32>
    %206 = arith.addf %205, %202 : vector<32x32xf32>
    %cst_102 = arith.constant dense<0xFF800000> : vector<32xf32>
    %207 = vector.multi_reduction <maximumf>, %206, %cst_102 [1] : vector<32x32xf32> to vector<32xf32>
    %208 = vector.shape_cast %207 : vector<32xf32> to vector<32x1xf32>
    %209 = vector.broadcast %208 : vector<32x1xf32> to vector<32x32xf32>
    %210 = arith.subf %206, %209 : vector<32x32xf32>
    %211 = math.exp %210 : vector<32x32xf32>
    %cst_103 = arith.constant dense<0.000000e+00> : vector<32xf32>
    %212 = vector.multi_reduction <add>, %211, %cst_103 [1] : vector<32x32xf32> to vector<32xf32>
    %213 = vector.shape_cast %212 : vector<32xf32> to vector<32x1xf32>
    %214 = tpu.reciprocal %213 {approx = true} : vector<32x1xf32> -> vector<32x1xf32>
    %215 = vector.broadcast %214 : vector<32x1xf32> to vector<32x32xf32>
    %216 = arith.mulf %211, %215 : vector<32x32xf32>
    %217 = arith.truncf %216 : vector<32x32xf32> to vector<32x32xbf16>
    %218 = vector.extract_strided_slice %200 {offsets = [0, 0], sizes = [32, 8], strides = [1, 1]} : vector<32x32xbf16> to vector<32x8xbf16>
    %cst_104 = arith.constant dense<0.000000e+00> : vector<32x8xf32>
    %219 = tpu.matmul %217, %218, %cst_104 {dimension_numbers = #tpu.dot_dimension_numbers<[1], [0], [0], [1], [0, 0, 1, 1], [], []>} : vector<32x32xbf16>, vector<32x8xbf16>, vector<32x8xf32> -> vector<32x8xf32>
    %220 = vector.extract_strided_slice %196 {offsets = [0, 8], sizes = [32, 8], strides = [1, 1]} : vector<32x32xbf16> to vector<32x8xbf16>
    %221 = vector.extract_strided_slice %198 {offsets = [0, 8], sizes = [32, 8], strides = [1, 1]} : vector<32x32xbf16> to vector<32x8xbf16>
    %cst_105 = arith.constant dense<0.000000e+00> : vector<32x32xf32>
    %222 = tpu.matmul %220, %221, %cst_105 {dimension_numbers = #tpu.dot_dimension_numbers<[1], [1], [0], [0], [0, 0, 1, 0], [], []>} : vector<32x8xbf16>, vector<32x8xbf16>, vector<32x32xf32> -> vector<32x32xf32>
    %223 = arith.addf %222, %202 : vector<32x32xf32>
    %cst_106 = arith.constant dense<0xFF800000> : vector<32xf32>
    %224 = vector.multi_reduction <maximumf>, %223, %cst_106 [1] : vector<32x32xf32> to vector<32xf32>
    %225 = vector.shape_cast %224 : vector<32xf32> to vector<32x1xf32>
    %226 = vector.broadcast %225 : vector<32x1xf32> to vector<32x32xf32>
    %227 = arith.subf %223, %226 : vector<32x32xf32>
    %228 = math.exp %227 : vector<32x32xf32>
    %cst_107 = arith.constant dense<0.000000e+00> : vector<32xf32>
    %229 = vector.multi_reduction <add>, %228, %cst_107 [1] : vector<32x32xf32> to vector<32xf32>
    %230 = vector.shape_cast %229 : vector<32xf32> to vector<32x1xf32>
    %231 = tpu.reciprocal %230 {approx = true} : vector<32x1xf32> -> vector<32x1xf32>
    %232 = vector.broadcast %231 : vector<32x1xf32> to vector<32x32xf32>
    %233 = arith.mulf %228, %232 : vector<32x32xf32>
    %234 = arith.truncf %233 : vector<32x32xf32> to vector<32x32xbf16>
    %235 = vector.extract_strided_slice %200 {offsets = [0, 8], sizes = [32, 8], strides = [1, 1]} : vector<32x32xbf16> to vector<32x8xbf16>
    %cst_108 = arith.constant dense<0.000000e+00> : vector<32x8xf32>
    %236 = tpu.matmul %234, %235, %cst_108 {dimension_numbers = #tpu.dot_dimension_numbers<[1], [0], [0], [1], [0, 0, 1, 1], [], []>} : vector<32x32xbf16>, vector<32x8xbf16>, vector<32x8xf32> -> vector<32x8xf32>
    %237 = vector.extract_strided_slice %196 {offsets = [0, 16], sizes = [32, 8], strides = [1, 1]} : vector<32x32xbf16> to vector<32x8xbf16>
    %238 = vector.extract_strided_slice %198 {offsets = [0, 16], sizes = [32, 8], strides = [1, 1]} : vector<32x32xbf16> to vector<32x8xbf16>
    %cst_109 = arith.constant dense<0.000000e+00> : vector<32x32xf32>
    %239 = tpu.matmul %237, %238, %cst_109 {dimension_numbers = #tpu.dot_dimension_numbers<[1], [1], [0], [0], [0, 0, 1, 0], [], []>} : vector<32x8xbf16>, vector<32x8xbf16>, vector<32x32xf32> -> vector<32x32xf32>
    %240 = arith.addf %239, %202 : vector<32x32xf32>
    %cst_110 = arith.constant dense<0xFF800000> : vector<32xf32>
    %241 = vector.multi_reduction <maximumf>, %240, %cst_110 [1] : vector<32x32xf32> to vector<32xf32>
    %242 = vector.shape_cast %241 : vector<32xf32> to vector<32x1xf32>
    %243 = vector.broadcast %242 : vector<32x1xf32> to vector<32x32xf32>
    %244 = arith.subf %240, %243 : vector<32x32xf32>
    %245 = math.exp %244 : vector<32x32xf32>
    %cst_111 = arith.constant dense<0.000000e+00> : vector<32xf32>
    %246 = vector.multi_reduction <add>, %245, %cst_111 [1] : vector<32x32xf32> to vector<32xf32>
    %247 = vector.shape_cast %246 : vector<32xf32> to vector<32x1xf32>
    %248 = tpu.reciprocal %247 {approx = true} : vector<32x1xf32> -> vector<32x1xf32>
    %249 = vector.broadcast %248 : vector<32x1xf32> to vector<32x32xf32>
    %250 = arith.mulf %245, %249 : vector<32x32xf32>
    %251 = arith.truncf %250 : vector<32x32xf32> to vector<32x32xbf16>
    %252 = vector.extract_strided_slice %200 {offsets = [0, 16], sizes = [32, 8], strides = [1, 1]} : vector<32x32xbf16> to vector<32x8xbf16>
    %cst_112 = arith.constant dense<0.000000e+00> : vector<32x8xf32>
    %253 = tpu.matmul %251, %252, %cst_112 {dimension_numbers = #tpu.dot_dimension_numbers<[1], [0], [0], [1], [0, 0, 1, 1], [], []>} : vector<32x32xbf16>, vector<32x8xbf16>, vector<32x8xf32> -> vector<32x8xf32>
    %254 = vector.extract_strided_slice %196 {offsets = [0, 24], sizes = [32, 8], strides = [1, 1]} : vector<32x32xbf16> to vector<32x8xbf16>
    %255 = vector.extract_strided_slice %198 {offsets = [0, 24], sizes = [32, 8], strides = [1, 1]} : vector<32x32xbf16> to vector<32x8xbf16>
    %cst_113 = arith.constant dense<0.000000e+00> : vector<32x32xf32>
    %256 = tpu.matmul %254, %255, %cst_113 {dimension_numbers = #tpu.dot_dimension_numbers<[1], [1], [0], [0], [0, 0, 1, 0], [], []>} : vector<32x8xbf16>, vector<32x8xbf16>, vector<32x32xf32> -> vector<32x32xf32>
    %257 = arith.addf %256, %202 : vector<32x32xf32>
    %cst_114 = arith.constant dense<0xFF800000> : vector<32xf32>
    %258 = vector.multi_reduction <maximumf>, %257, %cst_114 [1] : vector<32x32xf32> to vector<32xf32>
    %259 = vector.shape_cast %258 : vector<32xf32> to vector<32x1xf32>
    %260 = vector.broadcast %259 : vector<32x1xf32> to vector<32x32xf32>
    %261 = arith.subf %257, %260 : vector<32x32xf32>
    %262 = math.exp %261 : vector<32x32xf32>
    %cst_115 = arith.constant dense<0.000000e+00> : vector<32xf32>
    %263 = vector.multi_reduction <add>, %262, %cst_115 [1] : vector<32x32xf32> to vector<32xf32>
    %264 = vector.shape_cast %263 : vector<32xf32> to vector<32x1xf32>
    %265 = tpu.reciprocal %264 {approx = true} : vector<32x1xf32> -> vector<32x1xf32>
    %266 = vector.broadcast %265 : vector<32x1xf32> to vector<32x32xf32>
    %267 = arith.mulf %262, %266 : vector<32x32xf32>
    %268 = arith.truncf %267 : vector<32x32xf32> to vector<32x32xbf16>
    %269 = vector.extract_strided_slice %200 {offsets = [0, 24], sizes = [32, 8], strides = [1, 1]} : vector<32x32xbf16> to vector<32x8xbf16>
    %cst_116 = arith.constant dense<0.000000e+00> : vector<32x8xf32>
    %270 = tpu.matmul %268, %269, %cst_116 {dimension_numbers = #tpu.dot_dimension_numbers<[1], [0], [0], [1], [0, 0, 1, 1], [], []>} : vector<32x32xbf16>, vector<32x8xbf16>, vector<32x8xf32> -> vector<32x8xf32>
    %271 = tpu.concatenate %219, %236, %253, %270 in 1 : vector<32x8xf32>, vector<32x8xf32>, vector<32x8xf32>, vector<32x8xf32> -> vector<32x32xf32>
    %272 = arith.truncf %271 : vector<32x32xf32> to vector<32x32xbf16>
    %cst_117 = arith.constant dense<0.000000e+00> : vector<32x32xf32>
    %273 = tpu.matmul %272, %177, %cst_117 {dimension_numbers = #tpu.dot_dimension_numbers<[1], [0], [0], [1], [0, 0, 1, 1], [], []>} : vector<32x32xbf16>, vector<32x32xbf16>, vector<32x32xf32> -> vector<32x32xf32>
    %274 = arith.addf %172, %273 : vector<32x32xf32>
    %275 = arith.mulf %274, %274 : vector<32x32xf32>
    %cst_118 = arith.constant dense<0.000000e+00> : vector<32xf32>
    %276 = vector.multi_reduction <add>, %275, %cst_118 [1] : vector<32x32xf32> to vector<32xf32>
    %277 = vector.shape_cast %276 : vector<32xf32> to vector<32x1xf32>
    %cst_119 = arith.constant 3.200000e+01 : f32
    %278 = vector.broadcast %cst_119 : f32 to vector<32x1xf32>
    %279 = arith.divf %277, %278 : vector<32x1xf32>
    %cst_120 = arith.constant 9.99999997E-7 : f32
    %280 = vector.broadcast %cst_120 : f32 to vector<32x1xf32>
    %281 = arith.addf %279, %280 : vector<32x1xf32>
    %282 = math.rsqrt %281 : vector<32x1xf32>
    %283 = vector.broadcast %282 : vector<32x1xf32> to vector<32x32xf32>
    %284 = arith.mulf %274, %283 : vector<32x32xf32>
    %285 = vector.broadcast %178 : vector<1x32xf32> to vector<32x32xf32>
    %286 = arith.mulf %284, %285 : vector<32x32xf32>
    %287 = arith.truncf %286 : vector<32x32xf32> to vector<32x32xbf16>
    %cst_121 = arith.constant dense<0.000000e+00> : vector<32x128xf32>
    %288 = tpu.matmul %287, %179, %cst_121 {dimension_numbers = #tpu.dot_dimension_numbers<[1], [0], [0], [1], [0, 0, 1, 1], [], []>} : vector<32x32xbf16>, vector<32x128xbf16>, vector<32x128xf32> -> vector<32x128xf32>
    %cst_122 = arith.constant dense<0.000000e+00> : vector<32x128xf32>
    %289 = tpu.matmul %287, %180, %cst_122 {dimension_numbers = #tpu.dot_dimension_numbers<[1], [0], [0], [1], [0, 0, 1, 1], [], []>} : vector<32x32xbf16>, vector<32x128xbf16>, vector<32x128xf32> -> vector<32x128xf32>
    %290 = arith.negf %288 : vector<32x128xf32>
    %291 = math.exp %290 : vector<32x128xf32>
    %cst_123 = arith.constant 1.000000e+00 : f32
    %292 = vector.broadcast %cst_123 : f32 to vector<32x128xf32>
    %293 = arith.addf %292, %291 : vector<32x128xf32>
    %294 = arith.divf %292, %293 : vector<32x128xf32>
    %295 = arith.mulf %288, %294 : vector<32x128xf32>
    %296 = arith.mulf %295, %289 : vector<32x128xf32>
    %297 = arith.truncf %296 : vector<32x128xf32> to vector<32x128xbf16>
    %cst_124 = arith.constant dense<0.000000e+00> : vector<32x32xf32>
    %298 = tpu.matmul %297, %181, %cst_124 {dimension_numbers = #tpu.dot_dimension_numbers<[1], [0], [0], [1], [0, 0, 1, 1], [], []>} : vector<32x128xbf16>, vector<128x32xbf16>, vector<32x32xf32> -> vector<32x32xf32>
    %299 = arith.addf %274, %298 : vector<32x32xf32>
    %c0_125 = arith.constant 0 : index
    %c0_126 = arith.constant 0 : index
    %c0_127 = arith.constant 0 : index
    %300 = vector.load %arg28[%c0_125, %c0_126, %c0_127] : memref<1x32x32xf32, #tpu.memory_space<vmem>>, vector<1x32x32xf32>
    %301 = vector.shape_cast %300 : vector<1x32x32xf32> to vector<32x32xf32>
    %302 = vector.shape_cast %299 : vector<32x32xf32> to vector<1x32x32xf32>
    tpu.vector_store %arg28[%c0_125, %c0_126, %c0_127], %302 {strides = array<i32>} : memref<1x32x32xf32, #tpu.memory_space<vmem>>, vector<1x32x32xf32>,
    return
  }
  func.func @transform_0(%arg0: i32) -> (i32, i32, i32) {
    %c0_i32 = arith.constant 0 : i32
    %c0_i32_0 = arith.constant 0 : i32
    %c0_i32_1 = arith.constant 0 : i32
    return %arg0, %c0_i32, %c0_i32_0 : i32, i32, i32
  }
  func.func @transform_1(%arg0: i32) -> (i32, i32, i32) {
    %c0_i32 = arith.constant 0 : i32
    %c0_i32_0 = arith.constant 0 : i32
    %c0_i32_1 = arith.constant 0 : i32
    return %arg0, %c0_i32, %c0_i32_0 : i32, i32, i32
  }
  func.func @transform_2(%arg0: i32) -> (i32, i32, i32) {
    %c0_i32 = arith.constant 0 : i32
    %c0_i32_0 = arith.constant 0 : i32
    %c0_i32_1 = arith.constant 0 : i32
    return %arg0, %c0_i32, %c0_i32_0 : i32, i32, i32
  }
  func.func @transform_3(%arg0: i32) -> (i32, i32, i32) {
    %c0_i32 = arith.constant 0 : i32
    %c0_i32_0 = arith.constant 0 : i32
    %c0_i32_1 = arith.constant 0 : i32
    return %arg0, %c0_i32, %c0_i32_0 : i32, i32, i32
  }
  func.func @transform_4(%arg0: i32) -> (i32, i32) {
    %c0_i32 = arith.constant 0 : i32
    %c0_i32_0 = arith.constant 0 : i32
    %c0_i32_1 = arith.constant 0 : i32
    return %c0_i32, %c0_i32_0 : i32, i32
  }
  func.func @transform_5(%arg0: i32) -> (i32, i32) {
    %c0_i32 = arith.constant 0 : i32
    %c0_i32_0 = arith.constant 0 : i32
    %c0_i32_1 = arith.constant 0 : i32
    return %c0_i32, %c0_i32_0 : i32, i32
  }
  func.func @transform_6(%arg0: i32) -> (i32, i32) {
    %c0_i32 = arith.constant 0 : i32
    %c0_i32_0 = arith.constant 0 : i32
    %c0_i32_1 = arith.constant 0 : i32
    return %c0_i32, %c0_i32_0 : i32, i32
  }
  func.func @transform_7(%arg0: i32) -> (i32, i32) {
    %c0_i32 = arith.constant 0 : i32
    %c0_i32_0 = arith.constant 0 : i32
    %c0_i32_1 = arith.constant 0 : i32
    return %c0_i32, %c0_i32_0 : i32, i32
  }
  func.func @transform_8(%arg0: i32) -> (i32, i32) {
    %c0_i32 = arith.constant 0 : i32
    %c0_i32_0 = arith.constant 0 : i32
    %c0_i32_1 = arith.constant 0 : i32
    return %c0_i32, %c0_i32_0 : i32, i32
  }
  func.func @transform_9(%arg0: i32) -> (i32, i32) {
    %c0_i32 = arith.constant 0 : i32
    %c0_i32_0 = arith.constant 0 : i32
    %c0_i32_1 = arith.constant 0 : i32
    return %c0_i32, %c0_i32_0 : i32, i32
  }
  func.func @transform_10(%arg0: i32) -> (i32, i32) {
    %c0_i32 = arith.constant 0 : i32
    %c0_i32_0 = arith.constant 0 : i32
    %c0_i32_1 = arith.constant 0 : i32
    return %c0_i32, %c0_i32_0 : i32, i32
  }
  func.func @transform_11(%arg0: i32) -> (i32, i32) {
    %c0_i32 = arith.constant 0 : i32
    %c0_i32_0 = arith.constant 0 : i32
    %c0_i32_1 = arith.constant 0 : i32
    return %c0_i32, %c0_i32_0 : i32, i32
  }
  func.func @transform_12(%arg0: i32) -> (i32, i32) {
    %c0_i32 = arith.constant 0 : i32
    %c0_i32_0 = arith.constant 0 : i32
    %c0_i32_1 = arith.constant 0 : i32
    return %c0_i32, %c0_i32_0 : i32, i32
  }
  func.func @transform_13(%arg0: i32) -> (i32, i32) {
    %c0_i32 = arith.constant 0 : i32
    %c0_i32_0 = arith.constant 0 : i32
    %c0_i32_1 = arith.constant 0 : i32
    return %c0_i32, %c0_i32_0 : i32, i32
  }
  func.func @transform_14(%arg0: i32) -> (i32, i32) {
    %c0_i32 = arith.constant 0 : i32
    %c0_i32_0 = arith.constant 0 : i32
    %c0_i32_1 = arith.constant 0 : i32
    return %c0_i32, %c0_i32_0 : i32, i32
  }
  func.func @transform_15(%arg0: i32) -> (i32, i32) {
    %c0_i32 = arith.constant 0 : i32
    %c0_i32_0 = arith.constant 0 : i32
    %c0_i32_1 = arith.constant 0 : i32
    return %c0_i32, %c0_i32_0 : i32, i32
  }
  func.func @transform_16(%arg0: i32) -> (i32, i32) {
    %c0_i32 = arith.constant 0 : i32
    %c0_i32_0 = arith.constant 0 : i32
    %c0_i32_1 = arith.constant 0 : i32
    return %c0_i32, %c0_i32_0 : i32, i32
  }
  func.func @transform_17(%arg0: i32) -> (i32, i32) {
    %c0_i32 = arith.constant 0 : i32
    %c0_i32_0 = arith.constant 0 : i32
    %c0_i32_1 = arith.constant 0 : i32
    return %c0_i32, %c0_i32_0 : i32, i32
  }
  func.func @transform_18(%arg0: i32) -> (i32, i32) {
    %c0_i32 = arith.constant 0 : i32
    %c0_i32_0 = arith.constant 0 : i32
    %c0_i32_1 = arith.constant 0 : i32
    return %c0_i32, %c0_i32_0 : i32, i32
  }
  func.func @transform_19(%arg0: i32) -> (i32, i32) {
    %c0_i32 = arith.constant 0 : i32
    %c0_i32_0 = arith.constant 0 : i32
    %c0_i32_1 = arith.constant 0 : i32
    return %c0_i32, %c0_i32_0 : i32, i32
  }
  func.func @transform_20(%arg0: i32) -> (i32, i32) {
    %c0_i32 = arith.constant 0 : i32
    %c0_i32_0 = arith.constant 0 : i32
    %c0_i32_1 = arith.constant 0 : i32
    return %c0_i32, %c0_i32_0 : i32, i32
  }
  func.func @transform_21(%arg0: i32) -> (i32, i32) {
    %c0_i32 = arith.constant 0 : i32
    %c0_i32_0 = arith.constant 0 : i32
    %c0_i32_1 = arith.constant 0 : i32
    return %c0_i32, %c0_i32_0 : i32, i32
  }
  func.func @transform_22(%arg0: i32) -> (i32, i32) {
    %c0_i32 = arith.constant 0 : i32
    %c0_i32_0 = arith.constant 0 : i32
    %c0_i32_1 = arith.constant 0 : i32
    return %c0_i32, %c0_i32_0 : i32, i32
  }
  func.func @transform_23(%arg0: i32) -> (i32, i32) {
    %c0_i32 = arith.constant 0 : i32
    %c0_i32_0 = arith.constant 0 : i32
    %c0_i32_1 = arith.constant 0 : i32
    return %c0_i32, %c0_i32_0 : i32, i32
  }
  func.func @transform_24(%arg0: i32) -> (i32, i32) {
    %c0_i32 = arith.constant 0 : i32
    %c0_i32_0 = arith.constant 0 : i32
    %c0_i32_1 = arith.constant 0 : i32
    return %c0_i32, %c0_i32_0 : i32, i32
  }
  func.func @transform_25(%arg0: i32) -> (i32, i32) {
    %c0_i32 = arith.constant 0 : i32
    %c0_i32_0 = arith.constant 0 : i32
    %c0_i32_1 = arith.constant 0 : i32
    return %c0_i32, %c0_i32_0 : i32, i32
  }
  func.func @transform_26(%arg0: i32) -> (i32, i32) {
    %c0_i32 = arith.constant 0 : i32
    %c0_i32_0 = arith.constant 0 : i32
    %c0_i32_1 = arith.constant 0 : i32
    return %c0_i32, %c0_i32_0 : i32, i32
  }
  func.func @transform_27(%arg0: i32) -> (i32, i32, i32) {
    %c0_i32 = arith.constant 0 : i32
    %c0_i32_0 = arith.constant 0 : i32
    %c0_i32_1 = arith.constant 0 : i32
    return %arg0, %c0_i32, %c0_i32_0 : i32, i32, i32
  }
}

</mosaic_0001>

<bundles_post_ra>
// kernel: _lambda_.3
= control target key start
LH: loop header
LB: loop body
LE: loop exit
PB: predicated region body
PF: predicated region fallthrough
CT: control target
= control target key end

     0   :  { %s2008_s29 = smov 0   ;;  %s2249_s0 = inlined_call_operand.vmem [shape: f32[2,32,6], index: 0, kind: input, shape index: {}]   ;;  %s2250_s1 = inlined_call_operand.vmem [shape: f32[2,1,32], index: 1, kind: input, shape index: {}]   ;;  %s2251_s2 = inlined_call_operand.vmem [shape: bf16[6,16], index: 2, kind: input, shape index: {}]   ;;  %s2252_s3 = inlined_call_operand.vmem [shape: f32[1,16], index: 3, kind: input, shape index: {}]   ;;  %s2253_s4 = inlined_call_operand.vmem [shape: f32[1,16], index: 4, kind: input, shape index: {}, may-alias: {4,5,10}]   ;;  %s2254_s5 = inlined_call_operand.vmem [shape: f32[1,16], index: 5, kind: input, shape index: {}, may-alias: {4,5,10}]   ;;  %s2255_s6 = inlined_call_operand.vmem [shape: bf16[16,16], index: 6, kind: input, shape index: {}]   ;;  %s2256_s7 = inlined_call_operand.vmem [shape: bf16[16,16], index: 7, kind: input, shape index: {}]   ;;  %s2257_s8 = inlined_call_operand.vmem [shape: bf16[16,16], index: 8, kind: input, shape index: {}]   ;;  %s2258_s9 = inlined_call_operand.vmem [shape: bf16[16,16], index: 9, kind: input, shape index: {}]   ;;  %s2259_s10 = inlined_call_operand.vmem [shape: f32[1,16], index: 10, kind: input, shape index: {}, may-alias: {4,5,10}]   ;;  %s2260_s11 = inlined_call_operand.vmem [shape: bf16[16,64], index: 11, kind: input, shape index: {}]   ;;  %s2261_s12 = inlined_call_operand.vmem [shape: bf16[16,64], index: 12, kind: input, shape index: {}]   ;;  %s2262_s13 = inlined_call_operand.vmem [shape: bf16[64,16], index: 13, kind: input, shape index: {}]   ;;  %s2263_s14 = inlined_call_operand.vmem [shape: f32[2,32,16], index: 14, kind: output, shape index: {}]  }
   0x1 LB: > { %s1631_s30 = sadd.s32 4294967295, %s1929_s29   ;;  %p1635_p0 = scmp.ge.s32.totalorder %s1929_s29, 1  ;;  %s1929_s29 = sphi %s2008_s29, %s24_s29  }
   0x2   : > { %p420_p1 = scmp.lt.s32.totalorder %s1929_s29, 3 }
   0x4   : > { %p421_p2 = pnand %p1635_p0, %p420_p1 }
   0x5   : > { %v489_v0 = vld [vmem:[%s2251_s2] sm:$0x7] (!%p421_p2)  ;;  %vm504_vm0 = vcmask (!%p421_p2), 1042432   ;;  %p469_p3 = scmp.lt.s32.totalorder (!%p421_p2), %s1631_s30, 1  ;;  %vm497_vm1 = vcmask (!%p421_p2), 48128   ;;  %vm562_vm2 = vcmask (!%p421_p2), 130048  }
   0x6   : > { %424 = sbr.rel (%p421_p2) target bundleno = 3102 (0xc1e), region = 76  ;;  %1816 = vmatprep.subr.msk.bf16.mxu0 (!%p421_p2), %vm504_vm0, %v489_v0  ;;  %v506_v1 = vsel (!%p421_p2), %vm504_vm0, %v489_v0, 0  ;;  %v1640_v8 = vld [vmem:[%s2252_s3] ss:$0 sm:$0xff] (!%p421_p2)  ;;  %vm852_vm3 = vcmask (!%p421_p2), 64512   ;;  %vm914_vm4 = vcmask (!%p421_p2), 261120  }
   0x7   : > { %1731 = vmatpush3.bf16.msra.mxu0 (!%p421_p2), %v506_v1  ;;  %v1643_v39 = vld [vmem:[%s2253_s4] ss:$0 sm:$0xff] (!%p421_p2)  ;;  %s1931_s23 = smov (!%p421_p2), 120   ;;  %s1932_s26 = smov (!%p421_p2), 8   ;;  %vm1503_vm5 = vcmask (!%p421_p2), 523264  }
   0x8   : > { %v1841_v58 = vld [vmem:[%s2256_s7] sm:$0xff] (!%p421_p2)  }
   0x9   : > { %v1842_v59 = vld [vmem:[%s2255_s6] sm:$0xff] (!%p421_p2)   ;;  %1742 = vmatprep.subr.bf16.mxu0 (!%p421_p2), %v1841_v58 }
   0xa   : > { %1736 = vmatprep.subr.bf16.mxu1 (!%p421_p2), %v1842_v59  ;;  %v1843_v60 = vld [vmem:[%s2257_s8] sm:$0xff] (!%p421_p2)  }
   0xb   : > { %1737 = vmatpush3.bf16.msra.mxu1 (!%p421_p2), %v1842_v59 }
   0xc   : > { %1748 = vmatprep.subr.bf16.mxu1 (!%p421_p2), %v1843_v60 }
   0xd   : > { %s2265_s30 = smov (!%p469_p3, %s1631_s30), 1 }
   0xe   : > { %s1685_s17 = sshll.u32 %s2265_s30, 5  ;;  %s476_s22 = scalar_lea.vmem %s2250_s1, %s2265_s30 }
   0xf   : > { %s473_s20 = scalar_lea.vmem %s2249_s0, %s1685_s17  ;;  %s481_s16 = scalar_lea.vmem %s2263_s14, %s1685_s17 }
  0x10   : > { %v483_v2 = vld [vmem:[%s473_s20] sm:$0xff]  ;;  %v484_v3 = vld [vmem:[%s473_s20 + $0x8] sm:$0xff]  ;;  %v485_v4 = vld [vmem:[%s473_s20 + $0x10] sm:$0xff] }
  0x11   : > { %v487_v5 = vpack.c.bf16 %v484_v3, %v483_v2  ;;  %v486_v6 = vld [vmem:[%s473_s20 + $0x18] sm:$0xff] }
  0x12   : > { %v488_v7 = vpack.c.bf16 %v486_v6, %v485_v4 }
  0x13   : > { %1732 = vmatprep.mubr.msk.bf16.mxu0 %vm497_vm1, %v487_v5 }
  0x14   : > { %1733 = vmatmul.mubr.msk.bf16.vlgmr.msra.gmra.mrb[0].mxu0 %vm497_vm1, %v488_v7 }
  0x15   : > { %1743 = vmatpush3.bf16.msra.mxu0 %v1841_v58 }
  0xe7   : > { %v1734_v9 = vpop.f32.mrb[0].mxu0 }
  0xe8   : > { %v551_v10 = vadd.f32 %v1734_v9, %v1640_v8  ;;  %v542_v11 = vpop.f32.mrb[1].mxu0 }
  0xe9   : > { %v543_v12 = vadd.f32 %v1640_v8, %v542_v11  ;;  %v1735_v13 = vpop.f32.mrb[2].mxu0 }
  0xea   : > { %v554_v14 = vadd.f32 %v1735_v13, %v1640_v8  ;;  %v545_v15 = vpop.f32.mrb[3].mxu0  ;;  %v560_v16 = vmul.f32 %v551_v10, %v551_v10 }
  0xeb   : > { %v546_v17 = vadd.f32 %v1640_v8, %v545_v15  ;;  %v558_v18 = vmul.f32 %v543_v12, %v543_v12 }
  0xec   : > { %v569_v19 = vsel %vm562_vm2, %v560_v16, 0.0  ;;  %v561_v20 = vmul.f32 %v554_v14, %v554_v14 }
  0xed   : > { %570 = vadd.xlane.f32.xlu1 %v569_v19  ;;  %v563_v21 = vsel %vm562_vm2, %v558_v18, 0.0  ;;  %v559_v22 = vmul.f32 %v546_v17, %v546_v17 }
  0xee   : > { %564 = vadd.xlane.f32.xlu0 %v563_v21  ;;  %v572_v23 = vsel %vm562_vm2, %v561_v20, 0.0 }
  0xef   : > { %v566_v24 = vsel %vm562_vm2, %v559_v22, 0.0 }
  0xf1   : > { %573 = vadd.xlane.f32.xlu1 %v572_v23 }
  0xf2   : > { %567 = vadd.xlane.f32.xlu0 %v566_v24 }
 0x17a   : > { %v571_v25 = vpop.xlane.xlu1 %570 }
 0x17b   : > { %v578_v26 = vmul.f32 0.0625, %v571_v25  ;;  %v565_v27 = vpop.xlane.xlu0 %564 }
 0x17c   : > { %v576_v28 = vmul.f32 0.0625, %v565_v27 }
 0x17d   : > { %v582_v29 = vadd.f32 1e-06, %v578_v26 }
 0x17e   : > { %v580_v30 = vadd.f32 1e-06, %v576_v28  ;;  %v574_v31 = vpop.xlane.xlu1 %573 }
 0x17f   : > { %1851 = vrsqrt.f32 %v582_v29  ;;  %v579_v32 = vmul.f32 0.0625, %v574_v31  ;;  %v568_v33 = vpop.xlane.xlu0 %567 }
 0x180   : > { %1853 = vrsqrt.f32 %v580_v30  ;;  %v577_v34 = vmul.f32 0.0625, %v568_v33 }
 0x181   : > { %v583_v35 = vadd.f32 1e-06, %v579_v32 }
 0x182   : > { %v581_v36 = vadd.f32 1e-06, %v577_v34 }
 0x183   : > { %1855 = vrsqrt.f32 %v583_v35 }
 0x184   : > { %1857 = vrsqrt.f32 %v581_v36 }
 0x189   : > { %v1852_v37 = vpop.eup %1851 }
 0x18a   : > { %v1854_v38 = vpop.eup %1853  ;;  %v590_v40 = vmul.f32 %v1852_v37, %v551_v10 }
 0x18b   : > { %v588_v41 = vmul.f32 %v1854_v38, %v543_v12  ;;  %v1644_v12 = vld [vmem:[%s2254_s5] ss:$0 sm:$0xff] }
 0x18c   : > { %v2039_v44 = vmul.f32 %v1643_v39, %v590_v40 }
 0x18d   : > { %v1856_v42 = vpop.eup %1855  ;;  %v2037_v43 = vmul.f32 %v1643_v39, %v588_v41 }
 0x18e   : > { %v1858_v45 = vpop.eup %1857  ;;  %v591_v46 = vmul.f32 %v1856_v42, %v554_v14  ;;  %v627_v50 = vmul.f32 %v2039_v44, %v2039_v44 }
 0x18f   : > { %v625_v47 = vmul.f32 %v2037_v43, %v2037_v43  ;;  %v589_v48 = vmul.f32 %v1858_v45, %v546_v17 }
 0x190   : > { %v2048_v52 = vmul.f32 %v1643_v39, %v591_v46  ;;  %v635_v54 = vsel %vm562_vm2, %v627_v50, 0.0  ;;  %v2111_v46 = vld [vmem:[%s476_s22] ss:$0 sm:$0xff] }
 0x191   : > { %v629_v49 = vsel %vm562_vm2, %v625_v47, 0.0  ;;  %v2046_v51 = vmul.f32 %v1643_v39, %v589_v48 }
 0x192   : > { %630 = vadd.xlane.f32.xlu0 %v629_v49  ;;  %v628_v56 = vmul.f32 %v2048_v52, %v2048_v52 }
 0x193   : > { %v626_v53 = vmul.f32 %v2046_v51, %v2046_v51 }
 0x194   : > { %v638_v57 = vsel %vm562_vm2, %v628_v56, 0.0 }
 0x195   : > { %v632_v55 = vsel %vm562_vm2, %v626_v53, 0.0 }
 0x196   : > { %636 = vadd.xlane.f32.xlu0 %v635_v54  ;;  %633 = vadd.xlane.f32.xlu1 %v632_v55 }
 0x19a   : > { %639 = vadd.xlane.f32.xlu1 %v638_v57 }
 0x21f   : > { %v631_v61 = vpop.xlane.xlu0 %630 }
 0x220   : > { %v641_v62 = vmul.f32 0.0625, %v631_v61 }
 0x222   : > { %v645_v63 = vadd.f32 1e-06, %v641_v62 }
 0x223   : > { %v634_v0 = vpop.xlane.xlu1 %633  ;;  %v637_v1 = vpop.xlane.xlu0 %636 }
 0x224   : > { %1859 = vrsqrt.f32 %v645_v63  ;;  %v642_v2 = vmul.f32 0.0625, %v634_v0  ;;  %v643_v3 = vmul.f32 0.0625, %v637_v1 }
 0x226   : > { %v646_v4 = vadd.f32 1e-06, %v642_v2  ;;  %v647_v5 = vadd.f32 1e-06, %v643_v3 }
 0x227   : > { %v640_v6 = vpop.xlane.xlu1 %639 }
 0x228   : > { %1861 = vrsqrt.f32 %v646_v4  ;;  %v644_v7 = vmul.f32 0.0625, %v640_v6 }
 0x229   : > { %1863 = vrsqrt.f32 %v647_v5 }
 0x22a   : > { %v648_v8 = vadd.f32 1e-06, %v644_v7 }
 0x22c   : > { %1865 = vrsqrt.f32 %v648_v8 }
 0x22e   : > { %v1860_v9 = vpop.eup %1859 }
 0x22f   : > { %v653_v10 = vmul.f32 %v1860_v9, %v2037_v43 }
 0x231   : > { %v663_v15 = vmul.f32 %v1644_v12, %v653_v10 }
 0x232   : > { %v1862_v11 = vpop.eup %1861 }
 0x233   : > { %v1864_v13 = vpop.eup %1863  ;;  %v654_v14 = vmul.f32 %v1862_v11, %v2046_v51 }
 0x234   : > { %v655_v17 = vmul.f32 %v1864_v13, %v2039_v44 }
 0x235   : > { %v664_v16 = vmul.f32 %v1644_v12, %v654_v14 }
 0x236   : > { %v1866_v18 = vpop.eup %1865  ;;  %v665_v21 = vmul.f32 %v1644_v12, %v655_v17 }
 0x237   : > { %v667_v19 = vpack.c.bf16 %v664_v16, %v663_v15  ;;  %v656_v20 = vmul.f32 %v1866_v18, %v2048_v52 }
 0x239   : > { %1738 = vmatprep.mubr.msk.bf16.mxu1 %vm562_vm2, %v667_v19  ;;  %1744 = vmatprep.mubr.msk.bf16.mxu0 %vm562_vm2, %v667_v19  ;;  %v666_v22 = vmul.f32 %v1644_v12, %v656_v20 }
 0x23b   : > { %v668_v23 = vpack.c.bf16 %v666_v22, %v665_v21 }
 0x23d   : > { %1739 = vmatmul.mubr.msk.bf16.vlgmr.msra.gmra.mrb[0].mxu1 %vm562_vm2, %v668_v23  ;;  %1745 = vmatmul.mubr.msk.bf16.vlgmr.msra.gmra.mrb[4].mxu0 %vm562_vm2, %v668_v23 }
 0x23e   : > { %1750 = vmatprep.mubr.msk.bf16.mxu1 %vm562_vm2, %v667_v19  ;;  %1749 = vmatpush3.bf16.msra.mxu1 %v1843_v60 }
 0x245   : > { %1751 = vmatmul.mubr.msk.bf16.vlgmr.msra.gmra.mrb[4].mxu1 %vm562_vm2, %v668_v23 }
 0x310   : > { %v1740_v24 = vpop.f32.mrb[0].mxu1  ;;  %v1746_v25 = vpop.f32.mrb[4].mxu0 }
 0x311   : > { %v715_v26 = vpop.f32.mrb[1].mxu1  ;;  %v772_v27 = vpop.f32.mrb[5].mxu0 }
 0x312   : > { %v1741_v28 = vpop.f32.mrb[2].mxu1  ;;  %v1747_v29 = vpop.f32.mrb[6].mxu0 }
 0x313   : > { %v2079_v30 = vpack.c.bf16 %v1741_v28, %v1740_v24  ;;  %v2081_v31 = vpack.c.bf16 %v1747_v29, %v1746_v25  ;;  %v718_v32 = vpop.f32.mrb[3].mxu1  ;;  %v775_v33 = vpop.f32.mrb[7].mxu0 }
 0x314   : > { %v2083_v34 = vpack.c.bf16 %v718_v32, %v715_v26  ;;  %v2085_v35 = vpack.c.bf16 %v775_v33, %v772_v27 }
 0x315   : > { %v863_v45 = vsel %vm852_vm3, %v2081_v31, 0 }
 0x316   : > { %1817 = vmatprep.subr.msk.bf16.mxu0 %vm852_vm3, %v2085_v35  ;;  %1758 = vmatprep.mubr.msk.bf16.mxu0 %vm852_vm3, %v2083_v34  ;;  %v860_v36 = vsel %vm852_vm3, %v2085_v35, 0 }
 0x317   : > { %1755 = vmatpush3.bf16.xpose.msra.mxu0 %v860_v36 }
 0x318   : > { %v1752_v37 = vpop.f32.mrb[4].mxu1  ;;  %1818 = vmatprep.subr.msk.bf16.mxu0 %vm852_vm3, %v2081_v31 }
 0x319   : > { %v829_v38 = vpop.f32.mrb[5].mxu1 }
 0x31a   : > { %v1753_v39 = vpop.f32.mrb[6].mxu1 }
 0x31b   : > { %v2095_v40 = vpack.c.bf16 %v1753_v39, %v1752_v37  ;;  %v832_v41 = vpop.f32.mrb[7].mxu1 }
 0x31c   : > { %v2097_v42 = vpack.c.bf16 %v832_v41, %v829_v38 }
 0x31e   : > { %1762 = vmatprep.subr.bf16.mxu1 %v2097_v42 }
 0x31f   : > { %1757 = vmatpush3.bf16.xpose.msra.mxu0 %v863_v45  ;;  %1763 = vmatpush3.bf16.msra.mxu1 %v2097_v42 }
 0x320   : > { %1764 = vmatprep.subr.bf16.mxu1 %v2095_v40 }
 0x323   : > { %1765 = vmatpush3.bf16.msra.mxu1 %v2095_v40 }
 0x326   : > { %1759 = vmatmul.mubr.msk.bf16.vlgmr.msra.gmra.mrb[8].mxu0 %vm852_vm3, %v2079_v30 }
 0x3f9   : > { %v1760_v47 = vpop.f32.mrb[8].mxu0 }
 0x3fa   : > { %v899_v48 = vpop.f32.mrb[9].mxu0  ;;  %v908_v54 = vadd.f32 %v1760_v47, %v2111_v46 }
 0x3fb   : > { %v900_v49 = vadd.f32 %v2111_v46, %v899_v48  ;;  %v1761_v50 = vpop.f32.mrb[10].mxu0 }
 0x3fc   : > { %v902_v53 = vpop.f32.mrb[11].mxu0  ;;  %v911_v57 = vadd.f32 %v1761_v50, %v2111_v46  ;;  %v921_v59 = vsel %vm914_vm4, %v908_v54, -inf }
 0x3fd   : > { %v903_v55 = vadd.f32 %v2111_v46, %v902_v53  ;;  %v915_v56 = vsel %vm914_vm4, %v900_v49, -inf }
 0x3fe   : > { %916 = vmax.xlane.f32.xlu0 %v915_v56  ;;  %v924_v60 = vsel %vm914_vm4, %v911_v57, -inf }
 0x3ff   : > { %v918_v58 = vsel %vm914_vm4, %v903_v55, -inf }
 0x400   : > { %919 = vmax.xlane.f32.xlu1 %v918_v58 }
 0x402   : > { %922 = vmax.xlane.f32.xlu0 %v921_v59 }
 0x404   : > { %925 = vmax.xlane.f32.xlu1 %v924_v60 }
 0x48b   : > { %v917_v61 = vpop.xlane.xlu0 %916 }
 0x48c   : > { %v927_v62 = vsub.f32 %v900_v49, %v917_v61 }
 0x48d   : > { %v920_v63 = vpop.xlane.xlu1 %919 }
 0x48e   : > { %v928_v0 = vsub.f32 %v903_v55, %v920_v63  ;;  %v931_v4 = vmul.f32 1.442695, %v927_v62 }
 0x48f   : > { %v923_v1 = vpop.xlane.xlu0 %922 }
 0x490   : > { %v933_v2 = vmul.f32 1.442695, %v928_v0  ;;  %v929_v3 = vsub.f32 %v908_v54, %v923_v1 }
 0x491   : > { %v926_v5 = vpop.xlane.xlu1 %925 }
 0x492   : > { %1867 = vpow2.f32 %v933_v2  ;;  %v935_v6 = vmul.f32 1.442695, %v929_v3  ;;  %v930_v7 = vsub.f32 %v911_v57, %v926_v5 }
 0x494   : > { %1869 = vpow2.f32 %v935_v6  ;;  %v937_v8 = vmul.f32 1.442695, %v930_v7 }
 0x495   : > { %1871 = vpow2.f32 %v931_v4 }
 0x496   : > { %1873 = vpow2.f32 %v937_v8 }
 0x49c   : > { %v1868_v9 = vpop.eup %1867 }
 0x49d   : > { %v942_v10 = vsel %vm914_vm4, %v1868_v9, 0.0 }
 0x49e   : > { %v1870_v11 = vpop.eup %1869  ;;  %943 = vadd.xlane.f32.xlu1 %v942_v10 }
 0x49f   : > { %v1872_v12 = vpop.eup %1871  ;;  %v945_v13 = vsel %vm914_vm4, %v1870_v11, 0.0 }
 0x4a0   : > { %v1874_v14 = vpop.eup %1873  ;;  %946 = vadd.xlane.f32.xlu0 %v945_v13  ;;  %v939_v16 = vsel %vm914_vm4, %v1872_v12, 0.0 }
 0x4a1   : > { %v948_v15 = vsel %vm914_vm4, %v1874_v14, 0.0 }
 0x4a2   : > { %949 = vadd.xlane.f32.xlu1 %v948_v15 }
 0x4a4   : > { %940 = vadd.xlane.f32.xlu0 %v939_v16 }
 0x4b3   : > { %1026 = vrot.lane.b32.xlu1 %v2081_v31, %s1931_s23 }
 0x4b7   : > { %1018 = vrot.lane.b32.xlu1 %v2083_v34, %s1931_s23 }
 0x4ba   : > { %1024 = vrot.lane.b32.xlu0 %v2085_v35, %s1931_s23 }
 0x4bb   : > { %1020 = vrot.lane.b32.xlu1 %v2079_v30, %s1931_s23 }
 0x52b   : > { %v944_v17 = vpop.xlane.xlu1 %943 }
 0x52c   : > { %1875 = vrcp.f32 %v944_v17 }
 0x52d   : > { %v947_v18 = vpop.xlane.xlu0 %946 }
 0x52f   : > { %v950_v19 = vpop.xlane.xlu1 %949 }
 0x530   : > { %1877 = vrcp.f32 %v950_v19 }
 0x531   : > { %1879 = vrcp.f32 %v947_v18  ;;  %v941_v20 = vpop.xlane.xlu0 %940 }
 0x532   : > { %1881 = vrcp.f32 %v941_v20 }
 0x533   : > { %v1027_v27 = vpop.permute.xlu1 %1026 }
 0x534   : > { %v1038_v35 = vsel %vm852_vm3, %v1027_v27, 0 }
 0x535   : > { %v1025_v21 = vpop.permute.xlu0 %1024 }
 0x536   : > { %1819 = vmatprep.subr.msk.bf16.mxu1 %vm852_vm3, %v1025_v21  ;;  %v1876_v22 = vpop.eup %1875  ;;  %v1035_v33 = vsel %vm852_vm3, %v1025_v21, 0 }
 0x537   : > { %v956_v29 = vmul.f32 %v1876_v22, %v1868_v9  ;;  %v1019_v34 = vpop.permute.xlu1 %1018 }
 0x53a   : > { %v1878_v23 = vpop.eup %1877 }
 0x53b   : > { %v1880_v24 = vpop.eup %1879  ;;  %v958_v26 = vmul.f32 %v1878_v23, %v1874_v14  ;;  %v1021_v36 = vpop.permute.xlu1 %1020 }
 0x53c   : > { %v1882_v25 = vpop.eup %1881  ;;  %v957_v30 = vmul.f32 %v1880_v24, %v1870_v11 }
 0x53d   : > { %v955_v28 = vmul.f32 %v1882_v25, %v1872_v12 }
 0x53e   : > { %v960_v32 = vpack.c.bf16 %v958_v26, %v957_v30 }
 0x53f   : > { %v959_v31 = vpack.c.bf16 %v956_v29, %v955_v28  ;;  %v1844_v29 = vld [vmem:[%s2258_s9] sm:$0xff]  }
 0x541   : > { %1766 = vmatprep.mubr.msk.bf16.mxu1 %vm914_vm4, %v959_v31 }
 0x542   : > { %1767 = vmatmul.mubr.msk.bf16.vlgmr.msra.gmra.mrb[8].mxu1 %vm914_vm4, %v960_v32 }
 0x543   : > { %1771 = vmatpush3.bf16.xpose.msra.mxu1 %v1035_v33  ;;  %1774 = vmatprep.mubr.msk.bf16.mxu1 %vm852_vm3, %v1019_v34 }
 0x544   : > { %1820 = vmatprep.subr.msk.bf16.mxu1 %vm852_vm3, %v1027_v27 }
 0x54b   : > { %1773 = vmatpush3.bf16.xpose.msra.mxu1 %v1038_v35 }
 0x552   : > { %1775 = vmatmul.mubr.msk.bf16.vlgmr.msra.gmra.mrb[12].mxu1 %vm852_vm3, %v1021_v36 }
 0x615   : > { %v2141_v37 = vpop.f32.mrb[8].mxu1 }
 0x616   : > { %v2143_v38 = vpop.f32.mrb[9].mxu1 }
 0x617   : > { %v2145_v39 = vpop.f32.mrb[10].mxu1 }
 0x618   : > { %v2147_v41 = vpop.f32.mrb[11].mxu1 }
 0x625   : > { %v1776_v45 = vpop.f32.mrb[12].mxu1 }
 0x626   : > { %v1074_v47 = vpop.f32.mrb[13].mxu1  ;;  %v1083_v53 = vadd.f32 %v1776_v45, %v2111_v46 }
 0x627   : > { %v1075_v48 = vadd.f32 %v2111_v46, %v1074_v47  ;;  %v1777_v49 = vpop.f32.mrb[14].mxu1 }
 0x628   : > { %v1077_v50 = vpop.f32.mrb[15].mxu1  ;;  %v1086_v57 = vadd.f32 %v1777_v49, %v2111_v46  ;;  %v1095_v58 = vsel %vm914_vm4, %v1083_v53, -inf }
 0x629   : > { %v1078_v54 = vadd.f32 %v2111_v46, %v1077_v50  ;;  %v1089_v55 = vsel %vm914_vm4, %v1075_v48, -inf }
 0x62a   : > { %1090 = vmax.xlane.f32.xlu0 %v1089_v55  ;;  %v1098_v59 = vsel %vm914_vm4, %v1086_v57, -inf }
 0x62b   : > { %v1092_v56 = vsel %vm914_vm4, %v1078_v54, -inf }
 0x62c   : > { %1093 = vmax.xlane.f32.xlu1 %v1092_v56 }
 0x62e   : > { %1096 = vmax.xlane.f32.xlu0 %v1095_v58 }
 0x632   : > { %1099 = vmax.xlane.f32.xlu0 %v1098_v59 }
 0x6b7   : > { %v1091_v60 = vpop.xlane.xlu0 %1090 }
 0x6b8   : > { %v1101_v61 = vsub.f32 %v1075_v48, %v1091_v60 }
 0x6b9   : > { %v1094_v62 = vpop.xlane.xlu1 %1093 }
 0x6ba   : > { %v1105_v1 = vmul.f32 1.442695, %v1101_v61  ;;  %v1102_v2 = vsub.f32 %v1078_v54, %v1094_v62 }
 0x6bb   : > { %v1097_v63 = vpop.xlane.xlu0 %1096 }
 0x6bc   : > { %v1103_v0 = vsub.f32 %v1083_v53, %v1097_v63  ;;  %v1107_v6 = vmul.f32 1.442695, %v1102_v2 }
 0x6be   : > { %v1109_v3 = vmul.f32 1.442695, %v1103_v0 }
 0x6bf   : > { %v1100_v4 = vpop.xlane.xlu0 %1099 }
 0x6c0   : > { %1883 = vpow2.f32 %v1109_v3  ;;  %v1104_v5 = vsub.f32 %v1086_v57, %v1100_v4  ;;  %v1845_v3 = vld [vmem:[%s2260_s11] sm:$0xff]  }
 0x6c1   : > { %1885 = vpow2.f32 %v1105_v1  ;;  %v1846_v4 = vld [vmem:[%s2261_s12] sm:$0xff]   ;;  %1792 = vmatprep.subr.bf16.mxu1 %v1845_v3 }
 0x6c2   : > { %v1111_v46 = vmul.f32 1.442695, %v1104_v5  ;;  %1793 = vmatpush3.bf16.msra.mxu1 %v1845_v3 }
 0x6c4   : > { %1887 = vpow2.f32 %v1111_v46 }
 0x6c5   : > { %1889 = vpow2.f32 %v1107_v6 }
 0x6ca   : > { %v1884_v7 = vpop.eup %1883 }
 0x6cb   : > { %v1119_v8 = vsel %vm914_vm4, %v1884_v7, 0.0  ;;  %v1886_v9 = vpop.eup %1885 }
 0x6cc   : > { %1120 = vadd.xlane.f32.xlu0 %v1119_v8  ;;  %v1113_v11 = vsel %vm914_vm4, %v1886_v9, 0.0 }
 0x6ce   : > { %v1888_v10 = vpop.eup %1887 }
 0x6cf   : > { %v1122_v12 = vsel %vm914_vm4, %v1888_v10, 0.0  ;;  %v1890_v13 = vpop.eup %1889 }
 0x6d0   : > { %1114 = vadd.xlane.f32.xlu0 %v1113_v11  ;;  %1123 = vadd.xlane.f32.xlu1 %v1122_v12  ;;  %v1116_v14 = vsel %vm914_vm4, %v1890_v13, 0.0 }
 0x6d4   : > { %1117 = vadd.xlane.f32.xlu1 %v1116_v14 }
 0x6e5   : > { %1139 = vrot.lane.b32.xlu1 %v2095_v40, %s1931_s23 }
 0x6e6   : > { %1137 = vrot.lane.b32.xlu0 %v2097_v42, %s1931_s23 }
 0x759   : > { %v1121_v15 = vpop.xlane.xlu0 %1120 }
 0x75d   : > { %v1124_v16 = vpop.xlane.xlu1 %1123  ;;  %v1115_v17 = vpop.xlane.xlu0 %1114 }
 0x75e   : > { %1891 = vrcp.f32 %v1124_v16 }
 0x75f   : > { %1893 = vrcp.f32 %v1115_v17 }
 0x760   : > { %1895 = vrcp.f32 %v1121_v15 }
 0x761   : > { %v1118_v18 = vpop.xlane.xlu1 %1117  ;;  %v1138_v19 = vpop.permute.xlu0 %1137 }
 0x762   : > { %1897 = vrcp.f32 %v1118_v18  ;;  %1778 = vmatprep.subr.bf16.mxu0 %v1138_v19 }
 0x763   : > { %1779 = vmatpush3.bf16.msra.mxu0 %v1138_v19  ;;  %v1666_v19 = vld [vmem:[%s2259_s10] ss:$0 sm:$0xff] }
 0x765   : > { %v1140_v20 = vpop.permute.xlu1 %1139 }
 0x766   : > { %1780 = vmatprep.subr.bf16.mxu0 %v1140_v20 }
 0x767   : > { %1781 = vmatpush3.bf16.msra.mxu0 %v1140_v20 }
 0x768   : > { %v1892_v21 = vpop.eup %1891  ;;  %1786 = vmatprep.subr.bf16.mxu0 %v1844_v29 }
 0x769   : > { %v1894_v22 = vpop.eup %1893  ;;  %v1132_v24 = vmul.f32 %v1892_v21, %v1888_v10 }
 0x76a   : > { %v1896_v40 = vpop.eup %1895  ;;  %v1129_v42 = vmul.f32 %v1894_v22, %v1886_v9 }
 0x76b   : > { %v1131_v26 = vmul.f32 %v1896_v40, %v1884_v7 }
 0x76c   : > { %v1898_v23 = vpop.eup %1897 }
 0x76d   : > { %v1130_v25 = vmul.f32 %v1898_v23, %v1890_v13  ;;  %v1134_v28 = vpack.c.bf16 %v1132_v24, %v1131_v26 }
 0x76f   : > { %v1133_v27 = vpack.c.bf16 %v1130_v25, %v1129_v42 }
 0x771   : > { %1782 = vmatprep.mubr.msk.bf16.mxu0 %vm914_vm4, %v1133_v27 }
 0x772   : > { %1783 = vmatmul.mubr.msk.bf16.vlgmr.msra.gmra.mrb[12].mxu0 %vm914_vm4, %v1134_v28 }
 0x773   : > { %1787 = vmatpush3.bf16.msra.mxu0 %v1844_v29  ;;  %v1847_v29 = vld [vmem:[%s2262_s13] sm:$0xff]  }
 0x774   : > { %1798 = vmatprep.subr.bf16.mxu0 %v1846_v4  ;;  %1804 = vmatprep.subr.bf16.mxu1 %v1847_v29 }
 0x845   : > { %v1784_v30 = vpop.f32.mrb[12].mxu0 }
 0x846   : > { %v1183_v31 = vpop.f32.mrb[13].mxu0 }
 0x847   : > { %v1785_v32 = vpop.f32.mrb[14].mxu0 }
 0x848   : > { %v1836_v33 = vpack.i.bf16 %v1785_v32, %v1784_v30  ;;  %v1186_v34 = vpop.f32.mrb[15].mxu0  ;;  %v1848_v30 = vld [vmem:[%s2262_s13 + $0x8] sm:$0xff]   ;;  %v1850_v32 = vld [vmem:[%s2262_s13 + $0x18] sm:$0xff]  }
 0x849   : > { %v1831_v35 = vpack.i.bf16 %v1186_v34, %v1183_v31  ;;  %v1849_v31 = vld [vmem:[%s2262_s13 + $0x10] sm:$0xff]  }
 0x84b   : > { %1832 = vrot.lane.b32.xlu1 %v1831_v35, %s1932_s26 }
 0x84f   : > { %1837 = vrot.lane.b32.xlu1 %v1836_v33, %s1932_s26 }
 0x8bd   : > { %v1833_v36 = vpop.permute.xlu1 %1832 }
 0x8be   : > { %v1835_v45 = vunpack.i.h.bf16 %v1833_v36  ;;  %v1834_v47 = vunpack.i.l.bf16 %v1833_v36 }
 0x8c0   : > { %v1215_v48 = vsel %vm852_vm3, %v2147_v41, %v1835_v45  ;;  %v1214_v49 = vsel %vm852_vm3, %v2143_v38, %v1834_v47 }
 0x8c1   : > { %v1218_v50 = vpack.c.bf16 %v1215_v48, %v1214_v49  ;;  %v1838_v53 = vpop.permute.xlu1 %1837 }
 0x8c2   : > { %v1840_v54 = vunpack.i.h.bf16 %v1838_v53  ;;  %v1839_v55 = vunpack.i.l.bf16 %v1838_v53 }
 0x8c3   : > { %1788 = vmatprep.mubr.msk.bf16.mxu0 %vm562_vm2, %v1218_v50 }
 0x8c4   : > { %v1217_v56 = vsel %vm852_vm3, %v2145_v39, %v1840_v54  ;;  %v1216_v57 = vsel %vm852_vm3, %v2141_v37, %v1839_v55 }
 0x8c5   : > { %v1219_v58 = vpack.c.bf16 %v1217_v56, %v1216_v57 }
 0x8c7   : > { %1789 = vmatmul.mubr.msk.bf16.vlgmr.msra.gmra.mrb[16].mxu0 %vm562_vm2, %v1219_v58 }
 0x8c8   : > { %1799 = vmatpush3.bf16.msra.mxu0 %v1846_v4 }
 0x99a   : > { %v1790_v59 = vpop.f32.mrb[16].mxu0 }
 0x99b   : > { %v1266_v41 = vpop.f32.mrb[17].mxu0  ;;  %v2181_v60 = vadd.f32 %v1790_v59, %v2039_v44 }
 0x99c   : > { %v2184_v38 = vadd.f32 %v1266_v41, %v2037_v43  ;;  %v1791_v61 = vpop.f32.mrb[18].mxu0 }
 0x99d   : > { %v1269_v62 = vpop.f32.mrb[19].mxu0  ;;  %v2192_v37 = vadd.f32 %v1791_v61, %v2048_v52  ;;  %v1287_v43 = vmul.f32 %v2181_v60, %v2181_v60 }
 0x99e   : > { %v2187_v63 = vadd.f32 %v1269_v62, %v2046_v51  ;;  %v1285_v39 = vmul.f32 %v2184_v38, %v2184_v38 }
 0x99f   : > { %v1295_v51 = vsel %vm562_vm2, %v1287_v43, 0.0  ;;  %v1288_v2 = vmul.f32 %v2192_v37, %v2192_v37 }
 0x9a0   : > { %v1289_v0 = vsel %vm562_vm2, %v1285_v39, 0.0  ;;  %v1286_v44 = vmul.f32 %v2187_v63, %v2187_v63 }
 0x9a1   : > { %1290 = vadd.xlane.f32.xlu0 %v1289_v0  ;;  %v1298_v52 = vsel %vm562_vm2, %v1288_v2, 0.0 }
 0x9a2   : > { %v1292_v1 = vsel %vm562_vm2, %v1286_v44, 0.0 }
 0x9a3   : > { %1293 = vadd.xlane.f32.xlu1 %v1292_v1 }
 0x9a5   : > { %1296 = vadd.xlane.f32.xlu0 %v1295_v51 }
 0x9a9   : > { %1299 = vadd.xlane.f32.xlu0 %v1298_v52 }
 0xa2e   : > { %v1291_v5 = vpop.xlane.xlu0 %1290 }
 0xa2f   : > { %v1301_v6 = vmul.f32 0.0625, %v1291_v5 }
 0xa30   : > { %v1294_v46 = vpop.xlane.xlu1 %1293 }
 0xa31   : > { %v1305_v7 = vadd.f32 1e-06, %v1301_v6  ;;  %v1302_v8 = vmul.f32 0.0625, %v1294_v46 }
 0xa32   : > { %v1297_v9 = vpop.xlane.xlu0 %1296 }
 0xa33   : > { %1899 = vrsqrt.f32 %v1305_v7  ;;  %v1306_v10 = vadd.f32 1e-06, %v1302_v8  ;;  %v1303_v11 = vmul.f32 0.0625, %v1297_v9 }
 0xa35   : > { %1901 = vrsqrt.f32 %v1306_v10  ;;  %v1307_v12 = vadd.f32 1e-06, %v1303_v11 }
 0xa36   : > { %v1300_v13 = vpop.xlane.xlu0 %1299 }
 0xa37   : > { %1903 = vrsqrt.f32 %v1307_v12  ;;  %v1304_v14 = vmul.f32 0.0625, %v1300_v13 }
 0xa39   : > { %v1308_v15 = vadd.f32 1e-06, %v1304_v14 }
 0xa3b   : > { %1905 = vrsqrt.f32 %v1308_v15 }
 0xa3d   : > { %v1900_v16 = vpop.eup %1899 }
 0xa3e   : > { %v1313_v17 = vmul.f32 %v1900_v16, %v2184_v38 }
 0xa3f   : > { %v1902_v18 = vpop.eup %1901 }
 0xa40   : > { %v1314_v20 = vmul.f32 %v1902_v18, %v2187_v63  ;;  %v1323_v22 = vmul.f32 %v1666_v19, %v1313_v17 }
 0xa41   : > { %v1904_v21 = vpop.eup %1903 }
 0xa42   : > { %v1324_v40 = vmul.f32 %v1666_v19, %v1314_v20  ;;  %v1315_v23 = vmul.f32 %v1904_v21, %v2181_v60 }
 0xa44   : > { %v1327_v24 = vpack.c.bf16 %v1324_v40, %v1323_v22  ;;  %v1325_v26 = vmul.f32 %v1666_v19, %v1315_v23 }
 0xa45   : > { %v1906_v42 = vpop.eup %1905 }
 0xa46   : > { %v1316_v25 = vmul.f32 %v1906_v42, %v2192_v37  ;;  %1794 = vmatprep.mubr.msk.bf16.mxu1 %vm562_vm2, %v1327_v24  ;;  %1800 = vmatprep.mubr.msk.bf16.mxu0 %vm562_vm2, %v1327_v24 }
 0xa48   : > { %v1326_v27 = vmul.f32 %v1666_v19, %v1316_v25 }
 0xa4a   : > { %v1328_v28 = vpack.c.bf16 %v1326_v27, %v1325_v26 }
 0xa4c   : > { %1795 = vmatmul.mubr.msk.bf16.vlgmr.msra.gmra.mrb[16].mxu1 %vm562_vm2, %v1328_v28  ;;  %1801 = vmatmul.mubr.msk.bf16.vlgmr.msra.gmra.mrb[20].mxu0 %vm562_vm2, %v1328_v28 }
 0xa4d   : > { %1805 = vmatpush3.bf16.msra.mxu1 %v1847_v29 }
 0xa4e   : > { %1806 = vmatprep.subr.bf16.mxu1 %v1848_v30 }
 0xa51   : > { %1807 = vmatpush3.bf16.msra.mxu1 %v1848_v30 }
 0xa52   : > { %1808 = vmatprep.subr.bf16.mxu1 %v1849_v31 }
 0xa55   : > { %1809 = vmatpush3.bf16.msra.mxu1 %v1849_v31 }
 0xa56   : > { %1810 = vmatprep.subr.bf16.mxu1 %v1850_v32 }
 0xa59   : > { %1811 = vmatpush3.bf16.msra.mxu1 %v1850_v32 }
 0xb1f   : > { %v1796_v33 = vpop.f32.mrb[16].mxu1  ;;  %v1802_v34 = vpop.f32.mrb[20].mxu0 }
 0xb20   : > { %v1675_v35 = vmul.f32 -1.442695, %v1796_v33  ;;  %v1375_v36 = vpop.f32.mrb[17].mxu1  ;;  %v1430_v45 = vpop.f32.mrb[21].mxu0 }
 0xb21   : > { %v1673_v47 = vmul.f32 -1.442695, %v1375_v36  ;;  %v1797_v48 = vpop.f32.mrb[18].mxu1  ;;  %v1803_v49 = vpop.f32.mrb[22].mxu0 }
 0xb22   : > { %1907 = vpow2.f32 %v1675_v35  ;;  %v1676_v50 = vmul.f32 -1.442695, %v1797_v48  ;;  %v1378_v53 = vpop.f32.mrb[19].mxu1  ;;  %v1433_v54 = vpop.f32.mrb[23].mxu0 }
 0xb23   : > { %1909 = vpow2.f32 %v1673_v47  ;;  %v1674_v55 = vmul.f32 -1.442695, %v1378_v53 }
 0xb24   : > { %1911 = vpow2.f32 %v1676_v50 }
 0xb25   : > { %1913 = vpow2.f32 %v1674_v55 }
 0xb2c   : > { %v1908_v56 = vpop.eup %1907 }
 0xb2d   : > { %v1910_v57 = vpop.eup %1909  ;;  %v1459_v58 = vadd.f32 1.0, %v1908_v56 }
 0xb2e   : > { %v1912_v59 = vpop.eup %1911  ;;  %v1457_v41 = vadd.f32 1.0, %v1910_v57 }
 0xb2f   : > { %v1914_v61 = vpop.eup %1913  ;;  %1915 = vrcp.f32 %v1459_v58  ;;  %v1460_v62 = vadd.f32 1.0, %v1912_v59 }
 0xb30   : > { %1917 = vrcp.f32 %v1457_v41  ;;  %v1458_v39 = vadd.f32 1.0, %v1914_v61 }
 0xb31   : > { %1919 = vrcp.f32 %v1460_v62 }
 0xb32   : > { %1921 = vrcp.f32 %v1458_v39 }
 0xb39   : > { %v1916_v0 = vpop.eup %1915 }
 0xb3a   : > { %v1918_v44 = vpop.eup %1917  ;;  %v1471_v43 = vmul.f32 %v1916_v0, %v1796_v33 }
 0xb3b   : > { %v1920_v1 = vpop.eup %1919  ;;  %v1469_v51 = vmul.f32 %v1918_v44, %v1375_v36 }
 0xb3c   : > { %v1922_v2 = vpop.eup %1921  ;;  %v1475_v52 = vmul.f32 %v1802_v34, %v1471_v43  ;;  %v1472_v3 = vmul.f32 %v1920_v1, %v1797_v48 }
 0xb3d   : > { %v1473_v4 = vmul.f32 %v1469_v51, %v1430_v45  ;;  %v1470_v5 = vmul.f32 %v1922_v2, %v1378_v53 }
 0xb3e   : > { %v1476_v6 = vmul.f32 %v1803_v49, %v1472_v3 }
 0xb3f   : > { %v1474_v46 = vmul.f32 %v1470_v5, %v1433_v54 }
 0xb40   : > { %v1478_v7 = vpack.c.bf16 %v1476_v6, %v1475_v52 }
 0xb41   : > { %v1477_v8 = vpack.c.bf16 %v1474_v46, %v1473_v4 }
 0xb43   : > { %1812 = vmatprep.mubr.msk.bf16.mxu1 %vm1503_vm5, %v1477_v8 }
 0xb44   : > { %1813 = vmatmul.mubr.msk.bf16.vlgmr.msra.gmra.mrb[20].mxu1 %vm1503_vm5, %v1478_v7 }
 0xc17   : > { %v1814_v9 = vpop.f32.mrb[20].mxu1 }
 0xc18   : > { %v1561_v10 = vadd.f32 %v1814_v9, %v2181_v60  ;;  %v1544_v11 = vpop.f32.mrb[21].mxu1 }
 0xc19   : > { %v1559_v12 = vadd.f32 %v1544_v11, %v2184_v38  ;;  %v1815_v13 = vpop.f32.mrb[22].mxu1 }
 0xc1a   : > { %1565 = vst.msk [vmem:[%s481_s16 + $0x10] sm:$0xff] %vm562_vm2, %v1561_v10  ;;  %v1562_v14 = vadd.f32 %v1815_v13, %v2192_v37  ;;  %v1547_v15 = vpop.f32.mrb[23].mxu1 }
 0xc1b   : > { %1563 = vst.msk [vmem:[%s481_s16] sm:$0xff] %vm562_vm2, %v1559_v12  ;;  %v1560_v16 = vadd.f32 %v1547_v15, %v2187_v63 }
 0xc1c   : > { %1566 = vst.msk [vmem:[%s481_s16 + $0x18] sm:$0xff] %vm562_vm2, %v1562_v14 }
 0xc1d   : > { %1564 = vst.msk [vmem:[%s481_s16 + $0x8] sm:$0xff] %vm562_vm2, %v1560_v16 }
 0xc1e PF: > { %s24_s29 = sadd.s32 1, %s1929_s29  }
 0xc1f   : > { %p21_p4 = scmp.ge.s32.totalorder %s24_s29, 4  }
 0xc21   :  { %23 = sbr.rel (!%p21_p4) target bundleno = 1 (0x1), region = 109 }

// kernel: _lambda_.5
= control target key start
LH: loop header
LB: loop body
LE: loop exit
PB: predicated region body
PF: predicated region fallthrough
CT: control target
= control target key end

     0   :  { %s3133_s29 = smov 0   ;;  %s3465_s0 = inlined_call_operand.vmem [shape: f32[2,32,32], index: 0, kind: input, shape index: {}]   ;;  %s3466_s1 = inlined_call_operand.vmem [shape: bf16[2,32,32], index: 1, kind: input, shape index: {}]   ;;  %s3467_s2 = inlined_call_operand.vmem [shape: f32[2,32,256], index: 2, kind: input, shape index: {}]   ;;  %s3468_s3 = inlined_call_operand.vmem [shape: f32[2,32,16], index: 3, kind: input, shape index: {}]   ;;  %s3469_s4 = inlined_call_operand.vmem [shape: f32[2,1,32], index: 4, kind: input, shape index: {}]   ;;  %s3470_s5 = inlined_call_operand.vmem [shape: bf16[32,256], index: 5, kind: input, shape index: {}]   ;;  %s3471_s6 = inlined_call_operand.vmem [shape: f32[1,32], index: 6, kind: input, shape index: {}]   ;;  %s3472_s7 = inlined_call_operand.vmem [shape: bf16[256,16], index: 7, kind: input, shape index: {}]   ;;  %s3473_s8 = inlined_call_operand.vmem [shape: f32[1,16], index: 8, kind: input, shape index: {}]   ;;  %s3474_s9 = inlined_call_operand.vmem [shape: f32[1,16], index: 9, kind: input, shape index: {}, may-alias: {9,12,13,18}]   ;;  %s3475_s10 = inlined_call_operand.vmem [shape: bf16[16,16], index: 10, kind: input, shape index: {}]   ;;  %s3476_s11 = inlined_call_operand.vmem [shape: f32[1,16], index: 11, kind: input, shape index: {}]   ;;  %s3477_s12 = inlined_call_operand.vmem [shape: f32[1,16], index: 12, kind: input, shape index: {}, may-alias: {9,12,13,18}]   ;;  %s3478_s13 = inlined_call_operand.vmem [shape: f32[1,16], index: 13, kind: input, shape index: {}, may-alias: {9,12,13,18}]   ;;  %s3479_s14 = inlined_call_operand.vmem [shape: bf16[16,16], index: 14, kind: input, shape index: {}]   ;;  %s3480_s15 = inlined_call_operand.vmem [shape: bf16[16,16], index: 15, kind: input, shape index: {}]   ;;  %s3481_s16 = inlined_call_operand.vmem [shape: bf16[16,16], index: 16, kind: input, shape index: {}]   ;;  %s3482_s17 = inlined_call_operand.vmem [shape: bf16[16,16], index: 17, kind: input, shape index: {}]   ;;  %s3483_s18 = inlined_call_operand.vmem [shape: f32[1,16], index: 18, kind: input, shape index: {}, may-alias: {9,12,13,18}]   ;;  %s3484_s19 = inlined_call_operand.vmem [shape: bf16[16,64], index: 19, kind: input, shape index: {}]   ;;  %s3485_s20 = inlined_call_operand.vmem [shape: bf16[16,64], index: 20, kind: input, shape index: {}]   ;;  %s3486_s21 = inlined_call_operand.vmem [shape: bf16[64,16], index: 21, kind: input, shape index: {}]   ;;  %s3487_s22 = inlined_call_operand.vmem [shape: bf16[16,8], index: 22, kind: input, shape index: {}]   ;;  %s3488_s23 = inlined_call_operand.vmem [shape: f32[1,8], index: 23, kind: input, shape index: {}]   ;;  %s3489_s24 = inlined_call_operand.vmem [shape: f32[2,32,16], index: 24, kind: output, shape index: {0}]   ;;  %s3490_s25 = inlined_call_operand.vmem [shape: f32[2,32,8], index: 25, kind: output, shape index: {1}]  }
   0x1   :  { %3494 = sst [smem:[#allocation3_spill]] %s3465_s0 }
   0x2   :  { %3495 = sst [smem:[#allocation4_spill]] %s3466_s1 }
   0x3   :  { %3496 = sst [smem:[#allocation5_spill]] %s3467_s2 }
   0x4   :  { %3497 = sst [smem:[#allocation6_spill]] %s3468_s3 }
   0x5   :  { %3498 = sst [smem:[#allocation7_spill]] %s3469_s4 }
   0x6   :  { %3499 = sst [smem:[#allocation8_spill]] %s3470_s5 }
   0x7   :  { %3500 = sst [smem:[#allocation9_spill]] %s3471_s6 }
   0x8   :  { %3501 = sst [smem:[#allocation10_spill]] %s3472_s7 }
   0x9   :  { %3502 = sst [smem:[#allocation11_spill]] %s3473_s8 }
   0xa   :  { %3503 = sst [smem:[#allocation12_spill]] %s3474_s9 }
   0xb   :  { %3504 = sst [smem:[#allocation13_spill]] %s3490_s25 }
   0xc LB: > { %3505 = sst [smem:[#allocation2_spill]] %s2998_s29  ;;  %s2571_s2 = sadd.s32 4294967295, %s2998_s29   ;;  %s2998_s29 = sphi %s3133_s29, %s36_s29  }
   0xd   : > { %p2575_p0 = scmp.ge.s32.totalorder %s2998_s29, 1  ;;  %p728_p1 = scmp.lt.s32.totalorder %s2998_s29, 3 }
   0xf   : > { %p729_p2 = pnand %p2575_p0, %p728_p1 }
  0x10   : > { %p819_p3 = scmp.lt.s32.totalorder (!%p729_p2), %s2571_s2, 1  ;;  %s3506_s3 = sld [smem:[#allocation3_spill]] (!%p729_p2)  ;;  %vm862_vm0 = vcmask (!%p729_p2), 261120   ;;  %v3000_v45 = vmov (!%p729_p2), 0   ;;  %vm1271_vm1 = vcmask (!%p729_p2), 130048   ;;  %vm1648_vm2 = vcmask (!%p729_p2), 64512  }
  0x11   : > { %732 = sbr.rel (%p729_p2) target bundleno = 3353 (0xd19), region = 116  ;;  %s3507_s4 = sld [smem:[#allocation4_spill]] (!%p729_p2)  ;;  %1037 = vmatprep.mubr.bf16.mxu1 (!%p729_p2), %v3000_v45  ;;  %vm2298_vm3 = vcmask (!%p729_p2), 523264  }
  0x12   : > { %s3508_s0 = sld [smem:[#allocation8_spill]] (!%p729_p2)  ;;  %s3510_s7 = sld [smem:[#allocation6_spill]] (!%p729_p2) }
  0x13   : > { %s3512_s5 = sld [smem:[#allocation12_spill]] (!%p729_p2)  ;;  %s3513_s8 = sld [smem:[#allocation5_spill]] (!%p729_p2) }
  0x14   : > { %s3001_s9 = smov (!%p729_p2), 120  }
  0x18   : > { %s3519_s2 = smov (!%p819_p3, %s2571_s2), 1  ;;  %v2878_v13 = vld [vmem:[%s3508_s0 + $0x4] ss:$8 sps:$4 sm:$0xff]   ;;  %v2880_v14 = vld [vmem:[%s3508_s0] ss:$8 sps:$4 sm:$0xff]  }
  0x19   : > { %s3144_s6 = sshll.u32 %s3519_s2, 5  ;;  %s2668_s1 = sshll.u32 %s3519_s2, 4  ;;  %1005 = vmatprep.subr.bf16.mxu1 %v2878_v13  ;;  %v2881_v43 = vld [vmem:[%s3508_s0 + $0x14] ss:$8 sps:$4 sm:$0xff]   ;;  %v2883_v44 = vld [vmem:[%s3508_s0 + $0x10] ss:$8 sps:$4 sm:$0xff]  }
  0x1a   : > { %s823_s26 = scalar_lea.vmem %s3506_s3, %s3144_s6  ;;  %s3158_s28 = scalar_lea.vmem %s3507_s4, %s2668_s1  ;;  %1006 = vmatpush1.bf16.msra.mxu1 %v2880_v14 }
  0x1b   : > { %v855_v0 = vld [vmem:[%s823_s26 + $0x10] sm:$0xff]  ;;  %v853_v1 = vld [vmem:[%s823_s26] sm:$0xff]  ;;  %v856_v2 = vld [vmem:[%s823_s26 + $0x18] sm:$0xff]  ;;  %s3509_s1 = sld [smem:[#allocation9_spill]]  ;;  %1007 = vmatprep.subr.bf16.mxu1 %v2881_v43  ;;  %s838_s3 = scalar_lea.vmem %s3510_s7, %s3144_s6 }
  0x1c   : > { %v860_v3 = vmul.f32 %v855_v0, %v855_v0  ;;  %v858_v4 = vmul.f32 %v853_v1, %v853_v1  ;;  %v861_v5 = vmul.f32 %v856_v2, %v856_v2  ;;  %v854_v6 = vld [vmem:[%s823_s26 + $0x8] sm:$0xff]  ;;  %v2876_v12 = vld [vmem:[%s3158_s28] sm:$0xff]   ;;  %v3196_v51 = vld [vmem:[%s838_s3 + $0x18] sm:$0xff]  ;;  %s3514_s7 = sld [smem:[#allocation11_spill]]  ;;  %s3002_s26 = smov 8  }
  0x1d   : > { %v859_v7 = vmul.f32 %v854_v6, %v854_v6  ;;  %2755 = vmatprep.mubr.msk.bf16.mxu0 %vm862_vm0, %v2876_v12  ;;  %v2877_v42 = vld [vmem:[%s3158_s28 + $0x8] sm:$0xff]   ;;  %v3194_v50 = vld [vmem:[%s838_s3] sm:$0xff]  ;;  %v1270_v54 = vmul.f32 %v3196_v51, %v3196_v51  ;;  %v3204_v55 = vld [vmem:[%s838_s3 + $0x10] sm:$0xff] }
  0x1e   : > { %v869_v8 = vsel %vm862_vm0, %v860_v3, 0.0  ;;  %v863_v9 = vsel %vm862_vm0, %v858_v4, 0.0  ;;  %v872_v10 = vsel %vm862_vm0, %v861_v5, 0.0  ;;  %1008 = vmatpush1.bf16.msra.mxu1 %v2883_v44  ;;  %v3192_v49 = vld [vmem:[%s838_s3 + $0x8] sm:$0xff]  ;;  %v1267_v53 = vmul.f32 %v3194_v50, %v3194_v50  ;;  %v2894_v3 = vld [vmem:[%s3475_s10] sm:$0xff]   ;;  %s2669_s3 = sshll.u32 %s3519_s2, 6 }
  0x1f   : > { %870 = vadd.xlane.f32.xlu1 %v869_v8  ;;  %864 = vadd.xlane.f32.xlu0 %v863_v9  ;;  %v866_v11 = vsel %vm862_vm0, %v859_v7, 0.0  ;;  %v1268_v52 = vmul.f32 %v3192_v49, %v3192_v49  ;;  %v1269_v56 = vmul.f32 %v3204_v55, %v3204_v55  ;;  %v1281_v60 = vsel %vm1271_vm1, %v1270_v54, 0.0  ;;  %s833_s27 = scalar_lea.vmem %s3513_s8, %s2669_s3 }
  0x20   : > { %v1272_v59 = vsel %vm1271_vm1, %v1267_v53, 0.0  ;;  %2759 = vmatprep.subr.bf16.mxu1 %v2894_v3 }
  0x21   : > { %v2588_v33 = vld [vmem:[%s3509_s1] ss:$0 sm:$0xff]  ;;  %s3511_s1 = sld [smem:[#allocation10_spill]]  ;;  %v1275_v58 = vsel %vm1271_vm1, %v1268_v52, 0.0  ;;  %v1278_v61 = vsel %vm1271_vm1, %v1269_v56, 0.0 }
  0x23   : > { %873 = vadd.xlane.f32.xlu1 %v872_v10  ;;  %867 = vadd.xlane.f32.xlu0 %v866_v11 }
  0x27   : > { %v2884_v46 = vld [vmem:[%s3511_s1 + $0x40] sm:$0xff]   ;;  %v2886_v48 = vld [vmem:[%s3511_s1 + $0x48] sm:$0xff]   ;;  %1276 = vadd.xlane.f32.xlu1 %v1275_v58  ;;  %1273 = vadd.xlane.f32.xlu0 %v1272_v59  ;;  %v2888_v62 = vld [vmem:[%s3511_s1 + $0x50] sm:$0xff]  }
  0x28   : > { %v2885_v47 = vld [vmem:[%s3511_s1] sm:$0xff]   ;;  %v2887_v57 = vld [vmem:[%s3511_s1 + $0x8] sm:$0xff]   ;;  %v2889_v63 = vld [vmem:[%s3511_s1 + $0x10] sm:$0xff]  }
  0x29   : > { %v2893_v4 = vld [vmem:[%s3511_s1 + $0x20] sm:$0xff]   ;;  %v2895_v5 = vld [vmem:[%s3511_s1 + $0x68] sm:$0xff]  }
  0x2a   : > { %v1062_v59 = vld [vmem:[%s833_s27 + $0x20] sm:$0xff] }
  0x2b   : > { %1282 = vadd.xlane.f32.xlu1 %v1281_v60  ;;  %1279 = vadd.xlane.f32.xlu0 %v1278_v61  ;;  %v1064_v60 = vld [vmem:[%s833_s27 + $0x30] sm:$0xff] }
  0xac   : > { %v871_v15 = vpop.xlane.xlu1 %870  ;;  %v865_v16 = vpop.xlane.xlu0 %864 }
  0xad   : > { %v878_v17 = vmul.f32 0.03125, %v871_v15  ;;  %v876_v18 = vmul.f32 0.03125, %v865_v16 }
  0xaf   : > { %v882_v19 = vadd.f32 1e-06, %v878_v17  ;;  %v880_v20 = vadd.f32 1e-06, %v876_v18 }
  0xb0   : > { %v874_v21 = vpop.xlane.xlu1 %873  ;;  %v868_v22 = vpop.xlane.xlu0 %867 }
  0xb1   : > { %2912 = vrsqrt.f32 %v882_v19  ;;  %v879_v23 = vmul.f32 0.03125, %v874_v21  ;;  %v877_v24 = vmul.f32 0.03125, %v868_v22 }
  0xb2   : > { %2914 = vrsqrt.f32 %v880_v20 }
  0xb3   : > { %v883_v25 = vadd.f32 1e-06, %v879_v23  ;;  %v881_v26 = vadd.f32 1e-06, %v877_v24 }
  0xb4   : > { %v1277_v13 = vpop.xlane.xlu1 %1276  ;;  %v1274_v14 = vpop.xlane.xlu0 %1273 }
  0xb5   : > { %2916 = vrsqrt.f32 %v883_v25  ;;  %v1286_v17 = vmul.f32 0.0625, %v1277_v13  ;;  %v1285_v20 = vmul.f32 0.0625, %v1274_v14  ;;  %v2621_v14 = vld [vmem:[%s3477_s12] ss:$0 sm:$0xff] }
  0xb6   : > { %2918 = vrsqrt.f32 %v881_v26 }
  0xb7   : > { %v1290_v21 = vadd.f32 1e-06, %v1286_v17  ;;  %v1289_v24 = vadd.f32 1e-06, %v1285_v20  ;;  %v2599_v17 = vld [vmem:[%s3514_s7] ss:$0 sm:$0xff] }
  0xb8   : > { %v1283_v15 = vpop.xlane.xlu1 %1282  ;;  %v1280_v16 = vpop.xlane.xlu0 %1279  ;;  %s3515_s7 = sld [smem:[#allocation7_spill]] }
  0xb9   : > { %v1288_v18 = vmul.f32 0.0625, %v1283_v15  ;;  %v1287_v19 = vmul.f32 0.0625, %v1280_v16  ;;  %2920 = vrsqrt.f32 %v1290_v21 }
  0xbb   : > { %v2913_v27 = vpop.eup %2912  ;;  %v1292_v22 = vadd.f32 1e-06, %v1288_v18  ;;  %v1291_v23 = vadd.f32 1e-06, %v1287_v19 }
  0xbc   : > { %v2915_v28 = vpop.eup %2914  ;;  %v890_v31 = vmul.f32 %v2913_v27, %v855_v0  ;;  %v2890_v0 = vld [vmem:[%s3511_s1 + $0x58] sm:$0xff]  }
  0xbd   : > { %v888_v30 = vmul.f32 %v2915_v28, %v853_v1  ;;  %v2891_v1 = vld [vmem:[%s3511_s1 + $0x18] sm:$0xff]   ;;  %2922 = vrsqrt.f32 %v1292_v22 }
  0xbe   : > { %v900_v38 = vmul.f32 %v2588_v33, %v890_v31  ;;  %2924 = vrsqrt.f32 %v1291_v23  ;;  %s841_s3 = scalar_lea.vmem %s3515_s7, %s3519_s2  ;;  %s3516_s2 = sld [smem:[#allocation13_spill]] }
  0xbf   : > { %v2917_v29 = vpop.eup %2916  ;;  %v898_v36 = vmul.f32 %v2588_v33, %v888_v30  ;;  %2926 = vrsqrt.f32 %v1289_v24  ;;  %v2898_v30 = vld [vmem:[%s3511_s1 + $0x30] sm:$0xff]  }
  0xc0   : > { %v2919_v32 = vpop.eup %2918  ;;  %v891_v34 = vmul.f32 %v2917_v29, %v856_v2  ;;  %v2892_v2 = vld [vmem:[%s3511_s1 + $0x60] sm:$0xff]   ;;  %v2897_v29 = vld [vmem:[%s3511_s1 + $0x70] sm:$0xff]  }
  0xc1   : > { %v889_v35 = vmul.f32 %v2919_v32, %v854_v6  ;;  %v2896_v6 = vld [vmem:[%s3511_s1 + $0x28] sm:$0xff]  }
  0xc2   : > { %v901_v39 = vmul.f32 %v2588_v33, %v891_v34 }
  0xc3   : > { %v899_v37 = vmul.f32 %v2588_v33, %v889_v35  ;;  %v2921_v25 = vpop.eup %2920  ;;  %v2899_v35 = vld [vmem:[%s3511_s1 + $0x78] sm:$0xff]  }
  0xc4   : > { %v907_v41 = vpack.c.bf16 %v901_v39, %v900_v38  ;;  %v1298_v34 = vmul.f32 %v2921_v25, %v3192_v49  ;;  %v1061_v49 = vld [vmem:[%s833_s27 + $0x18] sm:$0xff]  ;;  %s851_s28 = scalar_lea.vmem %s3516_s2, %s3144_s6 }
  0xc5   : > { %v906_v40 = vpack.c.bf16 %v899_v37, %v898_v36  ;;  %v2616_v36 = vld [vmem:[%s3512_s5] ss:$0 sm:$0xff]  ;;  %v2900_v37 = vld [vmem:[%s3511_s1 + $0x38] sm:$0xff]  }
  0xc6   : > { %v1308_v39 = vmul.f32 %v2616_v36, %v1298_v34 }
  0xc7   : > { %2751 = vmatprep.subr.bf16.mxu0 %v906_v40  ;;  %v2923_v26 = vpop.eup %2922 }
  0xc8   : > { %2752 = vmatpush3.bf16.msra.mxu0 %v906_v40  ;;  %v2925_v27 = vpop.eup %2924  ;;  %v1300_v31 = vmul.f32 %v2923_v26, %v3196_v51 }
  0xc9   : > { %2753 = vmatprep.subr.bf16.mxu0 %v907_v41  ;;  %v2927_v28 = vpop.eup %2926  ;;  %v1299_v32 = vmul.f32 %v2925_v27, %v3204_v55 }
  0xca   : > { %v1297_v33 = vmul.f32 %v2927_v28, %v3194_v50 }
  0xcb   : > { %v1309_v40 = vmul.f32 %v2616_v36, %v1299_v32 }
  0xcc   : > { %2754 = vmatpush3.bf16.msra.mxu0 %v907_v41  ;;  %v1307_v38 = vmul.f32 %v2616_v36, %v1297_v33  ;;  %v1310_v41 = vmul.f32 %v2616_v36, %v1300_v31 }
  0xcd   : > { %2677 = vmatprep.subr.bf16.mxu0 %v2884_v46  ;;  %v1060_v46 = vld [vmem:[%s833_s27 + $0x10] sm:$0xff] }
  0xce   : > { %v1312_v43 = vpack.c.bf16 %v1310_v41, %v1309_v40 }
  0xcf   : > { %2756 = vmatmul.mubr.msk.bf16.vlgmr.msra.gmra.mrb[0].mxu0 %vm862_vm0, %v2877_v42  ;;  %v1311_v42 = vpack.c.bf16 %v1308_v39, %v1307_v38 }
  0xd0   : > { %2678 = vmatpush3.bf16.msra.mxu0 %v2885_v47 }
  0xd1   : > { %2679 = vmatprep.subr.bf16.mxu0 %v2886_v48  ;;  %v1059_v48 = vld [vmem:[%s833_s27 + $0x8] sm:$0xff] }
  0xd4   : > { %2680 = vmatpush3.bf16.msra.mxu0 %v2887_v57 }
  0xd5   : > { %2681 = vmatprep.subr.bf16.mxu0 %v2888_v62  ;;  %v1063_v62 = vld [vmem:[%s833_s27 + $0x28] sm:$0xff] }
  0xd8   : > { %2682 = vmatpush3.bf16.msra.mxu0 %v2889_v63  ;;  %v1065_v63 = vld [vmem:[%s833_s27 + $0x38] sm:$0xff] }
  0xd9   : > { %2683 = vmatprep.subr.bf16.mxu0 %v2890_v0 }
  0xdc   : > { %2684 = vmatpush3.bf16.msra.mxu0 %v2891_v1 }
  0xdd   : > { %2685 = vmatprep.subr.bf16.mxu0 %v2892_v2 }
  0xe0   : > { %2686 = vmatpush3.bf16.msra.mxu0 %v2893_v4 }
  0xe1   : > { %2687 = vmatprep.subr.bf16.mxu0 %v2895_v5 }
  0xe4   : > { %2688 = vmatpush3.bf16.msra.mxu0 %v2896_v6 }
  0xe5   : > { %2689 = vmatprep.subr.bf16.mxu0 %v2897_v29 }
  0xe8   : > { %2690 = vmatpush3.bf16.msra.mxu0 %v2898_v30 }
  0xe9   : > { %2691 = vmatprep.subr.bf16.mxu0 %v2899_v35 }
  0xec   : > { %2692 = vmatpush3.bf16.msra.mxu0 %v2900_v37 }
 0x1a2   : > { %v2757_v7 = vpop.f32.mrb[0].mxu0 }
 0x1a3   : > { %v958_v8 = vpop.f32.mrb[1].mxu0 }
 0x1a4   : > { %v2758_v9 = vpop.f32.mrb[2].mxu0 }
 0x1a5   : > { %v974_v10 = vpack.c.bf16 %v2758_v9, %v2757_v7  ;;  %v961_v11 = vpop.f32.mrb[3].mxu0 }
 0x1a6   : > { %v973_v12 = vpack.c.bf16 %v961_v11, %v958_v8 }
 0x1a8   : > { %2597 = vmatmul.mubr.msk.bf16.vlgmr.msra.gmra.mrb[0].mxu1 %vm862_vm0, %v973_v12  ;;  %v2617_v12 = vld [vmem:[%s3476_s11] ss:$0 sm:$0xff] }
 0x1a9   : > { %1047 = vmatprep.mubr.bf16.mxu1 %v3000_v45  ;;  %2760 = vmatpush3.bf16.msra.mxu1 %v2894_v3  ;;  %v1058_v45 = vld [vmem:[%s833_s27] sm:$0xff] }
 0x1b0   : > { %2598 = vmatmul.mubr.msk.bf16.gmra.mrb[4].mxu1 %vm862_vm0, %v974_v10 }
 0x1b1   : > { %2761 = vmatprep.mubr.msk.bf16.mxu1 %vm1271_vm1, %v1311_v42 }
 0x1b8   : > { %2762 = vmatmul.mubr.msk.bf16.vlgmr.msra.gmra.mrb[8].mxu1 %vm1271_vm1, %v1312_v43 }
 0x27b   : > { %v1039_v44 = vpop.f32.mrb[0].mxu1 }
 0x27c   : > { %v1041_v47 = vpop.f32.mrb[1].mxu1  ;;  %v1066_v51 = vmul.f32 %v1058_v45, %v1039_v44 }
 0x27d   : > { %v1043_v50 = vpop.f32.mrb[2].mxu1  ;;  %v1067_v54 = vmul.f32 %v1059_v48, %v1041_v47 }
 0x27e   : > { %v1068_v52 = vmul.f32 %v1060_v46, %v1043_v50  ;;  %v1045_v53 = vpop.f32.mrb[3].mxu1 }
 0x27f   : > { %v1069_v55 = vmul.f32 %v1061_v49, %v1045_v53 }
 0x280   : > { %v1074_v56 = vpack.c.bf16 %v1068_v52, %v1066_v51  ;;  %v2901_v51 = vld [vmem:[%s3479_s14] sm:$0xff]  }
 0x281   : > { %v1075_v57 = vpack.c.bf16 %v1069_v55, %v1067_v54  ;;  %v2902_v52 = vld [vmem:[%s3480_s15] sm:$0xff]   ;;  %2765 = vmatprep.subr.bf16.mxu1 %v2901_v51 }
 0x282   : > { %2766 = vmatpush3.bf16.msra.mxu1 %v2901_v51 }
 0x283   : > { %v1049_v58 = vpop.f32.mrb[4].mxu1  ;;  %1245 = vmatprep.mubr.bf16.mxu0 %v1075_v57  ;;  %2771 = vmatprep.subr.bf16.mxu1 %v2902_v52 }
 0x284   : > { %v1051_v61 = vpop.f32.mrb[5].mxu1  ;;  %1246 = vmatmul.mubr.bf16.vlgmr.msra.gmra.mrb[4].mxu0 %v1074_v56  ;;  %v1070_v1 = vmul.f32 %v1062_v59, %v1049_v58 }
 0x285   : > { %v1053_v0 = vpop.f32.mrb[6].mxu1  ;;  %v1071_v4 = vmul.f32 %v1063_v62, %v1051_v61 }
 0x286   : > { %v1072_v2 = vmul.f32 %v1064_v60, %v1053_v0  ;;  %v1055_v3 = vpop.f32.mrb[7].mxu1 }
 0x287   : > { %v1073_v5 = vmul.f32 %v1065_v63, %v1055_v3 }
 0x288   : > { %v1076_v6 = vpack.c.bf16 %v1072_v2, %v1070_v1 }
 0x289   : > { %v1077_v7 = vpack.c.bf16 %v1073_v5, %v1071_v4  ;;  %v2622_v4 = vld [vmem:[%s3478_s13] ss:$0 sm:$0xff] }
 0x28b   : > { %1253 = vmatprep.mubr.bf16.mxu0 %v1077_v7  ;;  %v2763_v8 = vpop.f32.mrb[8].mxu1 }
 0x28c   : > { %1254 = vmatmul.mubr.bf16.gmra.mrb[8].mxu0 %v1076_v6  ;;  %v1368_v9 = vpop.f32.mrb[9].mxu1  ;;  %v1377_v28 = vadd.f32 %v2763_v8, %v2617_v12 }
 0x28d   : > { %v2764_v10 = vpop.f32.mrb[10].mxu1  ;;  %v1369_v13 = vadd.f32 %v2617_v12, %v1368_v9 }
 0x28e   : > { %v1371_v11 = vpop.f32.mrb[11].mxu1  ;;  %v1380_v33 = vadd.f32 %v2764_v10, %v2617_v12  ;;  %v1392_v39 = vmul.f32 %v2621_v14, %v1377_v28 }
 0x28f   : > { %v1372_v16 = vadd.f32 %v2617_v12, %v1371_v11  ;;  %v1390_v20 = vmul.f32 %v2621_v14, %v1369_v13 }
 0x290   : > { %v1393_v43 = vmul.f32 %v2621_v14, %v1380_v33 }
 0x291   : > { %v1391_v25 = vmul.f32 %v2621_v14, %v1372_v16  ;;  %v2903_v16 = vld [vmem:[%s3481_s16] sm:$0xff]  }
 0x357   : > { %v2693_v15 = vpop.f32.mrb[4].mxu0 }
 0x358   : > { %v2694_v18 = vpop.f32.mrb[5].mxu0 }
 0x359   : > { %v2695_v19 = vadd.f32 %v2694_v18, %v2693_v15  ;;  %v2696_v21 = vpop.f32.mrb[6].mxu0 }
 0x35a   : > { %v2697_v22 = vpop.f32.mrb[7].mxu0 }
 0x35b   : > { %v1248_v23 = vadd.f32 %v2695_v19, %v2599_v17  ;;  %v2698_v24 = vadd.f32 %v2697_v22, %v2696_v21 }
 0x35d   : > { %v3278_v26 = vadd.f32 %v1390_v20, %v1248_v23  ;;  %v1251_v27 = vadd.f32 %v2698_v24, %v2599_v17 }
 0x35f   : > { %v3280_v29 = vadd.f32 %v1391_v25, %v1251_v27  ;;  %v2699_v30 = vpop.f32.mrb[8].mxu0  ;;  %v1421_v31 = vmul.f32 %v3278_v26, %v3278_v26 }
 0x360   : > { %v2700_v32 = vpop.f32.mrb[9].mxu0 }
 0x361   : > { %v2701_v34 = vadd.f32 %v2700_v32, %v2699_v30  ;;  %v2702_v35 = vpop.f32.mrb[10].mxu0  ;;  %v1425_v36 = vsel %vm1271_vm1, %v1421_v31, 0.0  ;;  %v1422_v37 = vmul.f32 %v3280_v29, %v3280_v29 }
 0x362   : > { %v2703_v38 = vpop.f32.mrb[11].mxu0  ;;  %1426 = vadd.xlane.f32.xlu0 %v1425_v36 }
 0x363   : > { %v1256_v40 = vadd.f32 %v2701_v34, %v2599_v17  ;;  %v2704_v41 = vadd.f32 %v2703_v38, %v2702_v35  ;;  %v1428_v42 = vsel %vm1271_vm1, %v1422_v37, 0.0 }
 0x364   : > { %1429 = vadd.xlane.f32.xlu1 %v1428_v42 }
 0x365   : > { %v3288_v44 = vadd.f32 %v1392_v39, %v1256_v40  ;;  %v1259_v45 = vadd.f32 %v2704_v41, %v2599_v17 }
 0x367   : > { %v3290_v46 = vadd.f32 %v1393_v43, %v1259_v45  ;;  %v1423_v47 = vmul.f32 %v3288_v44, %v3288_v44 }
 0x369   : > { %v1431_v48 = vsel %vm1271_vm1, %v1423_v47, 0.0  ;;  %v1424_v49 = vmul.f32 %v3290_v46, %v3290_v46  ;;  %v2632_v47 = vld [vmem:[%s841_s3] ss:$0 sm:$0xff] }
 0x36a   : > { %1432 = vadd.xlane.f32.xlu0 %v1431_v48 }
 0x36b   : > { %v1434_v50 = vsel %vm1271_vm1, %v1424_v49, 0.0 }
 0x36c   : > { %1435 = vadd.xlane.f32.xlu1 %v1434_v50 }
 0x3ef   : > { %v1427_v53 = vpop.xlane.xlu0 %1426 }
 0x3f0   : > { %v1437_v54 = vmul.f32 0.0625, %v1427_v53 }
 0x3f1   : > { %v1430_v55 = vpop.xlane.xlu1 %1429 }
 0x3f2   : > { %v1441_v56 = vadd.f32 1e-06, %v1437_v54  ;;  %v1438_v57 = vmul.f32 0.0625, %v1430_v55 }
 0x3f4   : > { %2928 = vrsqrt.f32 %v1441_v56  ;;  %v1442_v58 = vadd.f32 1e-06, %v1438_v57 }
 0x3f6   : > { %2930 = vrsqrt.f32 %v1442_v58 }
 0x3f7   : > { %v1433_v59 = vpop.xlane.xlu0 %1432 }
 0x3f8   : > { %v1439_v60 = vmul.f32 0.0625, %v1433_v59 }
 0x3f9   : > { %v1436_v61 = vpop.xlane.xlu1 %1435 }
 0x3fa   : > { %v1443_v62 = vadd.f32 1e-06, %v1439_v60  ;;  %v1440_v63 = vmul.f32 0.0625, %v1436_v61 }
 0x3fc   : > { %2932 = vrsqrt.f32 %v1443_v62  ;;  %v1444_v0 = vadd.f32 1e-06, %v1440_v63 }
 0x3fe   : > { %v2929_v1 = vpop.eup %2928  ;;  %2934 = vrsqrt.f32 %v1444_v0 }
 0x3ff   : > { %v1449_v2 = vmul.f32 %v2929_v1, %v3278_v26 }
 0x400   : > { %v2931_v3 = vpop.eup %2930 }
 0x401   : > { %v1450_v5 = vmul.f32 %v2931_v3, %v3280_v29  ;;  %v1459_v6 = vmul.f32 %v2622_v4, %v1449_v2 }
 0x403   : > { %v1460_v7 = vmul.f32 %v2622_v4, %v1450_v5 }
 0x405   : > { %v1463_v8 = vpack.c.bf16 %v1460_v7, %v1459_v6 }
 0x406   : > { %v2933_v9 = vpop.eup %2932 }
 0x407   : > { %v1451_v10 = vmul.f32 %v2933_v9, %v3288_v44  ;;  %2767 = vmatprep.mubr.msk.bf16.mxu1 %vm1271_vm1, %v1463_v8 }
 0x408   : > { %v2935_v11 = vpop.eup %2934 }
 0x409   : > { %v1452_v12 = vmul.f32 %v2935_v11, %v3290_v46  ;;  %v1461_v13 = vmul.f32 %v2622_v4, %v1451_v10 }
 0x40b   : > { %v1462_v14 = vmul.f32 %v2622_v4, %v1452_v12 }
 0x40d   : > { %v1464_v15 = vpack.c.bf16 %v1462_v14, %v1461_v13 }
 0x40f   : > { %2768 = vmatmul.mubr.msk.bf16.vlgmr.msra.gmra.mrb[12].mxu1 %vm1271_vm1, %v1464_v15 }
 0x410   : > { %2772 = vmatpush3.bf16.msra.mxu1 %v2902_v52  ;;  %2773 = vmatprep.mubr.msk.bf16.mxu1 %vm1271_vm1, %v1463_v8 }
 0x411   : > { %2777 = vmatprep.subr.bf16.mxu1 %v2903_v16 }
 0x417   : > { %2774 = vmatmul.mubr.msk.bf16.vlgmr.msra.gmra.mrb[16].mxu1 %vm1271_vm1, %v1464_v15 }
 0x418   : > { %2779 = vmatprep.mubr.msk.bf16.mxu1 %vm1271_vm1, %v1463_v8  ;;  %2778 = vmatpush3.bf16.msra.mxu1 %v2903_v16 }
 0x41f   : > { %2780 = vmatmul.mubr.msk.bf16.vlgmr.msra.gmra.mrb[20].mxu1 %vm1271_vm1, %v1464_v15 }
 0x4e2   : > { %v2769_v17 = vpop.f32.mrb[12].mxu1 }
 0x4e3   : > { %v1511_v18 = vpop.f32.mrb[13].mxu1 }
 0x4e4   : > { %v2770_v19 = vpop.f32.mrb[14].mxu1 }
 0x4e5   : > { %v1527_v20 = vpack.c.bf16 %v2770_v19, %v2769_v17  ;;  %v1514_v21 = vpop.f32.mrb[15].mxu1 }
 0x4e6   : > { %v1526_v22 = vpack.c.bf16 %v1514_v21, %v1511_v18 }
 0x4e8   : > { %2787 = vmatprep.mubr.msk.bf16.mxu0 %vm1648_vm2, %v1526_v22 }
 0x4ea   : > { %v2775_v23 = vpop.f32.mrb[16].mxu1 }
 0x4eb   : > { %v1568_v24 = vpop.f32.mrb[17].mxu1 }
 0x4ec   : > { %v2776_v25 = vpop.f32.mrb[18].mxu1 }
 0x4ed   : > { %v1584_v27 = vpack.c.bf16 %v2776_v25, %v2775_v23  ;;  %v1571_v28 = vpop.f32.mrb[19].mxu1 }
 0x4ee   : > { %v1583_v30 = vpack.c.bf16 %v1571_v28, %v1568_v24 }
 0x4ef   : > { %1821 = vrot.lane.b32.xlu1 %v1584_v27, %s3001_s9  ;;  %v1659_v38 = vsel %vm1648_vm2, %v1584_v27, 0 }
 0x4f0   : > { %1819 = vrot.lane.b32.xlu0 %v1583_v30, %s3001_s9  ;;  %2851 = vmatprep.subr.msk.bf16.mxu0 %vm1648_vm2, %v1583_v30  ;;  %v1656_v31 = vsel %vm1648_vm2, %v1583_v30, 0 }
 0x4f1   : > { %2784 = vmatpush3.bf16.xpose.msra.mxu0 %v1656_v31 }
 0x4f2   : > { %v2781_v32 = vpop.f32.mrb[20].mxu1  ;;  %2852 = vmatprep.subr.msk.bf16.mxu0 %vm1648_vm2, %v1584_v27 }
 0x4f3   : > { %v1625_v33 = vpop.f32.mrb[21].mxu1  ;;  %1813 = vrot.lane.b32.xlu1 %v1526_v22, %s3001_s9 }
 0x4f4   : > { %v2782_v34 = vpop.f32.mrb[22].mxu1 }
 0x4f5   : > { %v3327_v35 = vpack.c.bf16 %v2782_v34, %v2781_v32  ;;  %v1628_v36 = vpop.f32.mrb[23].mxu1 }
 0x4f6   : > { %v3329_v37 = vpack.c.bf16 %v1628_v36, %v1625_v33 }
 0x4f7   : > { %1815 = vrot.lane.b32.xlu1 %v1527_v20, %s3001_s9 }
 0x4f8   : > { %2791 = vmatprep.subr.bf16.mxu1 %v3329_v37 }
 0x4f9   : > { %2786 = vmatpush3.bf16.xpose.msra.mxu0 %v1659_v38  ;;  %2792 = vmatpush3.bf16.msra.mxu1 %v3329_v37 }
 0x4fa   : > { %2793 = vmatprep.subr.bf16.mxu1 %v3327_v35 }
 0x4fd   : > { %2794 = vmatpush3.bf16.msra.mxu1 %v3327_v35 }
 0x500   : > { %2788 = vmatmul.mubr.msk.bf16.vlgmr.msra.gmra.mrb[12].mxu0 %vm1648_vm2, %v1527_v20 }
 0x561   : > { %v1822_v39 = vpop.permute.xlu1 %1821 }
 0x562   : > { %v1820_v40 = vpop.permute.xlu0 %1819  ;;  %v1833_v43 = vsel %vm1648_vm2, %v1822_v39, 0 }
 0x563   : > { %v1830_v41 = vsel %vm1648_vm2, %v1820_v40, 0  ;;  %2853 = vmatprep.subr.msk.bf16.mxu0 %vm1648_vm2, %v1820_v40 }
 0x564   : > { %2800 = vmatpush3.bf16.xpose.msra.mxu0 %v1830_v41 }
 0x565   : > { %v1814_v42 = vpop.permute.xlu1 %1813  ;;  %2854 = vmatprep.subr.msk.bf16.mxu0 %vm1648_vm2, %v1822_v39 }
 0x566   : > { %2803 = vmatprep.mubr.msk.bf16.mxu0 %vm1648_vm2, %v1814_v42 }
 0x569   : > { %v1816_v45 = vpop.permute.xlu1 %1815 }
 0x56c   : > { %2802 = vmatpush3.bf16.xpose.msra.mxu0 %v1833_v43 }
 0x573   : > { %2804 = vmatmul.mubr.msk.bf16.vlgmr.msra.gmra.mrb[16].mxu0 %vm1648_vm2, %v1816_v45 }
 0x5d3   : > { %v2789_v48 = vpop.f32.mrb[12].mxu0 }
 0x5d4   : > { %v1695_v49 = vpop.f32.mrb[13].mxu0  ;;  %v1704_v53 = vadd.f32 %v2789_v48, %v2632_v47 }
 0x5d5   : > { %v1696_v50 = vadd.f32 %v2632_v47, %v1695_v49  ;;  %v2790_v51 = vpop.f32.mrb[14].mxu0 }
 0x5d6   : > { %v1698_v52 = vpop.f32.mrb[15].mxu0  ;;  %v1707_v57 = vadd.f32 %v2790_v51, %v2632_v47  ;;  %v1716_v58 = vsel %vm862_vm0, %v1704_v53, -inf }
 0x5d7   : > { %v1699_v54 = vadd.f32 %v2632_v47, %v1698_v52  ;;  %v1710_v55 = vsel %vm862_vm0, %v1696_v50, -inf }
 0x5d8   : > { %1711 = vmax.xlane.f32.xlu0 %v1710_v55  ;;  %v1719_v59 = vsel %vm862_vm0, %v1707_v57, -inf }
 0x5d9   : > { %v1713_v56 = vsel %vm862_vm0, %v1699_v54, -inf }
 0x5da   : > { %1714 = vmax.xlane.f32.xlu1 %v1713_v56 }
 0x5dc   : > { %1717 = vmax.xlane.f32.xlu0 %v1716_v58 }
 0x5e0   : > { %1720 = vmax.xlane.f32.xlu0 %v1719_v59 }
 0x646   : > { %v2805_v60 = vpop.f32.mrb[16].mxu0 }
 0x647   : > { %v1869_v61 = vpop.f32.mrb[17].mxu0  ;;  %v1878_v1 = vadd.f32 %v2805_v60, %v2632_v47 }
 0x648   : > { %v1870_v62 = vadd.f32 %v2632_v47, %v1869_v61  ;;  %v2806_v63 = vpop.f32.mrb[18].mxu0 }
 0x649   : > { %v1872_v0 = vpop.f32.mrb[19].mxu0  ;;  %v1881_v4 = vadd.f32 %v2806_v63, %v2632_v47  ;;  %v1890_v6 = vsel %vm862_vm0, %v1878_v1, -inf }
 0x64a   : > { %v1873_v2 = vadd.f32 %v2632_v47, %v1872_v0  ;;  %v1884_v3 = vsel %vm862_vm0, %v1870_v62, -inf }
 0x64b   : > { %1885 = vmax.xlane.f32.xlu0 %v1884_v3  ;;  %v1893_v7 = vsel %vm862_vm0, %v1881_v4, -inf }
 0x64c   : > { %v1887_v5 = vsel %vm862_vm0, %v1873_v2, -inf }
 0x64d   : > { %1888 = vmax.xlane.f32.xlu1 %v1887_v5 }
 0x64f   : > { %1891 = vmax.xlane.f32.xlu0 %v1890_v6 }
 0x651   : > { %1894 = vmax.xlane.f32.xlu1 %v1893_v7 }
 0x665   : > { %v1712_v8 = vpop.xlane.xlu0 %1711 }
 0x666   : > { %v1722_v9 = vsub.f32 %v1696_v50, %v1712_v8 }
 0x667   : > { %v1715_v10 = vpop.xlane.xlu1 %1714 }
 0x668   : > { %v1726_v13 = vmul.f32 1.442695, %v1722_v9  ;;  %v1723_v14 = vsub.f32 %v1699_v54, %v1715_v10 }
 0x669   : > { %v1718_v11 = vpop.xlane.xlu0 %1717 }
 0x66a   : > { %v1724_v12 = vsub.f32 %v1704_v53, %v1718_v11  ;;  %v1728_v18 = vmul.f32 1.442695, %v1723_v14 }
 0x66c   : > { %v1730_v15 = vmul.f32 1.442695, %v1724_v12 }
 0x66d   : > { %v1721_v16 = vpop.xlane.xlu0 %1720 }
 0x66e   : > { %2936 = vpow2.f32 %v1730_v15  ;;  %v1725_v17 = vsub.f32 %v1707_v57, %v1721_v16 }
 0x66f   : > { %2938 = vpow2.f32 %v1726_v13 }
 0x670   : > { %v1732_v19 = vmul.f32 1.442695, %v1725_v17 }
 0x672   : > { %2940 = vpow2.f32 %v1732_v19 }
 0x673   : > { %2942 = vpow2.f32 %v1728_v18 }
 0x678   : > { %v2937_v20 = vpop.eup %2936 }
 0x679   : > { %v1740_v21 = vsel %vm862_vm0, %v2937_v20, 0.0  ;;  %v2939_v22 = vpop.eup %2938 }
 0x67a   : > { %1741 = vadd.xlane.f32.xlu0 %v1740_v21  ;;  %v1734_v24 = vsel %vm862_vm0, %v2939_v22, 0.0 }
 0x67c   : > { %v2941_v23 = vpop.eup %2940 }
 0x67d   : > { %v1743_v25 = vsel %vm862_vm0, %v2941_v23, 0.0  ;;  %v2943_v27 = vpop.eup %2942 }
 0x67e   : > { %1735 = vadd.xlane.f32.xlu0 %v1734_v24  ;;  %1744 = vadd.xlane.f32.xlu1 %v1743_v25  ;;  %v1737_v28 = vsel %vm862_vm0, %v2943_v27, 0.0 }
 0x682   : > { %1738 = vadd.xlane.f32.xlu1 %v1737_v28 }
 0x6d8   : > { %v1886_v30 = vpop.xlane.xlu0 %1885 }
 0x6d9   : > { %v1896_v31 = vsub.f32 %v1870_v62, %v1886_v30 }
 0x6da   : > { %v1889_v32 = vpop.xlane.xlu1 %1888 }
 0x6db   : > { %v1897_v34 = vsub.f32 %v1873_v2, %v1889_v32  ;;  %v1900_v38 = vmul.f32 1.442695, %v1896_v31 }
 0x6dc   : > { %v1892_v33 = vpop.xlane.xlu0 %1891 }
 0x6dd   : > { %v1898_v36 = vsub.f32 %v1878_v1, %v1892_v33  ;;  %v1902_v42 = vmul.f32 1.442695, %v1897_v34 }
 0x6de   : > { %v1895_v39 = vpop.xlane.xlu1 %1894 }
 0x6df   : > { %v1904_v40 = vmul.f32 1.442695, %v1898_v36  ;;  %v1899_v41 = vsub.f32 %v1881_v4, %v1895_v39 }
 0x6e1   : > { %2944 = vpow2.f32 %v1904_v40  ;;  %v1906_v43 = vmul.f32 1.442695, %v1899_v41 }
 0x6e2   : > { %2946 = vpow2.f32 %v1900_v38 }
 0x6e3   : > { %2948 = vpow2.f32 %v1906_v43 }
 0x6e4   : > { %2950 = vpow2.f32 %v1902_v42 }
 0x6eb   : > { %v2945_v45 = vpop.eup %2944 }
 0x6ec   : > { %v2947_v47 = vpop.eup %2946  ;;  %v1914_v48 = vsel %vm862_vm0, %v2945_v45, 0.0 }
 0x6ed   : > { %v2949_v49 = vpop.eup %2948  ;;  %1915 = vadd.xlane.f32.xlu0 %v1914_v48  ;;  %v1908_v52 = vsel %vm862_vm0, %v2947_v47, 0.0 }
 0x6ee   : > { %v1917_v50 = vsel %vm862_vm0, %v2949_v49, 0.0  ;;  %v2951_v51 = vpop.eup %2950 }
 0x6ef   : > { %1918 = vadd.xlane.f32.xlu1 %v1917_v50  ;;  %v1911_v53 = vsel %vm862_vm0, %v2951_v51, 0.0 }
 0x6f1   : > { %1909 = vadd.xlane.f32.xlu0 %v1908_v52 }
 0x6f3   : > { %1912 = vadd.xlane.f32.xlu1 %v1911_v53 }
 0x704   : > { %1934 = vrot.lane.b32.xlu1 %v3327_v35, %s3001_s9 }
 0x707   : > { %1932 = vrot.lane.b32.xlu0 %v3329_v37, %s3001_s9  ;;  %v1742_v54 = vpop.xlane.xlu0 %1741  ;;  %s846_s9 = scalar_lea.vmem %s3489_s24, %s3144_s6 }
 0x70b   : > { %v1745_v55 = vpop.xlane.xlu1 %1744  ;;  %v1736_v56 = vpop.xlane.xlu0 %1735 }
 0x70c   : > { %2952 = vrcp.f32 %v1745_v55 }
 0x70d   : > { %2954 = vrcp.f32 %v1736_v56 }
 0x70e   : > { %2956 = vrcp.f32 %v1742_v54 }
 0x70f   : > { %v1739_v57 = vpop.xlane.xlu1 %1738 }
 0x710   : > { %2958 = vrcp.f32 %v1739_v57 }
 0x716   : > { %v2953_v58 = vpop.eup %2952 }
 0x717   : > { %v2955_v59 = vpop.eup %2954  ;;  %v1753_v62 = vmul.f32 %v2953_v58, %v2941_v23 }
 0x718   : > { %v2957_v60 = vpop.eup %2956  ;;  %v1750_v63 = vmul.f32 %v2955_v59, %v2939_v22  ;;  %v2904_v22 = vld [vmem:[%s3482_s17] sm:$0xff]  }
 0x719   : > { %v1752_v1 = vmul.f32 %v2957_v60, %v2937_v20  ;;  %v2905_v59 = vld [vmem:[%s3484_s19] sm:$0xff]  }
 0x71a   : > { %v2959_v61 = vpop.eup %2958  ;;  %v2906_v60 = vld [vmem:[%s3485_s20] sm:$0xff]   ;;  %2821 = vmatprep.subr.bf16.mxu0 %v2905_v59 }
 0x71b   : > { %v1751_v0 = vmul.f32 %v2959_v61, %v2943_v27  ;;  %v1755_v2 = vpack.c.bf16 %v1753_v62, %v1752_v1  ;;  %2822 = vmatpush3.bf16.msra.mxu0 %v2905_v59 }
 0x71d   : > { %v1754_v35 = vpack.c.bf16 %v1751_v0, %v1750_v63 }
 0x71f   : > { %2795 = vmatprep.mubr.msk.bf16.mxu1 %vm862_vm0, %v1754_v35 }
 0x720   : > { %2796 = vmatmul.mubr.msk.bf16.vlgmr.msra.gmra.mrb[24].mxu1 %vm862_vm0, %v1755_v2 }
 0x77a   : > { %v1916_v37 = vpop.xlane.xlu0 %1915 }
 0x77c   : > { %v1919_v3 = vpop.xlane.xlu1 %1918 }
 0x77d   : > { %2960 = vrcp.f32 %v1919_v3 }
 0x77e   : > { %v1910_v4 = vpop.xlane.xlu0 %1909 }
 0x77f   : > { %2962 = vrcp.f32 %v1910_v4 }
 0x780   : > { %2964 = vrcp.f32 %v1916_v37  ;;  %v1913_v5 = vpop.xlane.xlu1 %1912 }
 0x781   : > { %2966 = vrcp.f32 %v1913_v5 }
 0x782   : > { %v1933_v6 = vpop.permute.xlu0 %1932 }
 0x783   : > { %2807 = vmatprep.subr.bf16.mxu1 %v1933_v6 }
 0x784   : > { %v1935_v7 = vpop.permute.xlu1 %1934  ;;  %2808 = vmatpush3.bf16.msra.mxu1 %v1933_v6 }
 0x785   : > { %2809 = vmatprep.subr.bf16.mxu1 %v1935_v7 }
 0x787   : > { %v2961_v8 = vpop.eup %2960 }
 0x788   : > { %2810 = vmatpush3.bf16.msra.mxu1 %v1935_v7  ;;  %v1927_v12 = vmul.f32 %v2961_v8, %v2949_v49 }
 0x789   : > { %v2963_v9 = vpop.eup %2962  ;;  %2815 = vmatprep.subr.bf16.mxu1 %v2904_v22 }
 0x78a   : > { %v2965_v10 = vpop.eup %2964  ;;  %v1924_v13 = vmul.f32 %v2963_v9, %v2947_v47 }
 0x78b   : > { %v2967_v11 = vpop.eup %2966  ;;  %v1926_v15 = vmul.f32 %v2965_v10, %v2945_v45  ;;  %v2644_v10 = vld [vmem:[%s3483_s18] ss:$0 sm:$0xff] }
 0x78c   : > { %v1925_v14 = vmul.f32 %v2967_v11, %v2951_v51 }
 0x78d   : > { %v1929_v17 = vpack.c.bf16 %v1927_v12, %v1926_v15 }
 0x78e   : > { %v1928_v16 = vpack.c.bf16 %v1925_v14, %v1924_v13 }
 0x790   : > { %2811 = vmatprep.mubr.msk.bf16.mxu1 %vm862_vm0, %v1928_v16 }
 0x791   : > { %2812 = vmatmul.mubr.msk.bf16.vlgmr.msra.gmra.mrb[28].mxu1 %vm862_vm0, %v1929_v17 }
 0x792   : > { %2816 = vmatpush3.bf16.msra.mxu1 %v2904_v22  ;;  %v2907_v22 = vld [vmem:[%s3486_s21] sm:$0xff]  }
 0x793   : > { %2827 = vmatprep.subr.bf16.mxu1 %v2906_v60  ;;  %2833 = vmatprep.subr.bf16.mxu0 %v2907_v22 }
 0x7f3   : > { %v2797_v18 = vpop.f32.mrb[24].mxu1 }
 0x7f4   : > { %v1796_v19 = vpop.f32.mrb[25].mxu1 }
 0x7f5   : > { %v2798_v20 = vpop.f32.mrb[26].mxu1 }
 0x7f6   : > { %v1799_v21 = vpop.f32.mrb[27].mxu1 }
 0x864   : > { %v2813_v23 = vpop.f32.mrb[28].mxu1 }
 0x865   : > { %v1978_v24 = vpop.f32.mrb[29].mxu1 }
 0x866   : > { %v2814_v25 = vpop.f32.mrb[30].mxu1 }
 0x867   : > { %v2871_v27 = vpack.i.bf16 %v2814_v25, %v2813_v23  ;;  %v1981_v28 = vpop.f32.mrb[31].mxu1  ;;  %v2908_v23 = vld [vmem:[%s3486_s21 + $0x8] sm:$0xff]   ;;  %v2910_v25 = vld [vmem:[%s3486_s21 + $0x18] sm:$0xff]  }
 0x868   : > { %v2866_v30 = vpack.i.bf16 %v1981_v28, %v1978_v24  ;;  %v2909_v24 = vld [vmem:[%s3486_s21 + $0x10] sm:$0xff]  }
 0x86a   : > { %2867 = vrot.lane.b32.xlu1 %v2866_v30, %s3002_s26 }
 0x86e   : > { %2872 = vrot.lane.b32.xlu1 %v2871_v27, %s3002_s26 }
 0x8dc   : > { %v2868_v31 = vpop.permute.xlu1 %2867 }
 0x8dd   : > { %v2870_v32 = vunpack.i.h.bf16 %v2868_v31  ;;  %v2869_v33 = vunpack.i.l.bf16 %v2868_v31 }
 0x8df   : > { %v2010_v34 = vsel %vm1648_vm2, %v1799_v21, %v2870_v32  ;;  %v2009_v36 = vsel %vm1648_vm2, %v1796_v19, %v2869_v33 }
 0x8e0   : > { %v2013_v38 = vpack.c.bf16 %v2010_v34, %v2009_v36  ;;  %v2873_v39 = vpop.permute.xlu1 %2872 }
 0x8e1   : > { %v2875_v40 = vunpack.i.h.bf16 %v2873_v39  ;;  %v2874_v41 = vunpack.i.l.bf16 %v2873_v39 }
 0x8e2   : > { %2817 = vmatprep.mubr.msk.bf16.mxu1 %vm1271_vm1, %v2013_v38 }
 0x8e3   : > { %v2012_v42 = vsel %vm1648_vm2, %v2798_v20, %v2875_v40  ;;  %v2011_v43 = vsel %vm1648_vm2, %v2797_v18, %v2874_v41 }
 0x8e4   : > { %v2014_v45 = vpack.c.bf16 %v2012_v42, %v2011_v43 }
 0x8e6   : > { %2818 = vmatmul.mubr.msk.bf16.vlgmr.msra.gmra.mrb[32].mxu1 %vm1271_vm1, %v2014_v45 }
 0x8e7   : > { %2828 = vmatpush3.bf16.msra.mxu1 %v2906_v60 }
 0x9b9   : > { %v2819_v47 = vpop.f32.mrb[32].mxu1 }
 0x9ba   : > { %v2061_v48 = vpop.f32.mrb[33].mxu1  ;;  %v3382_v49 = vadd.f32 %v2819_v47, %v3288_v44 }
 0x9bb   : > { %v3385_v50 = vadd.f32 %v2061_v48, %v3278_v26  ;;  %v2820_v51 = vpop.f32.mrb[34].mxu1 }
 0x9bc   : > { %v2064_v52 = vpop.f32.mrb[35].mxu1  ;;  %v3393_v55 = vadd.f32 %v2820_v51, %v3290_v46  ;;  %v2082_v26 = vmul.f32 %v3382_v49, %v3382_v49 }
 0x9bd   : > { %v3388_v53 = vadd.f32 %v2064_v52, %v3280_v29  ;;  %v2080_v54 = vmul.f32 %v3385_v50, %v3385_v50 }
 0x9be   : > { %v2090_v29 = vsel %vm1271_vm1, %v2082_v26, 0.0  ;;  %v2083_v58 = vmul.f32 %v3393_v55, %v3393_v55 }
 0x9bf   : > { %v2084_v56 = vsel %vm1271_vm1, %v2080_v54, 0.0  ;;  %v2081_v44 = vmul.f32 %v3388_v53, %v3388_v53 }
 0x9c0   : > { %2085 = vadd.xlane.f32.xlu0 %v2084_v56  ;;  %v2093_v46 = vsel %vm1271_vm1, %v2083_v58, 0.0 }
 0x9c1   : > { %v2087_v57 = vsel %vm1271_vm1, %v2081_v44, 0.0 }
 0x9c2   : > { %2088 = vadd.xlane.f32.xlu1 %v2087_v57 }
 0x9c4   : > { %2091 = vadd.xlane.f32.xlu0 %v2090_v29 }
 0x9c8   : > { %2094 = vadd.xlane.f32.xlu0 %v2093_v46 }
 0xa4d   : > { %v2086_v61 = vpop.xlane.xlu0 %2085 }
 0xa4e   : > { %v2096_v62 = vmul.f32 0.0625, %v2086_v61 }
 0xa4f   : > { %v2089_v63 = vpop.xlane.xlu1 %2088 }
 0xa50   : > { %v2100_v0 = vadd.f32 1e-06, %v2096_v62  ;;  %v2097_v1 = vmul.f32 0.0625, %v2089_v63 }
 0xa51   : > { %v2092_v35 = vpop.xlane.xlu0 %2091 }
 0xa52   : > { %2968 = vrsqrt.f32 %v2100_v0  ;;  %v2101_v2 = vadd.f32 1e-06, %v2097_v1  ;;  %v2098_v37 = vmul.f32 0.0625, %v2092_v35  ;;  %v2911_v35 = vld [vmem:[%s3487_s22] sm:$0xff]  }
 0xa53   : > { %2845 = vmatprep.subr.bf16.mxu1 %v2911_v35 }
 0xa54   : > { %2970 = vrsqrt.f32 %v2101_v2  ;;  %v2102_v3 = vadd.f32 1e-06, %v2098_v37 }
 0xa55   : > { %v2095_v4 = vpop.xlane.xlu0 %2094 }
 0xa56   : > { %2972 = vrsqrt.f32 %v2102_v3  ;;  %v2099_v5 = vmul.f32 0.0625, %v2095_v4 }
 0xa58   : > { %v2103_v6 = vadd.f32 1e-06, %v2099_v5 }
 0xa5a   : > { %2974 = vrsqrt.f32 %v2103_v6 }
 0xa5c   : > { %v2969_v7 = vpop.eup %2968 }
 0xa5d   : > { %v2108_v8 = vmul.f32 %v2969_v7, %v3385_v50 }
 0xa5e   : > { %v2971_v9 = vpop.eup %2970 }
 0xa5f   : > { %v2109_v11 = vmul.f32 %v2971_v9, %v3388_v53  ;;  %v2118_v13 = vmul.f32 %v2644_v10, %v2108_v8 }
 0xa60   : > { %v2973_v12 = vpop.eup %2972 }
 0xa61   : > { %v2119_v14 = vmul.f32 %v2644_v10, %v2109_v11  ;;  %v2110_v15 = vmul.f32 %v2973_v12, %v3382_v49 }
 0xa63   : > { %v2122_v16 = vpack.c.bf16 %v2119_v14, %v2118_v13  ;;  %v2120_v19 = vmul.f32 %v2644_v10, %v2110_v15 }
 0xa64   : > { %v2975_v17 = vpop.eup %2974 }
 0xa65   : > { %v2111_v18 = vmul.f32 %v2975_v17, %v3393_v55  ;;  %2823 = vmatprep.mubr.msk.bf16.mxu0 %vm1271_vm1, %v2122_v16  ;;  %2829 = vmatprep.mubr.msk.bf16.mxu1 %vm1271_vm1, %v2122_v16 }
 0xa67   : > { %v2121_v20 = vmul.f32 %v2644_v10, %v2111_v18 }
 0xa69   : > { %v2123_v21 = vpack.c.bf16 %v2121_v20, %v2120_v19 }
 0xa6b   : > { %2824 = vmatmul.mubr.msk.bf16.vlgmr.msra.gmra.mrb[20].mxu0 %vm1271_vm1, %v2123_v21  ;;  %2830 = vmatmul.mubr.msk.bf16.vlgmr.msra.gmra.mrb[36].mxu1 %vm1271_vm1, %v2123_v21 }
 0xa6c   : > { %2834 = vmatpush3.bf16.msra.mxu0 %v2907_v22  ;;  %2846 = vmatpush3.bf16.msra.mxu1 %v2911_v35 }
 0xa6d   : > { %2835 = vmatprep.subr.bf16.mxu0 %v2908_v23 }
 0xa70   : > { %2836 = vmatpush3.bf16.msra.mxu0 %v2908_v23 }
 0xa71   : > { %2837 = vmatprep.subr.bf16.mxu0 %v2909_v24 }
 0xa74   : > { %2838 = vmatpush3.bf16.msra.mxu0 %v2909_v24 }
 0xa75   : > { %2839 = vmatprep.subr.bf16.mxu0 %v2910_v25 }
 0xa78   : > { %2840 = vmatpush3.bf16.msra.mxu0 %v2910_v25 }
 0xb3e   : > { %v2825_v27 = vpop.f32.mrb[20].mxu0  ;;  %v2831_v28 = vpop.f32.mrb[36].mxu1 }
 0xb3f   : > { %v2653_v30 = vmul.f32 -1.442695, %v2825_v27  ;;  %v2170_v31 = vpop.f32.mrb[21].mxu0  ;;  %v2225_v32 = vpop.f32.mrb[37].mxu1 }
 0xb40   : > { %v2651_v33 = vmul.f32 -1.442695, %v2170_v31  ;;  %v2826_v34 = vpop.f32.mrb[22].mxu0  ;;  %v2832_v36 = vpop.f32.mrb[38].mxu1 }
 0xb41   : > { %2976 = vpow2.f32 %v2653_v30  ;;  %v2654_v38 = vmul.f32 -1.442695, %v2826_v34  ;;  %v2173_v39 = vpop.f32.mrb[23].mxu0  ;;  %v2228_v40 = vpop.f32.mrb[39].mxu1 }
 0xb42   : > { %2978 = vpow2.f32 %v2651_v33  ;;  %v2652_v41 = vmul.f32 -1.442695, %v2173_v39 }
 0xb43   : > { %2980 = vpow2.f32 %v2654_v38 }
 0xb44   : > { %2982 = vpow2.f32 %v2652_v41 }
 0xb4b   : > { %v2977_v42 = vpop.eup %2976 }
 0xb4c   : > { %v2979_v43 = vpop.eup %2978  ;;  %v2254_v45 = vadd.f32 1.0, %v2977_v42 }
 0xb4d   : > { %v2981_v47 = vpop.eup %2980  ;;  %v2252_v48 = vadd.f32 1.0, %v2979_v43 }
 0xb4e   : > { %v2983_v51 = vpop.eup %2982  ;;  %2984 = vrcp.f32 %v2254_v45  ;;  %v2255_v52 = vadd.f32 1.0, %v2981_v47 }
 0xb4f   : > { %2986 = vrcp.f32 %v2252_v48  ;;  %v2253_v54 = vadd.f32 1.0, %v2983_v51 }
 0xb50   : > { %2988 = vrcp.f32 %v2255_v52 }
 0xb51   : > { %2990 = vrcp.f32 %v2253_v54 }
 0xb58   : > { %v2985_v56 = vpop.eup %2984 }
 0xb59   : > { %v2987_v44 = vpop.eup %2986  ;;  %v2266_v26 = vmul.f32 %v2985_v56, %v2825_v27 }
 0xb5a   : > { %v2989_v57 = vpop.eup %2988  ;;  %v2264_v29 = vmul.f32 %v2987_v44, %v2170_v31 }
 0xb5b   : > { %v2991_v58 = vpop.eup %2990  ;;  %v2270_v46 = vmul.f32 %v2831_v28, %v2266_v26  ;;  %v2267_v59 = vmul.f32 %v2989_v57, %v2826_v34 }
 0xb5c   : > { %v2268_v60 = vmul.f32 %v2264_v29, %v2225_v32  ;;  %v2265_v61 = vmul.f32 %v2991_v58, %v2173_v39 }
 0xb5d   : > { %v2271_v62 = vmul.f32 %v2832_v36, %v2267_v59 }
 0xb5e   : > { %v2269_v63 = vmul.f32 %v2265_v61, %v2228_v40 }
 0xb5f   : > { %v2273_v0 = vpack.c.bf16 %v2271_v62, %v2270_v46 }
 0xb60   : > { %v2272_v1 = vpack.c.bf16 %v2269_v63, %v2268_v60 }
 0xb62   : > { %2841 = vmatprep.mubr.msk.bf16.mxu0 %vm2298_vm3, %v2272_v1 }
 0xb63   : > { %2842 = vmatmul.mubr.msk.bf16.vlgmr.msra.gmra.mrb[24].mxu0 %vm2298_vm3, %v2273_v0 }
 0xc36   : > { %v2843_v2 = vpop.f32.mrb[24].mxu0 }
 0xc37   : > { %v2356_v37 = vadd.f32 %v2843_v2, %v3382_v49  ;;  %v2339_v3 = vpop.f32.mrb[25].mxu0 }
 0xc38   : > { %v2354_v4 = vadd.f32 %v2339_v3, %v3385_v50  ;;  %v2844_v5 = vpop.f32.mrb[26].mxu0  ;;  %v2661_v50 = vld [vmem:[%s3488_s23] ss:$0 sm:$0xff] }
 0xc39   : > { %2360 = vst.msk [vmem:[%s846_s9 + $0x10] sm:$0xff] %vm1271_vm1, %v2356_v37  ;;  %v2357_v6 = vadd.f32 %v2844_v5, %v3393_v55  ;;  %v2342_v7 = vpop.f32.mrb[27].mxu0 }
 0xc3a   : > { %2358 = vst.msk [vmem:[%s846_s9] sm:$0xff] %vm1271_vm1, %v2354_v4  ;;  %v2355_v8 = vadd.f32 %v2342_v7, %v3388_v53 }
 0xc3b   : > { %2361 = vst.msk [vmem:[%s846_s9 + $0x18] sm:$0xff] %vm1271_vm1, %v2357_v6  ;;  %v2363_v9 = vpack.c.bf16 %v2357_v6, %v2356_v37 }
 0xc3c   : > { %2359 = vst.msk [vmem:[%s846_s9 + $0x8] sm:$0xff] %vm1271_vm1, %v2355_v8  ;;  %v2362_v49 = vpack.c.bf16 %v2355_v8, %v2354_v4 }
 0xc3e   : > { %2847 = vmatprep.mubr.msk.bf16.mxu1 %vm1271_vm1, %v2362_v49 }
 0xc3f   : > { %2848 = vmatmul.mubr.msk.bf16.vlgmr.msra.gmra.mrb[40].mxu1 %vm1271_vm1, %v2363_v9 }
 0xd12   : > { %v2849_v55 = vpop.f32.mrb[40].mxu1 }
 0xd13   : > { %v2428_v53 = vadd.f32 %v2849_v55, %v2661_v50  ;;  %v2419_v10 = vpop.f32.mrb[41].mxu1 }
 0xd14   : > { %v2420_v11 = vadd.f32 %v2661_v50, %v2419_v10  ;;  %v2850_v12 = vpop.f32.mrb[42].mxu1 }
 0xd15   : > { %2436 = vst.msk [vmem:[%s851_s28 + $0x10] sm:$0xff] %vm1648_vm2, %v2428_v53  ;;  %v2431_v13 = vadd.f32 %v2850_v12, %v2661_v50  ;;  %v2422_v14 = vpop.f32.mrb[43].mxu1 }
 0xd16   : > { %2434 = vst.msk [vmem:[%s851_s28] sm:$0xff] %vm1648_vm2, %v2420_v11  ;;  %v2423_v15 = vadd.f32 %v2661_v50, %v2422_v14 }
 0xd17   : > { %2437 = vst.msk [vmem:[%s851_s28 + $0x18] sm:$0xff] %vm1648_vm2, %v2431_v13 }
 0xd18   : > { %2435 = vst.msk [vmem:[%s851_s28 + $0x8] sm:$0xff] %vm1648_vm2, %v2423_v15 }
 0xd19 PF: > { %s3517_s26 = sld [smem:[#allocation2_spill]] }
 0xd1f   : > { %s36_s29 = sadd.s32 1, %s3517_s26  }
 0xd20   : > { %p33_p4 = scmp.ge.s32.totalorder %s36_s29, 4  }
 0xd22   :  { %35 = sbr.rel (!%p33_p4) target bundleno = 12 (0xc), region = 170 }

// kernel: _lambda_.4
= control target key start
LH: loop header
LB: loop body
LE: loop exit
PB: predicated region body
PF: predicated region fallthrough
CT: control target
= control target key end

     0   :  { %s6009_s0 = inlined_call_operand.vmem [shape: f32[2,32,16], index: 0, kind: input, shape index: {}]   ;;  %s6010_s1 = inlined_call_operand.vmem [shape: f32[2,32,128], index: 1, kind: input, shape index: {}]   ;;  %s6011_s2 = inlined_call_operand.vmem [shape: bf16[2,32,32], index: 2, kind: input, shape index: {}]   ;;  %s6012_s3 = inlined_call_operand.vmem [shape: f32[2,1,32], index: 3, kind: input, shape index: {}]   ;;  %s6013_s4 = inlined_call_operand.vmem [shape: bf16[16,128], index: 4, kind: input, shape index: {}]   ;;  %s6014_s5 = inlined_call_operand.vmem [shape: bf16[128,32], index: 5, kind: input, shape index: {}]   ;;  %s6015_s6 = inlined_call_operand.vmem [shape: f32[1,32], index: 6, kind: input, shape index: {}]   ;;  %s6016_s7 = inlined_call_operand.vmem [shape: f32[1,32], index: 7, kind: input, shape index: {}, may-alias: {7,8,13,17,18,23}]   ;;  %s6017_s8 = inlined_call_operand.vmem [shape: f32[1,32], index: 8, kind: input, shape index: {}, may-alias: {7,8,13,17,18,23}]   ;;  %s6018_s9 = inlined_call_operand.vmem [shape: bf16[32,32], index: 9, kind: input, shape index: {}]   ;;  %s6019_s10 = inlined_call_operand.vmem [shape: bf16[32,32], index: 10, kind: input, shape index: {}]   ;;  %s6020_s11 = inlined_call_operand.vmem [shape: bf16[32,32], index: 11, kind: input, shape index: {}]   ;;  %s6021_s12 = inlined_call_operand.vmem [shape: bf16[32,32], index: 12, kind: input, shape index: {}]   ;;  %s6022_s13 = inlined_call_operand.vmem [shape: f32[1,32], index: 13, kind: input, shape index: {}, may-alias: {7,8,13,17,18,23}]   ;;  %s6023_s14 = inlined_call_operand.vmem [shape: bf16[32,128], index: 14, kind: input, shape index: {}]   ;;  %s6024_s15 = inlined_call_operand.vmem [shape: bf16[32,128], index: 15, kind: input, shape index: {}]   ;;  %s6025_s16 = inlined_call_operand.vmem [shape: bf16[128,32], index: 16, kind: input, shape index: {}]   ;;  %s6026_s17 = inlined_call_operand.vmem [shape: f32[1,32], index: 17, kind: input, shape index: {}, may-alias: {7,8,13,17,18,23}]   ;;  %s6027_s18 = inlined_call_operand.vmem [shape: f32[1,32], index: 18, kind: input, shape index: {}, may-alias: {7,8,13,17,18,23}]   ;;  %s6028_s19 = inlined_call_operand.vmem [shape: bf16[32,32], index: 19, kind: input, shape index: {}]   ;;  %s6029_s20 = inlined_call_operand.vmem [shape: bf16[32,32], index: 20, kind: input, shape index: {}]   ;;  %s6030_s21 = inlined_call_operand.vmem [shape: bf16[32,32], index: 21, kind: input, shape index: {}]   ;;  %s6031_s22 = inlined_call_operand.vmem [shape: bf16[32,32], index: 22, kind: input, shape index: {}]   ;;  %s6032_s23 = inlined_call_operand.vmem [shape: f32[1,32], index: 23, kind: input, shape index: {}, may-alias: {7,8,13,17,18,23}]   ;;  %s6033_s24 = inlined_call_operand.vmem [shape: bf16[32,128], index: 24, kind: input, shape index: {}]   ;;  %s6034_s25 = inlined_call_operand.vmem [shape: bf16[32,128], index: 25, kind: input, shape index: {}]   ;;  %s6035_s26 = inlined_call_operand.vmem [shape: bf16[128,32], index: 26, kind: input, shape index: {}]   ;;  %s6036_s27 = inlined_call_operand.vmem [shape: f32[2,32,32], index: 27, kind: output, shape index: {}]  }
   0x1   :  { %6053 = sst [smem:[#allocation2_spill]] %s6009_s0 }
   0x2   :  { %6054 = sst [smem:[#allocation3_spill]] %s6010_s1 }
   0x3   :  { %6055 = sst [smem:[#allocation4_spill]] %s6011_s2 }
   0x4   :  { %6056 = sst [smem:[#allocation5_spill]] %s6012_s3 }
   0x5   :  { %6057 = sst [smem:[#allocation6_spill]] %s6013_s4 }
   0x6   :  { %6058 = sst [smem:[#allocation7_spill]] %s6014_s5 }
   0x7   :  { %6059 = sst [smem:[#allocation8_spill]] %s6015_s6 }
   0x8   :  { %6060 = sst [smem:[#allocation9_spill]] %s6016_s7  ;;  %s5265_s7 = smov 0  }
   0x9   :  { %6061 = sst [smem:[#allocation10_spill]] %s6017_s8 }
   0xa   :  { %6062 = sst [smem:[#allocation11_spill]] %s6018_s9 }
   0xb   :  { %6063 = sst [smem:[#allocation12_spill]] %s6019_s10 }
   0xc   :  { %6064 = sst [smem:[#allocation13_spill]] %s6020_s11 }
   0xd LB: > { %s4168_s4 = sadd.s32 4294967295, %s5117_s7   ;;  %p4172_p0 = scmp.ge.s32.totalorder %s5117_s7, 1  ;;  %s5117_s7 = sphi %s5265_s7, %s37_s7  }
   0xe   : > { %p765_p1 = scmp.lt.s32.totalorder %s5117_s7, 3 }
  0x10   : > { %p766_p2 = pnand %p4172_p0, %p765_p1 }
  0x11   : > { %s6065_s9 = sld [smem:[#allocation6_spill]] (!%p766_p2)  ;;  %p850_p3 = scmp.lt.s32.totalorder (!%p766_p2), %s4168_s4, 1  ;;  %vm889_vm0 = vcmask (!%p766_p2), 130048   ;;  %vm1091_vm1 = vcmask (!%p766_p2), 261120   ;;  %vm1478_vm2 = vcmask (!%p766_p2), 64512   ;;  %vm2231_vm3 = vcmask (!%p766_p2), 195584  }
  0x12   : > { %769 = sbr.rel (%p766_p2) target bundleno = 8228 (0x2024), region = 128  ;;  %s6066_s0 = sld [smem:[#allocation7_spill]] (!%p766_p2) }
  0x13   : > { %s6067_s2 = sld [smem:[#allocation2_spill]] (!%p766_p2)  ;;  %s6068_s5 = sld [smem:[#allocation3_spill]] (!%p766_p2) }
  0x14   : > { %s6069_s11 = sld [smem:[#allocation4_spill]] (!%p766_p2)  ;;  %s6070_s30 = sld [smem:[#allocation8_spill]] (!%p766_p2) }
  0x15   : > { %s6072_s6 = sld [smem:[#allocation11_spill]] (!%p766_p2)  ;;  %s6076_s29 = sld [smem:[#allocation5_spill]] (!%p766_p2) }
  0x16   : > { %s6043_s8 = smov (!%p766_p2), 8  }
  0x17   : > { %v4851_v0 = vld [vmem:[%s6065_s9] sm:$0xff] (!%p766_p2)   ;;  %s6041_s9 = smov (!%p766_p2), 16  }
  0x18   : > { %v4852_v1 = vld [vmem:[%s6066_s0] sm:$0xff] (!%p766_p2)   ;;  %4463 = vmatprep.subr.bf16.mxu0 (!%p766_p2), %v4851_v0  ;;  %v4853_v2 = vld [vmem:[%s6066_s0 + $0x8] sm:$0xff] (!%p766_p2)   ;;  %v4854_v3 = vld [vmem:[%s6066_s0 + $0x10] sm:$0xff] (!%p766_p2)  }
  0x19   : > { %s6084_s4 = smov (!%p850_p3, %s4168_s4), 1  ;;  %4464 = vmatpush3.bf16.msra.mxu0 %v4851_v0  ;;  %4469 = vmatprep.subr.bf16.mxu1 %v4852_v1  ;;  %v4855_v10 = vld [vmem:[%s6066_s0 + $0x18] sm:$0xff]   ;;  %v4856_v11 = vld [vmem:[%s6066_s0 + $0x20] sm:$0xff]   ;;  %v4857_v12 = vld [vmem:[%s6066_s0 + $0x28] sm:$0xff]  }
  0x1a   : > { %s5285_s1 = sshll.u32 %s6084_s4, 5  ;;  %4470 = vmatpush3.bf16.msra.mxu1 %v4852_v1  ;;  %v4858_v13 = vld [vmem:[%s6066_s0 + $0x30] sm:$0xff]   ;;  %v4859_v14 = vld [vmem:[%s6066_s0 + $0x38] sm:$0xff]   ;;  %s4312_s10 = sshll.u32 %s6084_s4, 4  ;;  %v4192_v37 = vld [vmem:[%s6070_s30] ss:$0 sm:$0xff] }
  0x1b   : > { %s854_s3 = scalar_lea.vmem %s6067_s2, %s5285_s1  ;;  %4471 = vmatprep.subr.bf16.mxu1 %v4853_v2  ;;  %s859_s28 = scalar_lea.vmem %s6068_s5, %s5285_s1 }
  0x1c   : > { %v875_v4 = vld [vmem:[%s854_s3] sm:$0xff]  ;;  %v876_v5 = vld [vmem:[%s854_s3 + $0x8] sm:$0xff]  ;;  %v877_v6 = vld [vmem:[%s854_s3 + $0x10] sm:$0xff]  ;;  %s864_s2 = scalar_lea.vmem %s6069_s11, %s4312_s10  ;;  %s6073_s30 = sld [smem:[#allocation12_spill]] }
  0x1d   : > { %v879_v7 = vpack.c.bf16 %v876_v5, %v875_v4  ;;  %v878_v8 = vld [vmem:[%s854_s3 + $0x18] sm:$0xff]  ;;  %v947_v16 = vld [vmem:[%s859_s28 + $0x10] sm:$0xff]  ;;  %v945_v19 = vld [vmem:[%s859_s28] sm:$0xff]  ;;  %s6075_s3 = sld [smem:[#allocation13_spill]]  ;;  %s6051_s5 = smov 120  }
  0x1e   : > { %v880_v9 = vpack.c.bf16 %v878_v8, %v877_v6  ;;  %4472 = vmatpush3.bf16.msra.mxu1 %v4853_v2  ;;  %v948_v17 = vld [vmem:[%s859_s28 + $0x18] sm:$0xff]  ;;  %v946_v20 = vld [vmem:[%s859_s28 + $0x8] sm:$0xff]  ;;  %v4860_v29 = vld [vmem:[%s864_s2] sm:$0xff]   ;;  %s6071_s28 = sld [smem:[#allocation9_spill]]  ;;  %s5428_s11 = scalar_lea.vmem %s6076_s29, %s6084_s4 }
  0x1f   : > { %4465 = vmatprep.mubr.msk.bf16.mxu0 %vm889_vm0, %v879_v7  ;;  %4473 = vmatprep.subr.bf16.mxu1 %v4854_v3  ;;  %v4861_v36 = vld [vmem:[%s864_s2 + $0x8] sm:$0xff]   ;;  %s6049_s4 = smov 112   ;;  %s6047_s2 = smov 104  }
  0x20   : > { %4466 = vmatmul.mubr.msk.bf16.vlgmr.msra.gmra.mrb[0].mxu0 %vm889_vm0, %v880_v9 }
  0x21   : > { %4493 = vmatprep.mubr.msk.bf16.mxu0 %vm1091_vm1, %v4860_v29 }
  0x22   : > { %4474 = vmatpush3.bf16.msra.mxu1 %v4854_v3 }
  0x23   : > { %4475 = vmatprep.subr.bf16.mxu1 %v4855_v10 }
  0x24   : > { %v4197_v4 = vld [vmem:[%s6071_s28] ss:$0 sm:$0xff]  ;;  %s6074_s28 = sld [smem:[#allocation10_spill]] }
  0x26   : > { %4476 = vmatpush3.bf16.msra.mxu1 %v4855_v10 }
  0x27   : > { %4477 = vmatprep.subr.bf16.mxu1 %v4856_v11 }
  0x2a   : > { %4478 = vmatpush3.bf16.msra.mxu1 %v4856_v11 }
  0x2b   : > { %4479 = vmatprep.subr.bf16.mxu1 %v4857_v12 }
  0x2e   : > { %4480 = vmatpush3.bf16.msra.mxu1 %v4857_v12 }
  0x2f   : > { %4481 = vmatprep.subr.bf16.mxu1 %v4858_v13 }
  0x32   : > { %4482 = vmatpush3.bf16.msra.mxu1 %v4858_v13 }
  0x33   : > { %4483 = vmatprep.subr.bf16.mxu1 %v4859_v14 }
  0x36   : > { %4484 = vmatpush3.bf16.msra.mxu1 %v4859_v14 }
  0xf3   : > { %v4467_v15 = vpop.f32.mrb[0].mxu0 }
  0xf4   : > { %v930_v18 = vpop.f32.mrb[1].mxu0  ;;  %v951_v22 = vmul.f32 %v4467_v15, %v947_v16 }
  0xf5   : > { %v4468_v21 = vpop.f32.mrb[2].mxu0  ;;  %v949_v25 = vmul.f32 %v945_v19, %v930_v18 }
  0xf6   : > { %v952_v23 = vmul.f32 %v4468_v21, %v948_v17  ;;  %v933_v24 = vpop.f32.mrb[3].mxu0 }
  0xf7   : > { %v950_v26 = vmul.f32 %v946_v20, %v933_v24  ;;  %v4863_v24 = vld [vmem:[%s6072_s6 + $0x8] sm:$0xff]  }
  0xf8   : > { %v954_v27 = vpack.c.bf16 %v952_v23, %v951_v22  ;;  %v4862_v23 = vld [vmem:[%s6072_s6] sm:$0xff]  }
  0xf9   : > { %v953_v28 = vpack.c.bf16 %v950_v26, %v949_v25  ;;  %v4864_v25 = vld [vmem:[%s6073_s30] sm:$0xff]  }
  0xfb   : > { %4485 = vmatprep.mubr.bf16.mxu1 %v953_v28 }
  0xfc   : > { %4486 = vmatmul.mubr.bf16.vlgmr.msra.gmra.mrb[0].mxu1 %v954_v27 }
 0x1cf   : > { %v4487_v30 = vpop.f32.mrb[0].mxu1 }
 0x1d0   : > { %v1053_v31 = vpop.f32.mrb[1].mxu1 }
 0x1d1   : > { %v4488_v32 = vpop.f32.mrb[2].mxu1 }
 0x1d2   : > { %v1073_v33 = vpack.c.bf16 %v4488_v32, %v4487_v30  ;;  %v1056_v34 = vpop.f32.mrb[3].mxu1 }
 0x1d3   : > { %v1072_v35 = vpack.c.bf16 %v1056_v34, %v1053_v31 }
 0x1d5   : > { %4489 = vmatprep.subr.bf16.mxu0 %v1072_v35 }
 0x1d6   : > { %4490 = vmatpush3.bf16.msra.mxu0 %v1072_v35 }
 0x1d7   : > { %4491 = vmatprep.subr.bf16.mxu0 %v1073_v33 }
 0x1da   : > { %4492 = vmatpush3.bf16.msra.mxu0 %v1073_v33 }
 0x1db   : > { %4497 = vmatprep.subr.bf16.mxu0 %v4862_v23 }
 0x1dd   : > { %4494 = vmatmul.mubr.msk.bf16.vlgmr.msra.gmra.mrb[4].mxu0 %vm1091_vm1, %v4861_v36 }
 0x1de   : > { %4498 = vmatpush3.bf16.msra.mxu0 %v4862_v23 }
 0x1df   : > { %4499 = vmatprep.subr.bf16.mxu0 %v4863_v24 }
 0x1e2   : > { %4500 = vmatpush3.bf16.msra.mxu0 %v4863_v24 }
 0x1e3   : > { %4505 = vmatprep.subr.bf16.mxu0 %v4864_v25 }
 0x2b0   : > { %v4495_v38 = vpop.f32.mrb[4].mxu0 }
 0x2b1   : > { %v1141_v39 = vadd.f32 %v4495_v38, %v4192_v37  ;;  %v1132_v40 = vpop.f32.mrb[5].mxu0 }
 0x2b2   : > { %v1133_v41 = vadd.f32 %v4192_v37, %v1132_v40  ;;  %v4496_v42 = vpop.f32.mrb[6].mxu0 }
 0x2b3   : > { %v1144_v43 = vadd.f32 %v4496_v42, %v4192_v37  ;;  %v1135_v44 = vpop.f32.mrb[7].mxu0  ;;  %v1150_v45 = vmul.f32 %v1141_v39, %v1141_v39 }
 0x2b4   : > { %v1136_v46 = vadd.f32 %v4192_v37, %v1135_v44  ;;  %v1148_v47 = vmul.f32 %v1133_v41, %v1133_v41 }
 0x2b5   : > { %v1158_v48 = vsel %vm1091_vm1, %v1150_v45, 0.0  ;;  %v1151_v49 = vmul.f32 %v1144_v43, %v1144_v43 }
 0x2b6   : > { %1159 = vadd.xlane.f32.xlu1 %v1158_v48  ;;  %v1152_v50 = vsel %vm1091_vm1, %v1148_v47, 0.0  ;;  %v1149_v51 = vmul.f32 %v1136_v46, %v1136_v46 }
 0x2b7   : > { %1153 = vadd.xlane.f32.xlu0 %v1152_v50  ;;  %v1161_v52 = vsel %vm1091_vm1, %v1151_v49, 0.0 }
 0x2b8   : > { %v1155_v53 = vsel %vm1091_vm1, %v1149_v51, 0.0 }
 0x2ba   : > { %1162 = vadd.xlane.f32.xlu1 %v1161_v52 }
 0x2bb   : > { %1156 = vadd.xlane.f32.xlu0 %v1155_v53  ;;  %v4865_v53 = vld [vmem:[%s6073_s30 + $0x8] sm:$0xff]  }
 0x343   : > { %v1160_v54 = vpop.xlane.xlu1 %1159 }
 0x344   : > { %v1167_v55 = vmul.f32 0.03125, %v1160_v54  ;;  %v1154_v56 = vpop.xlane.xlu0 %1153  ;;  %v4866_v54 = vld [vmem:[%s6075_s3] sm:$0xff]  }
 0x345   : > { %v1165_v57 = vmul.f32 0.03125, %v1154_v56 }
 0x346   : > { %v1171_v58 = vadd.f32 1e-06, %v1167_v55  ;;  %v4867_v55 = vld [vmem:[%s6075_s3 + $0x8] sm:$0xff]  }
 0x347   : > { %v1169_v59 = vadd.f32 1e-06, %v1165_v57  ;;  %v1163_v60 = vpop.xlane.xlu1 %1162 }
 0x348   : > { %4902 = vrsqrt.f32 %v1171_v58  ;;  %v1168_v61 = vmul.f32 0.03125, %v1163_v60  ;;  %v1157_v62 = vpop.xlane.xlu0 %1156 }
 0x349   : > { %4904 = vrsqrt.f32 %v1169_v59  ;;  %v1166_v63 = vmul.f32 0.03125, %v1157_v62 }
 0x34a   : > { %v1172_v0 = vadd.f32 1e-06, %v1168_v61 }
 0x34b   : > { %v1170_v1 = vadd.f32 1e-06, %v1166_v63 }
 0x34c   : > { %4906 = vrsqrt.f32 %v1172_v0 }
 0x34d   : > { %4908 = vrsqrt.f32 %v1170_v1 }
 0x352   : > { %v4903_v2 = vpop.eup %4902 }
 0x353   : > { %v4905_v3 = vpop.eup %4904  ;;  %v1179_v5 = vmul.f32 %v4903_v2, %v1141_v39 }
 0x354   : > { %v1177_v6 = vmul.f32 %v4905_v3, %v1133_v41  ;;  %v4198_v41 = vld [vmem:[%s6074_s28] ss:$0 sm:$0xff]  ;;  %s6081_s28 = smov 16  }
 0x355   : > { %v5333_v9 = vmul.f32 %v4197_v4, %v1179_v5 }
 0x356   : > { %v4907_v7 = vpop.eup %4906  ;;  %v5331_v8 = vmul.f32 %v4197_v4, %v1177_v6 }
 0x357   : > { %v4909_v10 = vpop.eup %4908  ;;  %v1180_v11 = vmul.f32 %v4907_v7, %v1144_v43  ;;  %v1235_v15 = vmul.f32 %v5333_v9, %v5333_v9 }
 0x358   : > { %v1233_v12 = vmul.f32 %v5331_v8, %v5331_v8  ;;  %v1178_v13 = vmul.f32 %v4909_v10, %v1136_v46 }
 0x359   : > { %v5342_v17 = vmul.f32 %v4197_v4, %v1180_v11  ;;  %v1243_v19 = vsel %vm1091_vm1, %v1235_v15, 0.0 }
 0x35a   : > { %v1237_v14 = vsel %vm1091_vm1, %v1233_v12, 0.0  ;;  %v5340_v16 = vmul.f32 %v4197_v4, %v1178_v13 }
 0x35b   : > { %1238 = vadd.xlane.f32.xlu0 %v1237_v14  ;;  %v1236_v21 = vmul.f32 %v5342_v17, %v5342_v17 }
 0x35c   : > { %v1234_v18 = vmul.f32 %v5340_v16, %v5340_v16 }
 0x35d   : > { %v1246_v22 = vsel %vm1091_vm1, %v1236_v21, 0.0 }
 0x35e   : > { %v1240_v20 = vsel %vm1091_vm1, %v1234_v18, 0.0 }
 0x35f   : > { %1244 = vadd.xlane.f32.xlu0 %v1243_v19  ;;  %1241 = vadd.xlane.f32.xlu1 %v1240_v20 }
 0x363   : > { %1247 = vadd.xlane.f32.xlu1 %v1246_v22 }
 0x3e8   : > { %v1239_v26 = vpop.xlane.xlu0 %1238 }
 0x3e9   : > { %v1249_v27 = vmul.f32 0.03125, %v1239_v26 }
 0x3eb   : > { %v1253_v28 = vadd.f32 1e-06, %v1249_v27  ;;  %v5431_v27 = vld [vmem:[%s5428_s11] ss:$0 sm:$0xff] }
 0x3ec   : > { %v1242_v29 = vpop.xlane.xlu1 %1241  ;;  %v1245_v30 = vpop.xlane.xlu0 %1244 }
 0x3ed   : > { %4910 = vrsqrt.f32 %v1253_v28  ;;  %v1250_v31 = vmul.f32 0.03125, %v1242_v29  ;;  %v1251_v32 = vmul.f32 0.03125, %v1245_v30 }
 0x3ef   : > { %v1254_v33 = vadd.f32 1e-06, %v1250_v31  ;;  %v1255_v34 = vadd.f32 1e-06, %v1251_v32 }
 0x3f0   : > { %v1248_v35 = vpop.xlane.xlu1 %1247 }
 0x3f1   : > { %4912 = vrsqrt.f32 %v1254_v33  ;;  %v1252_v36 = vmul.f32 0.03125, %v1248_v35 }
 0x3f2   : > { %4914 = vrsqrt.f32 %v1255_v34 }
 0x3f3   : > { %v1256_v37 = vadd.f32 1e-06, %v1252_v36 }
 0x3f5   : > { %4916 = vrsqrt.f32 %v1256_v37 }
 0x3f7   : > { %v4911_v38 = vpop.eup %4910 }
 0x3f8   : > { %v1261_v39 = vmul.f32 %v4911_v38, %v5331_v8 }
 0x3fa   : > { %v1271_v45 = vmul.f32 %v4198_v41, %v1261_v39 }
 0x3fb   : > { %v4913_v40 = vpop.eup %4912 }
 0x3fc   : > { %v4915_v42 = vpop.eup %4914  ;;  %v1262_v43 = vmul.f32 %v4913_v40, %v5340_v16 }
 0x3fd   : > { %v1263_v44 = vmul.f32 %v4915_v42, %v5333_v9 }
 0x3fe   : > { %v1272_v46 = vmul.f32 %v4198_v41, %v1262_v43 }
 0x3ff   : > { %v4917_v47 = vpop.eup %4916  ;;  %v1273_v50 = vmul.f32 %v4198_v41, %v1263_v44 }
 0x400   : > { %v1264_v48 = vmul.f32 %v4917_v47, %v5342_v17  ;;  %v1275_v49 = vpack.c.bf16 %v1272_v46, %v1271_v45 }
 0x402   : > { %4501 = vmatprep.mubr.msk.bf16.mxu0 %vm1091_vm1, %v1275_v49  ;;  %v1274_v51 = vmul.f32 %v4198_v41, %v1264_v48 }
 0x404   : > { %v1276_v52 = vpack.c.bf16 %v1274_v51, %v1273_v50 }
 0x406   : > { %4502 = vmatmul.mubr.msk.bf16.vlgmr.msra.gmra.mrb[8].mxu0 %vm1091_vm1, %v1276_v52 }
 0x407   : > { %4506 = vmatpush3.bf16.msra.mxu0 %v4864_v25  ;;  %4509 = vmatprep.mubr.msk.bf16.mxu0 %vm1091_vm1, %v1275_v49 }
 0x408   : > { %4507 = vmatprep.subr.bf16.mxu0 %v4865_v53 }
 0x40b   : > { %4508 = vmatpush3.bf16.msra.mxu0 %v4865_v53 }
 0x40c   : > { %4513 = vmatprep.subr.bf16.mxu0 %v4866_v54 }
 0x40e   : > { %4510 = vmatmul.mubr.msk.bf16.vlgmr.msra.gmra.mrb[12].mxu0 %vm1091_vm1, %v1276_v52 }
 0x40f   : > { %4514 = vmatpush3.bf16.msra.mxu0 %v4866_v54  ;;  %4517 = vmatprep.mubr.msk.bf16.mxu0 %vm1091_vm1, %v1275_v49 }
 0x410   : > { %4515 = vmatprep.subr.bf16.mxu0 %v4867_v55 }
 0x413   : > { %4516 = vmatpush3.bf16.msra.mxu0 %v4867_v55 }
 0x416   : > { %4518 = vmatmul.mubr.msk.bf16.vlgmr.msra.gmra.mrb[16].mxu0 %vm1091_vm1, %v1276_v52 }
 0x4d9   : > { %v4503_v56 = vpop.f32.mrb[8].mxu0 }
 0x4da   : > { %v1329_v57 = vpop.f32.mrb[9].mxu0 }
 0x4db   : > { %v4504_v58 = vpop.f32.mrb[10].mxu0 }
 0x4dc   : > { %v5382_v59 = vpack.c.bf16 %v4504_v58, %v4503_v56  ;;  %v1332_v60 = vpop.f32.mrb[11].mxu0 }
 0x4dd   : > { %v5384_v61 = vpack.c.bf16 %v1332_v60, %v1329_v57 }
 0x4df   : > { %4525 = vmatprep.mubr.msk.bf16.mxu1 %vm1478_vm2, %v5384_v61 }
 0x4e1   : > { %v4511_v62 = vpop.f32.mrb[12].mxu0 }
 0x4e2   : > { %v1392_v63 = vpop.f32.mrb[13].mxu0 }
 0x4e3   : > { %v4512_v0 = vpop.f32.mrb[14].mxu0 }
 0x4e4   : > { %v5388_v1 = vpack.c.bf16 %v4512_v0, %v4511_v62  ;;  %v1395_v2 = vpop.f32.mrb[15].mxu0 }
 0x4e5   : > { %v5390_v3 = vpack.c.bf16 %v1395_v2, %v1392_v63 }
 0x4e6   : > { %1651 = vrot.lane.b32.xlu1 %v5388_v1, %s6051_s5  ;;  %v1489_v13 = vsel %vm1478_vm2, %v5388_v1, 0 }
 0x4e7   : > { %1649 = vrot.lane.b32.xlu0 %v5390_v3, %s6051_s5  ;;  %4761 = vmatprep.subr.msk.bf16.mxu1 %vm1478_vm2, %v5390_v3  ;;  %v1486_v4 = vsel %vm1478_vm2, %v5390_v3, 0 }
 0x4e8   : > { %4522 = vmatpush3.bf16.xpose.msra.mxu1 %v1486_v4 }
 0x4e9   : > { %v4519_v5 = vpop.f32.mrb[16].mxu0  ;;  %4762 = vmatprep.subr.msk.bf16.mxu1 %vm1478_vm2, %v5388_v1 }
 0x4ea   : > { %v1455_v6 = vpop.f32.mrb[17].mxu0  ;;  %1643 = vrot.lane.b32.xlu1 %v5384_v61, %s6051_s5 }
 0x4eb   : > { %v4520_v7 = vpop.f32.mrb[18].mxu0 }
 0x4ec   : > { %v5404_v10 = vpack.c.bf16 %v4520_v7, %v4519_v5  ;;  %v1458_v11 = vpop.f32.mrb[19].mxu0 }
 0x4ed   : > { %v5406_v12 = vpack.c.bf16 %v1458_v11, %v1455_v6 }
 0x4ee   : > { %1645 = vrot.lane.b32.xlu1 %v5382_v59, %s6051_s5 }
 0x4ef   : > { %4529 = vmatprep.subr.bf16.mxu0 %v5406_v12 }
 0x4f0   : > { %4524 = vmatpush3.bf16.xpose.msra.mxu1 %v1489_v13  ;;  %4530 = vmatpush3.bf16.msra.mxu0 %v5406_v12 }
 0x4f1   : > { %4531 = vmatprep.subr.bf16.mxu0 %v5404_v10 }
 0x4f4   : > { %4532 = vmatpush3.bf16.msra.mxu0 %v5404_v10 }
 0x4f7   : > { %4526 = vmatmul.mubr.msk.bf16.vlgmr.msra.gmra.mrb[4].mxu1 %vm1478_vm2, %v5382_v59 }
 0x558   : > { %v1652_v14 = vpop.permute.xlu1 %1651 }
 0x559   : > { %v1650_v15 = vpop.permute.xlu0 %1649  ;;  %v1663_v20 = vsel %vm1478_vm2, %v1652_v14, 0 }
 0x55a   : > { %4763 = vmatprep.subr.msk.bf16.mxu1 %vm1478_vm2, %v1650_v15  ;;  %v1660_v18 = vsel %vm1478_vm2, %v1650_v15, 0 }
 0x55b   : > { %4538 = vmatpush3.bf16.xpose.msra.mxu1 %v1660_v18 }
 0x55c   : > { %v1644_v19 = vpop.permute.xlu1 %1643  ;;  %4764 = vmatprep.subr.msk.bf16.mxu1 %vm1478_vm2, %v1652_v14 }
 0x55d   : > { %4541 = vmatprep.mubr.msk.bf16.mxu1 %vm1478_vm2, %v1644_v19 }
 0x560   : > { %v1646_v21 = vpop.permute.xlu1 %1645 }
 0x563   : > { %4540 = vmatpush3.bf16.xpose.msra.mxu1 %v1663_v20 }
 0x56a   : > { %4542 = vmatmul.mubr.msk.bf16.vlgmr.msra.gmra.mrb[8].mxu1 %vm1478_vm2, %v1646_v21 }
 0x5ca   : > { %v4527_v22 = vpop.f32.mrb[4].mxu1 }
 0x5cb   : > { %v1525_v23 = vpop.f32.mrb[5].mxu1  ;;  %v5459_v62 = vadd.f32 %v4527_v22, %v5431_v27 }
 0x5cc   : > { %v4528_v24 = vpop.f32.mrb[6].mxu1  ;;  %v1526_v60 = vadd.f32 %v5431_v27, %v1525_v23 }
 0x5cd   : > { %v1528_v25 = vpop.f32.mrb[7].mxu1  ;;  %v5463_v0 = vadd.f32 %v4528_v24, %v5431_v27  ;;  %v1546_v4 = vsel %vm1091_vm1, %v5459_v62, -inf }
 0x5ce   : > { %v1540_v63 = vsel %vm1091_vm1, %v1526_v60, -inf  ;;  %v1529_v2 = vadd.f32 %v5431_v27, %v1528_v25 }
 0x5cf   : > { %v1549_v6 = vsel %vm1091_vm1, %v5463_v0, -inf }
 0x5d0   : > { %v1543_v5 = vsel %vm1091_vm1, %v1529_v2, -inf }
 0x63d   : > { %v4543_v26 = vpop.f32.mrb[8].mxu1 }
 0x63e   : > { %v1699_v28 = vpop.f32.mrb[9].mxu1  ;;  %v1708_v32 = vadd.f32 %v4543_v26, %v5431_v27 }
 0x63f   : > { %v1700_v29 = vadd.f32 %v5431_v27, %v1699_v28  ;;  %v4544_v30 = vpop.f32.mrb[10].mxu1 }
 0x640   : > { %v1702_v31 = vpop.f32.mrb[11].mxu1  ;;  %v1711_v36 = vadd.f32 %v4544_v30, %v5431_v27  ;;  %v1720_v37 = vsel %vm1091_vm1, %v1708_v32, -inf }
 0x641   : > { %v1703_v33 = vadd.f32 %v5431_v27, %v1702_v31  ;;  %v1714_v34 = vsel %vm1091_vm1, %v1700_v29, -inf }
 0x642   : > { %1715 = vmax.xlane.f32.xlu0 %v1714_v34  ;;  %v1723_v38 = vsel %vm1091_vm1, %v1711_v36, -inf }
 0x643   : > { %v1717_v35 = vsel %vm1091_vm1, %v1703_v33, -inf }
 0x644   : > { %1718 = vmax.xlane.f32.xlu1 %v1717_v35 }
 0x646   : > { %1721 = vmax.xlane.f32.xlu0 %v1720_v37 }
 0x64a   : > { %1724 = vmax.xlane.f32.xlu0 %v1723_v38 }
 0x655   : > { %1764 = vrot.lane.b32.xlu1 %v5404_v10, %s6051_s5 }
 0x6cf   : > { %v1716_v39 = vpop.xlane.xlu0 %1715 }
 0x6d0   : > { %v1726_v40 = vsub.f32 %v1700_v29, %v1716_v39 }
 0x6d1   : > { %v1719_v41 = vpop.xlane.xlu1 %1718 }
 0x6d2   : > { %v1730_v44 = vmul.f32 1.442695, %v1726_v40  ;;  %v1727_v45 = vsub.f32 %v1703_v33, %v1719_v41 }
 0x6d3   : > { %v1722_v42 = vpop.xlane.xlu0 %1721 }
 0x6d4   : > { %v1728_v43 = vsub.f32 %v1708_v32, %v1722_v42  ;;  %v1732_v49 = vmul.f32 1.442695, %v1727_v45 }
 0x6d5   : > { %v1765_v7 = vpop.permute.xlu1 %1764 }
 0x6d6   : > { %v1734_v46 = vmul.f32 1.442695, %v1728_v43 }
 0x6d7   : > { %v1725_v47 = vpop.xlane.xlu0 %1724 }
 0x6d8   : > { %4918 = vpow2.f32 %v1734_v46  ;;  %v1729_v48 = vsub.f32 %v1711_v36, %v1725_v47 }
 0x6d9   : > { %4920 = vpow2.f32 %v1730_v44 }
 0x6da   : > { %v1736_v50 = vmul.f32 1.442695, %v1729_v48 }
 0x6dc   : > { %4922 = vpow2.f32 %v1736_v50 }
 0x6dd   : > { %4924 = vpow2.f32 %v1732_v49 }
 0x6e2   : > { %v4919_v51 = vpop.eup %4918 }
 0x6e3   : > { %v1744_v52 = vsel %vm1091_vm1, %v4919_v51, 0.0  ;;  %v4921_v53 = vpop.eup %4920 }
 0x6e4   : > { %1745 = vadd.xlane.f32.xlu0 %v1744_v52  ;;  %v1738_v55 = vsel %vm1091_vm1, %v4921_v53, 0.0 }
 0x6e6   : > { %v4923_v54 = vpop.eup %4922 }
 0x6e7   : > { %v1747_v56 = vsel %vm1091_vm1, %v4923_v54, 0.0  ;;  %v4925_v57 = vpop.eup %4924 }
 0x6e8   : > { %1739 = vadd.xlane.f32.xlu0 %v1738_v55  ;;  %1748 = vadd.xlane.f32.xlu1 %v1747_v56  ;;  %v1741_v58 = vsel %vm1091_vm1, %v4925_v57, 0.0 }
 0x6ec   : > { %1742 = vadd.xlane.f32.xlu1 %v1741_v58 }
 0x6fd   : > { %1827 = vrot.lane.b32.xlu1 %v5390_v3, %s6049_s4 }
 0x6fe   : > { %1762 = vrot.lane.b32.xlu0 %v5406_v12, %s6051_s5 }
 0x701   : > { %1829 = vrot.lane.b32.xlu1 %v5388_v1, %s6049_s4 }
 0x702   : > { %1823 = vrot.lane.b32.xlu0 %v5384_v61, %s6049_s4 }
 0x705   : > { %1825 = vrot.lane.b32.xlu1 %v5382_v59, %s6049_s4 }
 0x721   : > { %1541 = vmax.xlane.f32.xlu0 %v1540_v63 }
 0x725   : > { %1547 = vmax.xlane.f32.xlu0 %v1546_v4 }
 0x729   : > { %1544 = vmax.xlane.f32.xlu1 %v1543_v5  ;;  %1550 = vmax.xlane.f32.xlu0 %v1549_v6 }
 0x771   : > { %v1746_v11 = vpop.xlane.xlu0 %1745 }
 0x775   : > { %v1749_v13 = vpop.xlane.xlu1 %1748  ;;  %v1740_v14 = vpop.xlane.xlu0 %1739 }
 0x776   : > { %4926 = vrcp.f32 %v1749_v13 }
 0x777   : > { %4928 = vrcp.f32 %v1740_v14 }
 0x778   : > { %4930 = vrcp.f32 %v1746_v11 }
 0x779   : > { %v1743_v15 = vpop.xlane.xlu1 %1742  ;;  %v1763_v18 = vpop.permute.xlu0 %1762 }
 0x77a   : > { %4932 = vrcp.f32 %v1743_v15  ;;  %4545 = vmatprep.subr.bf16.mxu1 %v1763_v18 }
 0x77b   : > { %4546 = vmatpush3.bf16.msra.mxu1 %v1763_v18 }
 0x77c   : > { %4547 = vmatprep.subr.bf16.mxu1 %v1765_v7 }
 0x77d   : > { %v1828_v19 = vpop.permute.xlu1 %1827  ;;  %v1824_v31 = vpop.permute.xlu0 %1823 }
 0x77e   : > { %v1838_v32 = vsel %vm1478_vm2, %v1828_v19, 0 }
 0x77f   : > { %4548 = vmatpush3.bf16.msra.mxu1 %v1765_v7 }
 0x780   : > { %4765 = vmatprep.subr.msk.bf16.mxu1 %vm1478_vm2, %v1828_v19  ;;  %v4927_v20 = vpop.eup %4926 }
 0x781   : > { %v4929_v21 = vpop.eup %4928  ;;  %v1757_v24 = vmul.f32 %v4927_v20, %v4923_v54  ;;  %v1830_v33 = vpop.permute.xlu1 %1829 }
 0x782   : > { %v4931_v22 = vpop.eup %4930  ;;  %v1754_v25 = vmul.f32 %v4929_v21, %v4921_v53  ;;  %v1841_v34 = vsel %vm1478_vm2, %v1830_v33, 0 }
 0x783   : > { %v1756_v28 = vmul.f32 %v4931_v22, %v4919_v51 }
 0x784   : > { %v4933_v23 = vpop.eup %4932 }
 0x785   : > { %v1755_v26 = vmul.f32 %v4933_v23, %v4925_v57  ;;  %v1759_v30 = vpack.c.bf16 %v1757_v24, %v1756_v28  ;;  %v1826_v35 = vpop.permute.xlu1 %1825 }
 0x787   : > { %v1758_v29 = vpack.c.bf16 %v1755_v26, %v1754_v25 }
 0x789   : > { %4549 = vmatprep.mubr.msk.bf16.mxu1 %vm1091_vm1, %v1758_v29 }
 0x78a   : > { %4550 = vmatmul.mubr.msk.bf16.vlgmr.msra.gmra.mrb[12].mxu1 %vm1091_vm1, %v1759_v30 }
 0x78b   : > { %4554 = vmatpush3.bf16.xpose.msra.mxu1 %v1838_v32  ;;  %4557 = vmatprep.mubr.msk.bf16.mxu1 %vm1478_vm2, %v1824_v31 }
 0x78c   : > { %4766 = vmatprep.subr.msk.bf16.mxu1 %vm1478_vm2, %v1830_v33 }
 0x793   : > { %4556 = vmatpush3.bf16.xpose.msra.mxu1 %v1841_v34 }
 0x79a   : > { %4558 = vmatmul.mubr.msk.bf16.vlgmr.msra.gmra.mrb[16].mxu1 %vm1478_vm2, %v1826_v35 }
 0x7ae   : > { %v1542_v36 = vpop.xlane.xlu0 %1541 }
 0x7af   : > { %v1552_v45 = vsub.f32 %v1526_v60, %v1542_v36 }
 0x7b1   : > { %v1556_v48 = vmul.f32 1.442695, %v1552_v45 }
 0x7b2   : > { %v1548_v42 = vpop.xlane.xlu0 %1547 }
 0x7b3   : > { %v1554_v49 = vsub.f32 %v5459_v62, %v1548_v42  ;;  %4934 = vpow2.f32 %v1556_v48 }
 0x7b5   : > { %v1560_v52 = vmul.f32 1.442695, %v1554_v49 }
 0x7b6   : > { %v1545_v44 = vpop.xlane.xlu1 %1544  ;;  %v1551_v47 = vpop.xlane.xlu0 %1550 }
 0x7b7   : > { %v1553_v46 = vsub.f32 %v1529_v2, %v1545_v44  ;;  %v1555_v51 = vsub.f32 %v5463_v0, %v1551_v47 }
 0x7b9   : > { %v1558_v50 = vmul.f32 1.442695, %v1553_v46  ;;  %v1562_v54 = vmul.f32 1.442695, %v1555_v51 }
 0x7bb   : > { %4936 = vpow2.f32 %v1558_v50 }
 0x7bc   : > { %4938 = vpow2.f32 %v1560_v52 }
 0x7bd   : > { %4940 = vpow2.f32 %v1562_v54  ;;  %v4935_v5 = vpop.eup %4934 }
 0x7be   : > { %v1564_v11 = vsel %vm1091_vm1, %v4935_v5, 0.0 }
 0x7c5   : > { %v4937_v7 = vpop.eup %4936 }
 0x7c6   : > { %v4939_v13 = vpop.eup %4938  ;;  %v1567_v14 = vsel %vm1091_vm1, %v4937_v7, 0.0 }
 0x7c7   : > { %v4941_v15 = vpop.eup %4940  ;;  %v1570_v18 = vsel %vm1091_vm1, %v4939_v13, 0.0 }
 0x7c8   : > { %v1573_v19 = vsel %vm1091_vm1, %v4941_v15, 0.0 }
 0x85d   : > { %v5479_v37 = vpop.f32.mrb[12].mxu1 }
 0x85e   : > { %v5481_v38 = vpop.f32.mrb[13].mxu1 }
 0x85f   : > { %v5483_v39 = vpop.f32.mrb[14].mxu1 }
 0x860   : > { %v4796_v40 = vpack.i.bf16 %v5483_v39, %v5479_v37  ;;  %v5487_v41 = vpop.f32.mrb[15].mxu1 }
 0x861   : > { %v4791_v43 = vpack.i.bf16 %v5487_v41, %v5481_v38 }
 0x86d   : > { %v4559_v53 = vpop.f32.mrb[16].mxu1 }
 0x86e   : > { %v1877_v55 = vpop.f32.mrb[17].mxu1  ;;  %v1886_v60 = vadd.f32 %v4559_v53, %v5431_v27 }
 0x86f   : > { %v1878_v56 = vadd.f32 %v5431_v27, %v1877_v55  ;;  %v4560_v57 = vpop.f32.mrb[18].mxu1 }
 0x870   : > { %v1880_v58 = vpop.f32.mrb[19].mxu1  ;;  %v1889_v0 = vadd.f32 %v4560_v57, %v5431_v27  ;;  %v1898_v4 = vsel %vm1091_vm1, %v1886_v60, -inf }
 0x871   : > { %v1881_v63 = vadd.f32 %v5431_v27, %v1880_v58  ;;  %v1892_v62 = vsel %vm1091_vm1, %v1878_v56, -inf }
 0x872   : > { %1893 = vmax.xlane.f32.xlu0 %v1892_v62  ;;  %v1901_v6 = vsel %vm1091_vm1, %v1889_v0, -inf }
 0x873   : > { %v1895_v2 = vsel %vm1091_vm1, %v1881_v63, -inf }
 0x874   : > { %1896 = vmax.xlane.f32.xlu1 %v1895_v2 }
 0x876   : > { %1899 = vmax.xlane.f32.xlu0 %v1898_v4 }
 0x878   : > { %1902 = vmax.xlane.f32.xlu1 %v1901_v6 }
 0x87a   : > { %1565 = vadd.xlane.f32.xlu0 %v1564_v11 }
 0x87c   : > { %1568 = vadd.xlane.f32.xlu1 %v1567_v14 }
 0x87e   : > { %1571 = vadd.xlane.f32.xlu0 %v1570_v18 }
 0x880   : > { %1574 = vadd.xlane.f32.xlu1 %v1573_v19 }
 0x891   : > { %1940 = vrot.lane.b32.xlu1 %v5404_v10, %s6049_s4 }
 0x8ff   : > { %v1894_v20 = vpop.xlane.xlu0 %1893 }
 0x900   : > { %v1904_v21 = vsub.f32 %v1878_v56, %v1894_v20 }
 0x901   : > { %v1897_v22 = vpop.xlane.xlu1 %1896 }
 0x902   : > { %v1908_v23 = vmul.f32 1.442695, %v1904_v21  ;;  %v1905_v24 = vsub.f32 %v1881_v63, %v1897_v22 }
 0x903   : > { %v1900_v25 = vpop.xlane.xlu0 %1899 }
 0x904   : > { %v1910_v26 = vmul.f32 1.442695, %v1905_v24  ;;  %v1906_v28 = vsub.f32 %v1886_v60, %v1900_v25  ;;  %4942 = vpow2.f32 %v1908_v23 }
 0x905   : > { %v1903_v29 = vpop.xlane.xlu1 %1902 }
 0x906   : > { %v1912_v30 = vmul.f32 1.442695, %v1906_v28  ;;  %v1907_v31 = vsub.f32 %v1889_v0, %v1903_v29  ;;  %4944 = vpow2.f32 %v1910_v26 }
 0x907   : > { %v1566_v32 = vpop.xlane.xlu0 %1565 }
 0x908   : > { %4946 = vpow2.f32 %v1912_v30  ;;  %v1914_v33 = vmul.f32 1.442695, %v1907_v31 }
 0x909   : > { %4948 = vrcp.f32 %v1566_v32  ;;  %v1569_v34 = vpop.xlane.xlu1 %1568 }
 0x90a   : > { %4950 = vpow2.f32 %v1914_v33 }
 0x90b   : > { %4952 = vrcp.f32 %v1569_v34  ;;  %v1572_v35 = vpop.xlane.xlu0 %1571 }
 0x90c   : > { %4954 = vrcp.f32 %v1572_v35 }
 0x90d   : > { %v1575_v36 = vpop.xlane.xlu1 %1574 }
 0x90e   : > { %4956 = vrcp.f32 %v1575_v36  ;;  %v4943_v42 = vpop.eup %4942 }
 0x90f   : > { %v1916_v54 = vsel %vm1091_vm1, %v4943_v42, 0.0 }
 0x910   : > { %v4945_v44 = vpop.eup %4944 }
 0x911   : > { %v1919_v60 = vsel %vm1091_vm1, %v4945_v44, 0.0  ;;  %v1941_v62 = vpop.permute.xlu1 %1940 }
 0x912   : > { %v4947_v45 = vpop.eup %4946 }
 0x913   : > { %v4949_v46 = vpop.eup %4948  ;;  %v1922_v47 = vsel %vm1091_vm1, %v4947_v45, 0.0 }
 0x914   : > { %v4951_v48 = vpop.eup %4950  ;;  %1923 = vadd.xlane.f32.xlu0 %v1922_v47  ;;  %v1580_v52 = vmul.f32 %v4949_v46, %v4935_v5 }
 0x915   : > { %v4953_v49 = vpop.eup %4952  ;;  %v1925_v50 = vsel %vm1091_vm1, %v4951_v48, 0.0 }
 0x916   : > { %v4955_v51 = vpop.eup %4954  ;;  %1926 = vadd.xlane.f32.xlu1 %v1925_v50  ;;  %v1581_v53 = vmul.f32 %v4953_v49, %v4937_v7 }
 0x917   : > { %v1582_v57 = vmul.f32 %v4955_v51, %v4939_v13 }
 0x918   : > { %v4957_v55 = vpop.eup %4956  ;;  %1917 = vadd.xlane.f32.xlu0 %v1916_v54  ;;  %v1584_v56 = vpack.c.bf16 %v1581_v53, %v1580_v52 }
 0x919   : > { %v1583_v58 = vmul.f32 %v4957_v55, %v4941_v15 }
 0x91a   : > { %4533 = vmatprep.mubr.msk.bf16.mxu0 %vm1091_vm1, %v1584_v56  ;;  %1920 = vadd.xlane.f32.xlu1 %v1919_v60 }
 0x91b   : > { %v1585_v63 = vpack.c.bf16 %v1583_v58, %v1582_v57 }
 0x91d   : > { %4534 = vmatmul.mubr.msk.bf16.vlgmr.msra.gmra.mrb[20].mxu0 %vm1091_vm1, %v1585_v63 }
 0x92b   : > { %2003 = vrot.lane.b32.xlu1 %v5390_v3, %s6047_s2 }
 0x92e   : > { %1938 = vrot.lane.b32.xlu0 %v5406_v12, %s6049_s4 }
 0x92f   : > { %2005 = vrot.lane.b32.xlu1 %v5388_v1, %s6047_s2 }
 0x932   : > { %1999 = vrot.lane.b32.xlu0 %v5384_v61, %s6047_s2 }
 0x933   : > { %2001 = vrot.lane.b32.xlu1 %v5382_v59, %s6047_s2 }
 0x9a1   : > { %v1924_v0 = vpop.xlane.xlu0 %1923 }
 0x9a3   : > { %v1927_v2 = vpop.xlane.xlu1 %1926 }
 0x9a4   : > { %4958 = vrcp.f32 %v1927_v2 }
 0x9a5   : > { %v1918_v4 = vpop.xlane.xlu0 %1917 }
 0x9a6   : > { %4960 = vrcp.f32 %v1918_v4 }
 0x9a7   : > { %4962 = vrcp.f32 %v1924_v0  ;;  %v1921_v3 = vpop.xlane.xlu1 %1920 }
 0x9a8   : > { %4964 = vrcp.f32 %v1921_v3 }
 0x9a9   : > { %v1939_v5 = vpop.permute.xlu0 %1938 }
 0x9aa   : > { %4561 = vmatprep.subr.bf16.mxu0 %v1939_v5 }
 0x9ab   : > { %4562 = vmatpush3.bf16.msra.mxu0 %v1939_v5  ;;  %v2004_v6 = vpop.permute.xlu1 %2003 }
 0x9ac   : > { %4563 = vmatprep.subr.bf16.mxu0 %v1941_v62  ;;  %v2014_v20 = vsel %vm1478_vm2, %v2004_v6, 0 }
 0x9ad   : > { %v2000_v21 = vpop.permute.xlu0 %1999 }
 0x9ae   : > { %v4959_v1 = vpop.eup %4958 }
 0x9af   : > { %4564 = vmatpush3.bf16.msra.mxu0 %v1941_v62  ;;  %v1935_v11 = vmul.f32 %v4959_v1, %v4951_v48  ;;  %v2006_v22 = vpop.permute.xlu1 %2005 }
 0x9b0   : > { %v4961_v61 = vpop.eup %4960  ;;  %4767 = vmatprep.subr.msk.bf16.mxu0 %vm1478_vm2, %v2004_v6  ;;  %v2017_v23 = vsel %vm1478_vm2, %v2006_v22, 0 }
 0x9b1   : > { %v4963_v59 = vpop.eup %4962  ;;  %v1932_v13 = vmul.f32 %v4961_v61, %v4943_v42 }
 0x9b2   : > { %v4965_v7 = vpop.eup %4964  ;;  %v1934_v15 = vmul.f32 %v4963_v59, %v4947_v45 }
 0x9b3   : > { %v1933_v14 = vmul.f32 %v4965_v7, %v4945_v44  ;;  %v2002_v24 = vpop.permute.xlu1 %2001 }
 0x9b4   : > { %v1937_v19 = vpack.c.bf16 %v1935_v11, %v1934_v15 }
 0x9b5   : > { %v1936_v18 = vpack.c.bf16 %v1933_v14, %v1932_v13 }
 0x9b7   : > { %4565 = vmatprep.mubr.msk.bf16.mxu0 %vm1091_vm1, %v1936_v18 }
 0x9b8   : > { %4566 = vmatmul.mubr.msk.bf16.vlgmr.msra.gmra.mrb[24].mxu0 %vm1091_vm1, %v1937_v19 }
 0x9b9   : > { %4570 = vmatpush3.bf16.xpose.msra.mxu0 %v2014_v20  ;;  %4573 = vmatprep.mubr.msk.bf16.mxu0 %vm1478_vm2, %v2000_v21 }
 0x9ba   : > { %4768 = vmatprep.subr.msk.bf16.mxu0 %vm1478_vm2, %v2006_v22 }
 0x9c1   : > { %4572 = vmatpush3.bf16.xpose.msra.mxu0 %v2017_v23  ;;  %v4868_v23 = vld [vmem:[%s6021_s12] sm:$0xff]  }
 0x9c8   : > { %4574 = vmatmul.mubr.msk.bf16.vlgmr.msra.gmra.mrb[28].mxu0 %vm1478_vm2, %v2002_v24  ;;  %v4869_v24 = vld [vmem:[%s6021_s12 + $0x8] sm:$0xff]  }
 0x9f0   : > { %v5531_v25 = vpop.f32.mrb[20].mxu0 }
 0x9f1   : > { %v5533_v26 = vpop.f32.mrb[21].mxu0 }
 0x9f2   : > { %v5535_v28 = vpop.f32.mrb[22].mxu0 }
 0x9f3   : > { %v5537_v29 = vpop.f32.mrb[23].mxu0 }
 0xa8b   : > { %v4567_v30 = vpop.f32.mrb[24].mxu0 }
 0xa8c   : > { %v1984_v31 = vpop.f32.mrb[25].mxu0 }
 0xa8d   : > { %v4568_v32 = vpop.f32.mrb[26].mxu0 }
 0xa8e   : > { %v4806_v33 = vpack.i.bf16 %v4568_v32, %v4567_v30  ;;  %v1987_v34 = vpop.f32.mrb[27].mxu0 }
 0xa8f   : > { %v4801_v35 = vpack.i.bf16 %v1987_v34, %v1984_v31 }
 0xa9b   : > { %v4575_v36 = vpop.f32.mrb[28].mxu0 }
 0xa9c   : > { %v2053_v42 = vpop.f32.mrb[29].mxu0  ;;  %v2062_v47 = vadd.f32 %v4575_v36, %v5431_v27 }
 0xa9d   : > { %v2054_v44 = vadd.f32 %v5431_v27, %v2053_v42  ;;  %v4576_v45 = vpop.f32.mrb[30].mxu0 }
 0xa9e   : > { %v2056_v46 = vpop.f32.mrb[31].mxu0  ;;  %v2065_v51 = vadd.f32 %v4576_v45, %v5431_v27  ;;  %v2074_v52 = vsel %vm1091_vm1, %v2062_v47, -inf }
 0xa9f   : > { %v2057_v48 = vadd.f32 %v5431_v27, %v2056_v46  ;;  %v2068_v49 = vsel %vm1091_vm1, %v2054_v44, -inf }
 0xaa0   : > { %2069 = vmax.xlane.f32.xlu0 %v2068_v49  ;;  %v2077_v53 = vsel %vm1091_vm1, %v2065_v51, -inf }
 0xaa1   : > { %v2071_v50 = vsel %vm1091_vm1, %v2057_v48, -inf }
 0xaa2   : > { %2072 = vmax.xlane.f32.xlu1 %v2071_v50 }
 0xaa4   : > { %2075 = vmax.xlane.f32.xlu0 %v2074_v52 }
 0xaa8   : > { %2078 = vmax.xlane.f32.xlu0 %v2077_v53 }
 0xb2d   : > { %v2070_v54 = vpop.xlane.xlu0 %2069 }
 0xb2e   : > { %v2080_v55 = vsub.f32 %v2054_v44, %v2070_v54 }
 0xb2f   : > { %v2073_v56 = vpop.xlane.xlu1 %2072 }
 0xb30   : > { %v2084_v60 = vmul.f32 1.442695, %v2080_v55  ;;  %v2081_v63 = vsub.f32 %v2057_v48, %v2073_v56 }
 0xb31   : > { %v2076_v57 = vpop.xlane.xlu0 %2075 }
 0xb32   : > { %v2082_v58 = vsub.f32 %v2062_v47, %v2076_v57  ;;  %v2086_v4 = vmul.f32 1.442695, %v2081_v63 }
 0xb34   : > { %v2088_v62 = vmul.f32 1.442695, %v2082_v58 }
 0xb35   : > { %v2079_v0 = vpop.xlane.xlu0 %2078 }
 0xb36   : > { %4966 = vpow2.f32 %v2088_v62  ;;  %v2083_v2 = vsub.f32 %v2065_v51, %v2079_v0 }
 0xb37   : > { %4968 = vpow2.f32 %v2084_v60 }
 0xb38   : > { %v2090_v27 = vmul.f32 1.442695, %v2083_v2 }
 0xb3a   : > { %4970 = vpow2.f32 %v2090_v27 }
 0xb3b   : > { %4972 = vpow2.f32 %v2086_v4 }
 0xb40   : > { %v4967_v3 = vpop.eup %4966 }
 0xb41   : > { %v2098_v5 = vsel %vm1091_vm1, %v4967_v3, 0.0  ;;  %v4969_v1 = vpop.eup %4968 }
 0xb42   : > { %2099 = vadd.xlane.f32.xlu0 %v2098_v5  ;;  %v2092_v61 = vsel %vm1091_vm1, %v4969_v1, 0.0 }
 0xb44   : > { %v4971_v6 = vpop.eup %4970 }
 0xb45   : > { %v2101_v59 = vsel %vm1091_vm1, %v4971_v6, 0.0  ;;  %v4973_v7 = vpop.eup %4972 }
 0xb46   : > { %2093 = vadd.xlane.f32.xlu0 %v2092_v61  ;;  %2102 = vadd.xlane.f32.xlu1 %v2101_v59  ;;  %v2095_v11 = vsel %vm1091_vm1, %v4973_v7, 0.0 }
 0xb4a   : > { %2096 = vadd.xlane.f32.xlu1 %v2095_v11 }
 0xb5b   : > { %2116 = vrot.lane.b32.xlu1 %v5404_v10, %s6047_s2 }
 0xb5c   : > { %2114 = vrot.lane.b32.xlu0 %v5406_v12, %s6047_s2  ;;  %s6078_s2 = smov 112  }
 0xb5f   : > { %4792 = vrot.lane.b32.xlu1 %v4791_v43, %s6043_s8 }
 0xb60   : > { %4802 = vrot.lane.b32.xlu0 %v4801_v35, %s6041_s9 }
 0xb63   : > { %4797 = vrot.lane.b32.xlu1 %v4796_v40, %s6043_s8  ;;  %s6045_s8 = smov 24  }
 0xb67   : > { %4807 = vrot.lane.b32.xlu1 %v4806_v33, %s6041_s9  ;;  %s6080_s9 = smov 8  }
 0xbcf   : > { %v2100_v10 = vpop.xlane.xlu0 %2099 }
 0xbd3   : > { %v2103_v13 = vpop.xlane.xlu1 %2102  ;;  %v2094_v14 = vpop.xlane.xlu0 %2093 }
 0xbd4   : > { %4974 = vrcp.f32 %v2103_v13 }
 0xbd5   : > { %4976 = vrcp.f32 %v2094_v14 }
 0xbd6   : > { %4978 = vrcp.f32 %v2100_v10 }
 0xbd7   : > { %v2097_v12 = vpop.xlane.xlu1 %2096  ;;  %v2115_v15 = vpop.permute.xlu0 %2114 }
 0xbd8   : > { %4980 = vrcp.f32 %v2097_v12  ;;  %4577 = vmatprep.subr.bf16.mxu1 %v2115_v15 }
 0xbd9   : > { %4578 = vmatpush3.bf16.msra.mxu1 %v2115_v15 }
 0xbdb   : > { %v2117_v38 = vpop.permute.xlu1 %2116  ;;  %v4803_v45 = vpop.permute.xlu0 %4802 }
 0xbdc   : > { %4579 = vmatprep.subr.bf16.mxu1 %v2117_v38  ;;  %v4805_v52 = vunpack.i.h.bf16 %v4803_v45  ;;  %v4804_v53 = vunpack.i.l.bf16 %v4803_v45  ;;  %v4232_v45 = vld [vmem:[%s6022_s13] ss:$0 sm:$0xff] }
 0xbdd   : > { %4580 = vmatpush3.bf16.msra.mxu1 %v2117_v38 }
 0xbde   : > { %v4975_v41 = vpop.eup %4974  ;;  %4585 = vmatprep.subr.bf16.mxu1 %v4868_v23 }
 0xbdf   : > { %v4977_v43 = vpop.eup %4976  ;;  %v2111_v40 = vmul.f32 %v4975_v41, %v4971_v6  ;;  %v4793_v36 = vpop.permute.xlu1 %4792 }
 0xbe0   : > { %v4979_v37 = vpop.eup %4978  ;;  %v2108_v18 = vmul.f32 %v4977_v43, %v4969_v1  ;;  %v4795_v46 = vunpack.i.h.bf16 %v4793_v36  ;;  %v4794_v47 = vunpack.i.l.bf16 %v4793_v36 }
 0xbe1   : > { %v2110_v20 = vmul.f32 %v4979_v37, %v4967_v3  ;;  %v4870_v37 = vld [vmem:[%s6023_s14] sm:$0xff]  }
 0xbe2   : > { %v4981_v39 = vpop.eup %4980  ;;  %v2224_v54 = vsel %vm1478_vm2, %v5537_v29, %v4795_v46  ;;  %v2223_v55 = vsel %vm1478_vm2, %v5533_v26, %v4794_v47  ;;  %4593 = vmatprep.subr.bf16.mxu0 %v4870_v37 }
 0xbe3   : > { %v2109_v19 = vmul.f32 %v4981_v39, %v4973_v7  ;;  %v2113_v22 = vpack.c.bf16 %v2111_v40, %v2110_v20  ;;  %v4798_v42 = vpop.permute.xlu1 %4797  ;;  %v2227_v3 = vsel %vm889_vm0, %v2223_v55, %v4804_v53  ;;  %v4871_v39 = vld [vmem:[%s6024_s15] sm:$0xff]   ;;  %4594 = vmatpush3.bf16.msra.mxu0 %v4870_v37  ;;  %v4872_v40 = vld [vmem:[%s6023_s14 + $0x8] sm:$0xff]  }
 0xbe4   : > { %v4800_v48 = vunpack.i.h.bf16 %v4798_v42  ;;  %v4799_v49 = vunpack.i.l.bf16 %v4798_v42  ;;  %4595 = vmatprep.subr.bf16.mxu0 %v4872_v40 }
 0xbe5   : > { %v2112_v21 = vpack.c.bf16 %v2109_v19, %v2108_v18  ;;  %v4873_v18 = vld [vmem:[%s6024_s15 + $0x8] sm:$0xff]  }
 0xbe6   : > { %v2226_v57 = vsel %vm1478_vm2, %v5535_v28, %v4800_v48  ;;  %v2225_v58 = vsel %vm1478_vm2, %v5531_v25, %v4799_v49  ;;  %v2228_v28 = vsel %vm889_vm0, %v2224_v54, %v4805_v52 }
 0xbe7   : > { %4581 = vmatprep.mubr.msk.bf16.mxu1 %vm1091_vm1, %v2112_v21  ;;  %v4808_v44 = vpop.permute.xlu1 %4807  ;;  %4596 = vmatpush3.bf16.msra.mxu0 %v4872_v40 }
 0xbe8   : > { %4582 = vmatmul.mubr.msk.bf16.vlgmr.msra.gmra.mrb[20].mxu1 %vm1091_vm1, %v2113_v22  ;;  %v4810_v50 = vunpack.i.h.bf16 %v4808_v44  ;;  %v4809_v51 = vunpack.i.l.bf16 %v4808_v44 }
 0xbe9   : > { %4586 = vmatpush3.bf16.msra.mxu1 %v4868_v23 }
 0xbea   : > { %4587 = vmatprep.subr.bf16.mxu1 %v4869_v24  ;;  %v2229_v0 = vsel %vm889_vm0, %v2225_v58, %v4809_v51  ;;  %v2230_v2 = vsel %vm889_vm0, %v2226_v57, %v4810_v50  ;;  %v4874_v57 = vld [vmem:[%s6025_s16] sm:$0xff]   ;;  %v4875_v58 = vld [vmem:[%s6025_s16 + $0x8] sm:$0xff]  }
 0xbeb   : > { %4609 = vmatprep.subr.bf16.mxu0 %v4874_v57 }
 0xbed   : > { %4588 = vmatpush3.bf16.msra.mxu1 %v4869_v24 }
 0xbee   : > { %4601 = vmatprep.subr.bf16.mxu1 %v4871_v39 }
 0xcbb   : > { %v4583_v30 = vpop.f32.mrb[20].mxu1 }
 0xcbc   : > { %v2160_v31 = vpop.f32.mrb[21].mxu1 }
 0xcbd   : > { %v4584_v32 = vpop.f32.mrb[22].mxu1 }
 0xcbe   : > { %v4816_v33 = vpack.i.bf16 %v4584_v32, %v4583_v30  ;;  %v2163_v34 = vpop.f32.mrb[23].mxu1 }
 0xcbf   : > { %v4811_v35 = vpack.i.bf16 %v2163_v34, %v2160_v31 }
 0xcc0   : > { %4817 = vrot.lane.b32.xlu1 %v4816_v33, %s6045_s8 }
 0xcc1   : > { %4812 = vrot.lane.b32.xlu0 %v4811_v35, %s6045_s8  ;;  %s6079_s8 = smov 104  }
 0xd32   : > { %v4818_v56 = vpop.permute.xlu1 %4817 }
 0xd33   : > { %v4820_v60 = vunpack.i.h.bf16 %v4818_v56  ;;  %v4819_v63 = vunpack.i.l.bf16 %v4818_v56  ;;  %v4813_v62 = vpop.permute.xlu0 %4812 }
 0xd34   : > { %v4815_v4 = vunpack.i.h.bf16 %v4813_v62  ;;  %v4814_v29 = vunpack.i.l.bf16 %v4813_v62  ;;  %v4878_v62 = vld [vmem:[%s6025_s16 + $0x20] sm:$0xff]  }
 0xd35   : > { %v2235_v27 = vsel %vm2231_vm3, %v2230_v2, %v4820_v60  ;;  %v2234_v26 = vsel %vm2231_vm3, %v2229_v0, %v4819_v63  ;;  %v4876_v60 = vld [vmem:[%s6025_s16 + $0x10] sm:$0xff]   ;;  %v4877_v63 = vld [vmem:[%s6025_s16 + $0x18] sm:$0xff]   ;;  %v4879_v0 = vld [vmem:[%s6025_s16 + $0x28] sm:$0xff]  }
 0xd36   : > { %v2237_v5 = vpack.c.bf16 %v2235_v27, %v2234_v26  ;;  %v2232_v25 = vsel %vm2231_vm3, %v2227_v3, %v4814_v29  ;;  %v2233_v1 = vsel %vm2231_vm3, %v2228_v28, %v4815_v4  ;;  %v4880_v2 = vld [vmem:[%s6025_s16 + $0x30] sm:$0xff]   ;;  %v4881_v4 = vld [vmem:[%s6025_s16 + $0x38] sm:$0xff]  }
 0xd37   : > { %v2236_v6 = vpack.c.bf16 %v2233_v1, %v2232_v25 }
 0xd39   : > { %4589 = vmatprep.mubr.msk.bf16.mxu1 %vm1091_vm1, %v2236_v6 }
 0xd3a   : > { %4590 = vmatmul.mubr.msk.bf16.vlgmr.msra.gmra.mrb[24].mxu1 %vm1091_vm1, %v2237_v5 }
 0xd3b   : > { %4602 = vmatpush3.bf16.msra.mxu1 %v4871_v39 }
 0xd3c   : > { %4603 = vmatprep.subr.bf16.mxu1 %v4873_v18 }
 0xd3f   : > { %4604 = vmatpush3.bf16.msra.mxu1 %v4873_v18 }
 0xe0d   : > { %v4591_v61 = vpop.f32.mrb[24].mxu1 }
 0xe0e   : > { %v2290_v59 = vpop.f32.mrb[25].mxu1  ;;  %v5594_v7 = vadd.f32 %v4591_v61, %v5333_v9 }
 0xe0f   : > { %v5597_v11 = vadd.f32 %v2290_v59, %v5331_v8  ;;  %v4592_v10 = vpop.f32.mrb[26].mxu1 }
 0xe10   : > { %v2293_v13 = vpop.f32.mrb[27].mxu1  ;;  %v5605_v15 = vadd.f32 %v4592_v10, %v5342_v17  ;;  %v2311_v8 = vmul.f32 %v5594_v7, %v5594_v7 }
 0xe11   : > { %v5600_v14 = vadd.f32 %v2293_v13, %v5340_v16  ;;  %v2309_v12 = vmul.f32 %v5597_v11, %v5597_v11 }
 0xe12   : > { %v2319_v16 = vsel %vm1091_vm1, %v2311_v8, 0.0  ;;  %v2312_v43 = vmul.f32 %v5605_v15, %v5605_v15 }
 0xe13   : > { %v2313_v38 = vsel %vm1091_vm1, %v2309_v12, 0.0  ;;  %v2310_v9 = vmul.f32 %v5600_v14, %v5600_v14 }
 0xe14   : > { %2314 = vadd.xlane.f32.xlu0 %v2313_v38  ;;  %v2322_v17 = vsel %vm1091_vm1, %v2312_v43, 0.0 }
 0xe15   : > { %v2316_v41 = vsel %vm1091_vm1, %v2310_v9, 0.0 }
 0xe16   : > { %2317 = vadd.xlane.f32.xlu1 %v2316_v41 }
 0xe18   : > { %2320 = vadd.xlane.f32.xlu0 %v2319_v16 }
 0xe1c   : > { %2323 = vadd.xlane.f32.xlu0 %v2322_v17 }
 0xea1   : > { %v2315_v19 = vpop.xlane.xlu0 %2314 }
 0xea2   : > { %v2325_v20 = vmul.f32 0.03125, %v2315_v19 }
 0xea3   : > { %v2318_v21 = vpop.xlane.xlu1 %2317 }
 0xea4   : > { %v2329_v22 = vadd.f32 1e-06, %v2325_v20  ;;  %v2326_v23 = vmul.f32 0.03125, %v2318_v21 }
 0xea5   : > { %v2321_v24 = vpop.xlane.xlu0 %2320 }
 0xea6   : > { %4982 = vrsqrt.f32 %v2329_v22  ;;  %v2330_v30 = vadd.f32 1e-06, %v2326_v23  ;;  %v2327_v31 = vmul.f32 0.03125, %v2321_v24 }
 0xea8   : > { %4984 = vrsqrt.f32 %v2330_v30  ;;  %v2331_v32 = vadd.f32 1e-06, %v2327_v31 }
 0xea9   : > { %v2324_v33 = vpop.xlane.xlu0 %2323 }
 0xeaa   : > { %4986 = vrsqrt.f32 %v2331_v32  ;;  %v2328_v34 = vmul.f32 0.03125, %v2324_v33 }
 0xeac   : > { %v2332_v35 = vadd.f32 1e-06, %v2328_v34 }
 0xeae   : > { %4988 = vrsqrt.f32 %v2332_v35 }
 0xeb0   : > { %v4983_v36 = vpop.eup %4982 }
 0xeb1   : > { %v2337_v42 = vmul.f32 %v4983_v36, %v5597_v11 }
 0xeb2   : > { %v4985_v44 = vpop.eup %4984 }
 0xeb3   : > { %v2338_v46 = vmul.f32 %v4985_v44, %v5600_v14  ;;  %v2347_v48 = vmul.f32 %v4232_v45, %v2337_v42 }
 0xeb4   : > { %v4987_v47 = vpop.eup %4986 }
 0xeb5   : > { %v2348_v49 = vmul.f32 %v4232_v45, %v2338_v46  ;;  %v2339_v50 = vmul.f32 %v4987_v47, %v5594_v7 }
 0xeb7   : > { %v2351_v51 = vpack.c.bf16 %v2348_v49, %v2347_v48  ;;  %v2349_v54 = vmul.f32 %v4232_v45, %v2339_v50 }
 0xeb8   : > { %v4989_v52 = vpop.eup %4988 }
 0xeb9   : > { %v2340_v53 = vmul.f32 %v4989_v52, %v5605_v15  ;;  %4597 = vmatprep.mubr.msk.bf16.mxu0 %vm1091_vm1, %v2351_v51  ;;  %4605 = vmatprep.mubr.msk.bf16.mxu1 %vm1091_vm1, %v2351_v51 }
 0xebb   : > { %v2350_v55 = vmul.f32 %v4232_v45, %v2340_v53 }
 0xebd   : > { %v2352_v56 = vpack.c.bf16 %v2350_v55, %v2349_v54 }
 0xebf   : > { %4598 = vmatmul.mubr.msk.bf16.vlgmr.msra.gmra.mrb[32].mxu0 %vm1091_vm1, %v2352_v56  ;;  %4606 = vmatmul.mubr.msk.bf16.vlgmr.msra.gmra.mrb[28].mxu1 %vm1091_vm1, %v2352_v56 }
 0xec0   : > { %4610 = vmatpush3.bf16.msra.mxu0 %v4874_v57 }
 0xec1   : > { %4611 = vmatprep.subr.bf16.mxu0 %v4875_v58 }
 0xec4   : > { %4612 = vmatpush3.bf16.msra.mxu0 %v4875_v58 }
 0xec5   : > { %4613 = vmatprep.subr.bf16.mxu0 %v4876_v60 }
 0xec8   : > { %4614 = vmatpush3.bf16.msra.mxu0 %v4876_v60 }
 0xec9   : > { %4615 = vmatprep.subr.bf16.mxu0 %v4877_v63 }
 0xecc   : > { %4616 = vmatpush3.bf16.msra.mxu0 %v4877_v63 }
 0xecd   : > { %4617 = vmatprep.subr.bf16.mxu0 %v4878_v62 }
 0xed0   : > { %4618 = vmatpush3.bf16.msra.mxu0 %v4878_v62 }
 0xed1   : > { %4619 = vmatprep.subr.bf16.mxu0 %v4879_v0 }
 0xed4   : > { %4620 = vmatpush3.bf16.msra.mxu0 %v4879_v0 }
 0xed5   : > { %4621 = vmatprep.subr.bf16.mxu0 %v4880_v2 }
 0xed8   : > { %4622 = vmatpush3.bf16.msra.mxu0 %v4880_v2 }
 0xed9   : > { %4623 = vmatprep.subr.bf16.mxu0 %v4881_v4 }
 0xedc   : > { %4624 = vmatpush3.bf16.msra.mxu0 %v4881_v4  ;;  %v4253_v4 = vld [vmem:[%s6026_s17] ss:$0 sm:$0xff] }
 0xf92   : > { %v4599_v29 = vpop.f32.mrb[32].mxu0  ;;  %v4607_v27 = vpop.f32.mrb[28].mxu1 }
 0xf93   : > { %v4243_v26 = vmul.f32 -1.442695, %v4599_v29  ;;  %v2405_v3 = vpop.f32.mrb[33].mxu0  ;;  %v2466_v28 = vpop.f32.mrb[29].mxu1 }
 0xf94   : > { %v4241_v5 = vmul.f32 -1.442695, %v2405_v3  ;;  %v4600_v25 = vpop.f32.mrb[34].mxu0  ;;  %v4608_v1 = vpop.f32.mrb[30].mxu1 }
 0xf95   : > { %4990 = vpow2.f32 %v4243_v26  ;;  %v4244_v6 = vmul.f32 -1.442695, %v4600_v25  ;;  %v2408_v61 = vpop.f32.mrb[35].mxu0  ;;  %v2469_v59 = vpop.f32.mrb[31].mxu1 }
 0xf96   : > { %4992 = vpow2.f32 %v4241_v5  ;;  %v4242_v10 = vmul.f32 -1.442695, %v2408_v61 }
 0xf97   : > { %4994 = vpow2.f32 %v4244_v6 }
 0xf98   : > { %4996 = vpow2.f32 %v4242_v10 }
 0xf9f   : > { %v4991_v13 = vpop.eup %4990 }
 0xfa0   : > { %v4993_v12 = vpop.eup %4992  ;;  %v2495_v38 = vadd.f32 1.0, %v4991_v13 }
 0xfa1   : > { %v4995_v9 = vpop.eup %4994  ;;  %v2493_v8 = vadd.f32 1.0, %v4993_v12 }
 0xfa2   : > { %v4997_v41 = vpop.eup %4996  ;;  %4998 = vrcp.f32 %v2495_v38  ;;  %v2496_v16 = vadd.f32 1.0, %v4995_v9 }
 0xfa3   : > { %5000 = vrcp.f32 %v2493_v8  ;;  %v2494_v43 = vadd.f32 1.0, %v4997_v41 }
 0xfa4   : > { %5002 = vrcp.f32 %v2496_v16 }
 0xfa5   : > { %5004 = vrcp.f32 %v2494_v43  ;;  %v4882_v43 = vld [vmem:[%s6028_s19] sm:$0xff]  }
 0xfa6   : > { %4629 = vmatprep.subr.bf16.mxu1 %v4882_v43 }
 0xfa7   : > { %4630 = vmatpush3.bf16.msra.mxu1 %v4882_v43 }
 0xfac   : > { %v4999_v17 = vpop.eup %4998 }
 0xfad   : > { %v5001_v37 = vpop.eup %5000  ;;  %v2507_v39 = vmul.f32 %v4999_v17, %v4599_v29  ;;  %v4883_v17 = vld [vmem:[%s6028_s19 + $0x8] sm:$0xff]  }
 0xfae   : > { %v5003_v40 = vpop.eup %5002  ;;  %v2505_v18 = vmul.f32 %v5001_v37, %v2405_v3  ;;  %4631 = vmatprep.subr.bf16.mxu1 %v4883_v17  ;;  %v4884_v37 = vld [vmem:[%s6029_s20] sm:$0xff]  }
 0xfaf   : > { %v5005_v19 = vpop.eup %5004  ;;  %v2511_v20 = vmul.f32 %v4607_v27, %v2507_v39  ;;  %v2508_v21 = vmul.f32 %v5003_v40, %v4600_v25  ;;  %4632 = vmatpush3.bf16.msra.mxu1 %v4883_v17 }
 0xfb0   : > { %v2509_v22 = vmul.f32 %v2505_v18, %v2466_v28  ;;  %v2506_v23 = vmul.f32 %v5005_v19, %v2408_v61  ;;  %4637 = vmatprep.subr.bf16.mxu1 %v4884_v37 }
 0xfb1   : > { %v2512_v24 = vmul.f32 %v4608_v1, %v2508_v21 }
 0xfb2   : > { %v2510_v30 = vmul.f32 %v2506_v23, %v2469_v59 }
 0xfb3   : > { %v2514_v31 = vpack.c.bf16 %v2512_v24, %v2511_v20 }
 0xfb4   : > { %v2513_v32 = vpack.c.bf16 %v2510_v30, %v2509_v22 }
 0xfb6   : > { %4625 = vmatprep.mubr.bf16.mxu0 %v2513_v32 }
 0xfb7   : > { %4626 = vmatmul.mubr.bf16.vlgmr.msra.gmra.mrb[36].mxu0 %v2514_v31 }
0x108a   : > { %v4627_v33 = vpop.f32.mrb[36].mxu0 }
0x108b   : > { %v2597_v34 = vpop.f32.mrb[37].mxu0  ;;  %v2614_v35 = vadd.f32 %v4627_v33, %v5594_v7 }
0x108c   : > { %v2612_v36 = vadd.f32 %v2597_v34, %v5597_v11  ;;  %v4628_v42 = vpop.f32.mrb[38].mxu0 }
0x108d   : > { %v2600_v44 = vpop.f32.mrb[39].mxu0  ;;  %v2615_v45 = vadd.f32 %v4628_v42, %v5605_v15  ;;  %v2619_v50 = vmul.f32 %v2614_v35, %v2614_v35 }
0x108e   : > { %v2613_v46 = vadd.f32 %v2600_v44, %v5600_v14  ;;  %v2617_v47 = vmul.f32 %v2612_v36, %v2612_v36 }
0x108f   : > { %v2620_v52 = vmul.f32 %v2615_v45, %v2615_v45  ;;  %v2627_v7 = vsel %vm1091_vm1, %v2619_v50, 0.0 }
0x1090   : > { %v2621_v48 = vsel %vm1091_vm1, %v2617_v47, 0.0  ;;  %v2618_v49 = vmul.f32 %v2613_v46, %v2613_v46 }
0x1091   : > { %2622 = vadd.xlane.f32.xlu0 %v2621_v48  ;;  %v2630_v11 = vsel %vm1091_vm1, %v2620_v52, 0.0 }
0x1092   : > { %v2624_v51 = vsel %vm1091_vm1, %v2618_v49, 0.0 }
0x1093   : > { %2625 = vadd.xlane.f32.xlu1 %v2624_v51 }
0x1095   : > { %2628 = vadd.xlane.f32.xlu0 %v2627_v7 }
0x1097   : > { %2631 = vadd.xlane.f32.xlu1 %v2630_v11  ;;  %v4885_v11 = vld [vmem:[%s6029_s20 + $0x8] sm:$0xff]  }
0x111e   : > { %v2623_v53 = vpop.xlane.xlu0 %2622 }
0x111f   : > { %v2633_v15 = vmul.f32 0.03125, %v2623_v53  ;;  %v4886_v53 = vld [vmem:[%s6030_s21] sm:$0xff]  }
0x1120   : > { %v2626_v54 = vpop.xlane.xlu1 %2625 }
0x1121   : > { %v2637_v14 = vadd.f32 1e-06, %v2633_v15  ;;  %v2634_v55 = vmul.f32 0.03125, %v2626_v54  ;;  %v4887_v15 = vld [vmem:[%s6030_s21 + $0x8] sm:$0xff]  }
0x1122   : > { %v2629_v56 = vpop.xlane.xlu0 %2628 }
0x1123   : > { %5006 = vrsqrt.f32 %v2637_v14  ;;  %v2638_v57 = vadd.f32 1e-06, %v2634_v55  ;;  %v2635_v58 = vmul.f32 0.03125, %v2629_v56 }
0x1124   : > { %v2632_v60 = vpop.xlane.xlu1 %2631 }
0x1125   : > { %5008 = vrsqrt.f32 %v2638_v57  ;;  %v2639_v63 = vadd.f32 1e-06, %v2635_v58  ;;  %v2636_v62 = vmul.f32 0.03125, %v2632_v60 }
0x1127   : > { %5010 = vrsqrt.f32 %v2639_v63  ;;  %v2640_v0 = vadd.f32 1e-06, %v2636_v62 }
0x1129   : > { %5012 = vrsqrt.f32 %v2640_v0 }
0x112d   : > { %v5007_v2 = vpop.eup %5006 }
0x112e   : > { %v2645_v29 = vmul.f32 %v5007_v2, %v2612_v36  ;;  %v4254_v36 = vld [vmem:[%s6027_s18] ss:$0 sm:$0xff] }
0x112f   : > { %v5009_v27 = vpop.eup %5008 }
0x1130   : > { %v5675_v26 = vmul.f32 %v4253_v4, %v2645_v29  ;;  %v2646_v3 = vmul.f32 %v5009_v27, %v2613_v46 }
0x1131   : > { %v5011_v28 = vpop.eup %5010 }
0x1132   : > { %v2701_v5 = vmul.f32 %v5675_v26, %v5675_v26  ;;  %v5679_v25 = vmul.f32 %v4253_v4, %v2646_v3  ;;  %v2647_v1 = vmul.f32 %v5011_v28, %v2614_v35 }
0x1133   : > { %v5013_v6 = vpop.eup %5012 }
0x1134   : > { %v2705_v61 = vsel %vm1091_vm1, %v2701_v5, 0.0  ;;  %v2702_v59 = vmul.f32 %v5679_v25, %v5679_v25  ;;  %v5684_v10 = vmul.f32 %v4253_v4, %v2647_v1  ;;  %v2648_v13 = vmul.f32 %v5013_v6, %v2615_v45 }
0x1135   : > { %2706 = vadd.xlane.f32.xlu0 %v2705_v61 }
0x1136   : > { %v2708_v12 = vsel %vm1091_vm1, %v2702_v59, 0.0  ;;  %v2703_v38 = vmul.f32 %v5684_v10, %v5684_v10  ;;  %v5689_v9 = vmul.f32 %v4253_v4, %v2648_v13 }
0x1137   : > { %2709 = vadd.xlane.f32.xlu1 %v2708_v12  ;;  %v5755_v12 = vld [vmem:[%s5428_s11] ss:$0 sm:$0xff]  ;;  %s6077_s11 = smov 120  }
0x1138   : > { %v2711_v8 = vsel %vm1091_vm1, %v2703_v38, 0.0  ;;  %v2704_v41 = vmul.f32 %v5689_v9, %v5689_v9 }
0x1139   : > { %2712 = vadd.xlane.f32.xlu0 %v2711_v8 }
0x113a   : > { %v2714_v16 = vsel %vm1091_vm1, %v2704_v41, 0.0 }
0x113b   : > { %2715 = vadd.xlane.f32.xlu1 %v2714_v16 }
0x11c2   : > { %v2707_v39 = vpop.xlane.xlu0 %2706 }
0x11c3   : > { %v2717_v40 = vmul.f32 0.03125, %v2707_v39 }
0x11c4   : > { %v2710_v18 = vpop.xlane.xlu1 %2709 }
0x11c5   : > { %v2721_v19 = vadd.f32 1e-06, %v2717_v40  ;;  %v2718_v20 = vmul.f32 0.03125, %v2710_v18 }
0x11c6   : > { %v2713_v21 = vpop.xlane.xlu0 %2712 }
0x11c7   : > { %5014 = vrsqrt.f32 %v2721_v19  ;;  %v2722_v22 = vadd.f32 1e-06, %v2718_v20  ;;  %v2719_v23 = vmul.f32 0.03125, %v2713_v21 }
0x11c8   : > { %v2716_v24 = vpop.xlane.xlu1 %2715 }
0x11c9   : > { %5016 = vrsqrt.f32 %v2722_v22  ;;  %v2723_v30 = vadd.f32 1e-06, %v2719_v23  ;;  %v2720_v31 = vmul.f32 0.03125, %v2716_v24 }
0x11cb   : > { %5018 = vrsqrt.f32 %v2723_v30  ;;  %v2724_v32 = vadd.f32 1e-06, %v2720_v31 }
0x11cd   : > { %5020 = vrsqrt.f32 %v2724_v32 }
0x11d1   : > { %v5015_v33 = vpop.eup %5014 }
0x11d2   : > { %v2729_v34 = vmul.f32 %v5015_v33, %v5675_v26 }
0x11d3   : > { %v5017_v35 = vpop.eup %5016 }
0x11d4   : > { %v2730_v42 = vmul.f32 %v5017_v35, %v5679_v25  ;;  %v2739_v46 = vmul.f32 %v4254_v36, %v2729_v34 }
0x11d5   : > { %v5019_v44 = vpop.eup %5018 }
0x11d6   : > { %v2731_v45 = vmul.f32 %v5019_v44, %v5684_v10  ;;  %v2740_v47 = vmul.f32 %v4254_v36, %v2730_v42 }
0x11d7   : > { %v5021_v48 = vpop.eup %5020 }
0x11d8   : > { %v2732_v49 = vmul.f32 %v5021_v48, %v5689_v9  ;;  %v2743_v50 = vpack.c.bf16 %v2740_v47, %v2739_v46  ;;  %v2741_v51 = vmul.f32 %v4254_v36, %v2731_v45 }
0x11da   : > { %4633 = vmatprep.mubr.msk.bf16.mxu1 %vm1091_vm1, %v2743_v50  ;;  %v2742_v52 = vmul.f32 %v4254_v36, %v2732_v49 }
0x11dc   : > { %v2744_v7 = vpack.c.bf16 %v2742_v52, %v2741_v51 }
0x11de   : > { %4634 = vmatmul.mubr.msk.bf16.vlgmr.msra.gmra.mrb[32].mxu1 %vm1091_vm1, %v2744_v7 }
0x11df   : > { %4638 = vmatpush3.bf16.msra.mxu1 %v4884_v37  ;;  %4641 = vmatprep.mubr.msk.bf16.mxu1 %vm1091_vm1, %v2743_v50 }
0x11e0   : > { %4639 = vmatprep.subr.bf16.mxu1 %v4885_v11 }
0x11e3   : > { %4640 = vmatpush3.bf16.msra.mxu1 %v4885_v11 }
0x11e4   : > { %4645 = vmatprep.subr.bf16.mxu1 %v4886_v53 }
0x11e6   : > { %4642 = vmatmul.mubr.msk.bf16.vlgmr.msra.gmra.mrb[36].mxu1 %vm1091_vm1, %v2744_v7 }
0x11e7   : > { %4646 = vmatpush3.bf16.msra.mxu1 %v4886_v53  ;;  %4649 = vmatprep.mubr.msk.bf16.mxu1 %vm1091_vm1, %v2743_v50 }
0x11e8   : > { %4647 = vmatprep.subr.bf16.mxu1 %v4887_v15 }
0x11eb   : > { %4648 = vmatpush3.bf16.msra.mxu1 %v4887_v15 }
0x11ee   : > { %4650 = vmatmul.mubr.msk.bf16.vlgmr.msra.gmra.mrb[40].mxu1 %vm1091_vm1, %v2744_v7 }
0x12b1   : > { %v4635_v54 = vpop.f32.mrb[32].mxu1 }
0x12b2   : > { %v2797_v14 = vpop.f32.mrb[33].mxu1 }
0x12b3   : > { %v4636_v55 = vpop.f32.mrb[34].mxu1 }
0x12b4   : > { %v5726_v56 = vpack.c.bf16 %v4636_v55, %v4635_v54  ;;  %v2800_v57 = vpop.f32.mrb[35].mxu1 }
0x12b5   : > { %v5728_v58 = vpack.c.bf16 %v2800_v57, %v2797_v14 }
0x12b7   : > { %4657 = vmatprep.mubr.msk.bf16.mxu1 %vm1478_vm2, %v5728_v58 }
0x12b9   : > { %v4643_v60 = vpop.f32.mrb[36].mxu1 }
0x12ba   : > { %v2860_v63 = vpop.f32.mrb[37].mxu1 }
0x12bb   : > { %v4644_v62 = vpop.f32.mrb[38].mxu1 }
0x12bc   : > { %v5732_v0 = vpack.c.bf16 %v4644_v62, %v4643_v60  ;;  %v2863_v2 = vpop.f32.mrb[39].mxu1 }
0x12bd   : > { %v5734_v4 = vpack.c.bf16 %v2863_v2, %v2860_v63 }
0x12be   : > { %v2950_v61 = vsel %vm1478_vm2, %v5732_v0, 0 }
0x12bf   : > { %4769 = vmatprep.subr.msk.bf16.mxu1 %vm1478_vm2, %v5734_v4  ;;  %v2947_v29 = vsel %vm1478_vm2, %v5734_v4, 0 }
0x12c0   : > { %4654 = vmatpush3.bf16.xpose.msra.mxu1 %v2947_v29 }
0x12c1   : > { %v4651_v27 = vpop.f32.mrb[40].mxu1  ;;  %4770 = vmatprep.subr.msk.bf16.mxu1 %vm1478_vm2, %v5732_v0 }
0x12c2   : > { %v2923_v3 = vpop.f32.mrb[41].mxu1 }
0x12c3   : > { %v4652_v28 = vpop.f32.mrb[42].mxu1 }
0x12c4   : > { %v5742_v5 = vpack.c.bf16 %v4652_v28, %v4651_v27  ;;  %v2926_v1 = vpop.f32.mrb[43].mxu1 }
0x12c5   : > { %v5744_v6 = vpack.c.bf16 %v2926_v1, %v2923_v3 }
0x12c7   : > { %4661 = vmatprep.subr.bf16.mxu0 %v5744_v6 }
0x12c8   : > { %4656 = vmatpush3.bf16.xpose.msra.mxu1 %v2950_v61  ;;  %4662 = vmatpush3.bf16.msra.mxu0 %v5744_v6 }
0x12c9   : > { %4663 = vmatprep.subr.bf16.mxu0 %v5742_v5 }
0x12cc   : > { %4664 = vmatpush3.bf16.msra.mxu0 %v5742_v5 }
0x12cf   : > { %4658 = vmatmul.mubr.msk.bf16.vlgmr.msra.gmra.mrb[44].mxu1 %vm1478_vm2, %v5726_v56 }
0x13a2   : > { %v4659_v59 = vpop.f32.mrb[44].mxu1 }
0x13a3   : > { %v2986_v13 = vpop.f32.mrb[45].mxu1  ;;  %v2995_v16 = vadd.f32 %v5755_v12, %v4659_v59 }
0x13a4   : > { %v2987_v38 = vadd.f32 %v5755_v12, %v2986_v13  ;;  %v4660_v8 = vpop.f32.mrb[46].mxu1 }
0x13a5   : > { %v2989_v41 = vpop.f32.mrb[47].mxu1  ;;  %v2998_v37 = vadd.f32 %v5755_v12, %v4660_v8  ;;  %v3007_v40 = vsel %vm1091_vm1, %v2995_v16, -inf }
0x13a6   : > { %v2990_v43 = vadd.f32 %v5755_v12, %v2989_v41  ;;  %v3001_v17 = vsel %vm1091_vm1, %v2987_v38, -inf }
0x13a7   : > { %3002 = vmax.xlane.f32.xlu0 %v3001_v17  ;;  %v3010_v18 = vsel %vm1091_vm1, %v2998_v37, -inf }
0x13a8   : > { %v3004_v39 = vsel %vm1091_vm1, %v2990_v43, -inf }
0x13a9   : > { %3005 = vmax.xlane.f32.xlu1 %v3004_v39 }
0x13ab   : > { %3008 = vmax.xlane.f32.xlu0 %v3007_v40 }
0x13ad   : > { %3011 = vmax.xlane.f32.xlu1 %v3010_v18 }
0x1434   : > { %v3003_v19 = vpop.xlane.xlu0 %3002 }
0x1435   : > { %v3013_v20 = vsub.f32 %v2987_v38, %v3003_v19 }
0x1436   : > { %v3006_v21 = vpop.xlane.xlu1 %3005 }
0x1437   : > { %v3014_v22 = vsub.f32 %v2990_v43, %v3006_v21  ;;  %v3017_v31 = vmul.f32 1.442695, %v3013_v20 }
0x1438   : > { %v3009_v23 = vpop.xlane.xlu0 %3008 }
0x1439   : > { %v3019_v24 = vmul.f32 1.442695, %v3014_v22  ;;  %v3015_v30 = vsub.f32 %v2995_v16, %v3009_v23 }
0x143a   : > { %v3012_v32 = vpop.xlane.xlu1 %3011 }
0x143b   : > { %5022 = vpow2.f32 %v3019_v24  ;;  %v3021_v33 = vmul.f32 1.442695, %v3015_v30  ;;  %v3016_v34 = vsub.f32 %v2998_v37, %v3012_v32 }
0x143d   : > { %5024 = vpow2.f32 %v3021_v33  ;;  %v3023_v35 = vmul.f32 1.442695, %v3016_v34 }
0x143e   : > { %5026 = vpow2.f32 %v3017_v31 }
0x143f   : > { %5028 = vpow2.f32 %v3023_v35 }
0x1445   : > { %v5023_v36 = vpop.eup %5022 }
0x1446   : > { %v3028_v42 = vsel %vm1091_vm1, %v5023_v36, 0.0 }
0x1447   : > { %v5025_v44 = vpop.eup %5024  ;;  %3029 = vadd.xlane.f32.xlu1 %v3028_v42 }
0x1448   : > { %v5027_v45 = vpop.eup %5026  ;;  %v3031_v46 = vsel %vm1091_vm1, %v5025_v44, 0.0 }
0x1449   : > { %v5029_v47 = vpop.eup %5028  ;;  %3032 = vadd.xlane.f32.xlu0 %v3031_v46  ;;  %v3025_v49 = vsel %vm1091_vm1, %v5027_v45, 0.0 }
0x144a   : > { %v3034_v48 = vsel %vm1091_vm1, %v5029_v47, 0.0 }
0x144b   : > { %3035 = vadd.xlane.f32.xlu1 %v3034_v48 }
0x144d   : > { %3026 = vadd.xlane.f32.xlu0 %v3025_v49 }
0x145c   : > { %3112 = vrot.lane.b32.xlu1 %v5732_v0, %s6077_s11 }
0x1460   : > { %3104 = vrot.lane.b32.xlu1 %v5728_v58, %s6077_s11 }
0x1463   : > { %3110 = vrot.lane.b32.xlu0 %v5734_v4, %s6077_s11 }
0x1464   : > { %3106 = vrot.lane.b32.xlu1 %v5726_v56, %s6077_s11 }
0x14d4   : > { %v3030_v50 = vpop.xlane.xlu1 %3029 }
0x14d5   : > { %5030 = vrcp.f32 %v3030_v50 }
0x14d6   : > { %v3033_v51 = vpop.xlane.xlu0 %3032 }
0x14d8   : > { %v3036_v52 = vpop.xlane.xlu1 %3035 }
0x14d9   : > { %5032 = vrcp.f32 %v3036_v52 }
0x14da   : > { %5034 = vrcp.f32 %v3033_v51  ;;  %v3027_v7 = vpop.xlane.xlu0 %3026 }
0x14db   : > { %5036 = vrcp.f32 %v3027_v7 }
0x14dc   : > { %v3113_v57 = vpop.permute.xlu1 %3112 }
0x14dd   : > { %v3124_v28 = vsel %vm1478_vm2, %v3113_v57, 0 }
0x14de   : > { %v3111_v11 = vpop.permute.xlu0 %3110 }
0x14df   : > { %4771 = vmatprep.subr.msk.bf16.mxu0 %vm1478_vm2, %v3111_v11  ;;  %v5031_v53 = vpop.eup %5030  ;;  %v3121_v27 = vsel %vm1478_vm2, %v3111_v11, 0 }
0x14e0   : > { %v3042_v63 = vmul.f32 %v5031_v53, %v5023_v36  ;;  %v3105_v3 = vpop.permute.xlu1 %3104 }
0x14e3   : > { %v5033_v15 = vpop.eup %5032 }
0x14e4   : > { %v5035_v54 = vpop.eup %5034  ;;  %v3044_v55 = vmul.f32 %v5033_v15, %v5029_v47  ;;  %v3107_v1 = vpop.permute.xlu1 %3106 }
0x14e5   : > { %v5037_v14 = vpop.eup %5036  ;;  %v3043_v62 = vmul.f32 %v5035_v54, %v5025_v44 }
0x14e6   : > { %v3041_v60 = vmul.f32 %v5037_v14, %v5027_v45 }
0x14e7   : > { %v3046_v29 = vpack.c.bf16 %v3044_v55, %v3043_v62 }
0x14e8   : > { %v3045_v2 = vpack.c.bf16 %v3042_v63, %v3041_v60 }
0x14ea   : > { %4665 = vmatprep.mubr.msk.bf16.mxu0 %vm1091_vm1, %v3045_v2 }
0x14eb   : > { %4666 = vmatmul.mubr.msk.bf16.vlgmr.msra.gmra.mrb[40].mxu0 %vm1091_vm1, %v3046_v29 }
0x14ec   : > { %4670 = vmatpush3.bf16.xpose.msra.mxu0 %v3121_v27  ;;  %4673 = vmatprep.mubr.msk.bf16.mxu0 %vm1478_vm2, %v3105_v3 }
0x14ed   : > { %4772 = vmatprep.subr.msk.bf16.mxu0 %vm1478_vm2, %v3113_v57 }
0x14f4   : > { %4672 = vmatpush3.bf16.xpose.msra.mxu0 %v3124_v28 }
0x14fb   : > { %4674 = vmatmul.mubr.msk.bf16.vlgmr.msra.gmra.mrb[44].mxu0 %vm1478_vm2, %v3107_v1 }
0x15be   : > { %v5785_v61 = vpop.f32.mrb[40].mxu0 }
0x15bf   : > { %v5787_v59 = vpop.f32.mrb[41].mxu0 }
0x15c0   : > { %v5789_v13 = vpop.f32.mrb[42].mxu0 }
0x15c1   : > { %v5791_v38 = vpop.f32.mrb[43].mxu0 }
0x15ce   : > { %v4675_v8 = vpop.f32.mrb[44].mxu0 }
0x15cf   : > { %v3160_v41 = vpop.f32.mrb[45].mxu0  ;;  %v3169_v37 = vadd.f32 %v5755_v12, %v4675_v8 }
0x15d0   : > { %v3161_v16 = vadd.f32 %v5755_v12, %v3160_v41  ;;  %v4676_v43 = vpop.f32.mrb[46].mxu0 }
0x15d1   : > { %v3163_v17 = vpop.f32.mrb[47].mxu0  ;;  %v3172_v19 = vadd.f32 %v5755_v12, %v4676_v43  ;;  %v3181_v20 = vsel %vm1091_vm1, %v3169_v37, -inf }
0x15d2   : > { %v3164_v39 = vadd.f32 %v5755_v12, %v3163_v17  ;;  %v3175_v40 = vsel %vm1091_vm1, %v3161_v16, -inf }
0x15d3   : > { %3176 = vmax.xlane.f32.xlu0 %v3175_v40  ;;  %v3184_v21 = vsel %vm1091_vm1, %v3172_v19, -inf }
0x15d4   : > { %v3178_v18 = vsel %vm1091_vm1, %v3164_v39, -inf }
0x15d5   : > { %3179 = vmax.xlane.f32.xlu1 %v3178_v18 }
0x15d7   : > { %3182 = vmax.xlane.f32.xlu0 %v3181_v20 }
0x15db   : > { %3185 = vmax.xlane.f32.xlu0 %v3184_v21 }
0x15e6   : > { %3225 = vrot.lane.b32.xlu1 %v5742_v5, %s6077_s11 }
0x1660   : > { %v3177_v22 = vpop.xlane.xlu0 %3176 }
0x1661   : > { %v3187_v23 = vsub.f32 %v3161_v16, %v3177_v22 }
0x1662   : > { %v3180_v24 = vpop.xlane.xlu1 %3179 }
0x1663   : > { %v3191_v32 = vmul.f32 1.442695, %v3187_v23  ;;  %v3188_v33 = vsub.f32 %v3164_v39, %v3180_v24 }
0x1664   : > { %v3183_v30 = vpop.xlane.xlu0 %3182 }
0x1665   : > { %v3189_v31 = vsub.f32 %v3169_v37, %v3183_v30  ;;  %v3193_v42 = vmul.f32 1.442695, %v3188_v33 }
0x1666   : > { %v3226_v7 = vpop.permute.xlu1 %3225 }
0x1667   : > { %v3195_v34 = vmul.f32 1.442695, %v3189_v31 }
0x1668   : > { %v3186_v35 = vpop.xlane.xlu0 %3185 }
0x1669   : > { %5038 = vpow2.f32 %v3195_v34  ;;  %v3190_v36 = vsub.f32 %v3172_v19, %v3186_v35 }
0x166a   : > { %5040 = vpow2.f32 %v3191_v32 }
0x166b   : > { %v3197_v44 = vmul.f32 1.442695, %v3190_v36 }
0x166d   : > { %5042 = vpow2.f32 %v3197_v44 }
0x166e   : > { %5044 = vpow2.f32 %v3193_v42 }
0x1673   : > { %v5039_v45 = vpop.eup %5038 }
0x1674   : > { %v3205_v46 = vsel %vm1091_vm1, %v5039_v45, 0.0  ;;  %v5041_v47 = vpop.eup %5040 }
0x1675   : > { %3206 = vadd.xlane.f32.xlu0 %v3205_v46  ;;  %v3199_v49 = vsel %vm1091_vm1, %v5041_v47, 0.0 }
0x1677   : > { %v5043_v48 = vpop.eup %5042 }
0x1678   : > { %v3208_v50 = vsel %vm1091_vm1, %v5043_v48, 0.0  ;;  %v5045_v51 = vpop.eup %5044 }
0x1679   : > { %3200 = vadd.xlane.f32.xlu0 %v3199_v49  ;;  %3209 = vadd.xlane.f32.xlu1 %v3208_v50  ;;  %v3202_v52 = vsel %vm1091_vm1, %v5045_v51, 0.0 }
0x167d   : > { %3203 = vadd.xlane.f32.xlu1 %v3202_v52 }
0x168e   : > { %3288 = vrot.lane.b32.xlu1 %v5734_v4, %s6078_s2 }
0x168f   : > { %3223 = vrot.lane.b32.xlu0 %v5744_v6, %s6077_s11  ;;  %s6082_s11 = smov 24  }
0x1692   : > { %3290 = vrot.lane.b32.xlu1 %v5732_v0, %s6078_s2 }
0x1693   : > { %3284 = vrot.lane.b32.xlu0 %v5728_v58, %s6078_s2 }
0x1696   : > { %3286 = vrot.lane.b32.xlu1 %v5726_v56, %s6078_s2 }
0x1702   : > { %v3207_v11 = vpop.xlane.xlu0 %3206 }
0x1706   : > { %v3210_v53 = vpop.xlane.xlu1 %3209  ;;  %v3201_v15 = vpop.xlane.xlu0 %3200 }
0x1707   : > { %5046 = vrcp.f32 %v3210_v53 }
0x1708   : > { %5048 = vrcp.f32 %v3201_v15 }
0x1709   : > { %5050 = vrcp.f32 %v3207_v11 }
0x170a   : > { %v3204_v54 = vpop.xlane.xlu1 %3203  ;;  %v3224_v14 = vpop.permute.xlu0 %3223 }
0x170b   : > { %5052 = vrcp.f32 %v3204_v54  ;;  %4677 = vmatprep.subr.bf16.mxu1 %v3224_v14 }
0x170c   : > { %4678 = vmatpush3.bf16.msra.mxu1 %v3224_v14 }
0x170d   : > { %4679 = vmatprep.subr.bf16.mxu1 %v3226_v7 }
0x170e   : > { %v3289_v55 = vpop.permute.xlu1 %3288  ;;  %v3285_v41 = vpop.permute.xlu0 %3284 }
0x170f   : > { %v3299_v8 = vsel %vm1478_vm2, %v3289_v55, 0 }
0x1710   : > { %4680 = vmatpush3.bf16.msra.mxu1 %v3226_v7 }
0x1711   : > { %4773 = vmatprep.subr.msk.bf16.mxu1 %vm1478_vm2, %v3289_v55  ;;  %v5047_v57 = vpop.eup %5046 }
0x1712   : > { %v5049_v60 = vpop.eup %5048  ;;  %v3218_v2 = vmul.f32 %v5047_v57, %v5043_v48  ;;  %v3291_v16 = vpop.permute.xlu1 %3290 }
0x1713   : > { %v5051_v63 = vpop.eup %5050  ;;  %v3215_v29 = vmul.f32 %v5049_v60, %v5041_v47  ;;  %v3302_v43 = vsel %vm1478_vm2, %v3291_v16, 0 }
0x1714   : > { %v3217_v3 = vmul.f32 %v5051_v63, %v5039_v45 }
0x1715   : > { %v5053_v62 = vpop.eup %5052 }
0x1716   : > { %v3216_v27 = vmul.f32 %v5053_v62, %v5045_v51  ;;  %v3220_v1 = vpack.c.bf16 %v3218_v2, %v3217_v3  ;;  %v3287_v17 = vpop.permute.xlu1 %3286 }
0x1718   : > { %v3219_v28 = vpack.c.bf16 %v3216_v27, %v3215_v29 }
0x171a   : > { %4681 = vmatprep.mubr.msk.bf16.mxu1 %vm1091_vm1, %v3219_v28 }
0x171b   : > { %4682 = vmatmul.mubr.msk.bf16.vlgmr.msra.gmra.mrb[48].mxu1 %vm1091_vm1, %v3220_v1 }
0x171c   : > { %4686 = vmatpush3.bf16.xpose.msra.mxu1 %v3299_v8  ;;  %4689 = vmatprep.mubr.msk.bf16.mxu1 %vm1478_vm2, %v3285_v41 }
0x171d   : > { %4774 = vmatprep.subr.msk.bf16.mxu1 %vm1478_vm2, %v3291_v16 }
0x1724   : > { %4688 = vmatpush3.bf16.xpose.msra.mxu1 %v3302_v43 }
0x172b   : > { %4690 = vmatmul.mubr.msk.bf16.vlgmr.msra.gmra.mrb[52].mxu1 %vm1478_vm2, %v3287_v17 }
0x17ee   : > { %v5825_v37 = vpop.f32.mrb[48].mxu1 }
0x17ef   : > { %v5827_v39 = vpop.f32.mrb[49].mxu1 }
0x17f0   : > { %v5829_v40 = vpop.f32.mrb[50].mxu1 }
0x17f1   : > { %v4826_v18 = vpack.i.bf16 %v5829_v40, %v5825_v37  ;;  %v5833_v19 = vpop.f32.mrb[51].mxu1 }
0x17f2   : > { %v4821_v20 = vpack.i.bf16 %v5833_v19, %v5827_v39 }
0x17fe   : > { %v4691_v21 = vpop.f32.mrb[52].mxu1 }
0x17ff   : > { %v3338_v22 = vpop.f32.mrb[53].mxu1  ;;  %v3347_v31 = vadd.f32 %v5755_v12, %v4691_v21 }
0x1800   : > { %v3339_v23 = vadd.f32 %v5755_v12, %v3338_v22  ;;  %v4692_v24 = vpop.f32.mrb[54].mxu1 }
0x1801   : > { %v3341_v30 = vpop.f32.mrb[55].mxu1  ;;  %v3350_v35 = vadd.f32 %v5755_v12, %v4692_v24  ;;  %v3359_v36 = vsel %vm1091_vm1, %v3347_v31, -inf }
0x1802   : > { %v3342_v32 = vadd.f32 %v5755_v12, %v3341_v30  ;;  %v3353_v33 = vsel %vm1091_vm1, %v3339_v23, -inf }
0x1803   : > { %3354 = vmax.xlane.f32.xlu0 %v3353_v33  ;;  %v3362_v42 = vsel %vm1091_vm1, %v3350_v35, -inf }
0x1804   : > { %v3356_v34 = vsel %vm1091_vm1, %v3342_v32, -inf }
0x1805   : > { %3357 = vmax.xlane.f32.xlu1 %v3356_v34 }
0x1807   : > { %3360 = vmax.xlane.f32.xlu0 %v3359_v36 }
0x180b   : > { %3363 = vmax.xlane.f32.xlu0 %v3362_v42 }
0x1816   : > { %3401 = vrot.lane.b32.xlu1 %v5742_v5, %s6078_s2 }
0x1890   : > { %v3355_v44 = vpop.xlane.xlu0 %3354 }
0x1891   : > { %v3365_v45 = vsub.f32 %v3339_v23, %v3355_v44 }
0x1892   : > { %v3358_v46 = vpop.xlane.xlu1 %3357 }
0x1893   : > { %v3369_v49 = vmul.f32 1.442695, %v3365_v45  ;;  %v3366_v50 = vsub.f32 %v3342_v32, %v3358_v46 }
0x1894   : > { %v3361_v47 = vpop.xlane.xlu0 %3360 }
0x1895   : > { %v3367_v48 = vsub.f32 %v3347_v31, %v3361_v47  ;;  %v3371_v11 = vmul.f32 1.442695, %v3366_v50 }
0x1896   : > { %v3402_v2 = vpop.permute.xlu1 %3401 }
0x1897   : > { %v3373_v51 = vmul.f32 1.442695, %v3367_v48 }
0x1898   : > { %v3364_v52 = vpop.xlane.xlu0 %3363 }
0x1899   : > { %5054 = vpow2.f32 %v3373_v51  ;;  %v3368_v7 = vsub.f32 %v3350_v35, %v3364_v52 }
0x189a   : > { %5056 = vpow2.f32 %v3369_v49 }
0x189b   : > { %v3375_v53 = vmul.f32 1.442695, %v3368_v7 }
0x189d   : > { %5058 = vpow2.f32 %v3375_v53 }
0x189e   : > { %5060 = vpow2.f32 %v3371_v11 }
0x18a3   : > { %v5055_v15 = vpop.eup %5054 }
0x18a4   : > { %v3383_v54 = vsel %vm1091_vm1, %v5055_v15, 0.0  ;;  %v5057_v14 = vpop.eup %5056 }
0x18a5   : > { %3384 = vadd.xlane.f32.xlu0 %v3383_v54  ;;  %v3377_v57 = vsel %vm1091_vm1, %v5057_v14, 0.0 }
0x18a7   : > { %v5059_v55 = vpop.eup %5058 }
0x18a8   : > { %v3386_v60 = vsel %vm1091_vm1, %v5059_v55, 0.0  ;;  %v5061_v63 = vpop.eup %5060 }
0x18a9   : > { %3378 = vadd.xlane.f32.xlu0 %v3377_v57  ;;  %3387 = vadd.xlane.f32.xlu1 %v3386_v60  ;;  %v3380_v62 = vsel %vm1091_vm1, %v5061_v63, 0.0 }
0x18ad   : > { %3381 = vadd.xlane.f32.xlu1 %v3380_v62 }
0x18be   : > { %3464 = vrot.lane.b32.xlu1 %v5734_v4, %s6079_s8 }
0x18bf   : > { %3399 = vrot.lane.b32.xlu0 %v5744_v6, %s6078_s2 }
0x18c2   : > { %3466 = vrot.lane.b32.xlu1 %v5732_v0, %s6079_s8 }
0x18c3   : > { %3460 = vrot.lane.b32.xlu0 %v5728_v58, %s6079_s8 }
0x18c6   : > { %3462 = vrot.lane.b32.xlu1 %v5726_v56, %s6079_s8 }
0x1932   : > { %v3385_v29 = vpop.xlane.xlu0 %3384 }
0x1936   : > { %v3388_v27 = vpop.xlane.xlu1 %3387  ;;  %v3379_v3 = vpop.xlane.xlu0 %3378 }
0x1937   : > { %5062 = vrcp.f32 %v3388_v27 }
0x1938   : > { %5064 = vrcp.f32 %v3379_v3 }
0x1939   : > { %5066 = vrcp.f32 %v3385_v29 }
0x193a   : > { %v3382_v4 = vpop.xlane.xlu1 %3381  ;;  %v3400_v28 = vpop.permute.xlu0 %3399 }
0x193b   : > { %5068 = vrcp.f32 %v3382_v4  ;;  %4693 = vmatprep.subr.bf16.mxu0 %v3400_v28 }
0x193c   : > { %4694 = vmatpush3.bf16.msra.mxu0 %v3400_v28 }
0x193d   : > { %4695 = vmatprep.subr.bf16.mxu0 %v3402_v2 }
0x193e   : > { %v3465_v0 = vpop.permute.xlu1 %3464  ;;  %v3461_v24 = vpop.permute.xlu0 %3460 }
0x193f   : > { %v3475_v23 = vsel %vm1478_vm2, %v3465_v0, 0 }
0x1940   : > { %4696 = vmatpush3.bf16.msra.mxu0 %v3402_v2 }
0x1941   : > { %4775 = vmatprep.subr.msk.bf16.mxu0 %vm1478_vm2, %v3465_v0  ;;  %v5063_v58 = vpop.eup %5062 }
0x1942   : > { %v5065_v1 = vpop.eup %5064  ;;  %v3396_v41 = vmul.f32 %v5063_v58, %v5059_v55  ;;  %v3467_v30 = vpop.permute.xlu1 %3466 }
0x1943   : > { %v5067_v56 = vpop.eup %5066  ;;  %v3393_v16 = vmul.f32 %v5065_v1, %v5057_v14  ;;  %v3478_v31 = vsel %vm1478_vm2, %v3467_v30, 0 }
0x1944   : > { %v3395_v17 = vmul.f32 %v5067_v56, %v5055_v15 }
0x1945   : > { %v5069_v8 = vpop.eup %5068 }
0x1946   : > { %v3394_v43 = vmul.f32 %v5069_v8, %v5061_v63  ;;  %v3398_v22 = vpack.c.bf16 %v3396_v41, %v3395_v17  ;;  %v3463_v32 = vpop.permute.xlu1 %3462 }
0x1948   : > { %v3397_v21 = vpack.c.bf16 %v3394_v43, %v3393_v16 }
0x194a   : > { %4697 = vmatprep.mubr.msk.bf16.mxu0 %vm1091_vm1, %v3397_v21 }
0x194b   : > { %4698 = vmatmul.mubr.msk.bf16.vlgmr.msra.gmra.mrb[48].mxu0 %vm1091_vm1, %v3398_v22 }
0x194c   : > { %4702 = vmatpush3.bf16.xpose.msra.mxu0 %v3475_v23  ;;  %4705 = vmatprep.mubr.msk.bf16.mxu0 %vm1478_vm2, %v3461_v24 }
0x194d   : > { %4776 = vmatprep.subr.msk.bf16.mxu0 %vm1478_vm2, %v3467_v30 }
0x1954   : > { %4704 = vmatpush3.bf16.xpose.msra.mxu0 %v3478_v31  ;;  %v4888_v31 = vld [vmem:[%s6031_s22] sm:$0xff]  }
0x195b   : > { %4706 = vmatmul.mubr.msk.bf16.vlgmr.msra.gmra.mrb[52].mxu0 %vm1478_vm2, %v3463_v32  ;;  %v4889_v32 = vld [vmem:[%s6031_s22 + $0x8] sm:$0xff]  }
0x1a1e   : > { %v4699_v33 = vpop.f32.mrb[48].mxu0 }
0x1a1f   : > { %v3445_v34 = vpop.f32.mrb[49].mxu0 }
0x1a20   : > { %v4700_v35 = vpop.f32.mrb[50].mxu0 }
0x1a21   : > { %v4836_v36 = vpack.i.bf16 %v4700_v35, %v4699_v33  ;;  %v3448_v42 = vpop.f32.mrb[51].mxu0 }
0x1a22   : > { %v4831_v44 = vpack.i.bf16 %v3448_v42, %v3445_v34 }
0x1a2e   : > { %v4707_v45 = vpop.f32.mrb[52].mxu0 }
0x1a2f   : > { %v3514_v46 = vpop.f32.mrb[53].mxu0  ;;  %v3523_v50 = vadd.f32 %v5755_v12, %v4707_v45 }
0x1a30   : > { %v3515_v47 = vadd.f32 %v5755_v12, %v3514_v46  ;;  %v4708_v48 = vpop.f32.mrb[54].mxu0 }
0x1a31   : > { %v3517_v49 = vpop.f32.mrb[55].mxu0  ;;  %v3526_v11 = vadd.f32 %v5755_v12, %v4708_v48  ;;  %v3535_v53 = vsel %vm1091_vm1, %v3523_v50, -inf }
0x1a32   : > { %v3518_v51 = vadd.f32 %v5755_v12, %v3517_v49  ;;  %v3529_v52 = vsel %vm1091_vm1, %v3515_v47, -inf }
0x1a33   : > { %3530 = vmax.xlane.f32.xlu0 %v3529_v52  ;;  %v3538_v15 = vsel %vm1091_vm1, %v3526_v11, -inf }
0x1a34   : > { %v3532_v7 = vsel %vm1091_vm1, %v3518_v51, -inf }
0x1a35   : > { %3533 = vmax.xlane.f32.xlu1 %v3532_v7 }
0x1a37   : > { %3536 = vmax.xlane.f32.xlu0 %v3535_v53 }
0x1a3b   : > { %3539 = vmax.xlane.f32.xlu0 %v3538_v15 }
0x1ac0   : > { %v3531_v54 = vpop.xlane.xlu0 %3530 }
0x1ac1   : > { %v3541_v14 = vsub.f32 %v3515_v47, %v3531_v54 }
0x1ac2   : > { %v3534_v55 = vpop.xlane.xlu1 %3533 }
0x1ac3   : > { %v3545_v63 = vmul.f32 1.442695, %v3541_v14  ;;  %v3542_v62 = vsub.f32 %v3518_v51, %v3534_v55 }
0x1ac4   : > { %v3537_v57 = vpop.xlane.xlu0 %3536 }
0x1ac5   : > { %v3543_v60 = vsub.f32 %v3523_v50, %v3537_v57  ;;  %v3547_v3 = vmul.f32 1.442695, %v3542_v62 }
0x1ac7   : > { %v3549_v2 = vmul.f32 1.442695, %v3543_v60 }
0x1ac8   : > { %v3540_v29 = vpop.xlane.xlu0 %3539 }
0x1ac9   : > { %5070 = vpow2.f32 %v3549_v2  ;;  %v3544_v27 = vsub.f32 %v3526_v11, %v3540_v29 }
0x1aca   : > { %5072 = vpow2.f32 %v3545_v63 }
0x1acb   : > { %v3551_v12 = vmul.f32 1.442695, %v3544_v27 }
0x1acd   : > { %5074 = vpow2.f32 %v3551_v12 }
0x1ace   : > { %5076 = vpow2.f32 %v3547_v3 }
0x1ad3   : > { %v5071_v4 = vpop.eup %5070 }
0x1ad4   : > { %v3559_v28 = vsel %vm1091_vm1, %v5071_v4, 0.0  ;;  %v5073_v0 = vpop.eup %5072 }
0x1ad5   : > { %3560 = vadd.xlane.f32.xlu0 %v3559_v28  ;;  %v3553_v1 = vsel %vm1091_vm1, %v5073_v0, 0.0 }
0x1ad7   : > { %v5075_v58 = vpop.eup %5074 }
0x1ad8   : > { %v3562_v56 = vsel %vm1091_vm1, %v5075_v58, 0.0  ;;  %v5077_v8 = vpop.eup %5076 }
0x1ad9   : > { %3554 = vadd.xlane.f32.xlu0 %v3553_v1  ;;  %3563 = vadd.xlane.f32.xlu1 %v3562_v56  ;;  %v3556_v41 = vsel %vm1091_vm1, %v5077_v8, 0.0 }
0x1add   : > { %3557 = vadd.xlane.f32.xlu1 %v3556_v41 }
0x1aee   : > { %3577 = vrot.lane.b32.xlu1 %v5742_v5, %s6079_s8 }
0x1aef   : > { %3575 = vrot.lane.b32.xlu0 %v5744_v6, %s6079_s8  ;;  %s872_s8 = scalar_lea.vmem %s6036_s27, %s5285_s1 }
0x1af2   : > { %4822 = vrot.lane.b32.xlu1 %v4821_v20, %s6080_s9 }
0x1af3   : > { %4832 = vrot.lane.b32.xlu0 %v4831_v44, %s6081_s28 }
0x1af6   : > { %4827 = vrot.lane.b32.xlu1 %v4826_v18, %s6080_s9 }
0x1afa   : > { %4837 = vrot.lane.b32.xlu1 %v4836_v36, %s6081_s28 }
0x1b62   : > { %v3561_v16 = vpop.xlane.xlu0 %3560 }
0x1b66   : > { %v3564_v43 = vpop.xlane.xlu1 %3563  ;;  %v3555_v5 = vpop.xlane.xlu0 %3554 }
0x1b67   : > { %5078 = vrcp.f32 %v3564_v43 }
0x1b68   : > { %5080 = vrcp.f32 %v3555_v5 }
0x1b69   : > { %5082 = vrcp.f32 %v3561_v16 }
0x1b6a   : > { %v3558_v6 = vpop.xlane.xlu1 %3557  ;;  %v3576_v17 = vpop.permute.xlu0 %3575 }
0x1b6b   : > { %5084 = vrcp.f32 %v3558_v6  ;;  %4709 = vmatprep.subr.bf16.mxu1 %v3576_v17 }
0x1b6c   : > { %4710 = vmatpush3.bf16.msra.mxu1 %v3576_v17 }
0x1b6e   : > { %v3578_v39 = vpop.permute.xlu1 %3577  ;;  %v4833_v50 = vpop.permute.xlu0 %4832 }
0x1b6f   : > { %4711 = vmatprep.subr.bf16.mxu1 %v3578_v39  ;;  %v4835_v53 = vunpack.i.h.bf16 %v4833_v50  ;;  %v4834_v15 = vunpack.i.l.bf16 %v4833_v50 }
0x1b70   : > { %4712 = vmatpush3.bf16.msra.mxu1 %v3578_v39 }
0x1b71   : > { %v5079_v19 = vpop.eup %5078  ;;  %4717 = vmatprep.subr.bf16.mxu1 %v4888_v31 }
0x1b72   : > { %v5081_v20 = vpop.eup %5080  ;;  %v3572_v18 = vmul.f32 %v5079_v19, %v5075_v58  ;;  %v4823_v45 = vpop.permute.xlu1 %4822 }
0x1b73   : > { %v5083_v37 = vpop.eup %5082  ;;  %v3569_v21 = vmul.f32 %v5081_v20, %v5073_v0  ;;  %v4825_v48 = vunpack.i.h.bf16 %v4823_v45  ;;  %v4824_v49 = vunpack.i.l.bf16 %v4823_v45 }
0x1b74   : > { %v3571_v23 = vmul.f32 %v5083_v37, %v5071_v4  ;;  %v4890_v37 = vld [vmem:[%s6033_s24] sm:$0xff]  }
0x1b75   : > { %v5085_v40 = vpop.eup %5084  ;;  %v3685_v54 = vsel %vm1478_vm2, %v5791_v38, %v4825_v48  ;;  %v3684_v14 = vsel %vm1478_vm2, %v5787_v59, %v4824_v49  ;;  %4725 = vmatprep.subr.bf16.mxu0 %v4890_v37  ;;  %v4287_v48 = vld [vmem:[%s6032_s23] ss:$0 sm:$0xff] }
0x1b76   : > { %v3570_v22 = vmul.f32 %v5085_v40, %v5077_v8  ;;  %v3574_v30 = vpack.c.bf16 %v3572_v18, %v3571_v23  ;;  %v4828_v46 = vpop.permute.xlu1 %4827  ;;  %v3688_v4 = vsel %vm889_vm0, %v3684_v14, %v4834_v15  ;;  %v4891_v40 = vld [vmem:[%s6034_s25] sm:$0xff]   ;;  %4726 = vmatpush3.bf16.msra.mxu0 %v4890_v37  ;;  %v4892_v18 = vld [vmem:[%s6033_s24 + $0x8] sm:$0xff]  }
0x1b77   : > { %v4830_v51 = vunpack.i.h.bf16 %v4828_v46  ;;  %v4829_v52 = vunpack.i.l.bf16 %v4828_v46  ;;  %4727 = vmatprep.subr.bf16.mxu0 %v4892_v18 }
0x1b78   : > { %v3573_v24 = vpack.c.bf16 %v3570_v22, %v3569_v21  ;;  %v4893_v21 = vld [vmem:[%s6034_s25 + $0x8] sm:$0xff]  }
0x1b79   : > { %v3687_v57 = vsel %vm1478_vm2, %v5789_v13, %v4830_v51  ;;  %v3686_v60 = vsel %vm1478_vm2, %v5785_v61, %v4829_v52  ;;  %v3689_v13 = vsel %vm889_vm0, %v3685_v54, %v4835_v53 }
0x1b7a   : > { %4713 = vmatprep.mubr.msk.bf16.mxu1 %vm1091_vm1, %v3573_v24  ;;  %v4838_v47 = vpop.permute.xlu1 %4837  ;;  %4728 = vmatpush3.bf16.msra.mxu0 %v4892_v18 }
0x1b7b   : > { %4714 = vmatmul.mubr.msk.bf16.vlgmr.msra.gmra.mrb[56].mxu1 %vm1091_vm1, %v3574_v30  ;;  %v4840_v7 = vunpack.i.h.bf16 %v4838_v47  ;;  %v4839_v11 = vunpack.i.l.bf16 %v4838_v47 }
0x1b7c   : > { %4718 = vmatpush3.bf16.msra.mxu1 %v4888_v31 }
0x1b7d   : > { %4719 = vmatprep.subr.bf16.mxu1 %v4889_v32  ;;  %v3690_v29 = vsel %vm889_vm0, %v3686_v60, %v4839_v11  ;;  %v3691_v27 = vsel %vm889_vm0, %v3687_v57, %v4840_v7  ;;  %v4894_v57 = vld [vmem:[%s6035_s26] sm:$0xff]   ;;  %v4895_v60 = vld [vmem:[%s6035_s26 + $0x8] sm:$0xff]  }
0x1b7e   : > { %4741 = vmatprep.subr.bf16.mxu0 %v4894_v57 }
0x1b80   : > { %4720 = vmatpush3.bf16.msra.mxu1 %v4889_v32 }
0x1b81   : > { %4733 = vmatprep.subr.bf16.mxu1 %v4891_v40 }
0x1c4e   : > { %v4715_v33 = vpop.f32.mrb[56].mxu1 }
0x1c4f   : > { %v3621_v34 = vpop.f32.mrb[57].mxu1 }
0x1c50   : > { %v4716_v35 = vpop.f32.mrb[58].mxu1 }
0x1c51   : > { %v4846_v36 = vpack.i.bf16 %v4716_v35, %v4715_v33  ;;  %v3624_v42 = vpop.f32.mrb[59].mxu1 }
0x1c52   : > { %v4841_v44 = vpack.i.bf16 %v3624_v42, %v3621_v34 }
0x1c53   : > { %4847 = vrot.lane.b32.xlu1 %v4846_v36, %s6082_s11 }
0x1c54   : > { %4842 = vrot.lane.b32.xlu0 %v4841_v44, %s6082_s11 }
0x1cc5   : > { %v4848_v55 = vpop.permute.xlu1 %4847 }
0x1cc6   : > { %v4850_v63 = vunpack.i.h.bf16 %v4848_v55  ;;  %v4849_v62 = vunpack.i.l.bf16 %v4848_v55  ;;  %v4843_v2 = vpop.permute.xlu0 %4842 }
0x1cc7   : > { %v4845_v3 = vunpack.i.h.bf16 %v4843_v2  ;;  %v4844_v12 = vunpack.i.l.bf16 %v4843_v2  ;;  %v4898_v2 = vld [vmem:[%s6035_s26 + $0x20] sm:$0xff]  }
0x1cc8   : > { %v3695_v38 = vsel %vm2231_vm3, %v3691_v27, %v4850_v63  ;;  %v3694_v59 = vsel %vm2231_vm3, %v3690_v29, %v4849_v62  ;;  %v4896_v63 = vld [vmem:[%s6035_s26 + $0x10] sm:$0xff]   ;;  %v4897_v62 = vld [vmem:[%s6035_s26 + $0x18] sm:$0xff]   ;;  %v4899_v29 = vld [vmem:[%s6035_s26 + $0x28] sm:$0xff]  }
0x1cc9   : > { %v3697_v28 = vpack.c.bf16 %v3695_v38, %v3694_v59  ;;  %v3692_v61 = vsel %vm2231_vm3, %v3688_v4, %v4844_v12  ;;  %v3693_v0 = vsel %vm2231_vm3, %v3689_v13, %v4845_v3  ;;  %v4900_v27 = vld [vmem:[%s6035_s26 + $0x30] sm:$0xff]   ;;  %v4901_v3 = vld [vmem:[%s6035_s26 + $0x38] sm:$0xff]  }
0x1cca   : > { %v3696_v58 = vpack.c.bf16 %v3693_v0, %v3692_v61 }
0x1ccc   : > { %4721 = vmatprep.mubr.msk.bf16.mxu1 %vm1091_vm1, %v3696_v58 }
0x1ccd   : > { %4722 = vmatmul.mubr.msk.bf16.vlgmr.msra.gmra.mrb[60].mxu1 %vm1091_vm1, %v3697_v28 }
0x1cce   : > { %4734 = vmatpush3.bf16.msra.mxu1 %v4891_v40 }
0x1ccf   : > { %4735 = vmatprep.subr.bf16.mxu1 %v4893_v21 }
0x1cd2   : > { %4736 = vmatpush3.bf16.msra.mxu1 %v4893_v21 }
0x1da0   : > { %v4723_v1 = vpop.f32.mrb[60].mxu1 }
0x1da1   : > { %v3750_v56 = vpop.f32.mrb[61].mxu1  ;;  %v5924_v8 = vadd.f32 %v4723_v1, %v5684_v10 }
0x1da2   : > { %v5927_v41 = vadd.f32 %v3750_v56, %v5675_v26  ;;  %v4724_v16 = vpop.f32.mrb[62].mxu1 }
0x1da3   : > { %v3753_v43 = vpop.f32.mrb[63].mxu1  ;;  %v5935_v17 = vadd.f32 %v4724_v16, %v5689_v9  ;;  %v3771_v26 = vmul.f32 %v5924_v8, %v5924_v8 }
0x1da4   : > { %v5930_v5 = vadd.f32 %v3753_v43, %v5679_v25  ;;  %v3769_v6 = vmul.f32 %v5927_v41, %v5927_v41 }
0x1da5   : > { %v3779_v25 = vsel %vm1091_vm1, %v3771_v26, 0.0  ;;  %v3772_v20 = vmul.f32 %v5935_v17, %v5935_v17 }
0x1da6   : > { %v3773_v39 = vsel %vm1091_vm1, %v3769_v6, 0.0  ;;  %v3770_v10 = vmul.f32 %v5930_v5, %v5930_v5 }
0x1da7   : > { %3774 = vadd.xlane.f32.xlu0 %v3773_v39  ;;  %v3782_v9 = vsel %vm1091_vm1, %v3772_v20, 0.0 }
0x1da8   : > { %v3776_v19 = vsel %vm1091_vm1, %v3770_v10, 0.0 }
0x1da9   : > { %3777 = vadd.xlane.f32.xlu1 %v3776_v19 }
0x1dab   : > { %3780 = vadd.xlane.f32.xlu0 %v3779_v25 }
0x1daf   : > { %3783 = vadd.xlane.f32.xlu0 %v3782_v9 }
0x1e34   : > { %v3775_v22 = vpop.xlane.xlu0 %3774 }
0x1e35   : > { %v3785_v23 = vmul.f32 0.03125, %v3775_v22 }
0x1e36   : > { %v3778_v24 = vpop.xlane.xlu1 %3777 }
0x1e37   : > { %v3789_v30 = vadd.f32 1e-06, %v3785_v23  ;;  %v3786_v31 = vmul.f32 0.03125, %v3778_v24 }
0x1e38   : > { %v3781_v32 = vpop.xlane.xlu0 %3780 }
0x1e39   : > { %5086 = vrsqrt.f32 %v3789_v30  ;;  %v3790_v33 = vadd.f32 1e-06, %v3786_v31  ;;  %v3787_v34 = vmul.f32 0.03125, %v3781_v32 }
0x1e3b   : > { %5088 = vrsqrt.f32 %v3790_v33  ;;  %v3791_v35 = vadd.f32 1e-06, %v3787_v34 }
0x1e3c   : > { %v3784_v36 = vpop.xlane.xlu0 %3783 }
0x1e3d   : > { %5090 = vrsqrt.f32 %v3791_v35  ;;  %v3788_v42 = vmul.f32 0.03125, %v3784_v36 }
0x1e3f   : > { %v3792_v44 = vadd.f32 1e-06, %v3788_v42 }
0x1e41   : > { %5092 = vrsqrt.f32 %v3792_v44 }
0x1e43   : > { %v5087_v45 = vpop.eup %5086 }
0x1e44   : > { %v3797_v46 = vmul.f32 %v5087_v45, %v5927_v41 }
0x1e45   : > { %v5089_v47 = vpop.eup %5088 }
0x1e46   : > { %v3798_v49 = vmul.f32 %v5089_v47, %v5930_v5  ;;  %v3807_v51 = vmul.f32 %v4287_v48, %v3797_v46 }
0x1e47   : > { %v5091_v50 = vpop.eup %5090 }
0x1e48   : > { %v3808_v52 = vmul.f32 %v4287_v48, %v3798_v49  ;;  %v3799_v7 = vmul.f32 %v5091_v50, %v5924_v8 }
0x1e4a   : > { %v3811_v11 = vpack.c.bf16 %v3808_v52, %v3807_v51  ;;  %v3809_v54 = vmul.f32 %v4287_v48, %v3799_v7 }
0x1e4b   : > { %v5093_v53 = vpop.eup %5092 }
0x1e4c   : > { %v3800_v15 = vmul.f32 %v5093_v53, %v5935_v17  ;;  %4729 = vmatprep.mubr.msk.bf16.mxu0 %vm1091_vm1, %v3811_v11  ;;  %4737 = vmatprep.mubr.msk.bf16.mxu1 %vm1091_vm1, %v3811_v11 }
0x1e4e   : > { %v3810_v14 = vmul.f32 %v4287_v48, %v3800_v15 }
0x1e50   : > { %v3812_v55 = vpack.c.bf16 %v3810_v14, %v3809_v54 }
0x1e52   : > { %4730 = vmatmul.mubr.msk.bf16.vlgmr.msra.gmra.mrb[56].mxu0 %vm1091_vm1, %v3812_v55  ;;  %4738 = vmatmul.mubr.msk.bf16.vlgmr.msra.gmra.mrb[64].mxu1 %vm1091_vm1, %v3812_v55 }
0x1e53   : > { %4742 = vmatpush3.bf16.msra.mxu0 %v4894_v57 }
0x1e54   : > { %4743 = vmatprep.subr.bf16.mxu0 %v4895_v60 }
0x1e57   : > { %4744 = vmatpush3.bf16.msra.mxu0 %v4895_v60 }
0x1e58   : > { %4745 = vmatprep.subr.bf16.mxu0 %v4896_v63 }
0x1e5b   : > { %4746 = vmatpush3.bf16.msra.mxu0 %v4896_v63 }
0x1e5c   : > { %4747 = vmatprep.subr.bf16.mxu0 %v4897_v62 }
0x1e5f   : > { %4748 = vmatpush3.bf16.msra.mxu0 %v4897_v62 }
0x1e60   : > { %4749 = vmatprep.subr.bf16.mxu0 %v4898_v2 }
0x1e63   : > { %4750 = vmatpush3.bf16.msra.mxu0 %v4898_v2 }
0x1e64   : > { %4751 = vmatprep.subr.bf16.mxu0 %v4899_v29 }
0x1e67   : > { %4752 = vmatpush3.bf16.msra.mxu0 %v4899_v29 }
0x1e68   : > { %4753 = vmatprep.subr.bf16.mxu0 %v4900_v27 }
0x1e6b   : > { %4754 = vmatpush3.bf16.msra.mxu0 %v4900_v27 }
0x1e6c   : > { %4755 = vmatprep.subr.bf16.mxu0 %v4901_v3 }
0x1e6f   : > { %4756 = vmatpush3.bf16.msra.mxu0 %v4901_v3 }
0x1f25   : > { %v4731_v12 = vpop.f32.mrb[56].mxu0  ;;  %v4739_v38 = vpop.f32.mrb[64].mxu1 }
0x1f26   : > { %v4298_v59 = vmul.f32 -1.442695, %v4731_v12  ;;  %v3865_v4 = vpop.f32.mrb[57].mxu0  ;;  %v3926_v13 = vpop.f32.mrb[65].mxu1 }
0x1f27   : > { %v4296_v28 = vmul.f32 -1.442695, %v3865_v4  ;;  %v4732_v61 = vpop.f32.mrb[58].mxu0  ;;  %v4740_v0 = vpop.f32.mrb[66].mxu1 }
0x1f28   : > { %5094 = vpow2.f32 %v4298_v59  ;;  %v4299_v58 = vmul.f32 -1.442695, %v4732_v61  ;;  %v3868_v1 = vpop.f32.mrb[59].mxu0  ;;  %v3929_v56 = vpop.f32.mrb[67].mxu1 }
0x1f29   : > { %5096 = vpow2.f32 %v4296_v28  ;;  %v4297_v16 = vmul.f32 -1.442695, %v3868_v1 }
0x1f2a   : > { %5098 = vpow2.f32 %v4299_v58 }
0x1f2b   : > { %5100 = vpow2.f32 %v4297_v16 }
0x1f32   : > { %v5095_v43 = vpop.eup %5094 }
0x1f33   : > { %v5097_v6 = vpop.eup %5096  ;;  %v3955_v39 = vadd.f32 1.0, %v5095_v43 }
0x1f34   : > { %v5099_v10 = vpop.eup %5098  ;;  %v3953_v26 = vadd.f32 1.0, %v5097_v6 }
0x1f35   : > { %v5101_v19 = vpop.eup %5100  ;;  %5102 = vrcp.f32 %v3955_v39  ;;  %v3956_v25 = vadd.f32 1.0, %v5099_v10 }
0x1f36   : > { %5104 = vrcp.f32 %v3953_v26  ;;  %v3954_v20 = vadd.f32 1.0, %v5101_v19 }
0x1f37   : > { %5106 = vrcp.f32 %v3956_v25 }
0x1f38   : > { %5108 = vrcp.f32 %v3954_v20 }
0x1f3f   : > { %v5103_v9 = vpop.eup %5102 }
0x1f40   : > { %v5105_v37 = vpop.eup %5104  ;;  %v3967_v40 = vmul.f32 %v5103_v9, %v4731_v12 }
0x1f41   : > { %v5107_v18 = vpop.eup %5106  ;;  %v3965_v21 = vmul.f32 %v5105_v37, %v3865_v4 }
0x1f42   : > { %v5109_v22 = vpop.eup %5108  ;;  %v3971_v23 = vmul.f32 %v4739_v38, %v3967_v40  ;;  %v3968_v24 = vmul.f32 %v5107_v18, %v4732_v61 }
0x1f43   : > { %v3969_v30 = vmul.f32 %v3965_v21, %v3926_v13  ;;  %v3966_v31 = vmul.f32 %v5109_v22, %v3868_v1 }
0x1f44   : > { %v3972_v32 = vmul.f32 %v4740_v0, %v3968_v24 }
0x1f45   : > { %v3970_v33 = vmul.f32 %v3966_v31, %v3929_v56 }
0x1f46   : > { %v3974_v34 = vpack.c.bf16 %v3972_v32, %v3971_v23 }
0x1f47   : > { %v3973_v35 = vpack.c.bf16 %v3970_v33, %v3969_v30 }
0x1f49   : > { %4757 = vmatprep.mubr.bf16.mxu0 %v3973_v35 }
0x1f4a   : > { %4758 = vmatmul.mubr.bf16.vlgmr.msra.gmra.mrb[60].mxu0 %v3974_v34 }
0x201d   : > { %v4759_v36 = vpop.f32.mrb[60].mxu0 }
0x201e   : > { %v4074_v42 = vadd.f32 %v4759_v36, %v5924_v8  ;;  %v4057_v44 = vpop.f32.mrb[61].mxu0 }
0x201f   : > { %v4072_v45 = vadd.f32 %v4057_v44, %v5927_v41  ;;  %v4760_v46 = vpop.f32.mrb[62].mxu0 }
0x2020   : > { %4078 = vst.msk [vmem:[%s872_s8 + $0x10] sm:$0xff] %vm1091_vm1, %v4074_v42  ;;  %v4075_v47 = vadd.f32 %v4760_v46, %v5935_v17  ;;  %v4060_v48 = vpop.f32.mrb[63].mxu0 }
0x2021   : > { %4076 = vst.msk [vmem:[%s872_s8] sm:$0xff] %vm1091_vm1, %v4072_v45  ;;  %v4073_v49 = vadd.f32 %v4060_v48, %v5930_v5 }
0x2022   : > { %4079 = vst.msk [vmem:[%s872_s8 + $0x18] sm:$0xff] %vm1091_vm1, %v4075_v47 }
0x2023   : > { %4077 = vst.msk [vmem:[%s872_s8 + $0x8] sm:$0xff] %vm1091_vm1, %v4073_v49 }
0x2024 PF: > { %s37_s7 = sadd.s32 1, %s5117_s7  }
0x2025   : > { %p34_p4 = scmp.ge.s32.totalorder %s37_s7, 4  }
0x2027   :  { %36 = sbr.rel (!%p34_p4) target bundleno = 13 (0xd), region = 167 }

</bundles_post_ra>
